<compile_context>
chip_gen: v7x
topology: tpu7x:2x2x1
jax: 0.10.0
libtpu: 0.0.40
codegen_flags: <defaults>
</compile_context>

<pallas_src>
import jax
import jax.numpy as jnp
from jax.experimental import pallas as pl
from jax.experimental.pallas import tpu as pltpu

RESNET_OUT = 2048
FC1, FC2, FC3, FC4 = 1024, 512, 256, 128
LN_OUT = 1
EPS = 1e-5


def fpn_head_kernel(p_ref, w1_ref, b1_ref, w2_ref, b2_ref, w3_ref, b3_ref,
                    w4_ref, b4_ref, w5_ref, b5_ref, out_ref):
    # Single grid step: everything (pooled activations + all weights) is
    # resident in VMEM.  Linear+bias -> ReLU; BatchNorm1d (eval) is pre-folded
    # into the NEXT layer's weight/bias in the wrapper; Dropout is identity at
    # inference.  All dots accumulate in f32 on the MXU.
    h = jnp.maximum(
        jnp.dot(p_ref[...], w1_ref[...],
                preferred_element_type=jnp.float32) + b1_ref[...], 0.0)
    h = jnp.maximum(
        jnp.dot(h.astype(jnp.bfloat16), w2_ref[...],
                preferred_element_type=jnp.float32) + b2_ref[...], 0.0)
    h = jnp.maximum(
        jnp.dot(h.astype(jnp.bfloat16), w3_ref[...],
                preferred_element_type=jnp.float32) + b3_ref[...], 0.0)
    h = jnp.maximum(
        jnp.dot(h.astype(jnp.bfloat16), w4_ref[...],
                preferred_element_type=jnp.float32) + b4_ref[...], 0.0)
    # Final 128 -> 1 layer: VPU multiply + lane reduce (w5 passed as a (1, 128)
    # row) instead of wasting a full MXU tile on N=1.
    out_ref[...] = (jnp.sum(h * w5_ref[...], axis=-1, keepdims=True)
                    + b5_ref[...])


def make_params(key):
    """Deterministic synthetic parameters matching the module's layer shapes."""
    dims = [(RESNET_OUT, FC1), (FC1, FC2), (FC2, FC3), (FC3, FC4), (FC4, LN_OUT)]
    params = []
    for d_in, d_out in dims:
        key, kw, kb = jax.random.split(key, 3)
        w = jax.random.normal(kw, (d_in, d_out), jnp.float32) * (1.0 / jnp.sqrt(d_in))
        b = jax.random.normal(kb, (1, d_out), jnp.float32) * 0.01
        params.append((w, b))
    # BatchNorm1d (eval mode) running stats + affine, expressed as scale/shift.
    bns = []
    for feat in [FC1, FC2, FC3, FC4]:
        key, km, kv, kg, kbt = jax.random.split(key, 5)
        mean = jax.random.normal(km, (1, feat), jnp.float32) * 0.1
        var = 1.0 + 0.1 * jax.random.uniform(kv, (1, feat), jnp.float32)
        gamma = 1.0 + 0.05 * jax.random.normal(kg, (1, feat), jnp.float32)
        beta = 0.05 * jax.random.normal(kbt, (1, feat), jnp.float32)
        scale = gamma / jnp.sqrt(var + EPS)
        shift = beta - mean * scale
        bns.append((scale, shift))
    return params, bns


def fold_and_prepare(params, bns):
    """Fold eval-mode BN1d into the following Linear; cast big weights to bf16.

    Module order is Linear -> ReLU -> BatchNorm1d -> Dropout, so the BN sits
    AFTER the ReLU of layer i and BEFORE the Linear of layer i+1:
        (a * s + t) @ W + b  ==  a @ (s^T * W) + (t @ W + b)
    """
    (w1, b1), rest = params[0], params[1:]
    folded = [(w1, b1)]
    for (s, t), (w, b) in zip(bns, rest):
        folded.append((s.reshape(-1, 1) * w, t @ w + b))
    (w1, b1), (w2, b2), (w3, b3), (w4, b4), (w5, b5) = folded
    return dict(
        w1=w1.astype(jnp.bfloat16), b1=b1,
        w2=w2.astype(jnp.bfloat16), b2=b2,
        w3=w3.astype(jnp.bfloat16), b3=b3,
        w4=w4.astype(jnp.bfloat16), b4=b4,
        w5_row=w5.T,  # (1, FC4), kept f32 (tiny; used by the VPU reduce)
        b5=b5,        # (1, LN_OUT)
    )


def fpn_head_pallas(c5_nchw, params, bns):
    """c5_nchw: (B, 2048, H, W) float32  ->  (B, LN_OUT) float32."""
    B, C, H, W = c5_nchw.shape
    assert C == RESNET_OUT
    assert LN_OUT == 1   # final layer implemented as a lane reduce
    # Single (un-tiled) batch block: guard against VMEM blowup at large B
    # (add an M grid axis before reusing beyond this).
    assert B <= 256, "add an M (batch) grid axis for large batches"

    # AdaptiveAvgPool2d((1,1)) + flatten on the native NCHW layout (plain XLA).
    # No relayout and no full-c5 DMA: only (B, 2048) bf16 enters the kernel.
    pooled = jnp.mean(c5_nchw, axis=(2, 3)).astype(jnp.bfloat16)

    p = fold_and_prepare(params, bns)

    # Advisory cost hint for XLA's scheduler around the custom call.
    flops = 2 * B * (RESNET_OUT * FC1 + FC1 * FC2 + FC2 * FC3
                     + FC3 * FC4 + FC4 * LN_OUT)
    bytes_accessed = 2 * (RESNET_OUT * FC1 + FC1 * FC2 + FC2 * FC3
                          + FC3 * FC4 + B * RESNET_OUT) \
        + 4 * (FC1 + FC2 + FC3 + FC4 + FC4 + LN_OUT + B * LN_OUT)
    cost = pl.CostEstimate(flops=flops, transcendentals=0,
                           bytes_accessed=bytes_accessed)

    grid_spec = pltpu.PrefetchScalarGridSpec(
        num_scalar_prefetch=0,
        grid=(1,),  # single step: weight DMA dominates, pipelining hides nothing
        in_specs=[
            pl.BlockSpec((B, RESNET_OUT), lambda k: (0, 0)),   # pooled (bf16)
            pl.BlockSpec((RESNET_OUT, FC1), lambda k: (0, 0)),  # w1 (bf16)
            pl.BlockSpec((1, FC1), lambda k: (0, 0)),           # b1
            pl.BlockSpec((FC1, FC2), lambda k: (0, 0)),         # w2 (bf16)
            pl.BlockSpec((1, FC2), lambda k: (0, 0)),           # b2
            pl.BlockSpec((FC2, FC3), lambda k: (0, 0)),         # w3 (bf16)
            pl.BlockSpec((1, FC3), lambda k: (0, 0)),           # b3
            pl.BlockSpec((FC3, FC4), lambda k: (0, 0)),         # w4 (bf16)
            pl.BlockSpec((1, FC4), lambda k: (0, 0)),           # b4
            pl.BlockSpec((1, FC4), lambda k: (0, 0)),           # w5 row (f32)
            pl.BlockSpec((1, LN_OUT), lambda k: (0, 0)),        # b5
        ],
        out_specs=pl.BlockSpec((B, LN_OUT), lambda k: (0, 0)),
    )

    return pl.pallas_call(
        fpn_head_kernel,
        out_shape=jax.ShapeDtypeStruct((B, LN_OUT), jnp.float32),
        grid_spec=grid_spec,
        compiler_params=pltpu.CompilerParams(
            dimension_semantics=("arbitrary",),
            vmem_limit_bytes=32 * 1024 * 1024,   # fits v5e/v6e/v7x
        ),
        cost_estimate=cost,
    )(pooled, p["w1"], p["b1"], p["w2"], p["b2"], p["w3"], p["b3"],
      p["w4"], p["b4"], p["w5_row"], p["b5"])


def fpn_head_ref(c5_nchw, params, bns):
    """Pure-JAX reference mirroring the PyTorch eval-mode forward (full f32)."""
    pooled = jnp.mean(c5_nchw, axis=(2, 3))  # AdaptiveAvgPool2d((1,1)) + flatten
    h = pooled
    for (w, b), (sc, sh) in zip(params[:4], bns):
        h = jnp.maximum(h @ w + b, 0.0)      # Linear + ReLU
        h = h * sc + sh                      # BatchNorm1d (eval); Dropout = id
    w5, b5 = params[4]
    return h @ w5 + b5


if __name__ == "__main__":
    key = jax.random.PRNGKey(0)
    key, kx = jax.random.split(key)

    # Small synthetic c5 feature map (backbone output), NCHW.
    B, H, W = 4, 4, 4
    c5 = jax.random.normal(kx, (B, RESNET_OUT, H, W), jnp.float32)

    params, bns = make_params(key)

    out = fpn_head_pallas(c5, params, bns)
    out = jax.block_until_ready(out)

    ref = fpn_head_ref(c5, params, bns)
    assert out.shape == (B, LN_OUT), out.shape
    # Tolerance accounts for bf16-cast weights/activations in the kernel;
    # the reference runs in full f32 with unfolded BatchNorm.
    assert jnp.allclose(out, ref, atol=2e-2, rtol=2e-2), (out, ref)

    print("KERNEL_OK")
</pallas_src>

<mosaic_0001>
module attributes {stable_mosaic.version = 11 : i64} {
  func.func @fpn_head_kernel(%arg0: i32, %arg1: memref<4x2048xbf16, #tpu.memory_space<vmem>>, %arg2: memref<2048x1024xbf16, #tpu.memory_space<vmem>>, %arg3: memref<1x1024xf32, #tpu.memory_space<vmem>>, %arg4: memref<1024x512xbf16, #tpu.memory_space<vmem>>, %arg5: memref<1x512xf32, #tpu.memory_space<vmem>>, %arg6: memref<512x256xbf16, #tpu.memory_space<vmem>>, %arg7: memref<1x256xf32, #tpu.memory_space<vmem>>, %arg8: memref<256x128xbf16, #tpu.memory_space<vmem>>, %arg9: memref<1x128xf32, #tpu.memory_space<vmem>>, %arg10: memref<1x128xf32, #tpu.memory_space<vmem>>, %arg11: memref<1x1xf32, #tpu.memory_space<vmem>>, %arg12: memref<4x1xf32, #tpu.memory_space<vmem>>) attributes {dimension_semantics = [#tpu.dimension_semantics<arbitrary>], iteration_bounds = array<i64: 1>, scalar_prefetch = 0 : i64, scratch_operands = 0 : i64, tpu.core_type = #tpu.core_type<tc>, window_params = [{pipeline_mode = #tpu.pipeline_mode<synchronous>, transform_indices = @transform_0, window_bounds = array<i64: 4, 2048>}, {pipeline_mode = #tpu.pipeline_mode<synchronous>, transform_indices = @transform_1, window_bounds = array<i64: 2048, 1024>}, {pipeline_mode = #tpu.pipeline_mode<synchronous>, transform_indices = @transform_2, window_bounds = array<i64: 1, 1024>}, {pipeline_mode = #tpu.pipeline_mode<synchronous>, transform_indices = @transform_3, window_bounds = array<i64: 1024, 512>}, {pipeline_mode = #tpu.pipeline_mode<synchronous>, transform_indices = @transform_4, window_bounds = array<i64: 1, 512>}, {pipeline_mode = #tpu.pipeline_mode<synchronous>, transform_indices = @transform_5, window_bounds = array<i64: 512, 256>}, {pipeline_mode = #tpu.pipeline_mode<synchronous>, transform_indices = @transform_6, window_bounds = array<i64: 1, 256>}, {pipeline_mode = #tpu.pipeline_mode<synchronous>, transform_indices = @transform_7, window_bounds = array<i64: 256, 128>}, {pipeline_mode = #tpu.pipeline_mode<synchronous>, transform_indices = @transform_8, window_bounds = array<i64: 1, 128>}, {pipeline_mode = #tpu.pipeline_mode<synchronous>, transform_indices = @transform_9, window_bounds = array<i64: 1, 128>}, {pipeline_mode = #tpu.pipeline_mode<synchronous>, transform_indices = @transform_10, window_bounds = array<i64: 1, 1>}, {pipeline_mode = #tpu.pipeline_mode<synchronous>, transform_indices = @transform_11, window_bounds = array<i64: 4, 1>}]} {
    %c0 = arith.constant 0 : index
    %c0_0 = arith.constant 0 : index
    %0 = vector.load %arg1[%c0, %c0_0] : memref<4x2048xbf16, #tpu.memory_space<vmem>>, vector<4x2048xbf16>
    %c0_1 = arith.constant 0 : index
    %c0_2 = arith.constant 0 : index
    %1 = vector.load %arg2[%c0_1, %c0_2] : memref<2048x1024xbf16, #tpu.memory_space<vmem>>, vector<2048x1024xbf16>
    %cst = arith.constant dense<0.000000e+00> : vector<4x1024xf32>
    %2 = tpu.matmul %0, %1, %cst {dimension_numbers = #tpu.dot_dimension_numbers<[1], [0], [0], [1], [0, 0, 1, 1], [], []>} : vector<4x2048xbf16>, vector<2048x1024xbf16>, vector<4x1024xf32> -> vector<4x1024xf32>
    %c0_3 = arith.constant 0 : index
    %c0_4 = arith.constant 0 : index
    %3 = vector.load %arg3[%c0_3, %c0_4] : memref<1x1024xf32, #tpu.memory_space<vmem>>, vector<1x1024xf32>
    %4 = vector.broadcast %3 : vector<1x1024xf32> to vector<4x1024xf32>
    %5 = arith.addf %2, %4 : vector<4x1024xf32>
    %cst_5 = arith.constant 0.000000e+00 : f32
    %6 = vector.broadcast %cst_5 : f32 to vector<4x1024xf32>
    %7 = arith.maximumf %5, %6 : vector<4x1024xf32>
    %8 = arith.truncf %7 : vector<4x1024xf32> to vector<4x1024xbf16>
    %c0_6 = arith.constant 0 : index
    %c0_7 = arith.constant 0 : index
    %9 = vector.load %arg4[%c0_6, %c0_7] : memref<1024x512xbf16, #tpu.memory_space<vmem>>, vector<1024x512xbf16>
    %cst_8 = arith.constant dense<0.000000e+00> : vector<4x512xf32>
    %10 = tpu.matmul %8, %9, %cst_8 {dimension_numbers = #tpu.dot_dimension_numbers<[1], [0], [0], [1], [0, 0, 1, 1], [], []>} : vector<4x1024xbf16>, vector<1024x512xbf16>, vector<4x512xf32> -> vector<4x512xf32>
    %c0_9 = arith.constant 0 : index
    %c0_10 = arith.constant 0 : index
    %11 = vector.load %arg5[%c0_9, %c0_10] : memref<1x512xf32, #tpu.memory_space<vmem>>, vector<1x512xf32>
    %12 = vector.broadcast %11 : vector<1x512xf32> to vector<4x512xf32>
    %13 = arith.addf %10, %12 : vector<4x512xf32>
    %cst_11 = arith.constant 0.000000e+00 : f32
    %14 = vector.broadcast %cst_11 : f32 to vector<4x512xf32>
    %15 = arith.maximumf %13, %14 : vector<4x512xf32>
    %16 = arith.truncf %15 : vector<4x512xf32> to vector<4x512xbf16>
    %c0_12 = arith.constant 0 : index
    %c0_13 = arith.constant 0 : index
    %17 = vector.load %arg6[%c0_12, %c0_13] : memref<512x256xbf16, #tpu.memory_space<vmem>>, vector<512x256xbf16>
    %cst_14 = arith.constant dense<0.000000e+00> : vector<4x256xf32>
    %18 = tpu.matmul %16, %17, %cst_14 {dimension_numbers = #tpu.dot_dimension_numbers<[1], [0], [0], [1], [0, 0, 1, 1], [], []>} : vector<4x512xbf16>, vector<512x256xbf16>, vector<4x256xf32> -> vector<4x256xf32>
    %c0_15 = arith.constant 0 : index
    %c0_16 = arith.constant 0 : index
    %19 = vector.load %arg7[%c0_15, %c0_16] : memref<1x256xf32, #tpu.memory_space<vmem>>, vector<1x256xf32>
    %20 = vector.broadcast %19 : vector<1x256xf32> to vector<4x256xf32>
    %21 = arith.addf %18, %20 : vector<4x256xf32>
    %cst_17 = arith.constant 0.000000e+00 : f32
    %22 = vector.broadcast %cst_17 : f32 to vector<4x256xf32>
    %23 = arith.maximumf %21, %22 : vector<4x256xf32>
    %24 = arith.truncf %23 : vector<4x256xf32> to vector<4x256xbf16>
    %c0_18 = arith.constant 0 : index
    %c0_19 = arith.constant 0 : index
    %25 = vector.load %arg8[%c0_18, %c0_19] : memref<256x128xbf16, #tpu.memory_space<vmem>>, vector<256x128xbf16>
    %cst_20 = arith.constant dense<0.000000e+00> : vector<4x128xf32>
    %26 = tpu.matmul %24, %25, %cst_20 {dimension_numbers = #tpu.dot_dimension_numbers<[1], [0], [0], [1], [0, 0, 1, 1], [], []>} : vector<4x256xbf16>, vector<256x128xbf16>, vector<4x128xf32> -> vector<4x128xf32>
    %c0_21 = arith.constant 0 : index
    %c0_22 = arith.constant 0 : index
    %27 = vector.load %arg9[%c0_21, %c0_22] : memref<1x128xf32, #tpu.memory_space<vmem>>, vector<1x128xf32>
    %28 = vector.broadcast %27 : vector<1x128xf32> to vector<4x128xf32>
    %29 = arith.addf %26, %28 : vector<4x128xf32>
    %cst_23 = arith.constant 0.000000e+00 : f32
    %30 = vector.broadcast %cst_23 : f32 to vector<4x128xf32>
    %31 = arith.maximumf %29, %30 : vector<4x128xf32>
    %c0_24 = arith.constant 0 : index
    %c0_25 = arith.constant 0 : index
    %32 = vector.load %arg10[%c0_24, %c0_25] : memref<1x128xf32, #tpu.memory_space<vmem>>, vector<1x128xf32>
    %33 = vector.broadcast %32 : vector<1x128xf32> to vector<4x128xf32>
    %34 = arith.mulf %31, %33 : vector<4x128xf32>
    %cst_26 = arith.constant dense<0.000000e+00> : vector<4xf32>
    %35 = vector.multi_reduction <add>, %34, %cst_26 [1] : vector<4x128xf32> to vector<4xf32>
    %36 = vector.shape_cast %35 : vector<4xf32> to vector<4x1xf32>
    %c0_27 = arith.constant 0 : index
    %c0_28 = arith.constant 0 : index
    %37 = vector.load %arg11[%c0_27, %c0_28] : memref<1x1xf32, #tpu.memory_space<vmem>>, vector<1x1xf32>
    %38 = vector.broadcast %37 : vector<1x1xf32> to vector<4x1xf32>
    %39 = arith.addf %36, %38 : vector<4x1xf32>
    %c0_29 = arith.constant 0 : index
    %c0_30 = arith.constant 0 : index
    %40 = vector.load %arg12[%c0_29, %c0_30] : memref<4x1xf32, #tpu.memory_space<vmem>>, vector<4x1xf32>
    tpu.vector_store %arg12[%c0_29, %c0_30], %39 {strides = array<i32>} : memref<4x1xf32, #tpu.memory_space<vmem>>, vector<4x1xf32>,
    return
  }
  func.func @transform_0(%arg0: i32) -> (i32, i32) {
    %c0_i32 = arith.constant 0 : i32
    %c0_i32_0 = arith.constant 0 : i32
    %c0_i32_1 = arith.constant 0 : i32
    return %c0_i32, %c0_i32_0 : i32, i32
  }
  func.func @transform_1(%arg0: i32) -> (i32, i32) {
    %c0_i32 = arith.constant 0 : i32
    %c0_i32_0 = arith.constant 0 : i32
    %c0_i32_1 = arith.constant 0 : i32
    return %c0_i32, %c0_i32_0 : i32, i32
  }
  func.func @transform_2(%arg0: i32) -> (i32, i32) {
    %c0_i32 = arith.constant 0 : i32
    %c0_i32_0 = arith.constant 0 : i32
    %c0_i32_1 = arith.constant 0 : i32
    return %c0_i32, %c0_i32_0 : i32, i32
  }
  func.func @transform_3(%arg0: i32) -> (i32, i32) {
    %c0_i32 = arith.constant 0 : i32
    %c0_i32_0 = arith.constant 0 : i32
    %c0_i32_1 = arith.constant 0 : i32
    return %c0_i32, %c0_i32_0 : i32, i32
  }
  func.func @transform_4(%arg0: i32) -> (i32, i32) {
    %c0_i32 = arith.constant 0 : i32
    %c0_i32_0 = arith.constant 0 : i32
    %c0_i32_1 = arith.constant 0 : i32
    return %c0_i32, %c0_i32_0 : i32, i32
  }
  func.func @transform_5(%arg0: i32) -> (i32, i32) {
    %c0_i32 = arith.constant 0 : i32
    %c0_i32_0 = arith.constant 0 : i32
    %c0_i32_1 = arith.constant 0 : i32
    return %c0_i32, %c0_i32_0 : i32, i32
  }
  func.func @transform_6(%arg0: i32) -> (i32, i32) {
    %c0_i32 = arith.constant 0 : i32
    %c0_i32_0 = arith.constant 0 : i32
    %c0_i32_1 = arith.constant 0 : i32
    return %c0_i32, %c0_i32_0 : i32, i32
  }
  func.func @transform_7(%arg0: i32) -> (i32, i32) {
    %c0_i32 = arith.constant 0 : i32
    %c0_i32_0 = arith.constant 0 : i32
    %c0_i32_1 = arith.constant 0 : i32
    return %c0_i32, %c0_i32_0 : i32, i32
  }
  func.func @transform_8(%arg0: i32) -> (i32, i32) {
    %c0_i32 = arith.constant 0 : i32
    %c0_i32_0 = arith.constant 0 : i32
    %c0_i32_1 = arith.constant 0 : i32
    return %c0_i32, %c0_i32_0 : i32, i32
  }
  func.func @transform_9(%arg0: i32) -> (i32, i32) {
    %c0_i32 = arith.constant 0 : i32
    %c0_i32_0 = arith.constant 0 : i32
    %c0_i32_1 = arith.constant 0 : i32
    return %c0_i32, %c0_i32_0 : i32, i32
  }
  func.func @transform_10(%arg0: i32) -> (i32, i32) {
    %c0_i32 = arith.constant 0 : i32
    %c0_i32_0 = arith.constant 0 : i32
    %c0_i32_1 = arith.constant 0 : i32
    return %c0_i32, %c0_i32_0 : i32, i32
  }
  func.func @transform_11(%arg0: i32) -> (i32, i32) {
    %c0_i32 = arith.constant 0 : i32
    %c0_i32_0 = arith.constant 0 : i32
    %c0_i32_1 = arith.constant 0 : i32
    return %c0_i32, %c0_i32_0 : i32, i32
  }
}

</mosaic_0001>

<bundles_post_ra>
// kernel: tpu_custom_call.1
= control target key start
LH: loop header
LB: loop body
LE: loop exit
PB: predicated region body
PF: predicated region fallthrough
CT: control target
= control target key end

     0   :  { %s13074_s0 = inlined_call_operand.hbm [shape: bf16[4,2048], index: 0, kind: input, shape index: {}]   ;;  %s13075_s1 = inlined_call_operand.hbm [shape: bf16[2048,1024], index: 1, kind: input, shape index: {}]   ;;  %s13076_s2 = inlined_call_operand.hbm [shape: f32[1,1024], index: 2, kind: input, shape index: {}]   ;;  %s13077_s3 = inlined_call_operand.hbm [shape: bf16[1024,512], index: 3, kind: input, shape index: {}]   ;;  %s13078_s4 = inlined_call_operand.hbm [shape: f32[1,512], index: 4, kind: input, shape index: {}]   ;;  %s13079_s5 = inlined_call_operand.hbm [shape: bf16[512,256], index: 5, kind: input, shape index: {}]   ;;  %s13080_s6 = inlined_call_operand.hbm [shape: f32[1,256], index: 6, kind: input, shape index: {}]   ;;  %s13081_s7 = inlined_call_operand.hbm [shape: bf16[256,128], index: 7, kind: input, shape index: {}]   ;;  %s13082_s8 = inlined_call_operand.hbm [shape: f32[1,128], index: 8, kind: input, shape index: {}]   ;;  %s13083_s9 = inlined_call_operand.hbm [shape: f32[1,128], index: 9, kind: input, shape index: {}]   ;;  %s13084_s10 = inlined_call_operand.<no memory space> [shape: f32[1,1], index: 10, kind: input, shape index: {}]   ;;  %s13085_s11 = inlined_call_operand.vmem [shape: f32[4,1], index: 11, kind: output, shape index: {}]  }
   0x1   :  { %v16_v0 = vstv %s13084_s10 }
   0x2   :  { %17 = vst [vmem:[#allocation2] sm:$0x1] %v16_v0 }
   0x3   :  { %18 = vsyncpa [#allocation4], 0 }
   0x4   :  { %19 = vsyncpa [#allocation6], 0 }
   0x5   :  { %20 = vsyncpa [#allocation9], 0 }
   0x6   :  { %21 = vsyncpa [#allocation12], 0 }
   0x7   :  { %22 = vsyncpa [#allocation15], 0 }
   0x8   :  { %23 = vsyncpa [#allocation18], 0  ;;  %s12645_s19 = smov [#allocation5]   ;;  %s12413_s23 = scalar_lea.hbm %s13075_s1, 131072 }
   0x9   :  { %s39_s20 = sshll.u32 %s12645_s19, 4  ;;  %p12414_p0 = scmp.ne.s32.totalorder %s13075_s1, %s12413_s23  ;;  %s40_s20 = int_to_ptr.vmem [resolvable:$true] %s39_s20 }
   0xa   :  { %p12417_p1 = scmp.lt.u32.totalorder %s12413_s23, %s13075_s1 }
   0xc   :  { %p12419_p2 = pnand %p12417_p1, %p12414_p0 }
   0xe   :  { %12422 = shalt.err (!%p12419_p2)
}
   0xf   :  { %s12423_s27 = scalar_lea.vmem %s40_s20, 131072  ;;  %p12428_p4 = scmp.lt.s32.totalorder %s40_s20, %s40_s20 }
  0x10   :  { %p12424_p3 = scmp.ne.s32.totalorder %s40_s20, %s12423_s27  ;;  %p12429_p5 = scmp.lt.s32.totalorder %s12423_s27, %s12423_s27 }
  0x12   :  { %p12430_p6 = por %p12429_p5, %p12428_p4 }
  0x14   :  { %p12431_p7 = pnand %p12430_p6, %p12424_p3 }
  0x16   :  { %12434 = shalt.err (!%p12431_p7)
}
  0x17   :  { %s12646_s28 = smov 512   ;;  %s12647_s29 = smov 32  }
  0x18   :  { %45 = dma.hbm_to_vmem [thread:$0]  %s13075_s1, 131072, %s40_s20, [#allocation6], %s12646_s28, %s12646_s28, %s12647_s29  }
  0x19   :  { %s12648_s13 = smov [#allocation8]   ;;  %s12435_s17 = scalar_lea.hbm %s13077_s3, 32768 }
  0x1a   :  { %s61_s14 = sshll.u32 %s12648_s13, 4  ;;  %p12436_p8 = scmp.ne.s32.totalorder %s13077_s3, %s12435_s17  ;;  %s62_s14 = int_to_ptr.vmem [resolvable:$true] %s61_s14 }
  0x1b   :  { %p12439_p9 = scmp.lt.u32.totalorder %s12435_s17, %s13077_s3 }
  0x1d   :  { %p12441_p10 = pnand %p12439_p9, %p12436_p8 }
  0x1f   :  { %12444 = shalt.err (!%p12441_p10)
}
  0x20   :  { %s12445_s23 = scalar_lea.vmem %s62_s14, 32768  ;;  %p12450_p12 = scmp.lt.s32.totalorder %s62_s14, %s62_s14 }
  0x21   :  { %p12446_p11 = scmp.ne.s32.totalorder %s62_s14, %s12445_s23  ;;  %p12451_p13 = scmp.lt.s32.totalorder %s12445_s23, %s12445_s23 }
  0x23   :  { %p12452_p0 = por %p12451_p13, %p12450_p12 }
  0x25   :  { %p12453_p1 = pnand %p12452_p0, %p12446_p11 }
  0x27   :  { %12456 = shalt.err (!%p12453_p1)
}
  0x28   :  { %s12649_s1 = smov 256   ;;  %s12650_s20 = smov 16  }
  0x29   :  { %67 = dma.hbm_to_vmem [thread:$0]  %s13077_s3, 32768, %s62_s14, [#allocation9], %s12649_s1, %s12649_s1, %s12650_s20  }
  0x2a   :  { %s12651_s26 = smov [#allocation11]   ;;  %s12457_s29 = scalar_lea.hbm %s13079_s5, 8192 }
  0x2b   :  { %s83_s10 = sshll.u32 %s12651_s26, 4  ;;  %p12458_p2 = scmp.ne.s32.totalorder %s13079_s5, %s12457_s29  ;;  %s84_s10 = int_to_ptr.vmem [resolvable:$true] %s83_s10 }
  0x2c   :  { %p12461_p3 = scmp.lt.u32.totalorder %s12457_s29, %s13079_s5 }
  0x2e   :  { %p12463_p4 = pnand %p12461_p3, %p12458_p2 }
  0x30   :  { %12466 = shalt.err (!%p12463_p4)
}
  0x31   :  { %s12467_s16 = scalar_lea.vmem %s84_s10, 8192  ;;  %p12472_p6 = scmp.lt.s32.totalorder %s84_s10, %s84_s10 }
  0x32   :  { %p12468_p5 = scmp.ne.s32.totalorder %s84_s10, %s12467_s16  ;;  %p12473_p7 = scmp.lt.s32.totalorder %s12467_s16, %s12467_s16 }
  0x34   :  { %p12474_p8 = por %p12473_p7, %p12472_p6 }
  0x36   :  { %p12475_p9 = pnand %p12474_p8, %p12468_p5 }
  0x38   :  { %12478 = shalt.err (!%p12475_p9)
}
  0x39   :  { %s12652_s3 = smov 128   ;;  %s12653_s14 = smov 8  }
  0x3a   :  { %89 = dma.hbm_to_vmem [thread:$0]  %s13079_s5, 8192, %s84_s10, [#allocation12], %s12652_s3, %s12652_s3, %s12653_s14  }
  0x3b   :  { %s12654_s19 = smov [#allocation14]   ;;  %s12479_s1 = scalar_lea.hbm %s13081_s7, 2048 }
  0x3c   :  { %s105_s21 = sshll.u32 %s12654_s19, 4  ;;  %p12480_p10 = scmp.ne.s32.totalorder %s13081_s7, %s12479_s1  ;;  %s106_s21 = int_to_ptr.vmem [resolvable:$true] %s105_s21 }
  0x3d   :  { %p12483_p11 = scmp.lt.u32.totalorder %s12479_s1, %s13081_s7 }
  0x3f   :  { %p12485_p12 = pnand %p12483_p11, %p12480_p10 }
  0x41   :  { %12488 = shalt.err (!%p12485_p12)
}
  0x42   :  { %s12489_s27 = scalar_lea.vmem %s106_s21, 2048  ;;  %p12494_p0 = scmp.lt.s32.totalorder %s106_s21, %s106_s21 }
  0x43   :  { %p12490_p13 = scmp.ne.s32.totalorder %s106_s21, %s12489_s27  ;;  %p12495_p1 = scmp.lt.s32.totalorder %s12489_s27, %s12489_s27 }
  0x45   :  { %p12496_p2 = por %p12495_p1, %p12494_p0 }
  0x47   :  { %p12497_p3 = pnand %p12496_p2, %p12490_p13 }
  0x49   :  { %12500 = shalt.err (!%p12497_p3)
}
  0x4a   :  { %s12655_s5 = smov 64   ;;  %s12656_s10 = smov 4  }
  0x4b   :  { %111 = dma.hbm_to_vmem [thread:$0]  %s13081_s7, 2048, %s106_s21, [#allocation15], %s12655_s5, %s12655_s5, %s12656_s10  }
  0x4c   :  { %s12657_s30 = smov [#allocation3]   ;;  %s12658_s13 = smov [#allocation7]  }
  0x4d   :  { %s30_s12 = sshll.u32 %s12657_s30, 4  ;;  %s52_s15 = sshll.u32 %s12658_s13, 4  ;;  %s31_s12 = int_to_ptr.vmem [resolvable:$true] %s30_s12  ;;  %s53_s15 = int_to_ptr.vmem [resolvable:$true] %s52_s15 }
  0x4e   :  { %s12501_s14 = scalar_lea.hbm %s13074_s0, 512 }
  0x4f   :  { %p12502_p4 = scmp.ne.s32.totalorder %s13074_s0, %s12501_s14  ;;  %p12505_p5 = scmp.lt.u32.totalorder %s12501_s14, %s13074_s0 }
  0x51   :  { %p12507_p6 = pnand %p12505_p5, %p12502_p4 }
  0x53   :  { %12510 = shalt.err (!%p12507_p6)
}
  0x54   :  { %s12511_s7 = scalar_lea.vmem %s31_s12, 512  ;;  %p12516_p8 = scmp.lt.s32.totalorder %s31_s12, %s31_s12 }
  0x55   :  { %p12512_p7 = scmp.ne.s32.totalorder %s31_s12, %s12511_s7  ;;  %p12517_p9 = scmp.lt.s32.totalorder %s12511_s7, %s12511_s7 }
  0x57   :  { %p12518_p10 = por %p12517_p9, %p12516_p8 }
  0x59   :  { %p12519_p11 = pnand %p12518_p10, %p12512_p7 }
  0x5b   :  { %12522 = shalt.err (!%p12519_p11)
}
  0x5c   :  { %33 = dma.hbm_to_vmem [thread:$0]  %s13074_s0, 512, %s31_s12, [#allocation4]  }
  0x5d   :  { %s12523_s24 = scalar_lea.hbm %s13076_s2, 128 }
  0x5e   :  { %p12524_p12 = scmp.ne.s32.totalorder %s13076_s2, %s12523_s24  ;;  %p12527_p13 = scmp.lt.u32.totalorder %s12523_s24, %s13076_s2 }
  0x60   :  { %p12529_p0 = pnand %p12527_p13, %p12524_p12 }
  0x62   :  { %12532 = shalt.err (!%p12529_p0)
}
  0x63   :  { %s12533_s10 = scalar_lea.vmem %s53_s15, 128  ;;  %p12538_p2 = scmp.lt.s32.totalorder %s53_s15, %s53_s15 }
  0x64   :  { %p12534_p1 = scmp.ne.s32.totalorder %s53_s15, %s12533_s10  ;;  %p12539_p3 = scmp.lt.s32.totalorder %s12533_s10, %s12533_s10 }
  0x66   :  { %p12540_p4 = por %p12539_p3, %p12538_p2 }
  0x68   :  { %p12541_p5 = pnand %p12540_p4, %p12534_p1 }
  0x6a   :  { %12544 = shalt.err (!%p12541_p5)
}
  0x6b   :  { %55 = dma.hbm_to_vmem [thread:$0]  %s13076_s2, 128, %s53_s15, [#allocation6]  }
  0x6c   :  { %s12659_s29 = smov [#allocation10]   ;;  %s12660_s12 = smov [#allocation13]  }
  0x6d   :  { %s74_s30 = sshll.u32 %s12659_s29, 4  ;;  %s96_s13 = sshll.u32 %s12660_s12, 4  ;;  %s75_s30 = int_to_ptr.vmem [resolvable:$true] %s74_s30  ;;  %s97_s13 = int_to_ptr.vmem [resolvable:$true] %s96_s13 }
  0x6e   :  { %s12545_s14 = scalar_lea.hbm %s13078_s4, 64 }
  0x6f   :  { %p12546_p6 = scmp.ne.s32.totalorder %s13078_s4, %s12545_s14  ;;  %p12549_p7 = scmp.lt.u32.totalorder %s12545_s14, %s13078_s4 }
  0x71   :  { %p12551_p8 = pnand %p12549_p7, %p12546_p6 }
  0x73   :  { %12554 = shalt.err (!%p12551_p8)
}
  0x74   :  { %s12555_s2 = scalar_lea.vmem %s75_s30, 64  ;;  %p12560_p10 = scmp.lt.s32.totalorder %s75_s30, %s75_s30 }
  0x75   :  { %p12556_p9 = scmp.ne.s32.totalorder %s75_s30, %s12555_s2  ;;  %p12561_p11 = scmp.lt.s32.totalorder %s12555_s2, %s12555_s2 }
  0x77   :  { %p12562_p12 = por %p12561_p11, %p12560_p10 }
  0x79   :  { %p12563_p13 = pnand %p12562_p12, %p12556_p9 }
  0x7b   :  { %12566 = shalt.err (!%p12563_p13)
}
  0x7c   :  { %77 = dma.hbm_to_vmem [thread:$0]  %s13078_s4, 64, %s75_s30, [#allocation9]  }
  0x7d   :  { %s12567_s1 = scalar_lea.hbm %s13080_s6, 32 }
  0x7e   :  { %p12568_p0 = scmp.ne.s32.totalorder %s13080_s6, %s12567_s1  ;;  %p12571_p1 = scmp.lt.u32.totalorder %s12567_s1, %s13080_s6 }
  0x80   :  { %p12573_p2 = pnand %p12571_p1, %p12568_p0 }
  0x82   :  { %12576 = shalt.err (!%p12573_p2)
}
  0x83   :  { %s12577_s27 = scalar_lea.vmem %s97_s13, 32  ;;  %p12582_p4 = scmp.lt.s32.totalorder %s97_s13, %s97_s13 }
  0x84   :  { %p12578_p3 = scmp.ne.s32.totalorder %s97_s13, %s12577_s27  ;;  %p12583_p5 = scmp.lt.s32.totalorder %s12577_s27, %s12577_s27 }
  0x86   :  { %p12584_p6 = por %p12583_p5, %p12582_p4 }
  0x88   :  { %p12585_p7 = pnand %p12584_p6, %p12578_p3 }
  0x8a   :  { %12588 = shalt.err (!%p12585_p7)
}
  0x8b   :  { %99 = dma.hbm_to_vmem [thread:$0]  %s13080_s6, 32, %s97_s13, [#allocation12]  }
  0x8c   :  { %s12661_s10 = smov [#allocation16]   ;;  %s12662_s28 = smov [#allocation17]  }
  0x8d   :  { %s118_s0 = sshll.u32 %s12661_s10, 4  ;;  %s128_s29 = sshll.u32 %s12662_s28, 4  ;;  %s119_s0 = int_to_ptr.vmem [resolvable:$true] %s118_s0  ;;  %s129_s29 = int_to_ptr.vmem [resolvable:$true] %s128_s29 }
  0x8e   :  { %s12589_s16 = scalar_lea.hbm %s13082_s8, 16 }
  0x8f   :  { %p12590_p8 = scmp.ne.s32.totalorder %s13082_s8, %s12589_s16  ;;  %p12593_p9 = scmp.lt.u32.totalorder %s12589_s16, %s13082_s8 }
  0x91   :  { %p12595_p10 = pnand %p12593_p9, %p12590_p8 }
  0x93   :  { %12598 = shalt.err (!%p12595_p10)
}
  0x94   :  { %s12599_s6 = scalar_lea.vmem %s119_s0, 16  ;;  %s12603_s13 = scalar_lea.vmem %s119_s0, 32 }
  0x95   :  { %p12600_p11 = scmp.ne.s32.totalorder %s119_s0, %s12599_s6  ;;  %p12604_p12 = scmp.lt.s32.totalorder %s119_s0, %s119_s0 }
  0x96   :  { %p12605_p13 = scmp.lt.s32.totalorder %s12603_s13, %s12599_s6 }
  0x98   :  { %p12606_p0 = por %p12605_p13, %p12604_p12 }
  0x9a   :  { %p12607_p1 = pnand %p12606_p0, %p12600_p11 }
  0x9c   :  { %12610 = shalt.err (!%p12607_p1)
}
  0x9d   :  { %121 = dma.hbm_to_vmem [thread:$0]  %s13082_s8, 16, %s119_s0, [#allocation15]  }
  0x9e   :  { %s12611_s7 = scalar_lea.hbm %s13083_s9, 16 }
  0x9f   :  { %p12612_p2 = scmp.ne.s32.totalorder %s13083_s9, %s12611_s7  ;;  %p12615_p3 = scmp.lt.u32.totalorder %s12611_s7, %s13083_s9 }
  0xa1   :  { %p12617_p4 = pnand %p12615_p3, %p12612_p2 }
  0xa3   :  { %12620 = shalt.err (!%p12617_p4)
}
  0xa4   :  { %s12621_s24 = scalar_lea.vmem %s129_s29, 16  ;;  %s12625_s25 = scalar_lea.vmem %s129_s29, 32 }
  0xa5   :  { %p12622_p5 = scmp.ne.s32.totalorder %s129_s29, %s12621_s24  ;;  %p12626_p6 = scmp.lt.s32.totalorder %s129_s29, %s129_s29 }
  0xa6   :  { %p12627_p7 = scmp.lt.s32.totalorder %s12625_s25, %s12621_s24 }
  0xa8   :  { %p12628_p8 = por %p12627_p7, %p12626_p6 }
  0xaa   :  { %p12629_p9 = pnand %p12628_p8, %p12622_p5 }
  0xac   :  { %12632 = shalt.err (!%p12629_p9)
}
  0xad   :  { %131 = dma.hbm_to_vmem [thread:$0]  %s13083_s9, 16, %s129_s29, [#allocation18]  }
  0xae   :  { %12633 = dma.done.wait [#allocation4], 512  }
  0xaf   :  { %12634 = vsyncadd [#allocation4], 4294966784 }
  0xb0   :  { %12635 = dma.done.wait [#allocation6], 131200  }
  0xb1   :  { %12636 = vsyncadd [#allocation6], 4294836096 }
  0xb2   :  { %12637 = dma.done.wait [#allocation9], 32832  }
  0xb3   :  { %12638 = vsyncadd [#allocation9], 4294934464 }
  0xb4   :  { %12639 = dma.done.wait [#allocation12], 8224  }
  0xb5   :  { %12640 = vsyncadd [#allocation12], 4294959072 }
  0xb6   :  { %12641 = dma.done.wait [#allocation15], 2064  }
  0xb7   :  { %12642 = vsyncadd [#allocation15], 4294965232 }
  0xb8   :  { %12643 = dma.done.wait [#allocation18], 16  }
  0xb9   :  { %12644 = vsyncadd [#allocation18], 4294967280  ;;  %v169_v1 = vld [vmem:[#allocation5] sm:$0xff]  ;;  %v1195_v33 = vlaneseq  ;;  %v12663_v34 = vmov 1983009808   ;;  %vm10331_vm0 = vcmask 1043456  }
  0xba   :  { %v173_v2 = vld [vmem:[#allocation5 + $0x20] sm:$0xff]  ;;  %v1241_v35 = vunpack.c.l.s4 %v12663_v34  ;;  %vm10343_vm1 = vcmask 3072  }
  0xbb   :  { %v297_v3 = vld [vmem:[#allocation5 + $0x400] sm:$0xff]  ;;  %v10356_v4 = vcombine.high %v169_v1, %v173_v2  ;;  %v10355_v6 = vcombine.low %v169_v1, %v173_v2  ;;  %v12847_v44 = vshrl.u32 %v1195_v33, 7 }
  0xbc   :  { %v301_v5 = vld [vmem:[#allocation5 + $0x420] sm:$0xff]  ;;  %v1242_v45 = vunpack.c.0.s8 %v1241_v35 }
  0xbd   :  { %v177_v7 = vld [vmem:[#allocation5 + $0x40] sm:$0xff]  ;;  %v10484_v9 = vcombine.high %v297_v3, %v301_v5  ;;  %v10483_v10 = vcombine.low %v297_v3, %v301_v5  ;;  %6443 = vmatprep.subr.bf16.mxu1 %v10356_v4 }
  0xbe   :  { %v181_v8 = vld [vmem:[#allocation5 + $0x60] sm:$0xff]  ;;  %6444 = vmatpush1.bf16.msra.mxu1 %v10355_v6  ;;  %v12850_v54 = vsub.s32 %v1242_v45, %v12847_v44 }
  0xbf   :  { %v10364_v11 = vcombine.high %v177_v7, %v181_v8  ;;  %v305_v12 = vld [vmem:[#allocation5 + $0x440] sm:$0xff]  ;;  %6484 = vmatprep.subr.bf16.mxu0 %v10484_v9  ;;  %v10363_v19 = vcombine.low %v177_v7, %v181_v8 }
  0xc0   :  { %v309_v13 = vld [vmem:[#allocation5 + $0x460] sm:$0xff]  ;;  %6485 = vmatpush1.bf16.msra.mxu0 %v10483_v10 }
  0xc1   :  { %v185_v14 = vld [vmem:[#allocation5 + $0x80] sm:$0xff]  ;;  %v10492_v15 = vcombine.high %v305_v12, %v309_v13  ;;  %6445 = vmatprep.subr.bf16.mxu1 %v10364_v11  ;;  %v10491_v20 = vcombine.low %v305_v12, %v309_v13 }
  0xc2   :  { %v189_v16 = vld [vmem:[#allocation5 + $0xa0] sm:$0xff]  ;;  %6446 = vmatpush1.bf16.msra.mxu1 %v10363_v19 }
  0xc3   :  { %v313_v17 = vld [vmem:[#allocation5 + $0x480] sm:$0xff]  ;;  %v10372_v21 = vcombine.high %v185_v14, %v189_v16  ;;  %6486 = vmatprep.subr.bf16.mxu0 %v10492_v15  ;;  %v10371_v27 = vcombine.low %v185_v14, %v189_v16 }
  0xc4   :  { %v317_v18 = vld [vmem:[#allocation5 + $0x4a0] sm:$0xff]  ;;  %6487 = vmatpush1.bf16.msra.mxu0 %v10491_v20 }
  0xc5   :  { %v10500_v22 = vcombine.high %v313_v17, %v317_v18  ;;  %v193_v23 = vld [vmem:[#allocation5 + $0xc0] sm:$0xff]  ;;  %6447 = vmatprep.subr.bf16.mxu1 %v10372_v21  ;;  %v10499_v28 = vcombine.low %v313_v17, %v317_v18 }
  0xc6   :  { %v197_v24 = vld [vmem:[#allocation5 + $0xe0] sm:$0xff]  ;;  %6448 = vmatpush1.bf16.msra.mxu1 %v10371_v27 }
  0xc7   :  { %v321_v25 = vld [vmem:[#allocation5 + $0x4c0] sm:$0xff]  ;;  %v10380_v29 = vcombine.high %v193_v23, %v197_v24  ;;  %6488 = vmatprep.subr.bf16.mxu0 %v10500_v22  ;;  %v10379_v38 = vcombine.low %v193_v23, %v197_v24 }
  0xc8   :  { %v325_v26 = vld [vmem:[#allocation5 + $0x4e0] sm:$0xff]  ;;  %6489 = vmatpush1.bf16.msra.mxu0 %v10499_v28 }
  0xc9   :  { %v10508_v30 = vcombine.high %v321_v25, %v325_v26  ;;  %v201_v31 = vld [vmem:[#allocation5 + $0x100] sm:$0xff]  ;;  %6449 = vmatprep.subr.bf16.mxu1 %v10380_v29  ;;  %v10507_v39 = vcombine.low %v321_v25, %v325_v26 }
  0xca   :  { %v205_v32 = vld [vmem:[#allocation5 + $0x120] sm:$0xff]  ;;  %6450 = vmatpush1.bf16.msra.mxu1 %v10379_v38 }
  0xcb   :  { %v329_v36 = vld [vmem:[#allocation5 + $0x500] sm:$0xff]  ;;  %v10388_v40 = vcombine.high %v201_v31, %v205_v32  ;;  %6490 = vmatprep.subr.bf16.mxu0 %v10508_v30  ;;  %v10387_v48 = vcombine.low %v201_v31, %v205_v32 }
  0xcc   :  { %v333_v37 = vld [vmem:[#allocation5 + $0x520] sm:$0xff]  ;;  %6491 = vmatpush1.bf16.msra.mxu0 %v10507_v39 }
  0xcd   :  { %v10516_v41 = vcombine.high %v329_v36, %v333_v37  ;;  %v209_v42 = vld [vmem:[#allocation5 + $0x140] sm:$0xff]  ;;  %6451 = vmatprep.subr.bf16.mxu1 %v10388_v40  ;;  %v10515_v49 = vcombine.low %v329_v36, %v333_v37 }
  0xce   :  { %v213_v43 = vld [vmem:[#allocation5 + $0x160] sm:$0xff]  ;;  %6452 = vmatpush1.bf16.msra.mxu1 %v10387_v48 }
  0xcf   :  { %v337_v46 = vld [vmem:[#allocation5 + $0x540] sm:$0xff]  ;;  %v10396_v50 = vcombine.high %v209_v42, %v213_v43  ;;  %6492 = vmatprep.subr.bf16.mxu0 %v10516_v41  ;;  %v10395_v57 = vcombine.low %v209_v42, %v213_v43 }
  0xd0   :  { %v341_v47 = vld [vmem:[#allocation5 + $0x560] sm:$0xff]  ;;  %6493 = vmatpush1.bf16.msra.mxu0 %v10515_v49 }
  0xd1   :  { %v10524_v51 = vcombine.high %v337_v46, %v341_v47  ;;  %v217_v52 = vld [vmem:[#allocation5 + $0x180] sm:$0xff]  ;;  %6453 = vmatprep.subr.bf16.mxu1 %v10396_v50  ;;  %v10523_v58 = vcombine.low %v337_v46, %v341_v47 }
  0xd2   :  { %v221_v53 = vld [vmem:[#allocation5 + $0x1a0] sm:$0xff]  ;;  %6454 = vmatpush1.bf16.msra.mxu1 %v10395_v57 }
  0xd3   :  { %v345_v55 = vld [vmem:[#allocation5 + $0x580] sm:$0xff]  ;;  %v10404_v59 = vcombine.high %v217_v52, %v221_v53  ;;  %6494 = vmatprep.subr.bf16.mxu0 %v10524_v51  ;;  %v10403_v4 = vcombine.low %v217_v52, %v221_v53 }
  0xd4   :  { %v349_v56 = vld [vmem:[#allocation5 + $0x5a0] sm:$0xff]  ;;  %6495 = vmatpush1.bf16.msra.mxu0 %v10523_v58 }
  0xd5   :  { %v165_v60 = vld [vmem:[#allocation3] sm:$0xff]  ;;  %v10532_v61 = vcombine.high %v345_v55, %v349_v56  ;;  %6455 = vmatprep.subr.bf16.mxu1 %v10404_v59  ;;  %v10531_v7 = vcombine.low %v345_v55, %v349_v56 }
  0xd6   :  { %v225_v62 = vld [vmem:[#allocation5 + $0x1c0] sm:$0xff]  ;;  %v12853_v0 = vrot.slane %v165_v60, %v12850_v54  ;;  %v1239_v1 = vcombine.high %v165_v60, %v165_v60  ;;  %6456 = vmatpush1.bf16.msra.mxu1 %v10403_v4 }
  0xd7   :  { %v229_v63 = vld [vmem:[#allocation5 + $0x1e0] sm:$0xff]  ;;  %6496 = vmatprep.subr.bf16.mxu0 %v10532_v61 }
  0xd8   :  { %v353_v2 = vld [vmem:[#allocation5 + $0x5c0] sm:$0xff]  ;;  %v12857_v5 = vcombine.high %v12853_v0, %v12853_v0  ;;  %v12860_v6 = vrot.slane %v1239_v1, %v12850_v54  ;;  %v10412_v8 = vcombine.high %v225_v62, %v229_v63  ;;  %v10411_v15 = vcombine.low %v225_v62, %v229_v63  ;;  %6497 = vmatpush1.bf16.msra.mxu0 %v10531_v7 }
  0xd9   :  { %v357_v3 = vld [vmem:[#allocation5 + $0x5e0] sm:$0xff] }
  0xda   :  { %v10540_v9 = vcombine.high %v353_v2, %v357_v3  ;;  %v233_v10 = vld [vmem:[#allocation5 + $0x200] sm:$0xff]  ;;  %6475 = vmatprep.mubr.bf16.mxu1 %v12857_v5  ;;  %v12865_v12 = vcombine.high %v12860_v6, %v12860_v6  ;;  %6457 = vmatprep.subr.bf16.mxu1 %v10412_v8  ;;  %v10539_v16 = vcombine.low %v353_v2, %v357_v3 }
  0xdb   :  { %v237_v11 = vld [vmem:[#allocation5 + $0x220] sm:$0xff]  ;;  %6458 = vmatpush1.bf16.msra.mxu1 %v10411_v15 }
  0xdc   :  { %v361_v13 = vld [vmem:[#allocation5 + $0x600] sm:$0xff]  ;;  %6516 = vmatprep.mubr.bf16.mxu0 %v12865_v12  ;;  %v10420_v17 = vcombine.high %v233_v10, %v237_v11  ;;  %6498 = vmatprep.subr.bf16.mxu0 %v10540_v9  ;;  %v10419_v23 = vcombine.low %v233_v10, %v237_v11 }
  0xdd   :  { %v365_v14 = vld [vmem:[#allocation5 + $0x620] sm:$0xff]  ;;  %6499 = vmatpush1.bf16.msra.mxu0 %v10539_v16 }
  0xde   :  { %v10548_v18 = vcombine.high %v361_v13, %v365_v14  ;;  %v241_v19 = vld [vmem:[#allocation5 + $0x240] sm:$0xff]  ;;  %6459 = vmatprep.subr.bf16.mxu1 %v10420_v17  ;;  %v10547_v24 = vcombine.low %v361_v13, %v365_v14  ;;  %v170_v17 = vld [vmem:[#allocation5 + $0x8] sm:$0xff] }
  0xdf   :  { %v245_v20 = vld [vmem:[#allocation5 + $0x260] sm:$0xff]  ;;  %6460 = vmatpush1.bf16.msra.mxu1 %v10419_v23 }
  0xe0   :  { %v369_v21 = vld [vmem:[#allocation5 + $0x640] sm:$0xff]  ;;  %v10428_v25 = vcombine.high %v241_v19, %v245_v20  ;;  %6500 = vmatprep.subr.bf16.mxu0 %v10548_v18  ;;  %v10427_v31 = vcombine.low %v241_v19, %v245_v20  ;;  %v174_v18 = vld [vmem:[#allocation5 + $0x28] sm:$0xff] }
  0xe1   :  { %v373_v22 = vld [vmem:[#allocation5 + $0x660] sm:$0xff]  ;;  %6501 = vmatpush1.bf16.msra.mxu0 %v10547_v24  ;;  %v10358_v24 = vcombine.high %v170_v17, %v174_v18 }
  0xe2   :  { %v10556_v26 = vcombine.high %v369_v21, %v373_v22  ;;  %v249_v27 = vld [vmem:[#allocation5 + $0x280] sm:$0xff]  ;;  %6461 = vmatprep.subr.bf16.mxu1 %v10428_v25  ;;  %v10555_v32 = vcombine.low %v369_v21, %v373_v22  ;;  %v12868_v21 = vld [vmem:[#allocation3 + $0x8] sm:$0xff] }
  0xe3   :  { %v253_v28 = vld [vmem:[#allocation5 + $0x2a0] sm:$0xff]  ;;  %6462 = vmatpush1.bf16.msra.mxu1 %v10427_v31  ;;  %v10357_v31 = vcombine.low %v170_v17, %v174_v18 }
  0xe4   :  { %v377_v29 = vld [vmem:[#allocation5 + $0x680] sm:$0xff]  ;;  %v10436_v33 = vcombine.high %v249_v27, %v253_v28  ;;  %6502 = vmatprep.subr.bf16.mxu0 %v10556_v26  ;;  %v10435_v39 = vcombine.low %v249_v27, %v253_v28  ;;  %v178_v26 = vld [vmem:[#allocation5 + $0x48] sm:$0xff]  ;;  %v12872_v28 = vrot.slane %v12868_v21, %v12850_v54 }
  0xe5   :  { %v381_v30 = vld [vmem:[#allocation5 + $0x6a0] sm:$0xff]  ;;  %6503 = vmatpush1.bf16.msra.mxu0 %v10555_v32  ;;  %v182_v27 = vld [vmem:[#allocation5 + $0x68] sm:$0xff] }
  0xe6   :  { %v10564_v34 = vcombine.high %v377_v29, %v381_v30  ;;  %v257_v35 = vld [vmem:[#allocation5 + $0x2c0] sm:$0xff]  ;;  %6463 = vmatprep.subr.bf16.mxu1 %v10436_v33  ;;  %v10563_v40 = vcombine.low %v377_v29, %v381_v30  ;;  %v10366_v33 = vcombine.high %v178_v26, %v182_v27 }
  0xe7   :  { %v261_v36 = vld [vmem:[#allocation5 + $0x2e0] sm:$0xff]  ;;  %6464 = vmatpush1.bf16.msra.mxu1 %v10435_v39  ;;  %v12876_v39 = vcombine.high %v12872_v28, %v12872_v28 }
  0xe8   :  { %v385_v37 = vld [vmem:[#allocation5 + $0x6c0] sm:$0xff]  ;;  %v10444_v41 = vcombine.high %v257_v35, %v261_v36  ;;  %6504 = vmatprep.subr.bf16.mxu0 %v10564_v34  ;;  %v10443_v48 = vcombine.low %v257_v35, %v261_v36  ;;  %v186_v36 = vld [vmem:[#allocation5 + $0x88] sm:$0xff] }
  0xe9   :  { %v389_v38 = vld [vmem:[#allocation5 + $0x6e0] sm:$0xff]  ;;  %6505 = vmatpush1.bf16.msra.mxu0 %v10563_v40  ;;  %v10365_v40 = vcombine.low %v178_v26, %v182_v27 }
  0xea   :  { %v10572_v42 = vcombine.high %v385_v37, %v389_v38  ;;  %v265_v43 = vld [vmem:[#allocation5 + $0x300] sm:$0xff]  ;;  %6465 = vmatprep.subr.bf16.mxu1 %v10444_v41  ;;  %v10571_v49 = vcombine.low %v385_v37, %v389_v38  ;;  %v190_v38 = vld [vmem:[#allocation5 + $0xa8] sm:$0xff] }
  0xeb   :  { %v269_v45 = vld [vmem:[#allocation5 + $0x320] sm:$0xff]  ;;  %6466 = vmatpush1.bf16.msra.mxu1 %v10443_v48  ;;  %v198_v48 = vld [vmem:[#allocation5 + $0xe8] sm:$0xff] }
  0xec   :  { %v393_v46 = vld [vmem:[#allocation5 + $0x700] sm:$0xff]  ;;  %v10452_v50 = vcombine.high %v265_v43, %v269_v45  ;;  %6506 = vmatprep.subr.bf16.mxu0 %v10572_v42  ;;  %v10451_v57 = vcombine.low %v265_v43, %v269_v45  ;;  %v10374_v42 = vcombine.high %v186_v36, %v190_v38 }
  0xed   :  { %v397_v47 = vld [vmem:[#allocation5 + $0x720] sm:$0xff]  ;;  %6507 = vmatpush1.bf16.msra.mxu0 %v10571_v49  ;;  %v10373_v49 = vcombine.low %v186_v36, %v190_v38 }
  0xee   :  { %v10580_v51 = vcombine.high %v393_v46, %v397_v47  ;;  %v273_v52 = vld [vmem:[#allocation5 + $0x340] sm:$0xff]  ;;  %6467 = vmatprep.subr.bf16.mxu1 %v10452_v50  ;;  %v10579_v58 = vcombine.low %v393_v46, %v397_v47  ;;  %v194_v46 = vld [vmem:[#allocation5 + $0xc8] sm:$0xff] }
  0xef   :  { %v277_v53 = vld [vmem:[#allocation5 + $0x360] sm:$0xff]  ;;  %6468 = vmatpush1.bf16.msra.mxu1 %v10451_v57  ;;  %v206_v57 = vld [vmem:[#allocation5 + $0x128] sm:$0xff] }
  0xf0   :  { %v401_v55 = vld [vmem:[#allocation5 + $0x740] sm:$0xff]  ;;  %v10460_v59 = vcombine.high %v273_v52, %v277_v53  ;;  %6508 = vmatprep.subr.bf16.mxu0 %v10580_v51  ;;  %v10459_v2 = vcombine.low %v273_v52, %v277_v53  ;;  %v10382_v51 = vcombine.high %v194_v46, %v198_v48 }
  0xf1   :  { %v405_v56 = vld [vmem:[#allocation5 + $0x760] sm:$0xff]  ;;  %6509 = vmatpush1.bf16.msra.mxu0 %v10579_v58  ;;  %v10381_v58 = vcombine.low %v194_v46, %v198_v48 }
  0xf2   :  { %v10588_v60 = vcombine.high %v401_v55, %v405_v56  ;;  %v281_v61 = vld [vmem:[#allocation5 + $0x380] sm:$0xff]  ;;  %6469 = vmatprep.subr.bf16.mxu1 %v10460_v59  ;;  %v10587_v3 = vcombine.low %v401_v55, %v405_v56  ;;  %v202_v55 = vld [vmem:[#allocation5 + $0x108] sm:$0xff] }
  0xf3   :  { %v285_v62 = vld [vmem:[#allocation5 + $0x3a0] sm:$0xff]  ;;  %6470 = vmatpush1.bf16.msra.mxu1 %v10459_v2  ;;  %v214_v2 = vld [vmem:[#allocation5 + $0x168] sm:$0xff] }
  0xf4   :  { %v409_v63 = vld [vmem:[#allocation5 + $0x780] sm:$0xff]  ;;  %v10468_v4 = vcombine.high %v281_v61, %v285_v62  ;;  %6510 = vmatprep.subr.bf16.mxu0 %v10588_v60  ;;  %v10467_v13 = vcombine.low %v281_v61, %v285_v62  ;;  %v10390_v60 = vcombine.high %v202_v55, %v206_v57 }
  0xf5   :  { %v413_v1 = vld [vmem:[#allocation5 + $0x7a0] sm:$0xff]  ;;  %6511 = vmatpush1.bf16.msra.mxu0 %v10587_v3  ;;  %v10389_v3 = vcombine.low %v202_v55, %v206_v57 }
  0xf6   :  { %v10596_v7 = vcombine.high %v409_v63, %v413_v1  ;;  %v289_v8 = vld [vmem:[#allocation5 + $0x3c0] sm:$0xff]  ;;  %6471 = vmatprep.subr.bf16.mxu1 %v10468_v4  ;;  %v10595_v14 = vcombine.low %v409_v63, %v413_v1  ;;  %v210_v63 = vld [vmem:[#allocation5 + $0x148] sm:$0xff] }
  0xf7   :  { %v293_v9 = vld [vmem:[#allocation5 + $0x3e0] sm:$0xff]  ;;  %6472 = vmatpush1.bf16.msra.mxu1 %v10467_v13  ;;  %v222_v13 = vld [vmem:[#allocation5 + $0x1a8] sm:$0xff] }
  0xf8   :  { %v417_v10 = vld [vmem:[#allocation5 + $0x7c0] sm:$0xff]  ;;  %v10476_v15 = vcombine.high %v289_v8, %v293_v9  ;;  %6512 = vmatprep.subr.bf16.mxu0 %v10596_v7  ;;  %v10475_v22 = vcombine.low %v289_v8, %v293_v9  ;;  %v10398_v7 = vcombine.high %v210_v63, %v214_v2 }
  0xf9   :  { %v421_v11 = vld [vmem:[#allocation5 + $0x7e0] sm:$0xff]  ;;  %6513 = vmatpush1.bf16.msra.mxu0 %v10595_v14  ;;  %v10397_v14 = vcombine.low %v210_v63, %v214_v2 }
  0xfa   :  { %v10604_v16 = vcombine.high %v417_v10, %v421_v11  ;;  %v425_v19 = vld [vmem:[#allocation5 + $0x800] sm:$0xff]  ;;  %6473 = vmatprep.subr.bf16.mxu1 %v10476_v15  ;;  %v10603_v23 = vcombine.low %v417_v10, %v421_v11  ;;  %v218_v10 = vld [vmem:[#allocation5 + $0x188] sm:$0xff] }
  0xfb   :  { %v429_v20 = vld [vmem:[#allocation5 + $0x820] sm:$0xff]  ;;  %6474 = vmatpush1.bf16.msra.mxu1 %v10475_v22  ;;  %v230_v22 = vld [vmem:[#allocation5 + $0x1e8] sm:$0xff] }
  0xfc   :  { %6514 = vmatprep.subr.bf16.mxu0 %v10604_v16  ;;  %v10612_v25 = vcombine.high %v425_v19, %v429_v20  ;;  %v433_v29 = vld [vmem:[#allocation5 + $0x840] sm:$0xff]  ;;  %v10611_v32 = vcombine.low %v425_v19, %v429_v20  ;;  %6771 = vmatprep.subr.bf16.mxu1 %v10358_v24  ;;  %v10406_v16 = vcombine.high %v218_v10, %v222_v13  ;;  %v226_v19 = vld [vmem:[#allocation5 + $0x1c8] sm:$0xff] }
  0xfd   :  { %v437_v30 = vld [vmem:[#allocation5 + $0x860] sm:$0xff]  ;;  %6515 = vmatpush1.bf16.msra.mxu0 %v10603_v23  ;;  %v10405_v23 = vcombine.low %v218_v10, %v222_v13 }
  0xfe   :  { %v441_v34 = vld [vmem:[#allocation5 + $0x880] sm:$0xff]  ;;  %6525 = vmatprep.subr.bf16.mxu0 %v10612_v25  ;;  %v10620_v37 = vcombine.high %v433_v29, %v437_v30  ;;  %6476 = vmatmul.mubr.bf16.vlgmr.msra.gmra.mrb[0].mxu1 %v12853_v0  ;;  %v10619_v41 = vcombine.low %v433_v29, %v437_v30  ;;  %v10414_v25 = vcombine.high %v226_v19, %v230_v22  ;;  %v234_v29 = vld [vmem:[#allocation5 + $0x208] sm:$0xff] }
  0xff   :  { %v445_v35 = vld [vmem:[#allocation5 + $0x8a0] sm:$0xff]  ;;  %6772 = vmatpush1.bf16.msra.mxu1 %v10357_v31  ;;  %6803 = vmatprep.mubr.bf16.mxu1 %v12857_v5  ;;  %v238_v31 = vld [vmem:[#allocation5 + $0x228] sm:$0xff] }
 0x100   :  { %6517 = vmatmul.mubr.bf16.vlgmr.msra.gmra.mrb[0].mxu0 %v12860_v6  ;;  %6773 = vmatprep.subr.bf16.mxu1 %v10366_v33  ;;  %v449_v43 = vld [vmem:[#allocation5 + $0x8c0] sm:$0xff]  ;;  %v10628_v47 = vcombine.high %v441_v34, %v445_v35  ;;  %v10627_v50 = vcombine.low %v441_v34, %v445_v35  ;;  %v10422_v34 = vcombine.high %v234_v29, %v238_v31 }
 0x101   :  { %6526 = vmatpush1.bf16.msra.mxu0 %v10611_v32  ;;  %v453_v45 = vld [vmem:[#allocation5 + $0x8e0] sm:$0xff]  ;;  %6557 = vmatprep.mubr.bf16.mxu0 %v12876_v39  ;;  %v10413_v32 = vcombine.low %v226_v19, %v230_v22 }
 0x102   :  { %6527 = vmatprep.subr.bf16.mxu0 %v10620_v37  ;;  %v457_v52 = vld [vmem:[#allocation5 + $0x900] sm:$0xff]  ;;  %v10636_v56 = vcombine.high %v449_v43, %v453_v45  ;;  %v10635_v59 = vcombine.low %v449_v43, %v453_v45  ;;  %v242_v37 = vld [vmem:[#allocation5 + $0x248] sm:$0xff] }
 0x103   :  { %6774 = vmatpush1.bf16.msra.mxu1 %v10365_v40  ;;  %v461_v53 = vld [vmem:[#allocation5 + $0x920] sm:$0xff]  ;;  %v246_v40 = vld [vmem:[#allocation5 + $0x268] sm:$0xff] }
 0x104   :  { %6775 = vmatprep.subr.bf16.mxu1 %v10374_v42  ;;  %v465_v61 = vld [vmem:[#allocation5 + $0x940] sm:$0xff]  ;;  %v10644_v1 = vcombine.high %v457_v52, %v461_v53  ;;  %v10643_v4 = vcombine.low %v457_v52, %v461_v53  ;;  %v10430_v43 = vcombine.high %v242_v37, %v246_v40 }
 0x105   :  { %6528 = vmatpush1.bf16.msra.mxu0 %v10619_v41  ;;  %v469_v62 = vld [vmem:[#allocation5 + $0x960] sm:$0xff]  ;;  %v10421_v41 = vcombine.low %v234_v29, %v238_v31 }
 0x106   :  { %6529 = vmatprep.subr.bf16.mxu0 %v10628_v47  ;;  %v473_v8 = vld [vmem:[#allocation5 + $0x980] sm:$0xff]  ;;  %v10652_v11 = vcombine.high %v465_v61, %v469_v62  ;;  %v10651_v15 = vcombine.low %v465_v61, %v469_v62  ;;  %v250_v47 = vld [vmem:[#allocation5 + $0x288] sm:$0xff] }
 0x107   :  { %6776 = vmatpush1.bf16.msra.mxu1 %v10373_v49  ;;  %v477_v9 = vld [vmem:[#allocation5 + $0x9a0] sm:$0xff]  ;;  %v254_v49 = vld [vmem:[#allocation5 + $0x2a8] sm:$0xff] }
 0x108   :  { %6777 = vmatprep.subr.bf16.mxu1 %v10382_v51  ;;  %v481_v17 = vld [vmem:[#allocation5 + $0x9c0] sm:$0xff]  ;;  %v10660_v20 = vcombine.high %v473_v8, %v477_v9  ;;  %v10659_v24 = vcombine.low %v473_v8, %v477_v9  ;;  %v10438_v52 = vcombine.high %v250_v47, %v254_v49 }
 0x109   :  { %6530 = vmatpush1.bf16.msra.mxu0 %v10627_v50  ;;  %v485_v18 = vld [vmem:[#allocation5 + $0x9e0] sm:$0xff]  ;;  %v10429_v50 = vcombine.low %v242_v37, %v246_v40 }
 0x10a   :  { %6531 = vmatprep.subr.bf16.mxu0 %v10636_v56  ;;  %v489_v26 = vld [vmem:[#allocation5 + $0xa00] sm:$0xff]  ;;  %v10668_v30 = vcombine.high %v481_v17, %v485_v18  ;;  %v10667_v33 = vcombine.low %v481_v17, %v485_v18  ;;  %v258_v56 = vld [vmem:[#allocation5 + $0x2c8] sm:$0xff] }
 0x10b   :  { %6778 = vmatpush1.bf16.msra.mxu1 %v10381_v58  ;;  %v493_v27 = vld [vmem:[#allocation5 + $0xa20] sm:$0xff]  ;;  %v262_v58 = vld [vmem:[#allocation5 + $0x2e8] sm:$0xff] }
 0x10c   :  { %6779 = vmatprep.subr.bf16.mxu1 %v10390_v60  ;;  %v497_v35 = vld [vmem:[#allocation5 + $0xa40] sm:$0xff]  ;;  %v10676_v38 = vcombine.high %v489_v26, %v493_v27  ;;  %v10675_v42 = vcombine.low %v489_v26, %v493_v27  ;;  %v10446_v61 = vcombine.high %v258_v56, %v262_v58 }
 0x10d   :  { %6532 = vmatpush1.bf16.msra.mxu0 %v10635_v59  ;;  %v501_v36 = vld [vmem:[#allocation5 + $0xa60] sm:$0xff]  ;;  %v10437_v59 = vcombine.low %v250_v47, %v254_v49 }
 0x10e   :  { %6533 = vmatprep.subr.bf16.mxu0 %v10644_v1  ;;  %v505_v45 = vld [vmem:[#allocation5 + $0xa80] sm:$0xff]  ;;  %v10684_v48 = vcombine.high %v497_v35, %v501_v36  ;;  %v10683_v51 = vcombine.low %v497_v35, %v501_v36  ;;  %v266_v1 = vld [vmem:[#allocation5 + $0x308] sm:$0xff] }
 0x10f   :  { %6780 = vmatpush1.bf16.msra.mxu1 %v10389_v3  ;;  %v509_v46 = vld [vmem:[#allocation5 + $0xaa0] sm:$0xff]  ;;  %v270_v3 = vld [vmem:[#allocation5 + $0x328] sm:$0xff] }
 0x110   :  { %6781 = vmatprep.subr.bf16.mxu1 %v10398_v7  ;;  %v513_v53 = vld [vmem:[#allocation5 + $0xac0] sm:$0xff]  ;;  %v10692_v57 = vcombine.high %v505_v45, %v509_v46  ;;  %v10691_v60 = vcombine.low %v505_v45, %v509_v46  ;;  %v10454_v8 = vcombine.high %v266_v1, %v270_v3 }
 0x111   :  { %6534 = vmatpush1.bf16.msra.mxu0 %v10643_v4  ;;  %v517_v55 = vld [vmem:[#allocation5 + $0xae0] sm:$0xff]  ;;  %v10445_v4 = vcombine.low %v258_v56, %v262_v58  ;;  %v314_v58 = vld [vmem:[#allocation5 + $0x488] sm:$0xff] }
 0x112   :  { %6535 = vmatprep.subr.bf16.mxu0 %v10652_v11  ;;  %v521_v62 = vld [vmem:[#allocation5 + $0xb00] sm:$0xff]  ;;  %v10700_v2 = vcombine.high %v513_v53, %v517_v55  ;;  %v10699_v7 = vcombine.low %v513_v53, %v517_v55  ;;  %v274_v11 = vld [vmem:[#allocation5 + $0x348] sm:$0xff] }
 0x113   :  { %6782 = vmatpush1.bf16.msra.mxu1 %v10397_v14  ;;  %v525_v63 = vld [vmem:[#allocation5 + $0xb20] sm:$0xff]  ;;  %v278_v14 = vld [vmem:[#allocation5 + $0x368] sm:$0xff] }
 0x114   :  { %6783 = vmatprep.subr.bf16.mxu1 %v10406_v16  ;;  %v529_v9 = vld [vmem:[#allocation5 + $0xb40] sm:$0xff]  ;;  %v10708_v13 = vcombine.high %v521_v62, %v525_v63  ;;  %v10707_v16 = vcombine.low %v521_v62, %v525_v63  ;;  %v10462_v17 = vcombine.high %v274_v11, %v278_v14 }
 0x115   :  { %6536 = vmatpush1.bf16.msra.mxu0 %v10651_v15  ;;  %v533_v10 = vld [vmem:[#allocation5 + $0xb60] sm:$0xff]  ;;  %v10453_v15 = vcombine.low %v266_v1, %v270_v3 }
 0x116   :  { %6537 = vmatprep.subr.bf16.mxu0 %v10660_v20  ;;  %v537_v18 = vld [vmem:[#allocation5 + $0xb80] sm:$0xff]  ;;  %v282_v20 = vld [vmem:[#allocation5 + $0x388] sm:$0xff]  ;;  %v10716_v22 = vcombine.high %v529_v9, %v533_v10 }
 0x117   :  { %6784 = vmatpush1.bf16.msra.mxu1 %v10405_v23  ;;  %v541_v19 = vld [vmem:[#allocation5 + $0xba0] sm:$0xff]  ;;  %v286_v23 = vld [vmem:[#allocation5 + $0x3a8] sm:$0xff] }
 0x118   :  { %6785 = vmatprep.subr.bf16.mxu1 %v10414_v25  ;;  %v10715_v25 = vcombine.low %v529_v9, %v533_v10  ;;  %v10470_v26 = vcombine.high %v282_v20, %v286_v23  ;;  %v545_v27 = vld [vmem:[#allocation5 + $0xbc0] sm:$0xff]  ;;  %v10724_v31 = vcombine.high %v537_v18, %v541_v19 }
 0x119   :  { %6538 = vmatpush1.bf16.msra.mxu0 %v10659_v24  ;;  %v10461_v24 = vcombine.low %v274_v11, %v278_v14  ;;  %v549_v29 = vld [vmem:[#allocation5 + $0xbe0] sm:$0xff] }
 0x11a   :  { %6539 = vmatprep.subr.bf16.mxu0 %v10668_v30  ;;  %v290_v30 = vld [vmem:[#allocation5 + $0x3c8] sm:$0xff]  ;;  %v553_v36 = vld [vmem:[#allocation5 + $0xc00] sm:$0xff]  ;;  %v10732_v40 = vcombine.high %v545_v27, %v549_v29  ;;  %v10731_v45 = vcombine.low %v545_v27, %v549_v29 }
 0x11b   :  { %6786 = vmatpush1.bf16.msra.mxu1 %v10413_v32  ;;  %v294_v32 = vld [vmem:[#allocation5 + $0x3e8] sm:$0xff]  ;;  %v557_v37 = vld [vmem:[#allocation5 + $0xc20] sm:$0xff] }
 0x11c   :  { %6787 = vmatprep.subr.bf16.mxu1 %v10422_v34  ;;  %v10723_v34 = vcombine.low %v537_v18, %v541_v19  ;;  %v10478_v35 = vcombine.high %v290_v30, %v294_v32  ;;  %v561_v47 = vld [vmem:[#allocation5 + $0xc40] sm:$0xff]  ;;  %v10740_v49 = vcombine.high %v553_v36, %v557_v37  ;;  %v10739_v55 = vcombine.low %v553_v36, %v557_v37 }
 0x11d   :  { %6540 = vmatpush1.bf16.msra.mxu0 %v10667_v33  ;;  %v10469_v33 = vcombine.low %v282_v20, %v286_v23  ;;  %v569_v56 = vld [vmem:[#allocation5 + $0xc80] sm:$0xff] }
 0x11e   :  { %6541 = vmatprep.subr.bf16.mxu0 %v10676_v38  ;;  %v298_v38 = vld [vmem:[#allocation5 + $0x408] sm:$0xff]  ;;  %v581_v3 = vld [vmem:[#allocation5 + $0xce0] sm:$0xff] }
 0x11f   :  { %6788 = vmatpush1.bf16.msra.mxu1 %v10421_v41  ;;  %v302_v41 = vld [vmem:[#allocation5 + $0x428] sm:$0xff]  ;;  %v589_v14 = vld [vmem:[#allocation5 + $0xd20] sm:$0xff] }
 0x120   :  { %6789 = vmatprep.subr.bf16.mxu1 %v10430_v43  ;;  %v10477_v43 = vcombine.low %v290_v30, %v294_v32  ;;  %v10486_v46 = vcombine.high %v298_v38, %v302_v41  ;;  %v10485_v53 = vcombine.low %v298_v38, %v302_v41  ;;  %v597_v23 = vld [vmem:[#allocation5 + $0xd60] sm:$0xff] }
 0x121   :  { %6542 = vmatpush1.bf16.msra.mxu0 %v10675_v42  ;;  %v1256_v42 = vcombine.high %v12868_v21, %v12868_v21  ;;  %v605_v32 = vld [vmem:[#allocation5 + $0xda0] sm:$0xff] }
 0x122   :  { %6543 = vmatprep.subr.bf16.mxu0 %v10684_v48  ;;  %v306_v48 = vld [vmem:[#allocation5 + $0x448] sm:$0xff]  ;;  %v613_v41 = vld [vmem:[#allocation5 + $0xde0] sm:$0xff] }
 0x123   :  { %6790 = vmatpush1.bf16.msra.mxu1 %v10429_v50  ;;  %v310_v50 = vld [vmem:[#allocation5 + $0x468] sm:$0xff] }
 0x124   :  { %6791 = vmatprep.subr.bf16.mxu1 %v10438_v52  ;;  %v565_v52 = vld [vmem:[#allocation5 + $0xc60] sm:$0xff]  ;;  %v10494_v21 = vcombine.high %v306_v48, %v310_v50  ;;  %v10493_v62 = vcombine.low %v306_v48, %v310_v50 }
 0x125   :  { %6544 = vmatpush1.bf16.msra.mxu0 %v10683_v51  ;;  %v12885_v51 = vrot.slane %v1256_v42, %v12850_v54  ;;  %v10747_v63 = vcombine.low %v561_v47, %v565_v52  ;;  %v621_v50 = vld [vmem:[#allocation5 + $0xe20] sm:$0xff] }
 0x126   :  { %6545 = vmatprep.subr.bf16.mxu0 %v10692_v57  ;;  %v573_v57 = vld [vmem:[#allocation5 + $0xca0] sm:$0xff] }
 0x127   :  { %6792 = vmatpush1.bf16.msra.mxu1 %v10437_v59  ;;  %v10748_v59 = vcombine.high %v561_v47, %v565_v52  ;;  %v10755_v10 = vcombine.low %v569_v56, %v573_v57  ;;  %v362_v52 = vld [vmem:[#allocation5 + $0x608] sm:$0xff] }
 0x128   :  { %6793 = vmatprep.subr.bf16.mxu1 %v10446_v61  ;;  %v12889_v61 = vcombine.high %v12885_v51, %v12885_v51 }
 0x129   :  { %6546 = vmatpush1.bf16.msra.mxu0 %v10691_v60  ;;  %v318_v60 = vld [vmem:[#allocation5 + $0x4a8] sm:$0xff] }
 0x12a   :  { %6547 = vmatprep.subr.bf16.mxu0 %v10700_v2  ;;  %v10502_v1 = vcombine.high %v314_v58, %v318_v60  ;;  %v577_v2 = vld [vmem:[#allocation5 + $0xcc0] sm:$0xff]  ;;  %v10501_v9 = vcombine.low %v314_v58, %v318_v60  ;;  %v370_v60 = vld [vmem:[#allocation5 + $0x648] sm:$0xff] }
 0x12b   :  { %6794 = vmatpush1.bf16.msra.mxu1 %v10445_v4  ;;  %v322_v4 = vld [vmem:[#allocation5 + $0x4c8] sm:$0xff]  ;;  %v10763_v19 = vcombine.low %v577_v2, %v581_v3  ;;  %v625_v58 = vld [vmem:[#allocation5 + $0xe40] sm:$0xff] }
 0x12c   :  { %6795 = vmatprep.subr.bf16.mxu1 %v10454_v8  ;;  %v326_v8 = vld [vmem:[#allocation5 + $0x4e8] sm:$0xff] }
 0x12d   :  { %6548 = vmatpush1.bf16.msra.mxu0 %v10699_v7  ;;  %v10756_v7 = vcombine.high %v569_v56, %v573_v57  ;;  %v10510_v11 = vcombine.high %v322_v4, %v326_v8  ;;  %v10509_v18 = vcombine.low %v322_v4, %v326_v8  ;;  %v633_v4 = vld [vmem:[#allocation5 + $0xe80] sm:$0xff]  ;;  %v378_v8 = vld [vmem:[#allocation5 + $0x688] sm:$0xff] }
 0x12e   :  { %6549 = vmatprep.subr.bf16.mxu0 %v10708_v13  ;;  %v585_v13 = vld [vmem:[#allocation5 + $0xd00] sm:$0xff] }
 0x12f   :  { %6796 = vmatpush1.bf16.msra.mxu1 %v10453_v15  ;;  %v330_v15 = vld [vmem:[#allocation5 + $0x508] sm:$0xff]  ;;  %v10771_v29 = vcombine.low %v585_v13, %v589_v14 }
 0x130   :  { %6797 = vmatprep.subr.bf16.mxu1 %v10462_v17  ;;  %v334_v17 = vld [vmem:[#allocation5 + $0x528] sm:$0xff] }
 0x131   :  { %6550 = vmatpush1.bf16.msra.mxu0 %v10707_v16  ;;  %v10764_v16 = vcombine.high %v577_v2, %v581_v3  ;;  %v10518_v20 = vcombine.high %v330_v15, %v334_v17  ;;  %v10517_v27 = vcombine.low %v330_v15, %v334_v17  ;;  %v641_v15 = vld [vmem:[#allocation5 + $0xec0] sm:$0xff]  ;;  %v386_v17 = vld [vmem:[#allocation5 + $0x6c8] sm:$0xff] }
 0x132   :  { %6551 = vmatprep.subr.bf16.mxu0 %v10716_v22  ;;  %v593_v22 = vld [vmem:[#allocation5 + $0xd40] sm:$0xff] }
 0x133   :  { %6798 = vmatpush1.bf16.msra.mxu1 %v10461_v24  ;;  %v338_v24 = vld [vmem:[#allocation5 + $0x548] sm:$0xff]  ;;  %v10779_v37 = vcombine.low %v593_v22, %v597_v23 }
 0x134   :  { %6799 = vmatprep.subr.bf16.mxu1 %v10470_v26  ;;  %v342_v26 = vld [vmem:[#allocation5 + $0x568] sm:$0xff] }
 0x135   :  { %6552 = vmatpush1.bf16.msra.mxu0 %v10715_v25  ;;  %v10772_v25 = vcombine.high %v585_v13, %v589_v14  ;;  %v10526_v30 = vcombine.high %v338_v24, %v342_v26  ;;  %v10525_v36 = vcombine.low %v338_v24, %v342_v26  ;;  %v649_v24 = vld [vmem:[#allocation5 + $0xf00] sm:$0xff]  ;;  %v394_v26 = vld [vmem:[#allocation5 + $0x708] sm:$0xff] }
 0x136   :  { %6553 = vmatprep.subr.bf16.mxu0 %v10724_v31  ;;  %v601_v31 = vld [vmem:[#allocation5 + $0xd80] sm:$0xff] }
 0x137   :  { %6800 = vmatpush1.bf16.msra.mxu1 %v10469_v33  ;;  %v346_v33 = vld [vmem:[#allocation5 + $0x588] sm:$0xff]  ;;  %v10788_v42 = vcombine.high %v601_v31, %v605_v32  ;;  %v10787_v47 = vcombine.low %v601_v31, %v605_v32 }
 0x138   :  { %6801 = vmatprep.subr.bf16.mxu1 %v10478_v35  ;;  %v350_v35 = vld [vmem:[#allocation5 + $0x5a8] sm:$0xff] }
 0x139   :  { %6554 = vmatpush1.bf16.msra.mxu0 %v10723_v34  ;;  %v10780_v34 = vcombine.high %v593_v22, %v597_v23  ;;  %v10534_v38 = vcombine.high %v346_v33, %v350_v35 }
 0x13a   :  { %6555 = vmatprep.subr.bf16.mxu0 %v10732_v40  ;;  %v609_v40 = vld [vmem:[#allocation5 + $0xdc0] sm:$0xff] }
 0x13b   :  { %6802 = vmatpush1.bf16.msra.mxu1 %v10477_v43  ;;  %v354_v43 = vld [vmem:[#allocation5 + $0x5c8] sm:$0xff]  ;;  %v10795_v56 = vcombine.low %v609_v40, %v613_v41 }
 0x13c   :  { %6812 = vmatprep.subr.bf16.mxu1 %v10486_v46  ;;  %v10533_v46 = vcombine.low %v346_v33, %v350_v35  ;;  %v657_v33 = vld [vmem:[#allocation5 + $0xf40] sm:$0xff]  ;;  %v402_v35 = vld [vmem:[#allocation5 + $0x748] sm:$0xff] }
 0x13d   :  { %6556 = vmatpush1.bf16.msra.mxu0 %v10731_v45  ;;  %v358_v45 = vld [vmem:[#allocation5 + $0x5e8] sm:$0xff] }
 0x13e   :  { %6566 = vmatprep.subr.bf16.mxu0 %v10740_v49  ;;  %6804 = vmatmul.mubr.bf16.vlgmr.msra.gmra.mrb[4].mxu1 %v12853_v0  ;;  %v10542_v48 = vcombine.high %v354_v43, %v358_v45  ;;  %v617_v49 = vld [vmem:[#allocation5 + $0xe00] sm:$0xff] }
 0x13f   :  { %6813 = vmatpush1.bf16.msra.mxu1 %v10485_v53  ;;  %6844 = vmatprep.mubr.bf16.mxu1 %v12865_v12  ;;  %v10796_v53 = vcombine.high %v609_v40, %v613_v41  ;;  %v10803_v2 = vcombine.low %v617_v49, %v621_v50 }
 0x140   :  { %6558 = vmatmul.mubr.bf16.vlgmr.msra.gmra.mrb[0].mxu0 %v12872_v28  ;;  %6814 = vmatprep.subr.bf16.mxu1 %v10494_v21  ;;  %v10541_v21 = vcombine.low %v354_v43, %v358_v45  ;;  %v669_v43 = vld [vmem:[#allocation5 + $0xfa0] sm:$0xff]  ;;  %v410_v45 = vld [vmem:[#allocation5 + $0x788] sm:$0xff] }
 0x141   :  { %6567 = vmatpush1.bf16.msra.mxu0 %v10739_v55  ;;  %6598 = vmatprep.mubr.bf16.mxu0 %v12889_v61  ;;  %v366_v55 = vld [vmem:[#allocation5 + $0x628] sm:$0xff] }
 0x142   :  { %6568 = vmatprep.subr.bf16.mxu0 %v10748_v59  ;;  %v10550_v57 = vcombine.high %v362_v52, %v366_v55  ;;  %v629_v59 = vld [vmem:[#allocation5 + $0xe60] sm:$0xff] }
 0x143   :  { %6815 = vmatpush1.bf16.msra.mxu1 %v10493_v62  ;;  %v10804_v62 = vcombine.high %v617_v49, %v621_v50  ;;  %v10811_v13 = vcombine.low %v625_v58, %v629_v59 }
 0x144   :  { %6816 = vmatprep.subr.bf16.mxu1 %v10502_v1  ;;  %v10549_v1 = vcombine.low %v362_v52, %v366_v55  ;;  %v673_v52 = vld [vmem:[#allocation5 + $0xfc0] sm:$0xff]  ;;  %v418_v55 = vld [vmem:[#allocation5 + $0x7c8] sm:$0xff] }
 0x145   :  { %6569 = vmatpush1.bf16.msra.mxu0 %v10747_v63  ;;  %v374_v63 = vld [vmem:[#allocation5 + $0x668] sm:$0xff] }
 0x146   :  { %6570 = vmatprep.subr.bf16.mxu0 %v10756_v7  ;;  %v10558_v3 = vcombine.high %v370_v60, %v374_v63  ;;  %v637_v7 = vld [vmem:[#allocation5 + $0xea0] sm:$0xff] }
 0x147   :  { %6817 = vmatpush1.bf16.msra.mxu1 %v10501_v9  ;;  %v10812_v9 = vcombine.high %v625_v58, %v629_v59  ;;  %v10819_v22 = vcombine.low %v633_v4, %v637_v7 }
 0x148   :  { %6818 = vmatprep.subr.bf16.mxu1 %v10510_v11  ;;  %v10557_v11 = vcombine.low %v370_v60, %v374_v63  ;;  %v681_v60 = vld [vmem:[#allocation5 + $0x1000] sm:$0xff]  ;;  %v426_v63 = vld [vmem:[#allocation5 + $0x808] sm:$0xff] }
 0x149   :  { %6571 = vmatpush1.bf16.msra.mxu0 %v10755_v10  ;;  %v382_v10 = vld [vmem:[#allocation5 + $0x6a8] sm:$0xff] }
 0x14a   :  { %6572 = vmatprep.subr.bf16.mxu0 %v10764_v16  ;;  %v10566_v14 = vcombine.high %v378_v8, %v382_v10  ;;  %v645_v16 = vld [vmem:[#allocation5 + $0xee0] sm:$0xff] }
 0x14b   :  { %6819 = vmatpush1.bf16.msra.mxu1 %v10509_v18  ;;  %v10820_v18 = vcombine.high %v633_v4, %v637_v7  ;;  %v10827_v31 = vcombine.low %v641_v15, %v645_v16 }
 0x14c   :  { %6820 = vmatprep.subr.bf16.mxu1 %v10518_v20  ;;  %v10565_v20 = vcombine.low %v378_v8, %v382_v10  ;;  %v693_v10 = vld [vmem:[#allocation5 + $0x1060] sm:$0xff] }
 0x14d   :  { %6573 = vmatpush1.bf16.msra.mxu0 %v10763_v19  ;;  %v390_v19 = vld [vmem:[#allocation5 + $0x6e8] sm:$0xff] }
 0x14e   :  { %6574 = vmatprep.subr.bf16.mxu0 %v10772_v25  ;;  %v10574_v23 = vcombine.high %v386_v17, %v390_v19  ;;  %v653_v25 = vld [vmem:[#allocation5 + $0xf20] sm:$0xff] }
 0x14f   :  { %6821 = vmatpush1.bf16.msra.mxu1 %v10517_v27  ;;  %v10828_v27 = vcombine.high %v641_v15, %v645_v16  ;;  %v10835_v40 = vcombine.low %v649_v24, %v653_v25 }
 0x150   :  { %6822 = vmatprep.subr.bf16.mxu1 %v10526_v30  ;;  %v10573_v30 = vcombine.low %v386_v17, %v390_v19  ;;  %v697_v19 = vld [vmem:[#allocation5 + $0x1080] sm:$0xff] }
 0x151   :  { %6575 = vmatpush1.bf16.msra.mxu0 %v10771_v29  ;;  %v398_v29 = vld [vmem:[#allocation5 + $0x728] sm:$0xff] }
 0x152   :  { %6576 = vmatprep.subr.bf16.mxu0 %v10780_v34  ;;  %v10582_v32 = vcombine.high %v394_v26, %v398_v29  ;;  %v661_v34 = vld [vmem:[#allocation5 + $0xf60] sm:$0xff] }
 0x153   :  { %6823 = vmatpush1.bf16.msra.mxu1 %v10525_v36  ;;  %v10836_v36 = vcombine.high %v649_v24, %v653_v25  ;;  %v10843_v49 = vcombine.low %v657_v33, %v661_v34  ;;  %v446_v24 = vld [vmem:[#allocation5 + $0x8a8] sm:$0xff] }
 0x154   :  { %6824 = vmatprep.subr.bf16.mxu1 %v10534_v38  ;;  %v10581_v38 = vcombine.low %v394_v26, %v398_v29 }
 0x155   :  { %6577 = vmatpush1.bf16.msra.mxu0 %v10779_v37  ;;  %v406_v37 = vld [vmem:[#allocation5 + $0x768] sm:$0xff] }
 0x156   :  { %6578 = vmatprep.subr.bf16.mxu0 %v10788_v42  ;;  %v10590_v41 = vcombine.high %v402_v35, %v406_v37  ;;  %v665_v42 = vld [vmem:[#allocation5 + $0xf80] sm:$0xff] }
 0x157   :  { %6825 = vmatpush1.bf16.msra.mxu1 %v10533_v46  ;;  %v10844_v46 = vcombine.high %v657_v33, %v661_v34  ;;  %v10851_v58 = vcombine.low %v665_v42, %v669_v43  ;;  %v454_v34 = vld [vmem:[#allocation5 + $0x8e8] sm:$0xff] }
 0x158   :  { %6826 = vmatprep.subr.bf16.mxu1 %v10542_v48  ;;  %v10589_v48 = vcombine.low %v402_v35, %v406_v37 }
 0x159   :  { %6579 = vmatpush1.bf16.msra.mxu0 %v10787_v47  ;;  %v414_v47 = vld [vmem:[#allocation5 + $0x7a8] sm:$0xff] }
 0x15a   :  { %6580 = vmatprep.subr.bf16.mxu0 %v10796_v53  ;;  %v10598_v50 = vcombine.high %v410_v45, %v414_v47  ;;  %v677_v53 = vld [vmem:[#allocation5 + $0xfe0] sm:$0xff] }
 0x15b   :  { %6827 = vmatpush1.bf16.msra.mxu1 %v10541_v21  ;;  %v10852_v21 = vcombine.high %v665_v42, %v669_v43  ;;  %v10859_v7 = vcombine.low %v673_v52, %v677_v53  ;;  %v462_v43 = vld [vmem:[#allocation5 + $0x928] sm:$0xff] }
 0x15c   :  { %6828 = vmatprep.subr.bf16.mxu1 %v10550_v57  ;;  %v10597_v57 = vcombine.low %v410_v45, %v414_v47 }
 0x15d   :  { %6581 = vmatpush1.bf16.msra.mxu0 %v10795_v56  ;;  %v422_v56 = vld [vmem:[#allocation5 + $0x7e8] sm:$0xff] }
 0x15e   :  { %6582 = vmatprep.subr.bf16.mxu0 %v10804_v62  ;;  %v10606_v59 = vcombine.high %v418_v55, %v422_v56  ;;  %v685_v62 = vld [vmem:[#allocation5 + $0x1020] sm:$0xff]  ;;  %v10605_v4 = vcombine.low %v418_v55, %v422_v56 }
 0x15f   :  { %6829 = vmatpush1.bf16.msra.mxu1 %v10549_v1  ;;  %v430_v1 = vld [vmem:[#allocation5 + $0x828] sm:$0xff]  ;;  %v10867_v17 = vcombine.low %v681_v60, %v685_v62 }
 0x160   :  { %6830 = vmatprep.subr.bf16.mxu1 %v10558_v3  ;;  %v12895_v3 = vld [vmem:[#allocation3 + $0x10] sm:$0xff]  ;;  %v10614_v8 = vcombine.high %v426_v63, %v430_v1  ;;  %v10613_v16 = vcombine.low %v426_v63, %v430_v1 }
 0x161   :  { %6583 = vmatpush1.bf16.msra.mxu0 %v10803_v2  ;;  %v10860_v2 = vcombine.high %v673_v52, %v677_v53  ;;  %v12899_v15 = vrot.slane %v12895_v3, %v12850_v54  ;;  %v470_v53 = vld [vmem:[#allocation5 + $0x968] sm:$0xff] }
 0x162   :  { %6584 = vmatprep.subr.bf16.mxu0 %v10812_v9  ;;  %v689_v9 = vld [vmem:[#allocation5 + $0x1040] sm:$0xff] }
 0x163   :  { %6831 = vmatpush1.bf16.msra.mxu1 %v10557_v11  ;;  %v434_v11 = vld [vmem:[#allocation5 + $0x848] sm:$0xff]  ;;  %v12903_v25 = vcombine.high %v12899_v15, %v12899_v15 }
 0x164   :  { %6832 = vmatprep.subr.bf16.mxu1 %v10566_v14  ;;  %v438_v14 = vld [vmem:[#allocation5 + $0x868] sm:$0xff] }
 0x165   :  { %6585 = vmatpush1.bf16.msra.mxu0 %v10811_v13  ;;  %v10868_v13 = vcombine.high %v681_v60, %v685_v62  ;;  %v10621_v26 = vcombine.low %v434_v11, %v438_v14  ;;  %v478_v62 = vld [vmem:[#allocation5 + $0x9a8] sm:$0xff] }
 0x166   :  { %6586 = vmatprep.subr.bf16.mxu0 %v10820_v18  ;;  %v10622_v18 = vcombine.high %v434_v11, %v438_v14 }
 0x167   :  { %6833 = vmatpush1.bf16.msra.mxu1 %v10565_v20  ;;  %v701_v20 = vld [vmem:[#allocation5 + $0x10a0] sm:$0xff] }
 0x168   :  { %6834 = vmatprep.subr.bf16.mxu1 %v10574_v23  ;;  %v10876_v23 = vcombine.high %v689_v9, %v693_v10  ;;  %v10884_v33 = vcombine.high %v697_v19, %v701_v20 }
 0x169   :  { %6587 = vmatpush1.bf16.msra.mxu0 %v10819_v22  ;;  %v442_v22 = vld [vmem:[#allocation5 + $0x888] sm:$0xff] }
 0x16a   :  { %6588 = vmatprep.subr.bf16.mxu0 %v10828_v27  ;;  %v10875_v27 = vcombine.low %v689_v9, %v693_v10  ;;  %v10630_v29 = vcombine.high %v442_v22, %v446_v24  ;;  %v10629_v35 = vcombine.low %v442_v22, %v446_v24  ;;  %v486_v10 = vld [vmem:[#allocation5 + $0x9e8] sm:$0xff] }
 0x16b   :  { %6835 = vmatpush1.bf16.msra.mxu1 %v10573_v30  ;;  %v705_v30 = vld [vmem:[#allocation5 + $0x10c0] sm:$0xff] }
 0x16c   :  { %6836 = vmatprep.subr.bf16.mxu1 %v10582_v32  ;;  %v450_v32 = vld [vmem:[#allocation5 + $0x8c8] sm:$0xff] }
 0x16d   :  { %6589 = vmatpush1.bf16.msra.mxu0 %v10827_v31  ;;  %v709_v31 = vld [vmem:[#allocation5 + $0x10e0] sm:$0xff]  ;;  %v10638_v37 = vcombine.high %v450_v32, %v454_v34  ;;  %v10637_v45 = vcombine.low %v450_v32, %v454_v34 }
 0x16e   :  { %6590 = vmatprep.subr.bf16.mxu0 %v10836_v36  ;;  %v10883_v36 = vcombine.low %v697_v19, %v701_v20  ;;  %v10892_v42 = vcombine.high %v705_v30, %v709_v31  ;;  %v494_v20 = vld [vmem:[#allocation5 + $0xa28] sm:$0xff] }
 0x16f   :  { %6837 = vmatpush1.bf16.msra.mxu1 %v10581_v38  ;;  %v713_v38 = vld [vmem:[#allocation5 + $0x1100] sm:$0xff] }
 0x170   :  { %6838 = vmatprep.subr.bf16.mxu1 %v10590_v41  ;;  %v458_v41 = vld [vmem:[#allocation5 + $0x908] sm:$0xff] }
 0x171   :  { %6591 = vmatpush1.bf16.msra.mxu0 %v10835_v40  ;;  %v717_v40 = vld [vmem:[#allocation5 + $0x1120] sm:$0xff]  ;;  %v10646_v47 = vcombine.high %v458_v41, %v462_v43  ;;  %v10645_v55 = vcombine.low %v458_v41, %v462_v43 }
 0x172   :  { %6592 = vmatprep.subr.bf16.mxu0 %v10844_v46  ;;  %v10891_v46 = vcombine.low %v705_v30, %v709_v31  ;;  %v10900_v52 = vcombine.high %v713_v38, %v717_v40  ;;  %v502_v31 = vld [vmem:[#allocation5 + $0xa68] sm:$0xff] }
 0x173   :  { %6839 = vmatpush1.bf16.msra.mxu1 %v10589_v48  ;;  %v721_v48 = vld [vmem:[#allocation5 + $0x1140] sm:$0xff] }
 0x174   :  { %6840 = vmatprep.subr.bf16.mxu1 %v10598_v50  ;;  %v466_v50 = vld [vmem:[#allocation5 + $0x948] sm:$0xff] }
 0x175   :  { %6593 = vmatpush1.bf16.msra.mxu0 %v10843_v49  ;;  %v725_v49 = vld [vmem:[#allocation5 + $0x1160] sm:$0xff]  ;;  %v10654_v56 = vcombine.high %v466_v50, %v470_v53  ;;  %v10653_v63 = vcombine.low %v466_v50, %v470_v53 }
 0x176   :  { %6594 = vmatprep.subr.bf16.mxu0 %v10852_v21  ;;  %v10899_v21 = vcombine.low %v713_v38, %v717_v40  ;;  %v10908_v60 = vcombine.high %v721_v48, %v725_v49  ;;  %v10907_v1 = vcombine.low %v721_v48, %v725_v49  ;;  %v510_v40 = vld [vmem:[#allocation5 + $0xaa8] sm:$0xff] }
 0x177   :  { %6841 = vmatpush1.bf16.msra.mxu1 %v10597_v57  ;;  %v729_v57 = vld [vmem:[#allocation5 + $0x1180] sm:$0xff]  ;;  %v518_v49 = vld [vmem:[#allocation5 + $0xae8] sm:$0xff] }
 0x178   :  { %6842 = vmatprep.subr.bf16.mxu1 %v10606_v59  ;;  %v474_v59 = vld [vmem:[#allocation5 + $0x988] sm:$0xff] }
 0x179   :  { %6595 = vmatpush1.bf16.msra.mxu0 %v10851_v58  ;;  %v733_v58 = vld [vmem:[#allocation5 + $0x11a0] sm:$0xff]  ;;  %v10661_v11 = vcombine.low %v474_v59, %v478_v62 }
 0x17a   :  { %6596 = vmatprep.subr.bf16.mxu0 %v10860_v2  ;;  %v10662_v2 = vcombine.high %v474_v59, %v478_v62  ;;  %v10916_v9 = vcombine.high %v729_v57, %v733_v58 }
 0x17b   :  { %6843 = vmatpush1.bf16.msra.mxu1 %v10605_v4  ;;  %v737_v4 = vld [vmem:[#allocation5 + $0x11c0] sm:$0xff] }
 0x17c   :  { %6853 = vmatprep.subr.bf16.mxu1 %v10614_v8  ;;  %v482_v8 = vld [vmem:[#allocation5 + $0x9c8] sm:$0xff] }
 0x17d   :  { %6597 = vmatpush1.bf16.msra.mxu0 %v10859_v7  ;;  %v741_v7 = vld [vmem:[#allocation5 + $0x11e0] sm:$0xff]  ;;  %v10670_v14 = vcombine.high %v482_v8, %v486_v10  ;;  %v10669_v22 = vcombine.low %v482_v8, %v486_v10 }
 0x17e   :  { %6607 = vmatprep.subr.bf16.mxu0 %v10868_v13  ;;  %6845 = vmatmul.mubr.bf16.vlgmr.msra.gmra.mrb[4].mxu1 %v12860_v6  ;;  %v10915_v13 = vcombine.low %v729_v57, %v733_v58  ;;  %v10924_v19 = vcombine.high %v737_v4, %v741_v7  ;;  %v526_v58 = vld [vmem:[#allocation5 + $0xb28] sm:$0xff] }
 0x17f   :  { %6854 = vmatpush1.bf16.msra.mxu1 %v10613_v16  ;;  %6885 = vmatprep.mubr.bf16.mxu1 %v12876_v39  ;;  %v745_v16 = vld [vmem:[#allocation5 + $0x1200] sm:$0xff] }
 0x180   :  { %6599 = vmatmul.mubr.bf16.vlgmr.msra.gmra.mrb[0].mxu0 %v12885_v51  ;;  %6855 = vmatprep.subr.bf16.mxu1 %v10622_v18  ;;  %v490_v18 = vld [vmem:[#allocation5 + $0xa08] sm:$0xff] }
 0x181   :  { %6608 = vmatpush1.bf16.msra.mxu0 %v10867_v17  ;;  %6639 = vmatprep.mubr.bf16.mxu0 %v12903_v25  ;;  %v749_v17 = vld [vmem:[#allocation5 + $0x1220] sm:$0xff]  ;;  %v10678_v24 = vcombine.high %v490_v18, %v494_v20  ;;  %v10677_v32 = vcombine.low %v490_v18, %v494_v20 }
 0x182   :  { %6609 = vmatprep.subr.bf16.mxu0 %v10876_v23  ;;  %v10923_v23 = vcombine.low %v737_v4, %v741_v7  ;;  %v10932_v30 = vcombine.high %v745_v16, %v749_v17  ;;  %v534_v7 = vld [vmem:[#allocation5 + $0xb68] sm:$0xff] }
 0x183   :  { %6856 = vmatpush1.bf16.msra.mxu1 %v10621_v26  ;;  %v753_v26 = vld [vmem:[#allocation5 + $0x1240] sm:$0xff] }
 0x184   :  { %6857 = vmatprep.subr.bf16.mxu1 %v10630_v29  ;;  %v498_v29 = vld [vmem:[#allocation5 + $0xa48] sm:$0xff] }
 0x185   :  { %6610 = vmatpush1.bf16.msra.mxu0 %v10875_v27  ;;  %v757_v27 = vld [vmem:[#allocation5 + $0x1260] sm:$0xff]  ;;  %v10686_v34 = vcombine.high %v498_v29, %v502_v31  ;;  %v10685_v41 = vcombine.low %v498_v29, %v502_v31 }
 0x186   :  { %6611 = vmatprep.subr.bf16.mxu0 %v10884_v33  ;;  %v10931_v33 = vcombine.low %v745_v16, %v749_v17  ;;  %v10940_v38 = vcombine.high %v753_v26, %v757_v27  ;;  %v793_v16 = vld [vmem:[#allocation5 + $0x1380] sm:$0xff] }
 0x187   :  { %6858 = vmatpush1.bf16.msra.mxu1 %v10629_v35  ;;  %v761_v35 = vld [vmem:[#allocation5 + $0x1280] sm:$0xff] }
 0x188   :  { %6859 = vmatprep.subr.bf16.mxu1 %v10638_v37  ;;  %v506_v37 = vld [vmem:[#allocation5 + $0xa88] sm:$0xff]  ;;  %v797_v17 = vld [vmem:[#allocation5 + $0x13a0] sm:$0xff] }
 0x189   :  { %6612 = vmatpush1.bf16.msra.mxu0 %v10883_v36  ;;  %v765_v36 = vld [vmem:[#allocation5 + $0x12a0] sm:$0xff]  ;;  %v10694_v43 = vcombine.high %v506_v37, %v510_v40  ;;  %v10693_v50 = vcombine.low %v506_v37, %v510_v40 }
 0x18a   :  { %6613 = vmatprep.subr.bf16.mxu0 %v10892_v42  ;;  %v10939_v42 = vcombine.low %v753_v26, %v757_v27  ;;  %v10948_v48 = vcombine.high %v761_v35, %v765_v36  ;;  %v801_v26 = vld [vmem:[#allocation5 + $0x13c0] sm:$0xff] }
 0x18b   :  { %6860 = vmatpush1.bf16.msra.mxu1 %v10637_v45  ;;  %v769_v45 = vld [vmem:[#allocation5 + $0x12c0] sm:$0xff] }
 0x18c   :  { %6861 = vmatprep.subr.bf16.mxu1 %v10646_v47  ;;  %v514_v47 = vld [vmem:[#allocation5 + $0xac8] sm:$0xff]  ;;  %v805_v27 = vld [vmem:[#allocation5 + $0x13e0] sm:$0xff] }
 0x18d   :  { %6614 = vmatpush1.bf16.msra.mxu0 %v10891_v46  ;;  %v773_v46 = vld [vmem:[#allocation5 + $0x12e0] sm:$0xff]  ;;  %v10702_v53 = vcombine.high %v514_v47, %v518_v49  ;;  %v10701_v59 = vcombine.low %v514_v47, %v518_v49  ;;  %v10987_v40 = vcombine.low %v801_v26, %v805_v27 }
 0x18e   :  { %6615 = vmatprep.subr.bf16.mxu0 %v10900_v52  ;;  %v10947_v52 = vcombine.low %v761_v35, %v765_v36  ;;  %v10956_v57 = vcombine.high %v769_v45, %v773_v46  ;;  %v1273_v35 = vcombine.high %v12895_v3, %v12895_v3  ;;  %v809_v36 = vld [vmem:[#allocation5 + $0x1400] sm:$0xff] }
 0x18f   :  { %6862 = vmatpush1.bf16.msra.mxu1 %v10645_v55  ;;  %v777_v55 = vld [vmem:[#allocation5 + $0x1300] sm:$0xff] }
 0x190   :  { %6863 = vmatprep.subr.bf16.mxu1 %v10654_v56  ;;  %v522_v56 = vld [vmem:[#allocation5 + $0xb08] sm:$0xff]  ;;  %v813_v37 = vld [vmem:[#allocation5 + $0x1420] sm:$0xff] }
 0x191   :  { %6616 = vmatpush1.bf16.msra.mxu0 %v10899_v21  ;;  %v781_v21 = vld [vmem:[#allocation5 + $0x1320] sm:$0xff]  ;;  %v10710_v62 = vcombine.high %v522_v56, %v526_v58  ;;  %v10709_v8 = vcombine.low %v522_v56, %v526_v58  ;;  %v10995_v3 = vcombine.low %v809_v36, %v813_v37 }
 0x192   :  { %6617 = vmatprep.subr.bf16.mxu0 %v10908_v60  ;;  %v10955_v60 = vcombine.low %v769_v45, %v773_v46  ;;  %v10964_v4 = vcombine.high %v777_v55, %v781_v21  ;;  %v566_v45 = vld [vmem:[#allocation5 + $0xc68] sm:$0xff]  ;;  %v12912_v46 = vrot.slane %v1273_v35, %v12850_v54  ;;  %v817_v47 = vld [vmem:[#allocation5 + $0x1440] sm:$0xff] }
 0x193   :  { %6864 = vmatpush1.bf16.msra.mxu1 %v10653_v63  ;;  %v785_v63 = vld [vmem:[#allocation5 + $0x1340] sm:$0xff] }
 0x194   :  { %6865 = vmatprep.subr.bf16.mxu1 %v10662_v2  ;;  %v530_v2 = vld [vmem:[#allocation5 + $0xb48] sm:$0xff]  ;;  %v825_v56 = vld [vmem:[#allocation5 + $0x1480] sm:$0xff] }
 0x195   :  { %6618 = vmatpush1.bf16.msra.mxu0 %v10907_v1  ;;  %v789_v1 = vld [vmem:[#allocation5 + $0x1360] sm:$0xff]  ;;  %v10718_v10 = vcombine.high %v530_v2, %v534_v7  ;;  %v10717_v18 = vcombine.low %v530_v2, %v534_v7 }
 0x196   :  { %6619 = vmatprep.subr.bf16.mxu0 %v10916_v9  ;;  %v10963_v9 = vcombine.low %v777_v55, %v781_v21  ;;  %v574_v55 = vld [vmem:[#allocation5 + $0xca8] sm:$0xff]  ;;  %v12916_v21 = vcombine.high %v12912_v46, %v12912_v46  ;;  %v833_v2 = vld [vmem:[#allocation5 + $0x14c0] sm:$0xff] }
 0x197   :  { %6866 = vmatpush1.bf16.msra.mxu1 %v10661_v11  ;;  %v10972_v11 = vcombine.high %v785_v63, %v789_v1  ;;  %v861_v35 = vld [vmem:[#allocation5 + $0x15a0] sm:$0xff] }
 0x198   :  { %6867 = vmatprep.subr.bf16.mxu1 %v10670_v14  ;;  %v542_v14 = vld [vmem:[#allocation5 + $0xba8] sm:$0xff] }
 0x199   :  { %6620 = vmatpush1.bf16.msra.mxu0 %v10915_v13  ;;  %v538_v13 = vld [vmem:[#allocation5 + $0xb88] sm:$0xff] }
 0x19a   :  { %6621 = vmatprep.subr.bf16.mxu0 %v10924_v19  ;;  %v10971_v19 = vcombine.low %v785_v63, %v789_v1  ;;  %v10726_v20 = vcombine.high %v538_v13, %v542_v14  ;;  %v10725_v29 = vcombine.low %v538_v13, %v542_v14  ;;  %v578_v63 = vld [vmem:[#allocation5 + $0xcc8] sm:$0xff]  ;;  %v841_v14 = vld [vmem:[#allocation5 + $0x1500] sm:$0xff] }
 0x19b   :  { %6868 = vmatpush1.bf16.msra.mxu1 %v10669_v22  ;;  %v10980_v22 = vcombine.high %v793_v16, %v797_v17  ;;  %v582_v1 = vld [vmem:[#allocation5 + $0xce8] sm:$0xff] }
 0x19c   :  { %6869 = vmatprep.subr.bf16.mxu1 %v10678_v24  ;;  %v550_v24 = vld [vmem:[#allocation5 + $0xbe8] sm:$0xff] }
 0x19d   :  { %6622 = vmatpush1.bf16.msra.mxu0 %v10923_v23  ;;  %v546_v23 = vld [vmem:[#allocation5 + $0xbc8] sm:$0xff] }
 0x19e   :  { %6623 = vmatprep.subr.bf16.mxu0 %v10932_v30  ;;  %v10979_v30 = vcombine.low %v793_v16, %v797_v17  ;;  %v10734_v31 = vcombine.high %v546_v23, %v550_v24  ;;  %v590_v13 = vld [vmem:[#allocation5 + $0xd28] sm:$0xff]  ;;  %v845_v16 = vld [vmem:[#allocation5 + $0x1520] sm:$0xff]  ;;  %v10765_v17 = vcombine.low %v578_v63, %v582_v1 }
 0x19f   :  { %6870 = vmatpush1.bf16.msra.mxu1 %v10677_v32  ;;  %v10988_v32 = vcombine.high %v801_v26, %v805_v27  ;;  %v853_v26 = vld [vmem:[#allocation5 + $0x1560] sm:$0xff] }
 0x1a0   :  { %6871 = vmatprep.subr.bf16.mxu1 %v10686_v34  ;;  %v558_v34 = vld [vmem:[#allocation5 + $0xc28] sm:$0xff] }
 0x1a1   :  { %6624 = vmatpush1.bf16.msra.mxu0 %v10931_v33  ;;  %v554_v33 = vld [vmem:[#allocation5 + $0xc08] sm:$0xff] }
 0x1a2   :  { %6625 = vmatprep.subr.bf16.mxu0 %v10940_v38  ;;  %v10733_v38 = vcombine.low %v546_v23, %v550_v24  ;;  %v10741_v49 = vcombine.low %v554_v33, %v558_v34  ;;  %v598_v23 = vld [vmem:[#allocation5 + $0xd68] sm:$0xff]  ;;  %v849_v24 = vld [vmem:[#allocation5 + $0x1540] sm:$0xff] }
 0x1a3   :  { %6872 = vmatpush1.bf16.msra.mxu1 %v10685_v41  ;;  %v10742_v41 = vcombine.high %v554_v33, %v558_v34  ;;  %v606_v33 = vld [vmem:[#allocation5 + $0xda8] sm:$0xff]  ;;  %v857_v34 = vld [vmem:[#allocation5 + $0x1580] sm:$0xff] }
 0x1a4   :  { %6873 = vmatprep.subr.bf16.mxu1 %v10694_v43  ;;  %v562_v43 = vld [vmem:[#allocation5 + $0xc48] sm:$0xff] }
 0x1a5   :  { %6626 = vmatpush1.bf16.msra.mxu0 %v10939_v42  ;;  %v10996_v42 = vcombine.high %v809_v36, %v813_v37  ;;  %v10749_v58 = vcombine.low %v562_v43, %v566_v45  ;;  %v11035_v37 = vcombine.low %v849_v24, %v853_v26 }
 0x1a6   :  { %6627 = vmatprep.subr.bf16.mxu0 %v10948_v48  ;;  %v821_v48 = vld [vmem:[#allocation5 + $0x1460] sm:$0xff] }
 0x1a7   :  { %6874 = vmatpush1.bf16.msra.mxu1 %v10693_v50  ;;  %v10750_v50 = vcombine.high %v562_v43, %v566_v45  ;;  %v614_v43 = vld [vmem:[#allocation5 + $0xde8] sm:$0xff] }
 0x1a8   :  { %6875 = vmatprep.subr.bf16.mxu1 %v10702_v53  ;;  %v570_v53 = vld [vmem:[#allocation5 + $0xc88] sm:$0xff] }
 0x1a9   :  { %6628 = vmatpush1.bf16.msra.mxu0 %v10947_v52  ;;  %v11004_v52 = vcombine.high %v817_v47, %v821_v48  ;;  %v10757_v7 = vcombine.low %v570_v53, %v574_v55 }
 0x1aa   :  { %6629 = vmatprep.subr.bf16.mxu0 %v10956_v57  ;;  %v829_v57 = vld [vmem:[#allocation5 + $0x14a0] sm:$0xff] }
 0x1ab   :  { %6876 = vmatpush1.bf16.msra.mxu1 %v10701_v59  ;;  %v11003_v59 = vcombine.low %v817_v47, %v821_v48  ;;  %v865_v47 = vld [vmem:[#allocation5 + $0x15c0] sm:$0xff] }
 0x1ac   :  { %6877 = vmatprep.subr.bf16.mxu1 %v10710_v62  ;;  %v11012_v62 = vcombine.high %v825_v56, %v829_v57  ;;  %v869_v48 = vld [vmem:[#allocation5 + $0x15e0] sm:$0xff] }
 0x1ad   :  { %6630 = vmatpush1.bf16.msra.mxu0 %v10955_v60  ;;  %v10758_v60 = vcombine.high %v570_v53, %v574_v55  ;;  %v11052_v55 = vcombine.high %v865_v47, %v869_v48 }
 0x1ae   :  { %6631 = vmatprep.subr.bf16.mxu0 %v10964_v4  ;;  %v837_v4 = vld [vmem:[#allocation5 + $0x14e0] sm:$0xff] }
 0x1af   :  { %6878 = vmatpush1.bf16.msra.mxu1 %v10709_v8  ;;  %v11011_v8 = vcombine.low %v825_v56, %v829_v57  ;;  %v618_v56 = vld [vmem:[#allocation5 + $0xe08] sm:$0xff] }
 0x1b0   :  { %6879 = vmatprep.subr.bf16.mxu1 %v10718_v10  ;;  %v11020_v10 = vcombine.high %v833_v2, %v837_v4  ;;  %v622_v57 = vld [vmem:[#allocation5 + $0xe28] sm:$0xff] }
 0x1b1   :  { %6632 = vmatpush1.bf16.msra.mxu0 %v10963_v9  ;;  %v10766_v9 = vcombine.high %v578_v63, %v582_v1  ;;  %v10806_v63 = vcombine.high %v618_v56, %v622_v57 }
 0x1b2   :  { %6633 = vmatprep.subr.bf16.mxu0 %v10972_v11  ;;  %v586_v11 = vld [vmem:[#allocation5 + $0xd08] sm:$0xff] }
 0x1b3   :  { %6880 = vmatpush1.bf16.msra.mxu1 %v10717_v18  ;;  %v11019_v18 = vcombine.low %v833_v2, %v837_v4  ;;  %v10773_v27 = vcombine.low %v586_v11, %v590_v13  ;;  %v626_v2 = vld [vmem:[#allocation5 + $0xe48] sm:$0xff] }
 0x1b4   :  { %6881 = vmatprep.subr.bf16.mxu1 %v10726_v20  ;;  %v11028_v20 = vcombine.high %v841_v14, %v845_v16  ;;  %v630_v4 = vld [vmem:[#allocation5 + $0xe68] sm:$0xff] }
 0x1b5   :  { %6634 = vmatpush1.bf16.msra.mxu0 %v10971_v19  ;;  %v10774_v19 = vcombine.high %v586_v11, %v590_v13  ;;  %v10814_v11 = vcombine.high %v626_v2, %v630_v4 }
 0x1b6   :  { %6635 = vmatprep.subr.bf16.mxu0 %v10980_v22  ;;  %v594_v22 = vld [vmem:[#allocation5 + $0xd48] sm:$0xff] }
 0x1b7   :  { %6882 = vmatpush1.bf16.msra.mxu1 %v10725_v29  ;;  %v11027_v29 = vcombine.low %v841_v14, %v845_v16  ;;  %v10781_v36 = vcombine.low %v594_v22, %v598_v23  ;;  %v634_v14 = vld [vmem:[#allocation5 + $0xe88] sm:$0xff] }
 0x1b8   :  { %6883 = vmatprep.subr.bf16.mxu1 %v10734_v31  ;;  %v11036_v31 = vcombine.high %v849_v24, %v853_v26  ;;  %v638_v16 = vld [vmem:[#allocation5 + $0xea8] sm:$0xff] }
 0x1b9   :  { %6636 = vmatpush1.bf16.msra.mxu0 %v10979_v30  ;;  %v10782_v30 = vcombine.high %v594_v22, %v598_v23  ;;  %v10822_v22 = vcombine.high %v634_v14, %v638_v16  ;;  %v642_v24 = vld [vmem:[#allocation5 + $0xec8] sm:$0xff] }
 0x1ba   :  { %6637 = vmatprep.subr.bf16.mxu0 %v10988_v32  ;;  %v602_v32 = vld [vmem:[#allocation5 + $0xd88] sm:$0xff] }
 0x1bb   :  { %6884 = vmatpush1.bf16.msra.mxu1 %v10733_v38  ;;  %v10790_v38 = vcombine.high %v602_v32, %v606_v33  ;;  %v646_v26 = vld [vmem:[#allocation5 + $0xee8] sm:$0xff] }
 0x1bc   :  { %6894 = vmatprep.subr.bf16.mxu1 %v10742_v41  ;;  %v11044_v41 = vcombine.high %v857_v34, %v861_v35 }
 0x1bd   :  { %6638 = vmatpush1.bf16.msra.mxu0 %v10987_v40 }
 0x1be   :  { %6648 = vmatprep.subr.bf16.mxu0 %v10996_v42  ;;  %6886 = vmatmul.mubr.bf16.vlgmr.msra.gmra.mrb[4].mxu1 %v12872_v28  ;;  %v610_v42 = vld [vmem:[#allocation5 + $0xdc8] sm:$0xff] }
 0x1bf   :  { %6895 = vmatpush1.bf16.msra.mxu1 %v10741_v49  ;;  %6926 = vmatprep.mubr.bf16.mxu1 %v12889_v61  ;;  %v10798_v53 = vcombine.high %v610_v42, %v614_v43 }
 0x1c0   :  { %6640 = vmatmul.mubr.bf16.vlgmr.msra.gmra.mrb[0].mxu0 %v12899_v15  ;;  %6896 = vmatprep.subr.bf16.mxu1 %v10750_v50 }
 0x1c1   :  { %6649 = vmatpush1.bf16.msra.mxu0 %v10995_v3  ;;  %6680 = vmatprep.mubr.bf16.mxu0 %v12916_v21  ;;  %v10789_v3 = vcombine.low %v602_v32, %v606_v33  ;;  %v10830_v32 = vcombine.high %v642_v24, %v646_v26 }
 0x1c2   :  { %6650 = vmatprep.subr.bf16.mxu0 %v11004_v52  ;;  %v11043_v52 = vcombine.low %v857_v34, %v861_v35  ;;  %v650_v34 = vld [vmem:[#allocation5 + $0xf08] sm:$0xff] }
 0x1c3   :  { %6897 = vmatpush1.bf16.msra.mxu1 %v10749_v58  ;;  %v873_v58 = vld [vmem:[#allocation5 + $0x1600] sm:$0xff]  ;;  %v654_v35 = vld [vmem:[#allocation5 + $0xf28] sm:$0xff] }
 0x1c4   :  { %6898 = vmatprep.subr.bf16.mxu1 %v10758_v60  ;;  %v10797_v60 = vcombine.low %v610_v42, %v614_v43  ;;  %v10838_v42 = vcombine.high %v650_v34, %v654_v35 }
 0x1c5   :  { %6651 = vmatpush1.bf16.msra.mxu0 %v11003_v59  ;;  %v877_v59 = vld [vmem:[#allocation5 + $0x1620] sm:$0xff] }
 0x1c6   :  { %6652 = vmatprep.subr.bf16.mxu0 %v11012_v62  ;;  %v11051_v62 = vcombine.low %v865_v47, %v869_v48  ;;  %v11060_v1 = vcombine.high %v873_v58, %v877_v59  ;;  %v658_v47 = vld [vmem:[#allocation5 + $0xf48] sm:$0xff] }
 0x1c7   :  { %6899 = vmatpush1.bf16.msra.mxu1 %v10757_v7  ;;  %v881_v7 = vld [vmem:[#allocation5 + $0x1640] sm:$0xff]  ;;  %v662_v48 = vld [vmem:[#allocation5 + $0xf68] sm:$0xff] }
 0x1c8   :  { %6900 = vmatprep.subr.bf16.mxu1 %v10766_v9  ;;  %v10805_v9 = vcombine.low %v618_v56, %v622_v57  ;;  %v666_v56 = vld [vmem:[#allocation5 + $0xf88] sm:$0xff] }
 0x1c9   :  { %6653 = vmatpush1.bf16.msra.mxu0 %v11011_v8  ;;  %v885_v8 = vld [vmem:[#allocation5 + $0x1660] sm:$0xff]  ;;  %v670_v57 = vld [vmem:[#allocation5 + $0xfa8] sm:$0xff] }
 0x1ca   :  { %6654 = vmatprep.subr.bf16.mxu0 %v11020_v10  ;;  %v11059_v10 = vcombine.low %v873_v58, %v877_v59  ;;  %v11068_v13 = vcombine.high %v881_v7, %v885_v8  ;;  %v921_v58 = vld [vmem:[#allocation5 + $0x1780] sm:$0xff] }
 0x1cb   :  { %6901 = vmatpush1.bf16.msra.mxu1 %v10765_v17  ;;  %v889_v17 = vld [vmem:[#allocation5 + $0x1680] sm:$0xff] }
 0x1cc   :  { %6902 = vmatprep.subr.bf16.mxu1 %v10774_v19  ;;  %v10813_v19 = vcombine.low %v626_v2, %v630_v4  ;;  %v925_v59 = vld [vmem:[#allocation5 + $0x17a0] sm:$0xff]  ;;  %v674_v2 = vld [vmem:[#allocation5 + $0xfc8] sm:$0xff] }
 0x1cd   :  { %6655 = vmatpush1.bf16.msra.mxu0 %v11019_v18  ;;  %v893_v18 = vld [vmem:[#allocation5 + $0x16a0] sm:$0xff]  ;;  %v678_v4 = vld [vmem:[#allocation5 + $0xfe8] sm:$0xff] }
 0x1ce   :  { %6656 = vmatprep.subr.bf16.mxu0 %v11028_v20  ;;  %v11067_v20 = vcombine.low %v881_v7, %v885_v8  ;;  %v11076_v23 = vcombine.high %v889_v17, %v893_v18  ;;  %v929_v7 = vld [vmem:[#allocation5 + $0x17c0] sm:$0xff] }
 0x1cf   :  { %6903 = vmatpush1.bf16.msra.mxu1 %v10773_v27  ;;  %v897_v27 = vld [vmem:[#allocation5 + $0x16c0] sm:$0xff] }
 0x1d0   :  { %6904 = vmatprep.subr.bf16.mxu1 %v10782_v30  ;;  %v10821_v30 = vcombine.low %v634_v14, %v638_v16  ;;  %v933_v8 = vld [vmem:[#allocation5 + $0x17e0] sm:$0xff]  ;;  %v682_v14 = vld [vmem:[#allocation5 + $0x1008] sm:$0xff] }
 0x1d1   :  { %6657 = vmatpush1.bf16.msra.mxu0 %v11027_v29  ;;  %v12922_v40 = vpop.f32.mrb[0].mxu1  ;;  %v901_v29 = vld [vmem:[#allocation5 + $0x16e0] sm:$0xff]  ;;  %v686_v16 = vld [vmem:[#allocation5 + $0x1028] sm:$0xff] }
 0x1d2   :  { %6658 = vmatprep.subr.bf16.mxu0 %v11036_v31  ;;  %v12924_v45 = vpop.f32.mrb[1].mxu1  ;;  %v11075_v31 = vcombine.low %v889_v17, %v893_v18  ;;  %v11084_v33 = vcombine.high %v897_v27, %v901_v29  ;;  %v937_v17 = vld [vmem:[#allocation5 + $0x1800] sm:$0xff] }
 0x1d3   :  { %v6481_v49 = vpop.f32.mrb[2].mxu1  ;;  %6905 = vmatpush1.bf16.msra.mxu1 %v10781_v36  ;;  %v905_v36 = vld [vmem:[#allocation5 + $0x1700] sm:$0xff] }
 0x1d4   :  { %v6482_v50 = vpop.f32.mrb[3].mxu1  ;;  %6906 = vmatprep.subr.bf16.mxu1 %v10790_v38  ;;  %v10829_v38 = vcombine.low %v642_v24, %v646_v26  ;;  %v913_v49 = vld [vmem:[#allocation5 + $0x1740] sm:$0xff]  ;;  %v690_v26 = vld [vmem:[#allocation5 + $0x1048] sm:$0xff] }
 0x1d5   :  { %6659 = vmatpush1.bf16.msra.mxu0 %v11035_v37  ;;  %v909_v37 = vld [vmem:[#allocation5 + $0x1720] sm:$0xff]  ;;  %v10837_v50 = vcombine.low %v650_v34, %v654_v35 }
 0x1d6   :  { %6660 = vmatprep.subr.bf16.mxu0 %v11044_v41  ;;  %v11083_v41 = vcombine.low %v897_v27, %v901_v29  ;;  %v11092_v43 = vcombine.high %v905_v36, %v909_v37  ;;  %v941_v18 = vld [vmem:[#allocation5 + $0x1820] sm:$0xff]  ;;  %v694_v27 = vld [vmem:[#allocation5 + $0x1068] sm:$0xff] }
 0x1d7   :  { %6907 = vmatpush1.bf16.msra.mxu1 %v10789_v3  ;;  %v917_v3 = vld [vmem:[#allocation5 + $0x1760] sm:$0xff]  ;;  %v11124_v24 = vcombine.high %v937_v17, %v941_v18  ;;  %v10878_v34 = vcombine.high %v690_v26, %v694_v27 }
 0x1d8   :  { %6908 = vmatprep.subr.bf16.mxu1 %v10798_v53  ;;  %v10846_v53 = vcombine.high %v658_v47, %v662_v48 }
 0x1d9   :  { %6661 = vmatpush1.bf16.msra.mxu0 %v11043_v52  ;;  %v11091_v52 = vcombine.low %v905_v36, %v909_v37  ;;  %v698_v36 = vld [vmem:[#allocation5 + $0x1088] sm:$0xff] }
 0x1da   :  { %6662 = vmatprep.subr.bf16.mxu0 %v11052_v55  ;;  %v11100_v55 = vcombine.high %v913_v49, %v917_v3  ;;  %v702_v37 = vld [vmem:[#allocation5 + $0x10a8] sm:$0xff] }
 0x1db   :  { %6909 = vmatpush1.bf16.msra.mxu1 %v10797_v60  ;;  %v10845_v60 = vcombine.low %v658_v47, %v662_v48  ;;  %v10886_v48 = vcombine.high %v698_v36, %v702_v37 }
 0x1dc   :  { %6910 = vmatprep.subr.bf16.mxu1 %v10806_v63  ;;  %v10854_v63 = vcombine.high %v666_v56, %v670_v57 }
 0x1dd   :  { %6663 = vmatpush1.bf16.msra.mxu0 %v11051_v62  ;;  %v11099_v62 = vcombine.low %v913_v49, %v917_v3  ;;  %v706_v3 = vld [vmem:[#allocation5 + $0x10c8] sm:$0xff] }
 0x1de   :  { %6664 = vmatprep.subr.bf16.mxu0 %v11060_v1  ;;  %v11108_v1 = vcombine.high %v921_v58, %v925_v59 }
 0x1df   :  { %6911 = vmatpush1.bf16.msra.mxu1 %v10805_v9  ;;  %v10853_v9 = vcombine.low %v666_v56, %v670_v57 }
 0x1e0   :  { %6912 = vmatprep.subr.bf16.mxu1 %v10814_v11  ;;  %v10862_v11 = vcombine.high %v674_v2, %v678_v4 }
 0x1e1   :  { %6665 = vmatpush1.bf16.msra.mxu0 %v11059_v10  ;;  %v11107_v10 = vcombine.low %v921_v58, %v925_v59  ;;  %v714_v59 = vld [vmem:[#allocation5 + $0x1108] sm:$0xff] }
 0x1e2   :  { %6666 = vmatprep.subr.bf16.mxu0 %v11068_v13  ;;  %v11116_v13 = vcombine.high %v929_v7, %v933_v8 }
 0x1e3   :  { %6913 = vmatpush1.bf16.msra.mxu1 %v10813_v19  ;;  %v12926_v19 = vld [vmem:[#allocation3 + $0x18] sm:$0xff] }
 0x1e4   :  { %6914 = vmatprep.subr.bf16.mxu1 %v10822_v22  ;;  %v11115_v22 = vcombine.low %v929_v7, %v933_v8  ;;  %v12930_v29 = vrot.slane %v12926_v19, %v12850_v54  ;;  %v722_v8 = vld [vmem:[#allocation5 + $0x1148] sm:$0xff] }
 0x1e5   :  { %6667 = vmatpush1.bf16.msra.mxu0 %v11067_v20  ;;  %v10861_v20 = vcombine.low %v674_v2, %v678_v4 }
 0x1e6   :  { %6668 = vmatprep.subr.bf16.mxu0 %v11076_v23  ;;  %v10870_v23 = vcombine.high %v682_v14, %v686_v16 }
 0x1e7   :  { %6915 = vmatpush1.bf16.msra.mxu1 %v10821_v30  ;;  %v945_v30 = vld [vmem:[#allocation5 + $0x1840] sm:$0xff] }
 0x1e8   :  { %6916 = vmatprep.subr.bf16.mxu1 %v10830_v32  ;;  %v10869_v32 = vcombine.low %v682_v14, %v686_v16 }
 0x1e9   :  { %6669 = vmatpush1.bf16.msra.mxu0 %v11075_v31  ;;  %v949_v31 = vld [vmem:[#allocation5 + $0x1860] sm:$0xff] }
 0x1ea   :  { %6670 = vmatprep.subr.bf16.mxu0 %v11084_v33  ;;  %v11123_v33 = vcombine.low %v937_v17, %v941_v18  ;;  %v11132_v35 = vcombine.high %v945_v30, %v949_v31  ;;  %v11131_v47 = vcombine.low %v945_v30, %v949_v31  ;;  %v730_v18 = vld [vmem:[#allocation5 + $0x1188] sm:$0xff] }
 0x1eb   :  { %6917 = vmatpush1.bf16.msra.mxu1 %v10829_v38  ;;  %v12934_v38 = vcombine.high %v12930_v29, %v12930_v29  ;;  %v738_v31 = vld [vmem:[#allocation5 + $0x11c8] sm:$0xff] }
 0x1ec   :  { %6918 = vmatprep.subr.bf16.mxu1 %v10838_v42  ;;  %v957_v42 = vld [vmem:[#allocation5 + $0x18a0] sm:$0xff] }
 0x1ed   :  { %6671 = vmatpush1.bf16.msra.mxu0 %v11083_v41  ;;  %v953_v41 = vld [vmem:[#allocation5 + $0x1880] sm:$0xff] }
 0x1ee   :  { %6672 = vmatprep.subr.bf16.mxu0 %v11092_v43  ;;  %v10877_v43 = vcombine.low %v690_v26, %v694_v27  ;;  %v11140_v49 = vcombine.high %v953_v41, %v957_v42  ;;  %v11139_v56 = vcombine.low %v953_v41, %v957_v42  ;;  %v746_v42 = vld [vmem:[#allocation5 + $0x1208] sm:$0xff] }
 0x1ef   :  { %6919 = vmatpush1.bf16.msra.mxu1 %v10837_v50  ;;  %v710_v50 = vld [vmem:[#allocation5 + $0x10e8] sm:$0xff] }
 0x1f0   :  { %6920 = vmatprep.subr.bf16.mxu1 %v10846_v53  ;;  %v965_v53 = vld [vmem:[#allocation5 + $0x18e0] sm:$0xff]  ;;  %v10894_v57 = vcombine.high %v706_v3, %v710_v50 }
 0x1f1   :  { %6673 = vmatpush1.bf16.msra.mxu0 %v11091_v52  ;;  %v961_v52 = vld [vmem:[#allocation5 + $0x18c0] sm:$0xff] }
 0x1f2   :  { %6674 = vmatprep.subr.bf16.mxu0 %v11100_v55  ;;  %v10885_v55 = vcombine.low %v698_v36, %v702_v37  ;;  %v11148_v58 = vcombine.high %v961_v52, %v965_v53  ;;  %v11147_v2 = vcombine.low %v961_v52, %v965_v53  ;;  %v754_v53 = vld [vmem:[#allocation5 + $0x1248] sm:$0xff] }
 0x1f3   :  { %6921 = vmatpush1.bf16.msra.mxu1 %v10845_v60  ;;  %v718_v60 = vld [vmem:[#allocation5 + $0x1128] sm:$0xff] }
 0x1f4   :  { %6922 = vmatprep.subr.bf16.mxu1 %v10854_v63  ;;  %v973_v63 = vld [vmem:[#allocation5 + $0x1920] sm:$0xff]  ;;  %v10902_v4 = vcombine.high %v714_v59, %v718_v60 }
 0x1f5   :  { %6675 = vmatpush1.bf16.msra.mxu0 %v11099_v62  ;;  %v969_v62 = vld [vmem:[#allocation5 + $0x1900] sm:$0xff] }
 0x1f6   :  { %6676 = vmatprep.subr.bf16.mxu0 %v11108_v1  ;;  %v10893_v1 = vcombine.low %v706_v3, %v710_v50  ;;  %v11156_v7 = vcombine.high %v969_v62, %v973_v63  ;;  %v11155_v14 = vcombine.low %v969_v62, %v973_v63  ;;  %v762_v63 = vld [vmem:[#allocation5 + $0x1288] sm:$0xff] }
 0x1f7   :  { %6923 = vmatpush1.bf16.msra.mxu1 %v10853_v9  ;;  %v726_v9 = vld [vmem:[#allocation5 + $0x1168] sm:$0xff] }
 0x1f8   :  { %6924 = vmatprep.subr.bf16.mxu1 %v10862_v11  ;;  %v981_v11 = vld [vmem:[#allocation5 + $0x1960] sm:$0xff]  ;;  %v10910_v16 = vcombine.high %v722_v8, %v726_v9 }
 0x1f9   :  { %6677 = vmatpush1.bf16.msra.mxu0 %v11107_v10  ;;  %v977_v10 = vld [vmem:[#allocation5 + $0x1940] sm:$0xff] }
 0x1fa   :  { %6678 = vmatprep.subr.bf16.mxu0 %v11116_v13  ;;  %v10901_v13 = vcombine.low %v714_v59, %v718_v60  ;;  %v11164_v17 = vcombine.high %v977_v10, %v981_v11  ;;  %v11163_v26 = vcombine.low %v977_v10, %v981_v11  ;;  %v770_v11 = vld [vmem:[#allocation5 + $0x12c8] sm:$0xff] }
 0x1fb   :  { %6925 = vmatpush1.bf16.msra.mxu1 %v10861_v20  ;;  %v734_v20 = vld [vmem:[#allocation5 + $0x11a8] sm:$0xff] }
 0x1fc   :  { %6935 = vmatprep.subr.bf16.mxu1 %v10870_v23  ;;  %v989_v23 = vld [vmem:[#allocation5 + $0x19a0] sm:$0xff]  ;;  %v10918_v27 = vcombine.high %v730_v18, %v734_v20 }
 0x1fd   :  { %6679 = vmatpush1.bf16.msra.mxu0 %v11115_v22  ;;  %v985_v22 = vld [vmem:[#allocation5 + $0x1980] sm:$0xff] }
 0x1fe   :  { %6689 = vmatprep.subr.bf16.mxu0 %v11124_v24  ;;  %6927 = vmatmul.mubr.bf16.vlgmr.msra.gmra.mrb[4].mxu1 %v12885_v51  ;;  %v10909_v24 = vcombine.low %v722_v8, %v726_v9  ;;  %v11172_v30 = vcombine.high %v985_v22, %v989_v23  ;;  %v11171_v36 = vcombine.low %v985_v22, %v989_v23  ;;  %v778_v23 = vld [vmem:[#allocation5 + $0x1308] sm:$0xff] }
 0x1ff   :  { %6936 = vmatpush1.bf16.msra.mxu1 %v10869_v32  ;;  %6967 = vmatprep.mubr.bf16.mxu1 %v12903_v25  ;;  %v742_v32 = vld [vmem:[#allocation5 + $0x11e8] sm:$0xff] }
 0x200   :  { %6681 = vmatmul.mubr.bf16.vlgmr.msra.gmra.mrb[0].mxu0 %v12912_v46  ;;  %6937 = vmatprep.subr.bf16.mxu1 %v10878_v34  ;;  %v997_v34 = vld [vmem:[#allocation5 + $0x19e0] sm:$0xff]  ;;  %v10926_v37 = vcombine.high %v738_v31, %v742_v32 }
 0x201   :  { %6690 = vmatpush1.bf16.msra.mxu0 %v11123_v33  ;;  %6721 = vmatprep.mubr.bf16.mxu0 %v12934_v38  ;;  %v993_v33 = vld [vmem:[#allocation5 + $0x19c0] sm:$0xff] }
 0x202   :  { %6691 = vmatprep.subr.bf16.mxu0 %v11132_v35  ;;  %v10917_v35 = vcombine.low %v730_v18, %v734_v20  ;;  %v11180_v41 = vcombine.high %v993_v33, %v997_v34  ;;  %v11179_v3 = vcombine.low %v993_v33, %v997_v34  ;;  %v786_v34 = vld [vmem:[#allocation5 + $0x1348] sm:$0xff] }
 0x203   :  { %6938 = vmatpush1.bf16.msra.mxu1 %v10877_v43  ;;  %v750_v43 = vld [vmem:[#allocation5 + $0x1228] sm:$0xff] }
 0x204   :  { %6939 = vmatprep.subr.bf16.mxu1 %v10886_v48  ;;  %v1005_v48 = vld [vmem:[#allocation5 + $0x1a20] sm:$0xff]  ;;  %v10934_v50 = vcombine.high %v746_v42, %v750_v43 }
 0x205   :  { %6692 = vmatpush1.bf16.msra.mxu0 %v11131_v47  ;;  %v1001_v47 = vld [vmem:[#allocation5 + $0x1a00] sm:$0xff] }
 0x206   :  { %6693 = vmatprep.subr.bf16.mxu0 %v11140_v49  ;;  %v10925_v49 = vcombine.low %v738_v31, %v742_v32  ;;  %v11188_v52 = vcombine.high %v1001_v47, %v1005_v48  ;;  %v11187_v59 = vcombine.low %v1001_v47, %v1005_v48  ;;  %v794_v48 = vld [vmem:[#allocation5 + $0x1388] sm:$0xff] }
 0x207   :  { %6940 = vmatpush1.bf16.msra.mxu1 %v10885_v55  ;;  %v758_v55 = vld [vmem:[#allocation5 + $0x1268] sm:$0xff] }
 0x208   :  { %6941 = vmatprep.subr.bf16.mxu1 %v10894_v57  ;;  %v1013_v57 = vld [vmem:[#allocation5 + $0x1a60] sm:$0xff]  ;;  %v10942_v60 = vcombine.high %v754_v53, %v758_v55 }
 0x209   :  { %6694 = vmatpush1.bf16.msra.mxu0 %v11139_v56  ;;  %v1009_v56 = vld [vmem:[#allocation5 + $0x1a40] sm:$0xff] }
 0x20a   :  { %6695 = vmatprep.subr.bf16.mxu0 %v11148_v58  ;;  %v10933_v58 = vcombine.low %v746_v42, %v750_v43  ;;  %v11196_v62 = vcombine.high %v1009_v56, %v1013_v57  ;;  %v11195_v8 = vcombine.low %v1009_v56, %v1013_v57  ;;  %v802_v57 = vld [vmem:[#allocation5 + $0x13c8] sm:$0xff] }
 0x20b   :  { %6942 = vmatpush1.bf16.msra.mxu1 %v10893_v1  ;;  %v766_v1 = vld [vmem:[#allocation5 + $0x12a8] sm:$0xff] }
 0x20c   :  { %6943 = vmatprep.subr.bf16.mxu1 %v10902_v4  ;;  %v1021_v4 = vld [vmem:[#allocation5 + $0x1aa0] sm:$0xff]  ;;  %v10950_v9 = vcombine.high %v762_v63, %v766_v1 }
 0x20d   :  { %6696 = vmatpush1.bf16.msra.mxu0 %v11147_v2  ;;  %v1017_v2 = vld [vmem:[#allocation5 + $0x1a80] sm:$0xff] }
 0x20e   :  { %6697 = vmatprep.subr.bf16.mxu0 %v11156_v7  ;;  %v10941_v7 = vcombine.low %v754_v53, %v758_v55  ;;  %v11204_v10 = vcombine.high %v1017_v2, %v1021_v4  ;;  %v11203_v18 = vcombine.low %v1017_v2, %v1021_v4  ;;  %v810_v4 = vld [vmem:[#allocation5 + $0x1408] sm:$0xff] }
 0x20f   :  { %6944 = vmatpush1.bf16.msra.mxu1 %v10901_v13  ;;  %v774_v13 = vld [vmem:[#allocation5 + $0x12e8] sm:$0xff] }
 0x210   :  { %6945 = vmatprep.subr.bf16.mxu1 %v10910_v16  ;;  %v1029_v16 = vld [vmem:[#allocation5 + $0x1ae0] sm:$0xff]  ;;  %v10958_v20 = vcombine.high %v770_v11, %v774_v13 }
 0x211   :  { %6698 = vmatpush1.bf16.msra.mxu0 %v11155_v14  ;;  %v1025_v14 = vld [vmem:[#allocation5 + $0x1ac0] sm:$0xff] }
 0x212   :  { %6699 = vmatprep.subr.bf16.mxu0 %v11164_v17  ;;  %v10949_v17 = vcombine.low %v762_v63, %v766_v1  ;;  %v11212_v22 = vcombine.high %v1025_v14, %v1029_v16  ;;  %v11211_v31 = vcombine.low %v1025_v14, %v1029_v16 }
 0x213   :  { %6946 = vmatpush1.bf16.msra.mxu1 %v10909_v24  ;;  %v782_v24 = vld [vmem:[#allocation5 + $0x1328] sm:$0xff] }
 0x214   :  { %6947 = vmatprep.subr.bf16.mxu1 %v10918_v27  ;;  %v1037_v27 = vld [vmem:[#allocation5 + $0x1b20] sm:$0xff]  ;;  %v10966_v32 = vcombine.high %v778_v23, %v782_v24 }
 0x215   :  { %6700 = vmatpush1.bf16.msra.mxu0 %v11163_v26  ;;  %v1033_v26 = vld [vmem:[#allocation5 + $0x1b00] sm:$0xff] }
 0x216   :  { %6701 = vmatprep.subr.bf16.mxu0 %v11172_v30  ;;  %v10957_v30 = vcombine.low %v770_v11, %v774_v13  ;;  %v11220_v33 = vcombine.high %v1033_v26, %v1037_v27  ;;  %v11219_v42 = vcombine.low %v1033_v26, %v1037_v27 }
 0x217   :  { %6948 = vmatpush1.bf16.msra.mxu1 %v10917_v35  ;;  %v790_v35 = vld [vmem:[#allocation5 + $0x1368] sm:$0xff] }
 0x218   :  { %6949 = vmatprep.subr.bf16.mxu1 %v10926_v37  ;;  %v1045_v37 = vld [vmem:[#allocation5 + $0x1b60] sm:$0xff]  ;;  %v10974_v43 = vcombine.high %v786_v34, %v790_v35 }
 0x219   :  { %6702 = vmatpush1.bf16.msra.mxu0 %v11171_v36  ;;  %v1041_v36 = vld [vmem:[#allocation5 + $0x1b40] sm:$0xff] }
 0x21a   :  { %6703 = vmatprep.subr.bf16.mxu0 %v11180_v41  ;;  %v10965_v41 = vcombine.low %v778_v23, %v782_v24  ;;  %v11228_v47 = vcombine.high %v1041_v36, %v1045_v37  ;;  %v11227_v53 = vcombine.low %v1041_v36, %v1045_v37  ;;  %v1077_v23 = vld [vmem:[#allocation5 + $0x1c60] sm:$0xff] }
 0x21b   :  { %6950 = vmatpush1.bf16.msra.mxu1 %v10925_v49  ;;  %v798_v49 = vld [vmem:[#allocation5 + $0x13a8] sm:$0xff] }
 0x21c   :  { %6951 = vmatprep.subr.bf16.mxu1 %v10934_v50  ;;  %v1053_v50 = vld [vmem:[#allocation5 + $0x1ba0] sm:$0xff]  ;;  %v10982_v55 = vcombine.high %v794_v48, %v798_v49 }
 0x21d   :  { %6704 = vmatpush1.bf16.msra.mxu0 %v11179_v3  ;;  %v1049_v3 = vld [vmem:[#allocation5 + $0x1b80] sm:$0xff] }
 0x21e   :  { %6705 = vmatprep.subr.bf16.mxu0 %v11188_v52  ;;  %v10973_v52 = vcombine.low %v786_v34, %v790_v35  ;;  %v11236_v56 = vcombine.high %v1049_v3, %v1053_v50  ;;  %v11235_v63 = vcombine.low %v1049_v3, %v1053_v50 }
 0x21f   :  { %6952 = vmatpush1.bf16.msra.mxu1 %v10933_v58  ;;  %v806_v58 = vld [vmem:[#allocation5 + $0x13e8] sm:$0xff] }
 0x220   :  { %6953 = vmatprep.subr.bf16.mxu1 %v10942_v60  ;;  %v1061_v60 = vld [vmem:[#allocation5 + $0x1be0] sm:$0xff]  ;;  %v10990_v1 = vcombine.high %v802_v57, %v806_v58  ;;  %v10989_v11 = vcombine.low %v802_v57, %v806_v58 }
 0x221   :  { %6706 = vmatpush1.bf16.msra.mxu0 %v11187_v59  ;;  %v1057_v59 = vld [vmem:[#allocation5 + $0x1bc0] sm:$0xff] }
 0x222   :  { %6707 = vmatprep.subr.bf16.mxu0 %v11196_v62  ;;  %v10981_v62 = vcombine.low %v794_v48, %v798_v49  ;;  %v11244_v2 = vcombine.high %v1057_v59, %v1061_v60  ;;  %v11243_v13 = vcombine.low %v1057_v59, %v1061_v60 }
 0x223   :  { %6954 = vmatpush1.bf16.msra.mxu1 %v10941_v7  ;;  %v814_v7 = vld [vmem:[#allocation5 + $0x1428] sm:$0xff] }
 0x224   :  { %6955 = vmatprep.subr.bf16.mxu1 %v10950_v9  ;;  %v1065_v9 = vld [vmem:[#allocation5 + $0x1c00] sm:$0xff]  ;;  %v10998_v14 = vcombine.high %v810_v4, %v814_v7  ;;  %v10997_v24 = vcombine.low %v810_v4, %v814_v7 }
 0x225   :  { %6708 = vmatpush1.bf16.msra.mxu0 %v11195_v8  ;;  %v1290_v8 = vcombine.high %v12926_v19, %v12926_v19 }
 0x226   :  { %6709 = vmatprep.subr.bf16.mxu0 %v11204_v10  ;;  %v1069_v10 = vld [vmem:[#allocation5 + $0x1c20] sm:$0xff] }
 0x227   :  { %6956 = vmatpush1.bf16.msra.mxu1 %v10949_v17  ;;  %v11252_v16 = vcombine.high %v1065_v9, %v1069_v10  ;;  %v818_v17 = vld [vmem:[#allocation5 + $0x1448] sm:$0xff]  ;;  %v11251_v19 = vcombine.low %v1065_v9, %v1069_v10 }
 0x228   :  { %6957 = vmatprep.subr.bf16.mxu1 %v10958_v20  ;;  %v12943_v20 = vrot.slane %v1290_v8, %v12850_v54  ;;  %v1081_v54 = vld [vmem:[#allocation5 + $0x1c80] sm:$0xff]  ;;  %v858_v10 = vld [vmem:[#allocation5 + $0x1588] sm:$0xff] }
 0x229   :  { %6710 = vmatpush1.bf16.msra.mxu0 %v11203_v18  ;;  %v822_v18 = vld [vmem:[#allocation5 + $0x1468] sm:$0xff] }
 0x22a   :  { %6711 = vmatprep.subr.bf16.mxu0 %v11212_v22  ;;  %v1073_v22 = vld [vmem:[#allocation5 + $0x1c40] sm:$0xff]  ;;  %v11006_v26 = vcombine.high %v818_v17, %v822_v18  ;;  %v11005_v34 = vcombine.low %v818_v17, %v822_v18 }
 0x22b   :  { %6958 = vmatpush1.bf16.msra.mxu1 %v10957_v30  ;;  %v11260_v27 = vcombine.high %v1073_v22, %v1077_v23  ;;  %v826_v30 = vld [vmem:[#allocation5 + $0x1488] sm:$0xff]  ;;  %v11259_v35 = vcombine.low %v1073_v22, %v1077_v23 }
 0x22c   :  { %6959 = vmatprep.subr.bf16.mxu1 %v10966_v32  ;;  %v12947_v32 = vcombine.high %v12943_v20, %v12943_v20  ;;  %v866_v23 = vld [vmem:[#allocation5 + $0x15c8] sm:$0xff] }
 0x22d   :  { %6712 = vmatpush1.bf16.msra.mxu0 %v11211_v31  ;;  %v830_v31 = vld [vmem:[#allocation5 + $0x14a8] sm:$0xff] }
 0x22e   :  { %6713 = vmatprep.subr.bf16.mxu0 %v11220_v33  ;;  %v1085_v33 = vld [vmem:[#allocation5 + $0x1ca0] sm:$0xff]  ;;  %v11014_v36 = vcombine.high %v826_v30, %v830_v31  ;;  %v11013_v48 = vcombine.low %v826_v30, %v830_v31 }
 0x22f   :  { %6960 = vmatpush1.bf16.msra.mxu1 %v10965_v41  ;;  %v11268_v37 = vcombine.high %v1081_v54, %v1085_v33  ;;  %v834_v41 = vld [vmem:[#allocation5 + $0x14c8] sm:$0xff]  ;;  %v11267_v49 = vcombine.low %v1081_v54, %v1085_v33 }
 0x230   :  { %6961 = vmatprep.subr.bf16.mxu1 %v10974_v43  ;;  %v1089_v43 = vld [vmem:[#allocation5 + $0x1cc0] sm:$0xff]  ;;  %v874_v33 = vld [vmem:[#allocation5 + $0x1608] sm:$0xff] }
 0x231   :  { %6714 = vmatpush1.bf16.msra.mxu0 %v11219_v42  ;;  %v838_v42 = vld [vmem:[#allocation5 + $0x14e8] sm:$0xff] }
 0x232   :  { %6715 = vmatprep.subr.bf16.mxu0 %v11228_v47  ;;  %v1093_v47 = vld [vmem:[#allocation5 + $0x1ce0] sm:$0xff]  ;;  %v11022_v3 = vcombine.high %v834_v41, %v838_v42  ;;  %v11021_v57 = vcombine.low %v834_v41, %v838_v42 }
 0x233   :  { %6962 = vmatpush1.bf16.msra.mxu1 %v10973_v52  ;;  %v11276_v50 = vcombine.high %v1089_v43, %v1093_v47  ;;  %v842_v52 = vld [vmem:[#allocation5 + $0x1508] sm:$0xff]  ;;  %v11275_v58 = vcombine.low %v1089_v43, %v1093_v47 }
 0x234   :  { %6963 = vmatprep.subr.bf16.mxu1 %v10982_v55  ;;  %v1097_v55 = vld [vmem:[#allocation5 + $0x1d00] sm:$0xff]  ;;  %v882_v47 = vld [vmem:[#allocation5 + $0x1648] sm:$0xff] }
 0x235   :  { %6716 = vmatpush1.bf16.msra.mxu0 %v11227_v53  ;;  %v846_v53 = vld [vmem:[#allocation5 + $0x1528] sm:$0xff] }
 0x236   :  { %6717 = vmatprep.subr.bf16.mxu0 %v11236_v56  ;;  %v1101_v56 = vld [vmem:[#allocation5 + $0x1d20] sm:$0xff]  ;;  %v11030_v59 = vcombine.high %v842_v52, %v846_v53  ;;  %v11029_v4 = vcombine.low %v842_v52, %v846_v53 }
 0x237   :  { %6964 = vmatpush1.bf16.msra.mxu1 %v10981_v62  ;;  %v11284_v60 = vcombine.high %v1097_v55, %v1101_v56  ;;  %v850_v62 = vld [vmem:[#allocation5 + $0x1548] sm:$0xff]  ;;  %v11283_v7 = vcombine.low %v1097_v55, %v1101_v56 }
 0x238   :  { %6965 = vmatprep.subr.bf16.mxu1 %v10990_v1  ;;  %v1105_v1 = vld [vmem:[#allocation5 + $0x1d40] sm:$0xff]  ;;  %v890_v56 = vld [vmem:[#allocation5 + $0x1688] sm:$0xff] }
 0x239   :  { %6718 = vmatpush1.bf16.msra.mxu0 %v11235_v63  ;;  %v854_v63 = vld [vmem:[#allocation5 + $0x1568] sm:$0xff] }
 0x23a   :  { %6719 = vmatprep.subr.bf16.mxu0 %v11244_v2  ;;  %v1109_v2 = vld [vmem:[#allocation5 + $0x1d60] sm:$0xff]  ;;  %v11038_v8 = vcombine.high %v850_v62, %v854_v63 }
 0x23b   :  { %6966 = vmatpush1.bf16.msra.mxu1 %v10989_v11  ;;  %v11292_v9 = vcombine.high %v1105_v1, %v1109_v2  ;;  %v862_v11 = vld [vmem:[#allocation5 + $0x15a8] sm:$0xff]  ;;  %v11291_v17 = vcombine.low %v1105_v1, %v1109_v2 }
 0x23c   :  { %6976 = vmatprep.subr.bf16.mxu1 %v10998_v14  ;;  %v1117_v14 = vld [vmem:[#allocation5 + $0x1da0] sm:$0xff]  ;;  %v11046_v18 = vcombine.high %v858_v10, %v862_v11  ;;  %v898_v2 = vld [vmem:[#allocation5 + $0x16c8] sm:$0xff] }
 0x23d   :  { %6720 = vmatpush1.bf16.msra.mxu0 %v11243_v13  ;;  %v1113_v13 = vld [vmem:[#allocation5 + $0x1d80] sm:$0xff] }
 0x23e   :  { %6730 = vmatprep.subr.bf16.mxu0 %v11252_v16  ;;  %6968 = vmatmul.mubr.bf16.vlgmr.msra.gmra.mrb[4].mxu1 %v12899_v15  ;;  %v11037_v16 = vcombine.low %v850_v62, %v854_v63  ;;  %v11300_v22 = vcombine.high %v1113_v13, %v1117_v14  ;;  %v11299_v30 = vcombine.low %v1113_v13, %v1117_v14  ;;  %v906_v14 = vld [vmem:[#allocation5 + $0x1708] sm:$0xff] }
 0x23f   :  { %6977 = vmatpush1.bf16.msra.mxu1 %v10997_v24  ;;  %7008 = vmatprep.mubr.bf16.mxu1 %v12916_v21  ;;  %v870_v24 = vld [vmem:[#allocation5 + $0x15e8] sm:$0xff] }
 0x240   :  { %6722 = vmatmul.mubr.bf16.vlgmr.msra.gmra.mrb[0].mxu0 %v12930_v29  ;;  %6978 = vmatprep.subr.bf16.mxu1 %v11006_v26  ;;  %v1125_v26 = vld [vmem:[#allocation5 + $0x1de0] sm:$0xff]  ;;  %v11054_v31 = vcombine.high %v866_v23, %v870_v24 }
 0x241   :  { %6731 = vmatpush1.bf16.msra.mxu0 %v11251_v19  ;;  %6762 = vmatprep.mubr.bf16.mxu0 %v12947_v32  ;;  %v1121_v19 = vld [vmem:[#allocation5 + $0x1dc0] sm:$0xff] }
 0x242   :  { %6732 = vmatprep.subr.bf16.mxu0 %v11260_v27  ;;  %v11045_v27 = vcombine.low %v858_v10, %v862_v11  ;;  %v11308_v54 = vcombine.high %v1121_v19, %v1125_v26  ;;  %v11307_v41 = vcombine.low %v1121_v19, %v1125_v26  ;;  %v914_v26 = vld [vmem:[#allocation5 + $0x1748] sm:$0xff] }
 0x243   :  { %6979 = vmatpush1.bf16.msra.mxu1 %v11005_v34  ;;  %v878_v34 = vld [vmem:[#allocation5 + $0x1628] sm:$0xff] }
 0x244   :  { %6980 = vmatprep.subr.bf16.mxu1 %v11014_v36  ;;  %v1133_v36 = vld [vmem:[#allocation5 + $0x1e20] sm:$0xff]  ;;  %v11062_v42 = vcombine.high %v874_v33, %v878_v34 }
 0x245   :  { %6733 = vmatpush1.bf16.msra.mxu0 %v11259_v35  ;;  %v1129_v35 = vld [vmem:[#allocation5 + $0x1e00] sm:$0xff] }
 0x246   :  { %6734 = vmatprep.subr.bf16.mxu0 %v11268_v37  ;;  %v11053_v37 = vcombine.low %v866_v23, %v870_v24  ;;  %v11316_v43 = vcombine.high %v1129_v35, %v1133_v36  ;;  %v11315_v52 = vcombine.low %v1129_v35, %v1133_v36  ;;  %v922_v36 = vld [vmem:[#allocation5 + $0x1788] sm:$0xff] }
 0x247   :  { %6981 = vmatpush1.bf16.msra.mxu1 %v11013_v48  ;;  %v886_v48 = vld [vmem:[#allocation5 + $0x1668] sm:$0xff] }
 0x248   :  { %6982 = vmatprep.subr.bf16.mxu1 %v11022_v3  ;;  %v1141_v3 = vld [vmem:[#allocation5 + $0x1e60] sm:$0xff]  ;;  %v11070_v53 = vcombine.high %v882_v47, %v886_v48 }
 0x249   :  { %6735 = vmatpush1.bf16.msra.mxu0 %v11267_v49  ;;  %v1137_v49 = vld [vmem:[#allocation5 + $0x1e40] sm:$0xff] }
 0x24a   :  { %6736 = vmatprep.subr.bf16.mxu0 %v11276_v50  ;;  %v11061_v50 = vcombine.low %v874_v33, %v878_v34  ;;  %v11324_v55 = vcombine.high %v1137_v49, %v1141_v3  ;;  %v11323_v62 = vcombine.low %v1137_v49, %v1141_v3  ;;  %v930_v3 = vld [vmem:[#allocation5 + $0x17c8] sm:$0xff] }
 0x24b   :  { %6983 = vmatpush1.bf16.msra.mxu1 %v11021_v57  ;;  %v894_v57 = vld [vmem:[#allocation5 + $0x16a8] sm:$0xff] }
 0x24c   :  { %6984 = vmatprep.subr.bf16.mxu1 %v11030_v59  ;;  %v1149_v59 = vld [vmem:[#allocation5 + $0x1ea0] sm:$0xff]  ;;  %v11078_v63 = vcombine.high %v890_v56, %v894_v57 }
 0x24d   :  { %6737 = vmatpush1.bf16.msra.mxu0 %v11275_v58  ;;  %v1145_v58 = vld [vmem:[#allocation5 + $0x1e80] sm:$0xff] }
 0x24e   :  { %6738 = vmatprep.subr.bf16.mxu0 %v11284_v60  ;;  %v11069_v60 = vcombine.low %v882_v47, %v886_v48  ;;  %v11332_v1 = vcombine.high %v1145_v58, %v1149_v59  ;;  %v11331_v10 = vcombine.low %v1145_v58, %v1149_v59  ;;  %v938_v59 = vld [vmem:[#allocation5 + $0x1808] sm:$0xff] }
 0x24f   :  { %6985 = vmatpush1.bf16.msra.mxu1 %v11029_v4  ;;  %v902_v4 = vld [vmem:[#allocation5 + $0x16e8] sm:$0xff] }
 0x250   :  { %6986 = vmatprep.subr.bf16.mxu1 %v11038_v8  ;;  %v1157_v8 = vld [vmem:[#allocation5 + $0x1ee0] sm:$0xff]  ;;  %v11086_v11 = vcombine.high %v898_v2, %v902_v4 }
 0x251   :  { %6739 = vmatpush1.bf16.msra.mxu0 %v11283_v7  ;;  %v1153_v7 = vld [vmem:[#allocation5 + $0x1ec0] sm:$0xff] }
 0x252   :  { %6740 = vmatprep.subr.bf16.mxu0 %v11292_v9  ;;  %v11077_v9 = vcombine.low %v890_v56, %v894_v57  ;;  %v11340_v13 = vcombine.high %v1153_v7, %v1157_v8  ;;  %v11339_v23 = vcombine.low %v1153_v7, %v1157_v8  ;;  %v946_v8 = vld [vmem:[#allocation5 + $0x1848] sm:$0xff] }
 0x253   :  { %6987 = vmatpush1.bf16.msra.mxu1 %v11037_v16  ;;  %v910_v16 = vld [vmem:[#allocation5 + $0x1728] sm:$0xff] }
 0x254   :  { %6988 = vmatprep.subr.bf16.mxu1 %v11046_v18  ;;  %v1165_v18 = vld [vmem:[#allocation5 + $0x1f20] sm:$0xff]  ;;  %v11094_v24 = vcombine.high %v906_v14, %v910_v16 }
 0x255   :  { %6741 = vmatpush1.bf16.msra.mxu0 %v11291_v17  ;;  %v1161_v17 = vld [vmem:[#allocation5 + $0x1f00] sm:$0xff] }
 0x256   :  { %6742 = vmatprep.subr.bf16.mxu0 %v11300_v22  ;;  %v11085_v22 = vcombine.low %v898_v2, %v902_v4  ;;  %v11348_v19 = vcombine.high %v1161_v17, %v1165_v18  ;;  %v11347_v33 = vcombine.low %v1161_v17, %v1165_v18  ;;  %v954_v18 = vld [vmem:[#allocation5 + $0x1888] sm:$0xff] }
 0x257   :  { %6989 = vmatpush1.bf16.msra.mxu1 %v11045_v27  ;;  %v918_v27 = vld [vmem:[#allocation5 + $0x1768] sm:$0xff] }
 0x258   :  { %6990 = vmatprep.subr.bf16.mxu1 %v11054_v31  ;;  %v1173_v31 = vld [vmem:[#allocation5 + $0x1f60] sm:$0xff]  ;;  %v11102_v34 = vcombine.high %v914_v26, %v918_v27 }
 0x259   :  { %6743 = vmatpush1.bf16.msra.mxu0 %v11299_v30  ;;  %v1169_v30 = vld [vmem:[#allocation5 + $0x1f40] sm:$0xff] }
 0x25a   :  { %6744 = vmatprep.subr.bf16.mxu0 %v11308_v54  ;;  %v11093_v54 = vcombine.low %v906_v14, %v910_v16  ;;  %v11356_v35 = vcombine.high %v1169_v30, %v1173_v31  ;;  %v11355_v47 = vcombine.low %v1169_v30, %v1173_v31  ;;  %v962_v31 = vld [vmem:[#allocation5 + $0x18c8] sm:$0xff] }
 0x25b   :  { %6991 = vmatpush1.bf16.msra.mxu1 %v11053_v37  ;;  %v926_v37 = vld [vmem:[#allocation5 + $0x17a8] sm:$0xff] }
 0x25c   :  { %6992 = vmatprep.subr.bf16.mxu1 %v11062_v42  ;;  %v1181_v42 = vld [vmem:[#allocation5 + $0x1fa0] sm:$0xff]  ;;  %v11110_v48 = vcombine.high %v922_v36, %v926_v37 }
 0x25d   :  { %6745 = vmatpush1.bf16.msra.mxu0 %v11307_v41  ;;  %v1177_v41 = vld [vmem:[#allocation5 + $0x1f80] sm:$0xff] }
 0x25e   :  { %6746 = vmatprep.subr.bf16.mxu0 %v11316_v43  ;;  %v11101_v43 = vcombine.low %v914_v26, %v918_v27  ;;  %v11364_v49 = vcombine.high %v1177_v41, %v1181_v42  ;;  %v11363_v56 = vcombine.low %v1177_v41, %v1181_v42  ;;  %v970_v42 = vld [vmem:[#allocation5 + $0x1908] sm:$0xff] }
 0x25f   :  { %6993 = vmatpush1.bf16.msra.mxu1 %v11061_v50  ;;  %v934_v50 = vld [vmem:[#allocation5 + $0x17e8] sm:$0xff] }
 0x260   :  { %6994 = vmatprep.subr.bf16.mxu1 %v11070_v53  ;;  %v1189_v53 = vld [vmem:[#allocation5 + $0x1fe0] sm:$0xff]  ;;  %v11118_v57 = vcombine.high %v930_v3, %v934_v50 }
 0x261   :  { %6747 = vmatpush1.bf16.msra.mxu0 %v11315_v52  ;;  %v1185_v52 = vld [vmem:[#allocation5 + $0x1fc0] sm:$0xff] }
 0x262   :  { %6748 = vmatprep.subr.bf16.mxu0 %v11324_v55  ;;  %v11109_v55 = vcombine.low %v922_v36, %v926_v37  ;;  %v11372_v58 = vcombine.high %v1185_v52, %v1189_v53  ;;  %v11371_v2 = vcombine.low %v1185_v52, %v1189_v53  ;;  %v978_v53 = vld [vmem:[#allocation5 + $0x1948] sm:$0xff] }
 0x263   :  { %6995 = vmatpush1.bf16.msra.mxu1 %v11069_v60  ;;  %v942_v60 = vld [vmem:[#allocation5 + $0x1828] sm:$0xff] }
 0x264   :  { %6996 = vmatprep.subr.bf16.mxu1 %v11078_v63  ;;  %v175_v63 = vld [vmem:[#allocation5 + $0x30] sm:$0xff]  ;;  %v11126_v4 = vcombine.high %v938_v59, %v942_v60 }
 0x265   :  { %6749 = vmatpush1.bf16.msra.mxu0 %v11323_v62  ;;  %v171_v62 = vld [vmem:[#allocation5 + $0x10] sm:$0xff] }
 0x266   :  { %6750 = vmatprep.subr.bf16.mxu0 %v11332_v1  ;;  %v11117_v1 = vcombine.low %v930_v3, %v934_v50  ;;  %v10360_v7 = vcombine.high %v171_v62, %v175_v63  ;;  %v10359_v14 = vcombine.low %v171_v62, %v175_v63  ;;  %v986_v63 = vld [vmem:[#allocation5 + $0x1988] sm:$0xff] }
 0x267   :  { %6997 = vmatpush1.bf16.msra.mxu1 %v11077_v9  ;;  %v950_v9 = vld [vmem:[#allocation5 + $0x1868] sm:$0xff] }
 0x268   :  { %6998 = vmatprep.subr.bf16.mxu1 %v11086_v11  ;;  %v183_v11 = vld [vmem:[#allocation5 + $0x70] sm:$0xff]  ;;  %v11134_v16 = vcombine.high %v946_v8, %v950_v9 }
 0x269   :  { %6751 = vmatpush1.bf16.msra.mxu0 %v11331_v10  ;;  %v179_v10 = vld [vmem:[#allocation5 + $0x50] sm:$0xff] }
 0x26a   :  { %6752 = vmatprep.subr.bf16.mxu0 %v11340_v13  ;;  %v11125_v13 = vcombine.low %v938_v59, %v942_v60  ;;  %v10368_v17 = vcombine.high %v179_v10, %v183_v11  ;;  %v10367_v26 = vcombine.low %v179_v10, %v183_v11  ;;  %v994_v11 = vld [vmem:[#allocation5 + $0x19c8] sm:$0xff] }
 0x26b   :  { %6999 = vmatpush1.bf16.msra.mxu1 %v11085_v22  ;;  %v958_v22 = vld [vmem:[#allocation5 + $0x18a8] sm:$0xff] }
 0x26c   :  { %7000 = vmatprep.subr.bf16.mxu1 %v11094_v24  ;;  %v191_v24 = vld [vmem:[#allocation5 + $0xb0] sm:$0xff]  ;;  %v11142_v27 = vcombine.high %v954_v18, %v958_v22 }
 0x26d   :  { %6753 = vmatpush1.bf16.msra.mxu0 %v11339_v23  ;;  %v187_v23 = vld [vmem:[#allocation5 + $0x90] sm:$0xff] }
 0x26e   :  { %6754 = vmatprep.subr.bf16.mxu0 %v11348_v19  ;;  %v11133_v19 = vcombine.low %v946_v8, %v950_v9  ;;  %v10376_v30 = vcombine.high %v187_v23, %v191_v24  ;;  %v10375_v36 = vcombine.low %v187_v23, %v191_v24  ;;  %v1002_v24 = vld [vmem:[#allocation5 + $0x1a08] sm:$0xff] }
 0x26f   :  { %7001 = vmatpush1.bf16.msra.mxu1 %v11093_v54  ;;  %v966_v54 = vld [vmem:[#allocation5 + $0x18e8] sm:$0xff] }
 0x270   :  { %7002 = vmatprep.subr.bf16.mxu1 %v11102_v34  ;;  %v199_v34 = vld [vmem:[#allocation5 + $0xf0] sm:$0xff]  ;;  %v11150_v37 = vcombine.high %v962_v31, %v966_v54 }
 0x271   :  { %6755 = vmatpush1.bf16.msra.mxu0 %v11347_v33  ;;  %v195_v33 = vld [vmem:[#allocation5 + $0xd0] sm:$0xff] }
 0x272   :  { %6756 = vmatprep.subr.bf16.mxu0 %v11356_v35  ;;  %v11141_v35 = vcombine.low %v954_v18, %v958_v22  ;;  %v10384_v41 = vcombine.high %v195_v33, %v199_v34  ;;  %v10383_v3 = vcombine.low %v195_v33, %v199_v34  ;;  %v1010_v34 = vld [vmem:[#allocation5 + $0x1a48] sm:$0xff] }
 0x273   :  { %7003 = vmatpush1.bf16.msra.mxu1 %v11101_v43  ;;  %v974_v43 = vld [vmem:[#allocation5 + $0x1928] sm:$0xff] }
 0x274   :  { %7004 = vmatprep.subr.bf16.mxu1 %v11110_v48  ;;  %v207_v48 = vld [vmem:[#allocation5 + $0x130] sm:$0xff]  ;;  %v11158_v50 = vcombine.high %v970_v42, %v974_v43 }
 0x275   :  { %6757 = vmatpush1.bf16.msra.mxu0 %v11355_v47  ;;  %v203_v47 = vld [vmem:[#allocation5 + $0x110] sm:$0xff] }
 0x276   :  { %6758 = vmatprep.subr.bf16.mxu0 %v11364_v49  ;;  %v11149_v49 = vcombine.low %v962_v31, %v966_v54  ;;  %v10392_v52 = vcombine.high %v203_v47, %v207_v48  ;;  %v10391_v59 = vcombine.low %v203_v47, %v207_v48  ;;  %v1018_v48 = vld [vmem:[#allocation5 + $0x1a88] sm:$0xff] }
 0x277   :  { %7005 = vmatpush1.bf16.msra.mxu1 %v11109_v55  ;;  %v982_v55 = vld [vmem:[#allocation5 + $0x1968] sm:$0xff] }
 0x278   :  { %7006 = vmatprep.subr.bf16.mxu1 %v11118_v57  ;;  %v215_v57 = vld [vmem:[#allocation5 + $0x170] sm:$0xff]  ;;  %v11166_v60 = vcombine.high %v978_v53, %v982_v55 }
 0x279   :  { %6759 = vmatpush1.bf16.msra.mxu0 %v11363_v56  ;;  %v211_v56 = vld [vmem:[#allocation5 + $0x150] sm:$0xff] }
 0x27a   :  { %6760 = vmatprep.subr.bf16.mxu0 %v11372_v58  ;;  %v11157_v58 = vcombine.low %v970_v42, %v974_v43  ;;  %v10400_v62 = vcombine.high %v211_v56, %v215_v57  ;;  %v10399_v8 = vcombine.low %v211_v56, %v215_v57  ;;  %v1026_v57 = vld [vmem:[#allocation5 + $0x1ac8] sm:$0xff] }
 0x27b   :  { %7007 = vmatpush1.bf16.msra.mxu1 %v11117_v1  ;;  %v990_v1 = vld [vmem:[#allocation5 + $0x19a8] sm:$0xff] }
 0x27c   :  { %7017 = vmatprep.subr.bf16.mxu1 %v11126_v4  ;;  %v223_v4 = vld [vmem:[#allocation5 + $0x1b0] sm:$0xff]  ;;  %v11174_v9 = vcombine.high %v986_v63, %v990_v1 }
 0x27d   :  { %6761 = vmatpush1.bf16.msra.mxu0 %v11371_v2  ;;  %v219_v2 = vld [vmem:[#allocation5 + $0x190] sm:$0xff] }
 0x27e   :  { %7099 = vmatprep.subr.bf16.mxu0 %v10360_v7  ;;  %7009 = vmatmul.mubr.bf16.vlgmr.msra.gmra.mrb[4].mxu1 %v12912_v46  ;;  %v11165_v7 = vcombine.low %v978_v53, %v982_v55  ;;  %v10408_v10 = vcombine.high %v219_v2, %v223_v4  ;;  %v10407_v18 = vcombine.low %v219_v2, %v223_v4  ;;  %v1034_v4 = vld [vmem:[#allocation5 + $0x1b08] sm:$0xff] }
 0x27f   :  { %7018 = vmatpush1.bf16.msra.mxu1 %v11125_v13  ;;  %7049 = vmatprep.mubr.bf16.mxu1 %v12934_v38  ;;  %v998_v13 = vld [vmem:[#allocation5 + $0x19e8] sm:$0xff] }
 0x280   :  { %6763 = vmatmul.mubr.bf16.vlgmr.msra.gmra.mrb[0].mxu0 %v12943_v20  ;;  %7019 = vmatprep.subr.bf16.mxu1 %v11134_v16  ;;  %v231_v16 = vld [vmem:[#allocation5 + $0x1f0] sm:$0xff]  ;;  %v11182_v22 = vcombine.high %v994_v11, %v998_v13 }
 0x281   :  { %7100 = vmatpush1.bf16.msra.mxu0 %v10359_v14  ;;  %7131 = vmatprep.mubr.bf16.mxu0 %v12857_v5  ;;  %v227_v14 = vld [vmem:[#allocation5 + $0x1d0] sm:$0xff] }
 0x282   :  { %7101 = vmatprep.subr.bf16.mxu0 %v10368_v17  ;;  %v11173_v17 = vcombine.low %v986_v63, %v990_v1  ;;  %v10416_v23 = vcombine.high %v227_v14, %v231_v16  ;;  %v10415_v31 = vcombine.low %v227_v14, %v231_v16  ;;  %v1042_v16 = vld [vmem:[#allocation5 + $0x1b48] sm:$0xff] }
 0x283   :  { %7020 = vmatpush1.bf16.msra.mxu1 %v11133_v19  ;;  %v1006_v19 = vld [vmem:[#allocation5 + $0x1a28] sm:$0xff] }
 0x284   :  { %7021 = vmatprep.subr.bf16.mxu1 %v11142_v27  ;;  %v239_v27 = vld [vmem:[#allocation5 + $0x230] sm:$0xff]  ;;  %v11190_v54 = vcombine.high %v1002_v24, %v1006_v19 }
 0x285   :  { %7102 = vmatpush1.bf16.msra.mxu0 %v10367_v26  ;;  %v235_v26 = vld [vmem:[#allocation5 + $0x210] sm:$0xff] }
 0x286   :  { %7103 = vmatprep.subr.bf16.mxu0 %v10376_v30  ;;  %v11181_v30 = vcombine.low %v994_v11, %v998_v13  ;;  %v10424_v33 = vcombine.high %v235_v26, %v239_v27  ;;  %v10423_v42 = vcombine.low %v235_v26, %v239_v27  ;;  %v1050_v27 = vld [vmem:[#allocation5 + $0x1b88] sm:$0xff] }
 0x287   :  { %7022 = vmatpush1.bf16.msra.mxu1 %v11141_v35  ;;  %v1014_v35 = vld [vmem:[#allocation5 + $0x1a68] sm:$0xff] }
 0x288   :  { %7023 = vmatprep.subr.bf16.mxu1 %v11150_v37  ;;  %v247_v37 = vld [vmem:[#allocation5 + $0x270] sm:$0xff]  ;;  %v11198_v43 = vcombine.high %v1010_v34, %v1014_v35 }
 0x289   :  { %7104 = vmatpush1.bf16.msra.mxu0 %v10375_v36  ;;  %v243_v36 = vld [vmem:[#allocation5 + $0x250] sm:$0xff] }
 0x28a   :  { %7105 = vmatprep.subr.bf16.mxu0 %v10384_v41  ;;  %v11189_v41 = vcombine.low %v1002_v24, %v1006_v19  ;;  %v10432_v47 = vcombine.high %v243_v36, %v247_v37  ;;  %v10431_v53 = vcombine.low %v243_v36, %v247_v37  ;;  %v1058_v37 = vld [vmem:[#allocation5 + $0x1bc8] sm:$0xff] }
 0x28b   :  { %7024 = vmatpush1.bf16.msra.mxu1 %v11149_v49  ;;  %v1022_v49 = vld [vmem:[#allocation5 + $0x1aa8] sm:$0xff] }
 0x28c   :  { %7025 = vmatprep.subr.bf16.mxu1 %v11158_v50  ;;  %v255_v50 = vld [vmem:[#allocation5 + $0x2b0] sm:$0xff]  ;;  %v11206_v55 = vcombine.high %v1018_v48, %v1022_v49 }
 0x28d   :  { %7106 = vmatpush1.bf16.msra.mxu0 %v10383_v3  ;;  %v251_v3 = vld [vmem:[#allocation5 + $0x290] sm:$0xff] }
 0x28e   :  { %7107 = vmatprep.subr.bf16.mxu0 %v10392_v52  ;;  %v11197_v52 = vcombine.low %v1010_v34, %v1014_v35  ;;  %v10440_v56 = vcombine.high %v251_v3, %v255_v50  ;;  %v10439_v63 = vcombine.low %v251_v3, %v255_v50  ;;  %v1066_v50 = vld [vmem:[#allocation5 + $0x1c08] sm:$0xff] }
 0x28f   :  { %7026 = vmatpush1.bf16.msra.mxu1 %v11157_v58  ;;  %v1030_v58 = vld [vmem:[#allocation5 + $0x1ae8] sm:$0xff] }
 0x290   :  { %7027 = vmatprep.subr.bf16.mxu1 %v11166_v60  ;;  %v263_v60 = vld [vmem:[#allocation5 + $0x2f0] sm:$0xff]  ;;  %v11214_v1 = vcombine.high %v1026_v57, %v1030_v58 }
 0x291   :  { %7108 = vmatpush1.bf16.msra.mxu0 %v10391_v59  ;;  %v259_v59 = vld [vmem:[#allocation5 + $0x2d0] sm:$0xff] }
 0x292   :  { %7109 = vmatprep.subr.bf16.mxu0 %v10400_v62  ;;  %v11205_v62 = vcombine.low %v1018_v48, %v1022_v49  ;;  %v10448_v2 = vcombine.high %v259_v59, %v263_v60  ;;  %v10447_v11 = vcombine.low %v259_v59, %v263_v60  ;;  %v1074_v60 = vld [vmem:[#allocation5 + $0x1c48] sm:$0xff] }
 0x293   :  { %7028 = vmatpush1.bf16.msra.mxu1 %v11165_v7  ;;  %v1038_v7 = vld [vmem:[#allocation5 + $0x1b28] sm:$0xff] }
 0x294   :  { %7029 = vmatprep.subr.bf16.mxu1 %v11174_v9  ;;  %v271_v9 = vld [vmem:[#allocation5 + $0x330] sm:$0xff]  ;;  %v11222_v13 = vcombine.high %v1034_v4, %v1038_v7 }
 0x295   :  { %7110 = vmatpush1.bf16.msra.mxu0 %v10399_v8  ;;  %v267_v8 = vld [vmem:[#allocation5 + $0x310] sm:$0xff] }
 0x296   :  { %7111 = vmatprep.subr.bf16.mxu0 %v10408_v10  ;;  %v11213_v10 = vcombine.low %v1026_v57, %v1030_v58  ;;  %v10456_v14 = vcombine.high %v267_v8, %v271_v9  ;;  %v10455_v24 = vcombine.low %v267_v8, %v271_v9  ;;  %v1082_v9 = vld [vmem:[#allocation5 + $0x1c88] sm:$0xff] }
 0x297   :  { %7030 = vmatpush1.bf16.msra.mxu1 %v11173_v17  ;;  %v1046_v17 = vld [vmem:[#allocation5 + $0x1b68] sm:$0xff] }
 0x298   :  { %7031 = vmatprep.subr.bf16.mxu1 %v11182_v22  ;;  %v279_v22 = vld [vmem:[#allocation5 + $0x370] sm:$0xff]  ;;  %v11230_v19 = vcombine.high %v1042_v16, %v1046_v17 }
 0x299   :  { %7112 = vmatpush1.bf16.msra.mxu0 %v10407_v18  ;;  %v275_v18 = vld [vmem:[#allocation5 + $0x350] sm:$0xff] }
 0x29a   :  { %7113 = vmatprep.subr.bf16.mxu0 %v10416_v23  ;;  %v11221_v23 = vcombine.low %v1034_v4, %v1038_v7  ;;  %v10464_v26 = vcombine.high %v275_v18, %v279_v22  ;;  %v10463_v34 = vcombine.low %v275_v18, %v279_v22  ;;  %v1090_v22 = vld [vmem:[#allocation5 + $0x1cc8] sm:$0xff] }
 0x29b   :  { %7032 = vmatpush1.bf16.msra.mxu1 %v11181_v30  ;;  %v1054_v30 = vld [vmem:[#allocation5 + $0x1ba8] sm:$0xff] }
 0x29c   :  { %7033 = vmatprep.subr.bf16.mxu1 %v11190_v54  ;;  %v287_v54 = vld [vmem:[#allocation5 + $0x3b0] sm:$0xff]  ;;  %v11238_v35 = vcombine.high %v1050_v27, %v1054_v30 }
 0x29d   :  { %7114 = vmatpush1.bf16.msra.mxu0 %v10415_v31  ;;  %v283_v31 = vld [vmem:[#allocation5 + $0x390] sm:$0xff] }
 0x29e   :  { %7115 = vmatprep.subr.bf16.mxu0 %v10424_v33  ;;  %v11229_v33 = vcombine.low %v1042_v16, %v1046_v17  ;;  %v10472_v36 = vcombine.high %v283_v31, %v287_v54  ;;  %v10471_v48 = vcombine.low %v283_v31, %v287_v54  ;;  %v1098_v54 = vld [vmem:[#allocation5 + $0x1d08] sm:$0xff] }
 0x29f   :  { %7034 = vmatpush1.bf16.msra.mxu1 %v11189_v41  ;;  %v1062_v41 = vld [vmem:[#allocation5 + $0x1be8] sm:$0xff] }
 0x2a0   :  { %7035 = vmatprep.subr.bf16.mxu1 %v11198_v43  ;;  %v295_v43 = vld [vmem:[#allocation5 + $0x3f0] sm:$0xff]  ;;  %v11246_v49 = vcombine.high %v1058_v37, %v1062_v41 }
 0x2a1   :  { %7116 = vmatpush1.bf16.msra.mxu0 %v10423_v42  ;;  %v291_v42 = vld [vmem:[#allocation5 + $0x3d0] sm:$0xff] }
 0x2a2   :  { %7117 = vmatprep.subr.bf16.mxu0 %v10432_v47  ;;  %v11237_v47 = vcombine.low %v1050_v27, %v1054_v30  ;;  %v10480_v3 = vcombine.high %v291_v42, %v295_v43  ;;  %v10479_v57 = vcombine.low %v291_v42, %v295_v43  ;;  %v1106_v43 = vld [vmem:[#allocation5 + $0x1d48] sm:$0xff] }
 0x2a3   :  { %7036 = vmatpush1.bf16.msra.mxu1 %v11197_v52  ;;  %v1070_v52 = vld [vmem:[#allocation5 + $0x1c28] sm:$0xff] }
 0x2a4   :  { %7037 = vmatprep.subr.bf16.mxu1 %v11206_v55  ;;  %v303_v55 = vld [vmem:[#allocation5 + $0x430] sm:$0xff]  ;;  %v11254_v58 = vcombine.high %v1066_v50, %v1070_v52 }
 0x2a5   :  { %7118 = vmatpush1.bf16.msra.mxu0 %v10431_v53  ;;  %v299_v53 = vld [vmem:[#allocation5 + $0x410] sm:$0xff] }
 0x2a6   :  { %7119 = vmatprep.subr.bf16.mxu0 %v10440_v56  ;;  %v11245_v56 = vcombine.low %v1058_v37, %v1062_v41  ;;  %v10488_v59 = vcombine.high %v299_v53, %v303_v55  ;;  %v10487_v4 = vcombine.low %v299_v53, %v303_v55  ;;  %v1114_v55 = vld [vmem:[#allocation5 + $0x1d88] sm:$0xff] }
 0x2a7   :  { %7038 = vmatpush1.bf16.msra.mxu1 %v11205_v62  ;;  %v1078_v62 = vld [vmem:[#allocation5 + $0x1c68] sm:$0xff] }
 0x2a8   :  { %7039 = vmatprep.subr.bf16.mxu1 %v11214_v1  ;;  %v311_v1 = vld [vmem:[#allocation5 + $0x470] sm:$0xff]  ;;  %v11262_v7 = vcombine.high %v1074_v60, %v1078_v62 }
 0x2a9   :  { %7120 = vmatpush1.bf16.msra.mxu0 %v10439_v63  ;;  %v307_v63 = vld [vmem:[#allocation5 + $0x450] sm:$0xff] }
 0x2aa   :  { %7121 = vmatprep.subr.bf16.mxu0 %v10448_v2  ;;  %v11253_v2 = vcombine.low %v1066_v50, %v1070_v52  ;;  %v10496_v8 = vcombine.high %v307_v63, %v311_v1  ;;  %v10495_v16 = vcombine.low %v307_v63, %v311_v1  ;;  %v1122_v1 = vld [vmem:[#allocation5 + $0x1dc8] sm:$0xff] }
 0x2ab   :  { %7040 = vmatpush1.bf16.msra.mxu1 %v11213_v10  ;;  %v1086_v10 = vld [vmem:[#allocation5 + $0x1ca8] sm:$0xff] }
 0x2ac   :  { %7041 = vmatprep.subr.bf16.mxu1 %v11222_v13  ;;  %v319_v13 = vld [vmem:[#allocation5 + $0x4b0] sm:$0xff]  ;;  %v11270_v17 = vcombine.high %v1082_v9, %v1086_v10 }
 0x2ad   :  { %7122 = vmatpush1.bf16.msra.mxu0 %v10447_v11  ;;  %v315_v11 = vld [vmem:[#allocation5 + $0x490] sm:$0xff] }
 0x2ae   :  { %7123 = vmatprep.subr.bf16.mxu0 %v10456_v14  ;;  %v11261_v14 = vcombine.low %v1074_v60, %v1078_v62  ;;  %v10504_v18 = vcombine.high %v315_v11, %v319_v13  ;;  %v10503_v27 = vcombine.low %v315_v11, %v319_v13  ;;  %v1130_v13 = vld [vmem:[#allocation5 + $0x1e08] sm:$0xff] }
 0x2af   :  { %7042 = vmatpush1.bf16.msra.mxu1 %v11221_v23  ;;  %v1094_v23 = vld [vmem:[#allocation5 + $0x1ce8] sm:$0xff] }
 0x2b0   :  { %7043 = vmatprep.subr.bf16.mxu1 %v11230_v19  ;;  %v327_v19 = vld [vmem:[#allocation5 + $0x4f0] sm:$0xff]  ;;  %v11278_v30 = vcombine.high %v1090_v22, %v1094_v23 }
 0x2b1   :  { %7124 = vmatpush1.bf16.msra.mxu0 %v10455_v24  ;;  %v323_v24 = vld [vmem:[#allocation5 + $0x4d0] sm:$0xff] }
 0x2b2   :  { %7125 = vmatprep.subr.bf16.mxu0 %v10464_v26  ;;  %v11269_v26 = vcombine.low %v1082_v9, %v1086_v10  ;;  %v10512_v31 = vcombine.high %v323_v24, %v327_v19  ;;  %v10511_v37 = vcombine.low %v323_v24, %v327_v19  ;;  %v1138_v19 = vld [vmem:[#allocation5 + $0x1e48] sm:$0xff] }
 0x2b3   :  { %7044 = vmatpush1.bf16.msra.mxu1 %v11229_v33  ;;  %v1102_v33 = vld [vmem:[#allocation5 + $0x1d28] sm:$0xff] }
 0x2b4   :  { %7045 = vmatprep.subr.bf16.mxu1 %v11238_v35  ;;  %v335_v35 = vld [vmem:[#allocation5 + $0x530] sm:$0xff]  ;;  %v11286_v41 = vcombine.high %v1098_v54, %v1102_v33 }
 0x2b5   :  { %7126 = vmatpush1.bf16.msra.mxu0 %v10463_v34  ;;  %v331_v34 = vld [vmem:[#allocation5 + $0x510] sm:$0xff] }
 0x2b6   :  { %7127 = vmatprep.subr.bf16.mxu0 %v10472_v36  ;;  %v11277_v36 = vcombine.low %v1090_v22, %v1094_v23  ;;  %v10520_v42 = vcombine.high %v331_v34, %v335_v35  ;;  %v10519_v50 = vcombine.low %v331_v34, %v335_v35  ;;  %v1146_v35 = vld [vmem:[#allocation5 + $0x1e88] sm:$0xff] }
 0x2b7   :  { %7046 = vmatpush1.bf16.msra.mxu1 %v11237_v47  ;;  %v1110_v47 = vld [vmem:[#allocation5 + $0x1d68] sm:$0xff] }
 0x2b8   :  { %7047 = vmatprep.subr.bf16.mxu1 %v11246_v49  ;;  %v343_v49 = vld [vmem:[#allocation5 + $0x570] sm:$0xff]  ;;  %v11294_v52 = vcombine.high %v1106_v43, %v1110_v47 }
 0x2b9   :  { %7128 = vmatpush1.bf16.msra.mxu0 %v10471_v48  ;;  %v339_v48 = vld [vmem:[#allocation5 + $0x550] sm:$0xff] }
 0x2ba   :  { %7129 = vmatprep.subr.bf16.mxu0 %v10480_v3  ;;  %v11285_v3 = vcombine.low %v1098_v54, %v1102_v33  ;;  %v10528_v53 = vcombine.high %v339_v48, %v343_v49  ;;  %v10527_v60 = vcombine.low %v339_v48, %v343_v49  ;;  %v1154_v49 = vld [vmem:[#allocation5 + $0x1ec8] sm:$0xff] }
 0x2bb   :  { %7048 = vmatpush1.bf16.msra.mxu1 %v11245_v56  ;;  %v1118_v56 = vld [vmem:[#allocation5 + $0x1da8] sm:$0xff] }
 0x2bc   :  { %7058 = vmatprep.subr.bf16.mxu1 %v11254_v58  ;;  %v351_v58 = vld [vmem:[#allocation5 + $0x5b0] sm:$0xff]  ;;  %v11302_v62 = vcombine.high %v1114_v55, %v1118_v56 }
 0x2bd   :  { %7130 = vmatpush1.bf16.msra.mxu0 %v10479_v57  ;;  %v347_v57 = vld [vmem:[#allocation5 + $0x590] sm:$0xff] }
 0x2be   :  { %7140 = vmatprep.subr.bf16.mxu0 %v10488_v59  ;;  %7050 = vmatmul.mubr.bf16.vlgmr.msra.gmra.mrb[4].mxu1 %v12930_v29  ;;  %v11293_v59 = vcombine.low %v1106_v43, %v1110_v47  ;;  %v10536_v63 = vcombine.high %v347_v57, %v351_v58  ;;  %v10535_v9 = vcombine.low %v347_v57, %v351_v58  ;;  %v1162_v58 = vld [vmem:[#allocation5 + $0x1f08] sm:$0xff] }
 0x2bf   :  { %7059 = vmatpush1.bf16.msra.mxu1 %v11253_v2  ;;  %7090 = vmatprep.mubr.bf16.mxu1 %v12947_v32  ;;  %v1126_v2 = vld [vmem:[#allocation5 + $0x1de8] sm:$0xff] }
 0x2c0   :  { %7132 = vmatmul.mubr.bf16.vlgmr.msra.gmra.mrb[4].mxu0 %v12853_v0  ;;  %7060 = vmatprep.subr.bf16.mxu1 %v11262_v7  ;;  %v359_v7 = vld [vmem:[#allocation5 + $0x5f0] sm:$0xff]  ;;  %v11310_v10 = vcombine.high %v1122_v1, %v1126_v2 }
 0x2c1   :  { %7141 = vmatpush1.bf16.msra.mxu0 %v10487_v4  ;;  %7172 = vmatprep.mubr.bf16.mxu0 %v12865_v12  ;;  %v355_v4 = vld [vmem:[#allocation5 + $0x5d0] sm:$0xff] }
 0x2c2   :  { %7142 = vmatprep.subr.bf16.mxu0 %v10496_v8  ;;  %v11301_v8 = vcombine.low %v1114_v55, %v1118_v56  ;;  %v10544_v11 = vcombine.high %v355_v4, %v359_v7  ;;  %v10543_v22 = vcombine.low %v355_v4, %v359_v7  ;;  %v1170_v7 = vld [vmem:[#allocation5 + $0x1f48] sm:$0xff] }
 0x2c3   :  { %7061 = vmatpush1.bf16.msra.mxu1 %v11261_v14  ;;  %v1134_v14 = vld [vmem:[#allocation5 + $0x1e28] sm:$0xff] }
 0x2c4   :  { %7062 = vmatprep.subr.bf16.mxu1 %v11270_v17  ;;  %v367_v17 = vld [vmem:[#allocation5 + $0x630] sm:$0xff]  ;;  %v11318_v23 = vcombine.high %v1130_v13, %v1134_v14 }
 0x2c5   :  { %7143 = vmatpush1.bf16.msra.mxu0 %v10495_v16  ;;  %v363_v16 = vld [vmem:[#allocation5 + $0x610] sm:$0xff] }
 0x2c6   :  { %7144 = vmatprep.subr.bf16.mxu0 %v10504_v18  ;;  %v11309_v18 = vcombine.low %v1122_v1, %v1126_v2  ;;  %v10552_v24 = vcombine.high %v363_v16, %v367_v17  ;;  %v10551_v54 = vcombine.low %v363_v16, %v367_v17  ;;  %v1178_v17 = vld [vmem:[#allocation5 + $0x1f88] sm:$0xff] }
 0x2c7   :  { %7063 = vmatpush1.bf16.msra.mxu1 %v11269_v26  ;;  %v1142_v26 = vld [vmem:[#allocation5 + $0x1e68] sm:$0xff] }
 0x2c8   :  { %7064 = vmatprep.subr.bf16.mxu1 %v11278_v30  ;;  %v375_v30 = vld [vmem:[#allocation5 + $0x670] sm:$0xff]  ;;  %v11326_v33 = vcombine.high %v1138_v19, %v1142_v26 }
 0x2c9   :  { %7145 = vmatpush1.bf16.msra.mxu0 %v10503_v27  ;;  %v371_v27 = vld [vmem:[#allocation5 + $0x650] sm:$0xff] }
 0x2ca   :  { %7146 = vmatprep.subr.bf16.mxu0 %v10512_v31  ;;  %v11317_v31 = vcombine.low %v1130_v13, %v1134_v14  ;;  %v10560_v34 = vcombine.high %v371_v27, %v375_v30  ;;  %v10559_v43 = vcombine.low %v371_v27, %v375_v30  ;;  %v1186_v30 = vld [vmem:[#allocation5 + $0x1fc8] sm:$0xff] }
 0x2cb   :  { %7065 = vmatpush1.bf16.msra.mxu1 %v11277_v36  ;;  %v1150_v36 = vld [vmem:[#allocation5 + $0x1ea8] sm:$0xff] }
 0x2cc   :  { %7066 = vmatprep.subr.bf16.mxu1 %v11286_v41  ;;  %v383_v41 = vld [vmem:[#allocation5 + $0x6b0] sm:$0xff]  ;;  %v11334_v47 = vcombine.high %v1146_v35, %v1150_v36 }
 0x2cd   :  { %7147 = vmatpush1.bf16.msra.mxu0 %v10511_v37  ;;  %v379_v37 = vld [vmem:[#allocation5 + $0x690] sm:$0xff] }
 0x2ce   :  { %7148 = vmatprep.subr.bf16.mxu0 %v10520_v42  ;;  %v11325_v42 = vcombine.low %v1138_v19, %v1142_v26  ;;  %v10568_v48 = vcombine.high %v379_v37, %v383_v41  ;;  %v10567_v55 = vcombine.low %v379_v37, %v383_v41  ;;  %v172_v41 = vld [vmem:[#allocation5 + $0x18] sm:$0xff] }
 0x2cf   :  { %7067 = vmatpush1.bf16.msra.mxu1 %v11285_v3  ;;  %v1158_v3 = vld [vmem:[#allocation5 + $0x1ee8] sm:$0xff] }
 0x2d0   :  { %7068 = vmatprep.subr.bf16.mxu1 %v11294_v52  ;;  %v391_v52 = vld [vmem:[#allocation5 + $0x6f0] sm:$0xff]  ;;  %v11342_v56 = vcombine.high %v1154_v49, %v1158_v3 }
 0x2d1   :  { %7149 = vmatpush1.bf16.msra.mxu0 %v10519_v50  ;;  %v387_v50 = vld [vmem:[#allocation5 + $0x6d0] sm:$0xff] }
 0x2d2   :  { %7150 = vmatprep.subr.bf16.mxu0 %v10528_v53  ;;  %v11333_v53 = vcombine.low %v1146_v35, %v1150_v36  ;;  %v10576_v57 = vcombine.high %v387_v50, %v391_v52  ;;  %v10575_v1 = vcombine.low %v387_v50, %v391_v52  ;;  %v180_v52 = vld [vmem:[#allocation5 + $0x58] sm:$0xff] }
 0x2d3   :  { %7069 = vmatpush1.bf16.msra.mxu1 %v11293_v59  ;;  %v1166_v59 = vld [vmem:[#allocation5 + $0x1f28] sm:$0xff] }
 0x2d4   :  { %7070 = vmatprep.subr.bf16.mxu1 %v11302_v62  ;;  %v399_v62 = vld [vmem:[#allocation5 + $0x730] sm:$0xff]  ;;  %v11350_v2 = vcombine.high %v1162_v58, %v1166_v59 }
 0x2d5   :  { %7151 = vmatpush1.bf16.msra.mxu0 %v10527_v60  ;;  %v395_v60 = vld [vmem:[#allocation5 + $0x710] sm:$0xff] }
 0x2d6   :  { %7152 = vmatprep.subr.bf16.mxu0 %v10536_v63  ;;  %v11341_v63 = vcombine.low %v1154_v49, %v1158_v3  ;;  %v10584_v4 = vcombine.high %v395_v60, %v399_v62  ;;  %v10583_v13 = vcombine.low %v395_v60, %v399_v62  ;;  %v188_v62 = vld [vmem:[#allocation5 + $0x98] sm:$0xff] }
 0x2d7   :  { %7071 = vmatpush1.bf16.msra.mxu1 %v11301_v8  ;;  %v1174_v8 = vld [vmem:[#allocation5 + $0x1f68] sm:$0xff] }
 0x2d8   :  { %7072 = vmatprep.subr.bf16.mxu1 %v11310_v10  ;;  %v407_v10 = vld [vmem:[#allocation5 + $0x770] sm:$0xff]  ;;  %v11358_v14 = vcombine.high %v1170_v7, %v1174_v8 }
 0x2d9   :  { %7153 = vmatpush1.bf16.msra.mxu0 %v10535_v9  ;;  %v403_v9 = vld [vmem:[#allocation5 + $0x750] sm:$0xff] }
 0x2da   :  { %7154 = vmatprep.subr.bf16.mxu0 %v10544_v11  ;;  %v11349_v11 = vcombine.low %v1162_v58, %v1166_v59  ;;  %v10592_v16 = vcombine.high %v403_v9, %v407_v10  ;;  %v10591_v19 = vcombine.low %v403_v9, %v407_v10  ;;  %v196_v10 = vld [vmem:[#allocation5 + $0xd8] sm:$0xff] }
 0x2db   :  { %7073 = vmatpush1.bf16.msra.mxu1 %v11309_v18  ;;  %v1182_v18 = vld [vmem:[#allocation5 + $0x1fa8] sm:$0xff] }
 0x2dc   :  { %7074 = vmatprep.subr.bf16.mxu1 %v11318_v23  ;;  %v415_v23 = vld [vmem:[#allocation5 + $0x7b0] sm:$0xff]  ;;  %v11366_v26 = vcombine.high %v1178_v17, %v1182_v18 }
 0x2dd   :  { %7155 = vmatpush1.bf16.msra.mxu0 %v10543_v22  ;;  %v411_v22 = vld [vmem:[#allocation5 + $0x790] sm:$0xff] }
 0x2de   :  { %7156 = vmatprep.subr.bf16.mxu0 %v10552_v24  ;;  %v11357_v24 = vcombine.low %v1170_v7, %v1174_v8  ;;  %v10600_v27 = vcombine.high %v411_v22, %v415_v23  ;;  %v10599_v35 = vcombine.low %v411_v22, %v415_v23  ;;  %v204_v23 = vld [vmem:[#allocation5 + $0x118] sm:$0xff] }
 0x2df   :  { %7075 = vmatpush1.bf16.msra.mxu1 %v11317_v31  ;;  %v1190_v31 = vld [vmem:[#allocation5 + $0x1fe8] sm:$0xff] }
 0x2e0   :  { %7076 = vmatprep.subr.bf16.mxu1 %v11326_v33  ;;  %v423_v33 = vld [vmem:[#allocation5 + $0x7f0] sm:$0xff]  ;;  %v11374_v36 = vcombine.high %v1186_v30, %v1190_v31 }
 0x2e1   :  { %7157 = vmatpush1.bf16.msra.mxu0 %v10551_v54  ;;  %v419_v54 = vld [vmem:[#allocation5 + $0x7d0] sm:$0xff] }
 0x2e2   :  { %7158 = vmatprep.subr.bf16.mxu0 %v10560_v34  ;;  %v11365_v34 = vcombine.low %v1178_v17, %v1182_v18  ;;  %v10608_v37 = vcombine.high %v419_v54, %v423_v33  ;;  %v10607_v49 = vcombine.low %v419_v54, %v423_v33  ;;  %v212_v54 = vld [vmem:[#allocation5 + $0x158] sm:$0xff] }
 0x2e3   :  { %7077 = vmatpush1.bf16.msra.mxu1 %v11325_v42  ;;  %v176_v42 = vld [vmem:[#allocation5 + $0x38] sm:$0xff] }
 0x2e4   :  { %7078 = vmatprep.subr.bf16.mxu1 %v11334_v47  ;;  %v431_v47 = vld [vmem:[#allocation5 + $0x830] sm:$0xff]  ;;  %v10362_v3 = vcombine.high %v172_v41, %v176_v42  ;;  %v216_v33 = vld [vmem:[#allocation5 + $0x178] sm:$0xff] }
 0x2e5   :  { %7159 = vmatpush1.bf16.msra.mxu0 %v10559_v43  ;;  %v427_v43 = vld [vmem:[#allocation5 + $0x810] sm:$0xff] }
 0x2e6   :  { %7160 = vmatprep.subr.bf16.mxu0 %v10568_v48  ;;  %v11373_v48 = vcombine.low %v1186_v30, %v1190_v31  ;;  %v10616_v50 = vcombine.high %v427_v43, %v431_v47  ;;  %v10615_v58 = vcombine.low %v427_v43, %v431_v47  ;;  %v220_v43 = vld [vmem:[#allocation5 + $0x198] sm:$0xff] }
 0x2e7   :  { %7079 = vmatpush1.bf16.msra.mxu1 %v11333_v53  ;;  %v184_v53 = vld [vmem:[#allocation5 + $0x78] sm:$0xff] }
 0x2e8   :  { %7080 = vmatprep.subr.bf16.mxu1 %v11342_v56  ;;  %v439_v56 = vld [vmem:[#allocation5 + $0x870] sm:$0xff]  ;;  %v10370_v59 = vcombine.high %v180_v52, %v184_v53  ;;  %v224_v47 = vld [vmem:[#allocation5 + $0x1b8] sm:$0xff] }
 0x2e9   :  { %7161 = vmatpush1.bf16.msra.mxu0 %v10567_v55  ;;  %v435_v55 = vld [vmem:[#allocation5 + $0x850] sm:$0xff] }
 0x2ea   :  { %7162 = vmatprep.subr.bf16.mxu0 %v10576_v57  ;;  %v10361_v57 = vcombine.low %v172_v41, %v176_v42  ;;  %v10624_v60 = vcombine.high %v435_v55, %v439_v56  ;;  %v10623_v7 = vcombine.low %v435_v55, %v439_v56  ;;  %v10402_v41 = vcombine.high %v212_v54, %v216_v33  ;;  %v228_v55 = vld [vmem:[#allocation5 + $0x1d8] sm:$0xff] }
 0x2eb   :  { %7081 = vmatpush1.bf16.msra.mxu1 %v11341_v63  ;;  %v192_v63 = vld [vmem:[#allocation5 + $0xb8] sm:$0xff] }
 0x2ec   :  { %7082 = vmatprep.subr.bf16.mxu1 %v11350_v2  ;;  %v447_v2 = vld [vmem:[#allocation5 + $0x8b0] sm:$0xff]  ;;  %v10378_v8 = vcombine.high %v188_v62, %v192_v63  ;;  %v232_v56 = vld [vmem:[#allocation5 + $0x1f8] sm:$0xff] }
 0x2ed   :  { %7163 = vmatpush1.bf16.msra.mxu0 %v10575_v1  ;;  %v443_v1 = vld [vmem:[#allocation5 + $0x890] sm:$0xff] }
 0x2ee   :  { %7164 = vmatprep.subr.bf16.mxu0 %v10584_v4  ;;  %v10369_v4 = vcombine.low %v180_v52, %v184_v53  ;;  %v10632_v9 = vcombine.high %v443_v1, %v447_v2  ;;  %v10631_v17 = vcombine.low %v443_v1, %v447_v2  ;;  %v10410_v52 = vcombine.high %v220_v43, %v224_v47  ;;  %v236_v1 = vld [vmem:[#allocation5 + $0x218] sm:$0xff] }
 0x2ef   :  { %7083 = vmatpush1.bf16.msra.mxu1 %v11349_v11  ;;  %v200_v11 = vld [vmem:[#allocation5 + $0xf8] sm:$0xff] }
 0x2f0   :  { %7084 = vmatprep.subr.bf16.mxu1 %v11358_v14  ;;  %v455_v14 = vld [vmem:[#allocation5 + $0x8f0] sm:$0xff]  ;;  %v10386_v18 = vcombine.high %v196_v10, %v200_v11  ;;  %v240_v2 = vld [vmem:[#allocation5 + $0x238] sm:$0xff] }
 0x2f1   :  { %7165 = vmatpush1.bf16.msra.mxu0 %v10583_v13  ;;  %v451_v13 = vld [vmem:[#allocation5 + $0x8d0] sm:$0xff] }
 0x2f2   :  { %7166 = vmatprep.subr.bf16.mxu0 %v10592_v16  ;;  %v10377_v16 = vcombine.low %v188_v62, %v192_v63  ;;  %v10640_v22 = vcombine.high %v451_v13, %v455_v14  ;;  %v10639_v30 = vcombine.low %v451_v13, %v455_v14  ;;  %v10418_v62 = vcombine.high %v228_v55, %v232_v56  ;;  %v244_v13 = vld [vmem:[#allocation5 + $0x258] sm:$0xff] }
 0x2f3   :  { %7085 = vmatpush1.bf16.msra.mxu1 %v11357_v24  ;;  %v208_v24 = vld [vmem:[#allocation5 + $0x138] sm:$0xff] }
 0x2f4   :  { %7086 = vmatprep.subr.bf16.mxu1 %v11366_v26  ;;  %v463_v26 = vld [vmem:[#allocation5 + $0x930] sm:$0xff]  ;;  %v10394_v31 = vcombine.high %v204_v23, %v208_v24  ;;  %v248_v14 = vld [vmem:[#allocation5 + $0x278] sm:$0xff] }
 0x2f5   :  { %7167 = vmatpush1.bf16.msra.mxu0 %v10591_v19  ;;  %v459_v19 = vld [vmem:[#allocation5 + $0x910] sm:$0xff] }
 0x2f6   :  { %7168 = vmatprep.subr.bf16.mxu0 %v10600_v27  ;;  %v10385_v27 = vcombine.low %v196_v10, %v200_v11  ;;  %v10426_v10 = vcombine.high %v236_v1, %v240_v2 }
 0x2f7   :  { %7087 = vmatpush1.bf16.msra.mxu1 %v11365_v34  ;;  %v467_v34 = vld [vmem:[#allocation5 + $0x950] sm:$0xff] }
 0x2f8   :  { %7088 = vmatprep.subr.bf16.mxu1 %v11374_v36  ;;  %v10393_v36 = vcombine.low %v204_v23, %v208_v24  ;;  %v10434_v23 = vcombine.high %v244_v13, %v248_v14 }
 0x2f9   :  { %7169 = vmatpush1.bf16.msra.mxu0 %v10599_v35  ;;  %v471_v35 = vld [vmem:[#allocation5 + $0x970] sm:$0xff] }
 0x2fa   :  { %7170 = vmatprep.subr.bf16.mxu0 %v10608_v37  ;;  %v10647_v37 = vcombine.low %v459_v19, %v463_v26  ;;  %v10656_v42 = vcombine.high %v467_v34, %v471_v35 }
 0x2fb   :  { %7089 = vmatpush1.bf16.msra.mxu1 %v11373_v48  ;;  %v475_v48 = vld [vmem:[#allocation5 + $0x990] sm:$0xff] }
 0x2fc   :  { %7427 = vmatprep.subr.bf16.mxu1 %v10362_v3  ;;  %v10401_v3 = vcombine.low %v212_v54, %v216_v33 }
 0x2fd   :  { %7171 = vmatpush1.bf16.msra.mxu0 %v10607_v49  ;;  %v479_v49 = vld [vmem:[#allocation5 + $0x9b0] sm:$0xff] }
 0x2fe   :  { %7181 = vmatprep.subr.bf16.mxu0 %v10616_v50  ;;  %7091 = vmatmul.mubr.bf16.vlgmr.msra.gmra.mrb[4].mxu1 %v12943_v20  ;;  %v10655_v50 = vcombine.low %v467_v34, %v471_v35  ;;  %v10664_v53 = vcombine.high %v475_v48, %v479_v49  ;;  %v260_v34 = vld [vmem:[#allocation5 + $0x2d8] sm:$0xff] }
 0x2ff   :  { %7428 = vmatpush1.bf16.msra.mxu1 %v10361_v57  ;;  %7459 = vmatprep.mubr.bf16.mxu1 %v12857_v5  ;;  %v10648_v5 = vcombine.high %v459_v19, %v463_v26  ;;  %v483_v57 = vld [vmem:[#allocation5 + $0x9d0] sm:$0xff]  ;;  %v252_v19 = vld [vmem:[#allocation5 + $0x298] sm:$0xff] }
 0x300   :  { %7173 = vmatmul.mubr.bf16.vlgmr.msra.gmra.mrb[4].mxu0 %v12860_v6  ;;  %7429 = vmatprep.subr.bf16.mxu1 %v10370_v59  ;;  %v10409_v59 = vcombine.low %v220_v43, %v224_v47  ;;  %v256_v26 = vld [vmem:[#allocation5 + $0x2b8] sm:$0xff] }
 0x301   :  { %7182 = vmatpush1.bf16.msra.mxu0 %v10615_v58  ;;  %7213 = vmatprep.mubr.bf16.mxu0 %v12876_v39  ;;  %v487_v58 = vld [vmem:[#allocation5 + $0x9f0] sm:$0xff]  ;;  %v10442_v54 = vcombine.high %v252_v19, %v256_v26  ;;  %v264_v35 = vld [vmem:[#allocation5 + $0x2f8] sm:$0xff] }
 0x302   :  { %7183 = vmatprep.subr.bf16.mxu0 %v10624_v60  ;;  %v10663_v60 = vcombine.low %v475_v48, %v479_v49  ;;  %v10672_v63 = vcombine.high %v483_v57, %v487_v58  ;;  %v10450_v43 = vcombine.high %v260_v34, %v264_v35  ;;  %v268_v48 = vld [vmem:[#allocation5 + $0x318] sm:$0xff] }
 0x303   :  { %7430 = vmatpush1.bf16.msra.mxu1 %v10369_v4  ;;  %v491_v4 = vld [vmem:[#allocation5 + $0xa10] sm:$0xff]  ;;  %v272_v49 = vld [vmem:[#allocation5 + $0x338] sm:$0xff] }
 0x304   :  { %7431 = vmatprep.subr.bf16.mxu1 %v10378_v8  ;;  %v10417_v8 = vcombine.low %v228_v55, %v232_v56  ;;  %v10458_v55 = vcombine.high %v268_v48, %v272_v49 }
 0x305   :  { %7184 = vmatpush1.bf16.msra.mxu0 %v10623_v7  ;;  %v495_v7 = vld [vmem:[#allocation5 + $0xa30] sm:$0xff] }
 0x306   :  { %7185 = vmatprep.subr.bf16.mxu0 %v10632_v9  ;;  %v10671_v9 = vcombine.low %v483_v57, %v487_v58  ;;  %v10680_v11 = vcombine.high %v491_v4, %v495_v7  ;;  %v276_v57 = vld [vmem:[#allocation5 + $0x358] sm:$0xff] }
 0x307   :  { %7432 = vmatpush1.bf16.msra.mxu1 %v10377_v16  ;;  %v499_v16 = vld [vmem:[#allocation5 + $0xa50] sm:$0xff]  ;;  %v280_v58 = vld [vmem:[#allocation5 + $0x378] sm:$0xff] }
 0x308   :  { %7433 = vmatprep.subr.bf16.mxu1 %v10386_v18  ;;  %v10425_v18 = vcombine.low %v236_v1, %v240_v2  ;;  %v10466_v1 = vcombine.high %v276_v57, %v280_v58 }
 0x309   :  { %7186 = vmatpush1.bf16.msra.mxu0 %v10631_v17  ;;  %v503_v17 = vld [vmem:[#allocation5 + $0xa70] sm:$0xff] }
 0x30a   :  { %7187 = vmatprep.subr.bf16.mxu0 %v10640_v22  ;;  %v10679_v22 = vcombine.low %v491_v4, %v495_v7  ;;  %v10688_v24 = vcombine.high %v499_v16, %v503_v17  ;;  %v284_v4 = vld [vmem:[#allocation5 + $0x398] sm:$0xff] }
 0x30b   :  { %7434 = vmatpush1.bf16.msra.mxu1 %v10385_v27  ;;  %v507_v27 = vld [vmem:[#allocation5 + $0xa90] sm:$0xff]  ;;  %v288_v7 = vld [vmem:[#allocation5 + $0x3b8] sm:$0xff] }
 0x30c   :  { %7435 = vmatprep.subr.bf16.mxu1 %v10394_v31  ;;  %v10433_v31 = vcombine.low %v244_v13, %v248_v14  ;;  %v10474_v13 = vcombine.high %v284_v4, %v288_v7 }
 0x30d   :  { %7188 = vmatpush1.bf16.msra.mxu0 %v10639_v30  ;;  %v511_v30 = vld [vmem:[#allocation5 + $0xab0] sm:$0xff] }
 0x30e   :  { %7189 = vmatprep.subr.bf16.mxu0 %v10648_v5  ;;  %v10687_v5 = vcombine.low %v499_v16, %v503_v17  ;;  %v10696_v33 = vcombine.high %v507_v27, %v511_v30  ;;  %v292_v16 = vld [vmem:[#allocation5 + $0x3d8] sm:$0xff] }
 0x30f   :  { %7436 = vmatpush1.bf16.msra.mxu1 %v10393_v36  ;;  %v515_v36 = vld [vmem:[#allocation5 + $0xad0] sm:$0xff]  ;;  %v296_v17 = vld [vmem:[#allocation5 + $0x3f8] sm:$0xff] }
 0x310   :  { %7437 = vmatprep.subr.bf16.mxu1 %v10402_v41  ;;  %v10441_v41 = vcombine.low %v252_v19, %v256_v26  ;;  %v10482_v19 = vcombine.high %v292_v16, %v296_v17 }
 0x311   :  { %7190 = vmatpush1.bf16.msra.mxu0 %v10647_v37  ;;  %v519_v37 = vld [vmem:[#allocation5 + $0xaf0] sm:$0xff] }
 0x312   :  { %7191 = vmatprep.subr.bf16.mxu0 %v10656_v42  ;;  %v10695_v42 = vcombine.low %v507_v27, %v511_v30  ;;  %v10704_v47 = vcombine.high %v515_v36, %v519_v37  ;;  %v300_v27 = vld [vmem:[#allocation5 + $0x418] sm:$0xff] }
 0x313   :  { %7438 = vmatpush1.bf16.msra.mxu1 %v10401_v3  ;;  %v523_v3 = vld [vmem:[#allocation5 + $0xb10] sm:$0xff]  ;;  %v304_v30 = vld [vmem:[#allocation5 + $0x438] sm:$0xff] }
 0x314   :  { %7439 = vmatprep.subr.bf16.mxu1 %v10410_v52  ;;  %v10449_v52 = vcombine.low %v260_v34, %v264_v35  ;;  %v10490_v34 = vcombine.high %v300_v27, %v304_v30 }
 0x315   :  { %7192 = vmatpush1.bf16.msra.mxu0 %v10655_v50  ;;  %v527_v50 = vld [vmem:[#allocation5 + $0xb30] sm:$0xff] }
 0x316   :  { %7193 = vmatprep.subr.bf16.mxu0 %v10664_v53  ;;  %v10703_v53 = vcombine.low %v515_v36, %v519_v37  ;;  %v10712_v56 = vcombine.high %v523_v3, %v527_v50  ;;  %v308_v36 = vld [vmem:[#allocation5 + $0x458] sm:$0xff] }
 0x317   :  { %7440 = vmatpush1.bf16.msra.mxu1 %v10409_v59  ;;  %v531_v59 = vld [vmem:[#allocation5 + $0xb50] sm:$0xff]  ;;  %v312_v37 = vld [vmem:[#allocation5 + $0x478] sm:$0xff] }
 0x318   :  { %7441 = vmatprep.subr.bf16.mxu1 %v10418_v62  ;;  %v10457_v62 = vcombine.low %v268_v48, %v272_v49  ;;  %v10498_v48 = vcombine.high %v308_v36, %v312_v37 }
 0x319   :  { %7194 = vmatpush1.bf16.msra.mxu0 %v10663_v60  ;;  %v535_v60 = vld [vmem:[#allocation5 + $0xb70] sm:$0xff] }
 0x31a   :  { %7195 = vmatprep.subr.bf16.mxu0 %v10672_v63  ;;  %v10711_v63 = vcombine.low %v523_v3, %v527_v50  ;;  %v10720_v2 = vcombine.high %v531_v59, %v535_v60  ;;  %v316_v3 = vld [vmem:[#allocation5 + $0x498] sm:$0xff] }
 0x31b   :  { %7442 = vmatpush1.bf16.msra.mxu1 %v10417_v8  ;;  %v539_v8 = vld [vmem:[#allocation5 + $0xb90] sm:$0xff]  ;;  %v320_v50 = vld [vmem:[#allocation5 + $0x4b8] sm:$0xff] }
 0x31c   :  { %7443 = vmatprep.subr.bf16.mxu1 %v10426_v10  ;;  %v10465_v10 = vcombine.low %v276_v57, %v280_v58  ;;  %v10506_v57 = vcombine.high %v316_v3, %v320_v50 }
 0x31d   :  { %7196 = vmatpush1.bf16.msra.mxu0 %v10671_v9  ;;  %v543_v9 = vld [vmem:[#allocation5 + $0xbb0] sm:$0xff] }
 0x31e   :  { %7197 = vmatprep.subr.bf16.mxu0 %v10680_v11  ;;  %v10719_v11 = vcombine.low %v531_v59, %v535_v60  ;;  %v10728_v14 = vcombine.high %v539_v8, %v543_v9  ;;  %v324_v59 = vld [vmem:[#allocation5 + $0x4d8] sm:$0xff] }
 0x31f   :  { %7444 = vmatpush1.bf16.msra.mxu1 %v10425_v18  ;;  %v547_v18 = vld [vmem:[#allocation5 + $0xbd0] sm:$0xff]  ;;  %v328_v60 = vld [vmem:[#allocation5 + $0x4f8] sm:$0xff] }
 0x320   :  { %7445 = vmatprep.subr.bf16.mxu1 %v10434_v23  ;;  %v10473_v23 = vcombine.low %v284_v4, %v288_v7  ;;  %v332_v7 = vld [vmem:[#allocation5 + $0x518] sm:$0xff] }
 0x321   :  { %7198 = vmatpush1.bf16.msra.mxu0 %v10679_v22  ;;  %v551_v22 = vld [vmem:[#allocation5 + $0xbf0] sm:$0xff] }
 0x322   :  { %7199 = vmatprep.subr.bf16.mxu0 %v10688_v24  ;;  %v10727_v24 = vcombine.low %v539_v8, %v543_v9  ;;  %v10736_v26 = vcombine.high %v547_v18, %v551_v22  ;;  %v336_v8 = vld [vmem:[#allocation5 + $0x538] sm:$0xff]  ;;  %v587_v9 = vld [vmem:[#allocation5 + $0xd10] sm:$0xff] }
 0x323   :  { %7446 = vmatpush1.bf16.msra.mxu1 %v10433_v31  ;;  %v555_v31 = vld [vmem:[#allocation5 + $0xc10] sm:$0xff] }
 0x324   :  { %7447 = vmatprep.subr.bf16.mxu1 %v10442_v54  ;;  %v10481_v54 = vcombine.low %v292_v16, %v296_v17  ;;  %v340_v17 = vld [vmem:[#allocation5 + $0x558] sm:$0xff] }
 0x325   :  { %7200 = vmatpush1.bf16.msra.mxu0 %v10687_v5  ;;  %v559_v5 = vld [vmem:[#allocation5 + $0xc30] sm:$0xff] }
 0x326   :  { %7201 = vmatprep.subr.bf16.mxu0 %v10696_v33  ;;  %v10735_v33 = vcombine.low %v547_v18, %v551_v22  ;;  %v10744_v35 = vcombine.high %v555_v31, %v559_v5  ;;  %v344_v18 = vld [vmem:[#allocation5 + $0x578] sm:$0xff]  ;;  %v1193_v22 = vld [vmem:[#allocation7] sm:$0xff] }
 0x327   :  { %7448 = vmatpush1.bf16.msra.mxu1 %v10441_v41  ;;  %v563_v41 = vld [vmem:[#allocation5 + $0xc50] sm:$0xff] }
 0x328   :  { %7449 = vmatprep.subr.bf16.mxu1 %v10450_v43  ;;  %v10489_v43 = vcombine.low %v300_v27, %v304_v30  ;;  %v10530_v30 = vcombine.high %v340_v17, %v344_v18 }
 0x329   :  { %7202 = vmatpush1.bf16.msra.mxu0 %v10695_v42  ;;  %v567_v42 = vld [vmem:[#allocation5 + $0xc70] sm:$0xff] }
 0x32a   :  { %7203 = vmatprep.subr.bf16.mxu0 %v10704_v47  ;;  %v10743_v47 = vcombine.low %v555_v31, %v559_v5  ;;  %v10752_v49 = vcombine.high %v563_v41, %v567_v42 }
 0x32b   :  { %7450 = vmatpush1.bf16.msra.mxu1 %v10449_v52  ;;  %v571_v52 = vld [vmem:[#allocation5 + $0xc90] sm:$0xff] }
 0x32c   :  { %7451 = vmatprep.subr.bf16.mxu1 %v10458_v55  ;;  %v10497_v55 = vcombine.low %v308_v36, %v312_v37  ;;  %v607_v36 = vld [vmem:[#allocation5 + $0xdb0] sm:$0xff]  ;;  %v10529_v37 = vcombine.low %v340_v17, %v344_v18 }
 0x32d   :  { %7204 = vmatpush1.bf16.msra.mxu0 %v10703_v53  ;;  %v575_v53 = vld [vmem:[#allocation5 + $0xcb0] sm:$0xff] }
 0x32e   :  { %7205 = vmatprep.subr.bf16.mxu0 %v10712_v56  ;;  %v10751_v56 = vcombine.low %v563_v41, %v567_v42  ;;  %v10760_v58 = vcombine.high %v571_v52, %v575_v53 }
 0x32f   :  { %7452 = vmatpush1.bf16.msra.mxu1 %v10457_v62  ;;  %v579_v62 = vld [vmem:[#allocation5 + $0xcd0] sm:$0xff] }
 0x330   :  { %7453 = vmatprep.subr.bf16.mxu1 %v10466_v1  ;;  %v10759_v1 = vcombine.low %v571_v52, %v575_v53  ;;  %v611_v52 = vld [vmem:[#allocation5 + $0xdd0] sm:$0xff] }
 0x331   :  { %7206 = vmatpush1.bf16.msra.mxu0 %v10711_v63  ;;  %v583_v63 = vld [vmem:[#allocation5 + $0xcf0] sm:$0xff] }
 0x332   :  { %7207 = vmatprep.subr.bf16.mxu0 %v10720_v2  ;;  %v10514_v2 = vcombine.high %v324_v59, %v328_v60  ;;  %v10768_v4 = vcombine.high %v579_v62, %v583_v63  ;;  %v615_v53 = vld [vmem:[#allocation5 + $0xdf0] sm:$0xff] }
 0x333   :  { %7454 = vmatpush1.bf16.msra.mxu1 %v10465_v10  ;;  %v591_v10 = vld [vmem:[#allocation5 + $0xd30] sm:$0xff] }
 0x334   :  { %7455 = vmatprep.subr.bf16.mxu1 %v10474_v13  ;;  %v10767_v13 = vcombine.low %v579_v62, %v583_v63  ;;  %v10776_v16 = vcombine.high %v587_v9, %v591_v10  ;;  %v10775_v27 = vcombine.low %v587_v9, %v591_v10  ;;  %v10800_v63 = vcombine.high %v611_v52, %v615_v53  ;;  %v372_v10 = vld [vmem:[#allocation5 + $0x658] sm:$0xff] }
 0x335   :  { %7208 = vmatpush1.bf16.msra.mxu0 %v10719_v11  ;;  %v10513_v11 = vcombine.low %v324_v59, %v328_v60 }
 0x336   :  { %7209 = vmatprep.subr.bf16.mxu0 %v10728_v14  ;;  %v10522_v14 = vcombine.high %v332_v7, %v336_v8 }
 0x337   :  { %7456 = vmatpush1.bf16.msra.mxu1 %v10473_v23  ;;  %v12973_v23 = vsub.s32 1, %v12847_v44 }
 0x338   :  { %7457 = vmatprep.subr.bf16.mxu1 %v10482_v19  ;;  %v599_v19 = vld [vmem:[#allocation5 + $0xd70] sm:$0xff] }
 0x339   :  { %7210 = vmatpush1.bf16.msra.mxu0 %v10727_v24  ;;  %v595_v24 = vld [vmem:[#allocation5 + $0xd50] sm:$0xff] }
 0x33a   :  { %7211 = vmatprep.subr.bf16.mxu0 %v10736_v26  ;;  %v10521_v26 = vcombine.low %v332_v7, %v336_v8  ;;  %v10784_v5 = vcombine.high %v595_v24, %v599_v19  ;;  %v10783_v41 = vcombine.low %v595_v24, %v599_v19  ;;  %v10799_v7 = vcombine.low %v611_v52, %v615_v53  ;;  %v380_v24 = vld [vmem:[#allocation5 + $0x698] sm:$0xff] }
 0x33b   :  { %7458 = vmatpush1.bf16.msra.mxu1 %v10481_v54  ;;  %v348_v54 = vld [vmem:[#allocation5 + $0x598] sm:$0xff] }
 0x33c   :  { %7468 = vmatprep.subr.bf16.mxu1 %v10490_v34  ;;  %v1202_v34 = vrot.slane %v1193_v22, %v12973_v23  ;;  %v384_v19 = vld [vmem:[#allocation5 + $0x6b8] sm:$0xff] }
 0x33d   :  { %7212 = vmatpush1.bf16.msra.mxu0 %v10735_v33  ;;  %v352_v33 = vld [vmem:[#allocation5 + $0x5b8] sm:$0xff] }
 0x33e   :  { %7222 = vmatprep.subr.bf16.mxu0 %v10744_v35  ;;  %7460 = vmatmul.mubr.bf16.vlgmr.msra.gmra.mrb[8].mxu1 %v12853_v0  ;;  %v10505_v0 = vcombine.low %v316_v3, %v320_v50  ;;  %v603_v35 = vld [vmem:[#allocation5 + $0xd90] sm:$0xff]  ;;  %v10538_v42 = vcombine.high %v348_v54, %v352_v33  ;;  %v6480_v3 = vadd.f32 %v12924_v45, %v1202_v34  ;;  %v368_v45 = vld [vmem:[#allocation5 + $0x638] sm:$0xff] }
 0x33f   :  { %7469 = vmatpush1.bf16.msra.mxu1 %v10489_v43  ;;  %7500 = vmatprep.mubr.bf16.mxu1 %v12865_v12  ;;  %v12970_v12 = vsub.s32 0, %v12847_v44  ;;  %v10791_v60 = vcombine.low %v603_v35, %v607_v36  ;;  %v392_v34 = vld [vmem:[#allocation5 + $0x6f8] sm:$0xff] }
 0x340   :  { %7214 = vmatmul.mubr.bf16.vlgmr.msra.gmra.mrb[4].mxu0 %v12872_v28  ;;  %7470 = vmatprep.subr.bf16.mxu1 %v10498_v48  ;;  %v356_v48 = vld [vmem:[#allocation5 + $0x5d8] sm:$0xff] }
 0x341   :  { %7223 = vmatpush1.bf16.msra.mxu0 %v10743_v47  ;;  %7254 = vmatprep.mubr.bf16.mxu0 %v12889_v61  ;;  %v1198_v31 = vrot.slane %v1193_v22, %v12970_v12  ;;  %v10792_v47 = vcombine.high %v603_v35, %v607_v36  ;;  %v643_v35 = vld [vmem:[#allocation5 + $0xed0] sm:$0xff] }
 0x342   :  { %7224 = vmatprep.subr.bf16.mxu0 %v10752_v49  ;;  %v360_v49 = vld [vmem:[#allocation5 + $0x5f8] sm:$0xff]  ;;  %v647_v36 = vld [vmem:[#allocation5 + $0xef0] sm:$0xff] }
 0x343   :  { %7471 = vmatpush1.bf16.msra.mxu1 %v10497_v55  ;;  %v6478_v43 = vadd.f32 %v12922_v40, %v1198_v31  ;;  %v10546_v40 = vcombine.high %v356_v48, %v360_v49  ;;  %v10831_v52 = vcombine.low %v643_v35, %v647_v36 }
 0x344   :  { %7472 = vmatprep.subr.bf16.mxu1 %v10506_v57  ;;  %v10537_v57 = vcombine.low %v348_v54, %v352_v33  ;;  %v388_v33 = vld [vmem:[#allocation5 + $0x6d8] sm:$0xff] }
 0x345   :  { %7225 = vmatpush1.bf16.msra.mxu0 %v10751_v56 }
 0x346   :  { %7226 = vmatprep.subr.bf16.mxu0 %v10760_v58 }
 0x347   :  { %7473 = vmatpush1.bf16.msra.mxu1 %v10505_v0  ;;  %v364_v0 = vld [vmem:[#allocation5 + $0x618] sm:$0xff] }
 0x348   :  { %7474 = vmatprep.subr.bf16.mxu1 %v10514_v2  ;;  %v623_v2 = vld [vmem:[#allocation5 + $0xe30] sm:$0xff]  ;;  %v10554_v8 = vcombine.high %v364_v0, %v368_v45 }
 0x349   :  { %7227 = vmatpush1.bf16.msra.mxu0 %v10759_v1  ;;  %v619_v1 = vld [vmem:[#allocation5 + $0xe10] sm:$0xff] }
 0x34a   :  { %7228 = vmatprep.subr.bf16.mxu0 %v10768_v4  ;;  %v10545_v4 = vcombine.low %v356_v48, %v360_v49  ;;  %v10808_v9 = vcombine.high %v619_v1, %v623_v2  ;;  %v10807_v17 = vcombine.low %v619_v1, %v623_v2  ;;  %v400_v48 = vld [vmem:[#allocation5 + $0x738] sm:$0xff]  ;;  %v651_v49 = vld [vmem:[#allocation5 + $0xf10] sm:$0xff] }
 0x34b   :  { %7475 = vmatpush1.bf16.msra.mxu1 %v10513_v11  ;;  %v376_v11 = vld [vmem:[#allocation5 + $0x678] sm:$0xff] }
 0x34c   :  { %7476 = vmatprep.subr.bf16.mxu1 %v10522_v14  ;;  %v631_v14 = vld [vmem:[#allocation5 + $0xe70] sm:$0xff]  ;;  %v10562_v18 = vcombine.high %v372_v10, %v376_v11  ;;  %v412_v1 = vld [vmem:[#allocation5 + $0x798] sm:$0xff] }
 0x34d   :  { %7229 = vmatpush1.bf16.msra.mxu0 %v10767_v13  ;;  %v627_v13 = vld [vmem:[#allocation5 + $0xe50] sm:$0xff]  ;;  %v416_v2 = vld [vmem:[#allocation5 + $0x7b8] sm:$0xff] }
 0x34e   :  { %7230 = vmatprep.subr.bf16.mxu0 %v10776_v16  ;;  %v10553_v16 = vcombine.low %v364_v0, %v368_v45  ;;  %v10816_v22 = vcombine.high %v627_v13, %v631_v14  ;;  %v10815_v31 = vcombine.low %v627_v13, %v631_v14  ;;  %v420_v13 = vld [vmem:[#allocation5 + $0x7d8] sm:$0xff] }
 0x34f   :  { %7477 = vmatpush1.bf16.msra.mxu1 %v10521_v26  ;;  %v635_v26 = vld [vmem:[#allocation5 + $0xe90] sm:$0xff]  ;;  %v424_v14 = vld [vmem:[#allocation5 + $0x7f8] sm:$0xff] }
 0x350   :  { %7478 = vmatprep.subr.bf16.mxu1 %v10530_v30  ;;  %v10561_v30 = vcombine.low %v372_v10, %v376_v11  ;;  %v10602_v10 = vcombine.high %v412_v1, %v416_v2 }
 0x351   :  { %7231 = vmatpush1.bf16.msra.mxu0 %v10775_v27  ;;  %v639_v27 = vld [vmem:[#allocation5 + $0xeb0] sm:$0xff] }
 0x352   :  { %7232 = vmatprep.subr.bf16.mxu0 %v10784_v5  ;;  %v10570_v5 = vcombine.high %v380_v24, %v384_v19  ;;  %v10824_v54 = vcombine.high %v635_v26, %v639_v27 }
 0x353   :  { %v6764_v50 = vpop.f32.mrb[0].mxu0  ;;  %7479 = vmatpush1.bf16.msra.mxu1 %v10529_v37  ;;  %v10569_v37 = vcombine.low %v380_v24, %v384_v19  ;;  %v10610_v24 = vcombine.high %v420_v13, %v424_v14 }
 0x354   :  { %v12979_v55 = vadd.f32 %v6764_v50, %v6478_v43  ;;  %v6766_v56 = vpop.f32.mrb[1].mxu0  ;;  %7480 = vmatprep.subr.bf16.mxu1 %v10538_v42  ;;  %v10578_v42 = vcombine.high %v388_v33, %v392_v34  ;;  %v10832_v43 = vcombine.high %v643_v35, %v647_v36  ;;  %v10577_v50 = vcombine.low %v388_v33, %v392_v34  ;;  %v436_v35 = vld [vmem:[#allocation5 + $0x858] sm:$0xff] }
 0x355   :  { %v12981_v58 = vadd.f32 %v6766_v56, %v6480_v3  ;;  %v6768_v59 = vpop.f32.mrb[2].mxu0  ;;  %7233 = vmatpush1.bf16.msra.mxu0 %v10783_v41  ;;  %v10823_v41 = vcombine.low %v635_v26, %v639_v27  ;;  %v655_v3 = vld [vmem:[#allocation5 + $0xf30] sm:$0xff]  ;;  %v428_v26 = vld [vmem:[#allocation5 + $0x818] sm:$0xff] }
 0x356   :  { %v6769_v62 = vpop.f32.mrb[3].mxu0  ;;  %7234 = vmatprep.subr.bf16.mxu0 %v10792_v47  ;;  %v396_v47 = vld [vmem:[#allocation5 + $0x718] sm:$0xff]  ;;  %v10840_v56 = vcombine.high %v651_v49, %v655_v3 }
 0x357   :  { %7481 = vmatpush1.bf16.msra.mxu1 %v10537_v57  ;;  %v10586_v53 = vcombine.high %v396_v47, %v400_v48  ;;  %v404_v57 = vld [vmem:[#allocation5 + $0x758] sm:$0xff]  ;;  %v10585_v62 = vcombine.low %v396_v47, %v400_v48 }
 0x358   :  { %7482 = vmatprep.subr.bf16.mxu1 %v10546_v40  ;;  %v408_v59 = vld [vmem:[#allocation5 + $0x778] sm:$0xff]  ;;  %v663_v40 = vld [vmem:[#allocation5 + $0xf70] sm:$0xff] }
 0x359   :  { %7235 = vmatpush1.bf16.msra.mxu0 %v10791_v60  ;;  %v659_v60 = vld [vmem:[#allocation5 + $0xf50] sm:$0xff]  ;;  %v10594_v0 = vcombine.high %v404_v57, %v408_v59  ;;  %v432_v27 = vld [vmem:[#allocation5 + $0x838] sm:$0xff] }
 0x35a   :  { %7236 = vmatprep.subr.bf16.mxu0 %v10800_v63  ;;  %v10839_v63 = vcombine.low %v651_v49, %v655_v3  ;;  %v10848_v45 = vcombine.high %v659_v60, %v663_v40  ;;  %v10618_v33 = vcombine.high %v428_v26, %v432_v27  ;;  %v440_v36 = vld [vmem:[#allocation5 + $0x878] sm:$0xff] }
 0x35b   :  { %7483 = vmatpush1.bf16.msra.mxu1 %v10545_v4  ;;  %v667_v4 = vld [vmem:[#allocation5 + $0xf90] sm:$0xff]  ;;  %v10626_v47 = vcombine.high %v436_v35, %v440_v36  ;;  %v444_v49 = vld [vmem:[#allocation5 + $0x898] sm:$0xff] }
 0x35c   :  { %7484 = vmatprep.subr.bf16.mxu1 %v10554_v8  ;;  %v10593_v8 = vcombine.low %v404_v57, %v408_v59  ;;  %v448_v3 = vld [vmem:[#allocation5 + $0x8b8] sm:$0xff] }
 0x35d   :  { %7237 = vmatpush1.bf16.msra.mxu0 %v10799_v7  ;;  %v671_v7 = vld [vmem:[#allocation5 + $0xfb0] sm:$0xff]  ;;  %v10634_v57 = vcombine.high %v444_v49, %v448_v3 }
 0x35e   :  { %7238 = vmatprep.subr.bf16.mxu0 %v10808_v9  ;;  %v10847_v9 = vcombine.low %v659_v60, %v663_v40  ;;  %v10856_v11 = vcombine.high %v667_v4, %v671_v7  ;;  %v452_v60 = vld [vmem:[#allocation5 + $0x8d8] sm:$0xff] }
 0x35f   :  { %7485 = vmatpush1.bf16.msra.mxu1 %v10553_v16  ;;  %v675_v16 = vld [vmem:[#allocation5 + $0xfd0] sm:$0xff]  ;;  %v456_v40 = vld [vmem:[#allocation5 + $0x8f8] sm:$0xff] }
 0x360   :  { %7486 = vmatprep.subr.bf16.mxu1 %v10562_v18  ;;  %v10601_v18 = vcombine.low %v412_v1, %v416_v2  ;;  %v460_v2 = vld [vmem:[#allocation5 + $0x918] sm:$0xff] }
 0x361   :  { %7239 = vmatpush1.bf16.msra.mxu0 %v10807_v17  ;;  %v679_v17 = vld [vmem:[#allocation5 + $0xff0] sm:$0xff] }
 0x362   :  { %7240 = vmatprep.subr.bf16.mxu0 %v10816_v22  ;;  %v10855_v22 = vcombine.low %v667_v4, %v671_v7  ;;  %v10864_v19 = vcombine.high %v675_v16, %v679_v17  ;;  %v464_v4 = vld [vmem:[#allocation5 + $0x938] sm:$0xff]  ;;  %v715_v7 = vld [vmem:[#allocation5 + $0x1110] sm:$0xff] }
 0x363   :  { %7487 = vmatpush1.bf16.msra.mxu1 %v10561_v30  ;;  %v683_v30 = vld [vmem:[#allocation5 + $0x1010] sm:$0xff] }
 0x364   :  { %7488 = vmatprep.subr.bf16.mxu1 %v10570_v5  ;;  %v10609_v5 = vcombine.low %v420_v13, %v424_v14  ;;  %v468_v13 = vld [vmem:[#allocation5 + $0x958] sm:$0xff] }
 0x365   :  { %7241 = vmatpush1.bf16.msra.mxu0 %v10815_v31  ;;  %v687_v31 = vld [vmem:[#allocation5 + $0x1030] sm:$0xff]  ;;  %v472_v14 = vld [vmem:[#allocation5 + $0x978] sm:$0xff] }
 0x366   :  { %7242 = vmatprep.subr.bf16.mxu0 %v10824_v54  ;;  %v10863_v54 = vcombine.low %v675_v16, %v679_v17  ;;  %v10872_v34 = vcombine.high %v683_v30, %v687_v31  ;;  %v723_v16 = vld [vmem:[#allocation5 + $0x1150] sm:$0xff] }
 0x367   :  { %7489 = vmatpush1.bf16.msra.mxu1 %v10569_v37  ;;  %v691_v37 = vld [vmem:[#allocation5 + $0x1050] sm:$0xff] }
 0x368   :  { %7490 = vmatprep.subr.bf16.mxu1 %v10578_v42  ;;  %v10617_v42 = vcombine.low %v428_v26, %v432_v27  ;;  %v727_v17 = vld [vmem:[#allocation5 + $0x1170] sm:$0xff]  ;;  %v476_v26 = vld [vmem:[#allocation5 + $0x998] sm:$0xff] }
 0x369   :  { %7243 = vmatpush1.bf16.msra.mxu0 %v10823_v41  ;;  %v695_v41 = vld [vmem:[#allocation5 + $0x1070] sm:$0xff]  ;;  %v480_v27 = vld [vmem:[#allocation5 + $0x9b8] sm:$0xff] }
 0x36a   :  { %7244 = vmatprep.subr.bf16.mxu0 %v10832_v43  ;;  %v10871_v43 = vcombine.low %v683_v30, %v687_v31  ;;  %v10880_v48 = vcombine.high %v691_v37, %v695_v41  ;;  %v731_v30 = vld [vmem:[#allocation5 + $0x1190] sm:$0xff] }
 0x36b   :  { %7491 = vmatpush1.bf16.msra.mxu1 %v10577_v50  ;;  %v699_v50 = vld [vmem:[#allocation5 + $0x1090] sm:$0xff] }
 0x36c   :  { %7492 = vmatprep.subr.bf16.mxu1 %v10586_v53  ;;  %v10625_v53 = vcombine.low %v436_v35, %v440_v36  ;;  %v735_v31 = vld [vmem:[#allocation5 + $0x11b0] sm:$0xff]  ;;  %v484_v35 = vld [vmem:[#allocation5 + $0x9d8] sm:$0xff] }
 0x36d   :  { %7245 = vmatpush1.bf16.msra.mxu0 %v10831_v52  ;;  %v703_v52 = vld [vmem:[#allocation5 + $0x10b0] sm:$0xff]  ;;  %v488_v36 = vld [vmem:[#allocation5 + $0x9f8] sm:$0xff] }
 0x36e   :  { %7246 = vmatprep.subr.bf16.mxu0 %v10840_v56  ;;  %v10879_v56 = vcombine.low %v691_v37, %v695_v41  ;;  %v10888_v59 = vcombine.high %v699_v50, %v703_v52  ;;  %v739_v37 = vld [vmem:[#allocation5 + $0x11d0] sm:$0xff] }
 0x36f   :  { %7493 = vmatpush1.bf16.msra.mxu1 %v10585_v62  ;;  %v707_v62 = vld [vmem:[#allocation5 + $0x10d0] sm:$0xff] }
 0x370   :  { %7494 = vmatprep.subr.bf16.mxu1 %v10594_v0  ;;  %v10887_v0 = vcombine.low %v699_v50, %v703_v52  ;;  %v743_v41 = vld [vmem:[#allocation5 + $0x11f0] sm:$0xff] }
 0x371   :  { %7247 = vmatpush1.bf16.msra.mxu0 %v10839_v63  ;;  %v711_v63 = vld [vmem:[#allocation5 + $0x10f0] sm:$0xff] }
 0x372   :  { %7248 = vmatprep.subr.bf16.mxu0 %v10848_v45  ;;  %v10642_v45 = vcombine.high %v452_v60, %v456_v40  ;;  %v10896_v1 = vcombine.high %v707_v62, %v711_v63  ;;  %v747_v50 = vld [vmem:[#allocation5 + $0x1210] sm:$0xff] }
 0x373   :  { %7495 = vmatpush1.bf16.msra.mxu1 %v10593_v8  ;;  %v719_v8 = vld [vmem:[#allocation5 + $0x1130] sm:$0xff] }
 0x374   :  { %7496 = vmatprep.subr.bf16.mxu1 %v10602_v10  ;;  %v10895_v10 = vcombine.low %v707_v62, %v711_v63  ;;  %v751_v52 = vld [vmem:[#allocation5 + $0x1230] sm:$0xff] }
 0x375   :  { %7249 = vmatpush1.bf16.msra.mxu0 %v10847_v9  ;;  %v10641_v9 = vcombine.low %v452_v60, %v456_v40  ;;  %v500_v60 = vld [vmem:[#allocation5 + $0xa58] sm:$0xff]  ;;  %v755_v62 = vld [vmem:[#allocation5 + $0x1250] sm:$0xff] }
 0x376   :  { %7250 = vmatprep.subr.bf16.mxu0 %v10856_v11  ;;  %v10650_v11 = vcombine.high %v460_v2, %v464_v4  ;;  %v504_v40 = vld [vmem:[#allocation5 + $0xa78] sm:$0xff]  ;;  %v759_v63 = vld [vmem:[#allocation5 + $0x1270] sm:$0xff] }
 0x377   :  { %7497 = vmatpush1.bf16.msra.mxu1 %v10601_v18  ;;  %v10649_v18 = vcombine.low %v460_v2, %v464_v4  ;;  %v508_v2 = vld [vmem:[#allocation5 + $0xa98] sm:$0xff] }
 0x378   :  { %7498 = vmatprep.subr.bf16.mxu1 %v10610_v24  ;;  %v10658_v24 = vcombine.high %v468_v13, %v472_v14  ;;  %v512_v4 = vld [vmem:[#allocation5 + $0xab8] sm:$0xff] }
 0x379   :  { %7251 = vmatpush1.bf16.msra.mxu0 %v10855_v22  ;;  %v10903_v22 = vcombine.low %v715_v7, %v719_v8 }
 0x37a   :  { %7252 = vmatprep.subr.bf16.mxu0 %v10864_v19  ;;  %v10912_v19 = vcombine.high %v723_v16, %v727_v17 }
 0x37b   :  { %7499 = vmatpush1.bf16.msra.mxu1 %v10609_v5  ;;  %v10657_v5 = vcombine.low %v468_v13, %v472_v14  ;;  %v516_v13 = vld [vmem:[#allocation5 + $0xad8] sm:$0xff] }
 0x37c   :  { %7509 = vmatprep.subr.bf16.mxu1 %v10618_v33  ;;  %v10666_v33 = vcombine.high %v476_v26, %v480_v27  ;;  %v520_v14 = vld [vmem:[#allocation5 + $0xaf8] sm:$0xff] }
 0x37d   :  { %7253 = vmatpush1.bf16.msra.mxu0 %v10863_v54  ;;  %v10911_v54 = vcombine.low %v723_v16, %v727_v17  ;;  %v771_v16 = vld [vmem:[#allocation5 + $0x12d0] sm:$0xff] }
 0x37e   :  { %7263 = vmatprep.subr.bf16.mxu0 %v10872_v34  ;;  %7501 = vmatmul.mubr.bf16.vlgmr.msra.gmra.mrb[8].mxu1 %v12860_v6  ;;  %v10633_v6 = vcombine.low %v444_v49, %v448_v3  ;;  %v10920_v34 = vcombine.high %v731_v30, %v735_v31  ;;  %v492_v49 = vld [vmem:[#allocation5 + $0xa18] sm:$0xff]  ;;  %v775_v17 = vld [vmem:[#allocation5 + $0x12f0] sm:$0xff] }
 0x37f   :  { %7510 = vmatpush1.bf16.msra.mxu1 %v10617_v42  ;;  %7541 = vmatprep.mubr.bf16.mxu1 %v12876_v39  ;;  %v10904_v39 = vcombine.high %v715_v7, %v719_v8  ;;  %v10665_v42 = vcombine.low %v476_v26, %v480_v27  ;;  %v496_v3 = vld [vmem:[#allocation5 + $0xa38] sm:$0xff]  ;;  %v763_v7 = vld [vmem:[#allocation5 + $0x1290] sm:$0xff] }
 0x380   :  { %7255 = vmatmul.mubr.bf16.vlgmr.msra.gmra.mrb[4].mxu0 %v12885_v51  ;;  %7511 = vmatprep.subr.bf16.mxu1 %v10626_v47  ;;  %v10674_v47 = vcombine.high %v484_v35, %v488_v36  ;;  %v767_v8 = vld [vmem:[#allocation5 + $0x12b0] sm:$0xff]  ;;  %v524_v26 = vld [vmem:[#allocation5 + $0xb18] sm:$0xff] }
 0x381   :  { %7264 = vmatpush1.bf16.msra.mxu0 %v10871_v43  ;;  %7295 = vmatprep.mubr.bf16.mxu0 %v12903_v25  ;;  %v10919_v43 = vcombine.low %v731_v30, %v735_v31  ;;  %v528_v27 = vld [vmem:[#allocation5 + $0xb38] sm:$0xff]  ;;  %v779_v30 = vld [vmem:[#allocation5 + $0x1310] sm:$0xff] }
 0x382   :  { %7265 = vmatprep.subr.bf16.mxu0 %v10880_v48  ;;  %v10928_v48 = vcombine.high %v739_v37, %v743_v41  ;;  %v783_v31 = vld [vmem:[#allocation5 + $0x1330] sm:$0xff] }
 0x383   :  { %7512 = vmatpush1.bf16.msra.mxu1 %v10625_v53  ;;  %v10673_v53 = vcombine.low %v484_v35, %v488_v36  ;;  %v532_v35 = vld [vmem:[#allocation5 + $0xb58] sm:$0xff] }
 0x384   :  { %7513 = vmatprep.subr.bf16.mxu1 %v10634_v57  ;;  %v10682_v57 = vcombine.high %v492_v49, %v496_v3  ;;  %v536_v36 = vld [vmem:[#allocation5 + $0xb78] sm:$0xff] }
 0x385   :  { %7266 = vmatpush1.bf16.msra.mxu0 %v10879_v56  ;;  %v10927_v56 = vcombine.low %v739_v37, %v743_v41  ;;  %v787_v37 = vld [vmem:[#allocation5 + $0x1350] sm:$0xff] }
 0x386   :  { %7267 = vmatprep.subr.bf16.mxu0 %v10888_v59  ;;  %v10936_v59 = vcombine.high %v747_v50, %v751_v52  ;;  %v791_v41 = vld [vmem:[#allocation5 + $0x1370] sm:$0xff] }
 0x387   :  { %7514 = vmatpush1.bf16.msra.mxu1 %v10633_v6  ;;  %v10681_v6 = vcombine.low %v492_v49, %v496_v3  ;;  %v540_v49 = vld [vmem:[#allocation5 + $0xb98] sm:$0xff] }
 0x388   :  { %7515 = vmatprep.subr.bf16.mxu1 %v10642_v45  ;;  %v10690_v45 = vcombine.high %v500_v60, %v504_v40  ;;  %v544_v3 = vld [vmem:[#allocation5 + $0xbb8] sm:$0xff] }
 0x389   :  { %7268 = vmatpush1.bf16.msra.mxu0 %v10887_v0  ;;  %v10935_v0 = vcombine.low %v747_v50, %v751_v52  ;;  %v795_v50 = vld [vmem:[#allocation5 + $0x1390] sm:$0xff] }
 0x38a   :  { %7269 = vmatprep.subr.bf16.mxu0 %v10896_v1  ;;  %v10944_v1 = vcombine.high %v755_v62, %v759_v63  ;;  %v799_v52 = vld [vmem:[#allocation5 + $0x13b0] sm:$0xff] }
 0x38b   :  { %7516 = vmatpush1.bf16.msra.mxu1 %v10641_v9  ;;  %v10689_v9 = vcombine.low %v500_v60, %v504_v40  ;;  %v548_v60 = vld [vmem:[#allocation5 + $0xbd8] sm:$0xff] }
 0x38c   :  { %7517 = vmatprep.subr.bf16.mxu1 %v10650_v11  ;;  %v10698_v11 = vcombine.high %v508_v2, %v512_v4  ;;  %v552_v40 = vld [vmem:[#allocation5 + $0xbf8] sm:$0xff] }
 0x38d   :  { %7270 = vmatpush1.bf16.msra.mxu0 %v10895_v10  ;;  %v10943_v10 = vcombine.low %v755_v62, %v759_v63  ;;  %v803_v62 = vld [vmem:[#allocation5 + $0x13d0] sm:$0xff] }
 0x38e   :  { %7271 = vmatprep.subr.bf16.mxu0 %v10904_v39  ;;  %v10952_v39 = vcombine.high %v763_v7, %v767_v8  ;;  %v807_v63 = vld [vmem:[#allocation5 + $0x13f0] sm:$0xff] }
 0x38f   :  { %7518 = vmatpush1.bf16.msra.mxu1 %v10649_v18  ;;  %v10697_v18 = vcombine.low %v508_v2, %v512_v4  ;;  %v556_v2 = vld [vmem:[#allocation5 + $0xc18] sm:$0xff] }
 0x390   :  { %7519 = vmatprep.subr.bf16.mxu1 %v10658_v24  ;;  %v10706_v24 = vcombine.high %v516_v13, %v520_v14  ;;  %v560_v4 = vld [vmem:[#allocation5 + $0xc38] sm:$0xff] }
 0x391   :  { %7272 = vmatpush1.bf16.msra.mxu0 %v10903_v22  ;;  %v10951_v22 = vcombine.low %v763_v7, %v767_v8  ;;  %v811_v7 = vld [vmem:[#allocation5 + $0x1410] sm:$0xff] }
 0x392   :  { %7273 = vmatprep.subr.bf16.mxu0 %v10912_v19  ;;  %v10960_v19 = vcombine.high %v771_v16, %v775_v17  ;;  %v815_v8 = vld [vmem:[#allocation5 + $0x1430] sm:$0xff] }
 0x393   :  { %7520 = vmatpush1.bf16.msra.mxu1 %v10657_v5  ;;  %v10705_v5 = vcombine.low %v516_v13, %v520_v14  ;;  %v564_v13 = vld [vmem:[#allocation5 + $0xc58] sm:$0xff] }
 0x394   :  { %7521 = vmatprep.subr.bf16.mxu1 %v10666_v33  ;;  %v10714_v33 = vcombine.high %v524_v26, %v528_v27  ;;  %v568_v14 = vld [vmem:[#allocation5 + $0xc78] sm:$0xff] }
 0x395   :  { %7274 = vmatpush1.bf16.msra.mxu0 %v10911_v54  ;;  %v10959_v54 = vcombine.low %v771_v16, %v775_v17  ;;  %v819_v16 = vld [vmem:[#allocation5 + $0x1450] sm:$0xff] }
 0x396   :  { %7275 = vmatprep.subr.bf16.mxu0 %v10920_v34  ;;  %v10968_v34 = vcombine.high %v779_v30, %v783_v31  ;;  %v823_v17 = vld [vmem:[#allocation5 + $0x1470] sm:$0xff] }
 0x397   :  { %7522 = vmatpush1.bf16.msra.mxu1 %v10665_v42  ;;  %v10713_v42 = vcombine.low %v524_v26, %v528_v27  ;;  %v572_v26 = vld [vmem:[#allocation5 + $0xc98] sm:$0xff] }
 0x398   :  { %7523 = vmatprep.subr.bf16.mxu1 %v10674_v47  ;;  %v10722_v47 = vcombine.high %v532_v35, %v536_v36  ;;  %v576_v27 = vld [vmem:[#allocation5 + $0xcb8] sm:$0xff] }
 0x399   :  { %7276 = vmatpush1.bf16.msra.mxu0 %v10919_v43  ;;  %v10967_v43 = vcombine.low %v779_v30, %v783_v31  ;;  %v827_v30 = vld [vmem:[#allocation5 + $0x1490] sm:$0xff] }
 0x39a   :  { %7277 = vmatprep.subr.bf16.mxu0 %v10928_v48  ;;  %v10976_v48 = vcombine.high %v787_v37, %v791_v41  ;;  %v831_v31 = vld [vmem:[#allocation5 + $0x14b0] sm:$0xff] }
 0x39b   :  { %7524 = vmatpush1.bf16.msra.mxu1 %v10673_v53  ;;  %v10721_v53 = vcombine.low %v532_v35, %v536_v36  ;;  %v580_v35 = vld [vmem:[#allocation5 + $0xcd8] sm:$0xff] }
 0x39c   :  { %7525 = vmatprep.subr.bf16.mxu1 %v10682_v57  ;;  %v10730_v57 = vcombine.high %v540_v49, %v544_v3  ;;  %v584_v36 = vld [vmem:[#allocation5 + $0xcf8] sm:$0xff] }
 0x39d   :  { %7278 = vmatpush1.bf16.msra.mxu0 %v10927_v56  ;;  %v10975_v56 = vcombine.low %v787_v37, %v791_v41  ;;  %v835_v37 = vld [vmem:[#allocation5 + $0x14d0] sm:$0xff] }
 0x39e   :  { %7279 = vmatprep.subr.bf16.mxu0 %v10936_v59  ;;  %v10984_v59 = vcombine.high %v795_v50, %v799_v52  ;;  %v839_v41 = vld [vmem:[#allocation5 + $0x14f0] sm:$0xff] }
 0x39f   :  { %7526 = vmatpush1.bf16.msra.mxu1 %v10681_v6  ;;  %v10729_v6 = vcombine.low %v540_v49, %v544_v3  ;;  %v592_v49 = vld [vmem:[#allocation5 + $0xd38] sm:$0xff]  ;;  %v843_v3 = vld [vmem:[#allocation5 + $0x1510] sm:$0xff] }
 0x3a0   :  { %7527 = vmatprep.subr.bf16.mxu1 %v10690_v45  ;;  %v10738_v45 = vcombine.high %v548_v60, %v552_v40 }
 0x3a1   :  { %7280 = vmatpush1.bf16.msra.mxu0 %v10935_v0  ;;  %v10983_v0 = vcombine.low %v795_v50, %v799_v52  ;;  %v847_v50 = vld [vmem:[#allocation5 + $0x1530] sm:$0xff]  ;;  %v10769_v52 = vcombine.low %v580_v35, %v584_v36 }
 0x3a2   :  { %7281 = vmatprep.subr.bf16.mxu0 %v10944_v1  ;;  %v10992_v1 = vcombine.high %v803_v62, %v807_v63 }
 0x3a3   :  { %7528 = vmatpush1.bf16.msra.mxu1 %v10689_v9  ;;  %v10737_v9 = vcombine.low %v548_v60, %v552_v40  ;;  %v851_v60 = vld [vmem:[#allocation5 + $0x1550] sm:$0xff] }
 0x3a4   :  { %7529 = vmatprep.subr.bf16.mxu1 %v10698_v11  ;;  %v10746_v11 = vcombine.high %v556_v2, %v560_v4  ;;  %v855_v40 = vld [vmem:[#allocation5 + $0x1570] sm:$0xff] }
 0x3a5   :  { %7282 = vmatpush1.bf16.msra.mxu0 %v10943_v10  ;;  %v10991_v10 = vcombine.low %v803_v62, %v807_v63  ;;  %v11031_v63 = vcombine.low %v843_v3, %v847_v50 }
 0x3a6   :  { %7283 = vmatprep.subr.bf16.mxu0 %v10952_v39  ;;  %v11000_v39 = vcombine.high %v811_v7, %v815_v8 }
 0x3a7   :  { %7530 = vmatpush1.bf16.msra.mxu1 %v10697_v18  ;;  %v10745_v18 = vcombine.low %v556_v2, %v560_v4  ;;  %v859_v2 = vld [vmem:[#allocation5 + $0x1590] sm:$0xff] }
 0x3a8   :  { %7531 = vmatprep.subr.bf16.mxu1 %v10706_v24  ;;  %v10754_v24 = vcombine.high %v564_v13, %v568_v14  ;;  %v863_v4 = vld [vmem:[#allocation5 + $0x15b0] sm:$0xff] }
 0x3a9   :  { %7284 = vmatpush1.bf16.msra.mxu0 %v10951_v22  ;;  %v10999_v22 = vcombine.low %v811_v7, %v815_v8  ;;  %v11039_v8 = vcombine.low %v851_v60, %v855_v40 }
 0x3aa   :  { %7285 = vmatprep.subr.bf16.mxu0 %v10960_v19  ;;  %v11008_v19 = vcombine.high %v819_v16, %v823_v17 }
 0x3ab   :  { %7532 = vmatpush1.bf16.msra.mxu1 %v10705_v5  ;;  %v10753_v5 = vcombine.low %v564_v13, %v568_v14  ;;  %v616_v13 = vld [vmem:[#allocation5 + $0xdf8] sm:$0xff] }
 0x3ac   :  { %7533 = vmatprep.subr.bf16.mxu1 %v10714_v33  ;;  %v10762_v33 = vcombine.high %v572_v26, %v576_v27 }
 0x3ad   :  { %7286 = vmatpush1.bf16.msra.mxu0 %v10959_v54  ;;  %v11007_v54 = vcombine.low %v819_v16, %v823_v17  ;;  %v867_v16 = vld [vmem:[#allocation5 + $0x15d0] sm:$0xff] }
 0x3ae   :  { %7287 = vmatprep.subr.bf16.mxu0 %v10968_v34  ;;  %v11016_v34 = vcombine.high %v827_v30, %v831_v31  ;;  %v871_v17 = vld [vmem:[#allocation5 + $0x15f0] sm:$0xff] }
 0x3af   :  { %7534 = vmatpush1.bf16.msra.mxu1 %v10713_v42  ;;  %v11015_v42 = vcombine.low %v827_v30, %v831_v31  ;;  %v620_v30 = vld [vmem:[#allocation5 + $0xe18] sm:$0xff] }
 0x3b0   :  { %7535 = vmatprep.subr.bf16.mxu1 %v10722_v47  ;;  %v11024_v47 = vcombine.high %v835_v37, %v839_v41  ;;  %v624_v31 = vld [vmem:[#allocation5 + $0xe38] sm:$0xff] }
 0x3b1   :  { %7288 = vmatpush1.bf16.msra.mxu0 %v10967_v43  ;;  %v10770_v43 = vcombine.high %v580_v35, %v584_v36  ;;  %v10810_v35 = vcombine.high %v620_v30, %v624_v31 }
 0x3b2   :  { %7289 = vmatprep.subr.bf16.mxu0 %v10976_v48  ;;  %v588_v48 = vld [vmem:[#allocation5 + $0xd18] sm:$0xff] }
 0x3b3   :  { %7536 = vmatpush1.bf16.msra.mxu1 %v10721_v53  ;;  %v11023_v53 = vcombine.low %v835_v37, %v839_v41  ;;  %v10777_v62 = vcombine.low %v588_v48, %v592_v49  ;;  %v628_v37 = vld [vmem:[#allocation5 + $0xe58] sm:$0xff] }
 0x3b4   :  { %7537 = vmatprep.subr.bf16.mxu1 %v10730_v57  ;;  %v596_v57 = vld [vmem:[#allocation5 + $0xd58] sm:$0xff] }
 0x3b5   :  { %7290 = vmatpush1.bf16.msra.mxu0 %v10975_v56  ;;  %v10778_v56 = vcombine.high %v588_v48, %v592_v49  ;;  %v632_v41 = vld [vmem:[#allocation5 + $0xe78] sm:$0xff] }
 0x3b6   :  { %7291 = vmatprep.subr.bf16.mxu0 %v10984_v59  ;;  %v600_v59 = vld [vmem:[#allocation5 + $0xd78] sm:$0xff]  ;;  %v10818_v48 = vcombine.high %v628_v37, %v632_v41 }
 0x3b7   :  { %7538 = vmatpush1.bf16.msra.mxu1 %v10729_v6  ;;  %v10786_v6 = vcombine.high %v596_v57, %v600_v59  ;;  %v10785_v7 = vcombine.low %v596_v57, %v600_v59 }
 0x3b8   :  { %7539 = vmatprep.subr.bf16.mxu1 %v10738_v45  ;;  %v604_v45 = vld [vmem:[#allocation5 + $0xd98] sm:$0xff] }
 0x3b9   :  { %7292 = vmatpush1.bf16.msra.mxu0 %v10983_v0  ;;  %v11040_v0 = vcombine.high %v851_v60, %v855_v40  ;;  %v644_v60 = vld [vmem:[#allocation5 + $0xed8] sm:$0xff] }
 0x3ba   :  { %7293 = vmatprep.subr.bf16.mxu0 %v10992_v1  ;;  %v608_v1 = vld [vmem:[#allocation5 + $0xdb8] sm:$0xff] }
 0x3bb   :  { %7540 = vmatpush1.bf16.msra.mxu1 %v10737_v9  ;;  %v10794_v9 = vcombine.high %v604_v45, %v608_v1  ;;  %v648_v40 = vld [vmem:[#allocation5 + $0xef8] sm:$0xff] }
 0x3bc   :  { %7550 = vmatprep.subr.bf16.mxu1 %v10746_v11  ;;  %v11048_v11 = vcombine.high %v859_v2, %v863_v4 }
 0x3bd   :  { %7294 = vmatpush1.bf16.msra.mxu0 %v10991_v10 }
 0x3be   :  { %7304 = vmatprep.subr.bf16.mxu0 %v11000_v39  ;;  %7542 = vmatmul.mubr.bf16.vlgmr.msra.gmra.mrb[8].mxu1 %v12872_v28  ;;  %v10761_v28 = vcombine.low %v572_v26, %v576_v27  ;;  %v612_v39 = vld [vmem:[#allocation5 + $0xdd8] sm:$0xff]  ;;  %v11056_v27 = vcombine.high %v867_v16, %v871_v17 }
 0x3bf   :  { %7551 = vmatpush1.bf16.msra.mxu1 %v10745_v18  ;;  %7582 = vmatprep.mubr.bf16.mxu1 %v12889_v61  ;;  %v11032_v61 = vcombine.high %v843_v3, %v847_v50  ;;  %v10802_v26 = vcombine.high %v612_v39, %v616_v13  ;;  %v636_v3 = vld [vmem:[#allocation5 + $0xe98] sm:$0xff] }
 0x3c0   :  { %7296 = vmatmul.mubr.bf16.vlgmr.msra.gmra.mrb[4].mxu0 %v12899_v15  ;;  %7552 = vmatprep.subr.bf16.mxu1 %v10754_v24  ;;  %v640_v50 = vld [vmem:[#allocation5 + $0xeb8] sm:$0xff] }
 0x3c1   :  { %7305 = vmatpush1.bf16.msra.mxu0 %v10999_v22  ;;  %7336 = vmatprep.mubr.bf16.mxu0 %v12916_v21  ;;  %v10793_v22 = vcombine.low %v604_v45, %v608_v1  ;;  %v10826_v57 = vcombine.high %v636_v3, %v640_v50  ;;  %v10834_v45 = vcombine.high %v644_v60, %v648_v40 }
 0x3c2   :  { %7306 = vmatprep.subr.bf16.mxu0 %v11008_v19  ;;  %v11047_v19 = vcombine.low %v859_v2, %v863_v4  ;;  %v652_v2 = vld [vmem:[#allocation5 + $0xf18] sm:$0xff] }
 0x3c3   :  { %7553 = vmatpush1.bf16.msra.mxu1 %v10753_v5  ;;  %v875_v5 = vld [vmem:[#allocation5 + $0x1610] sm:$0xff]  ;;  %v656_v4 = vld [vmem:[#allocation5 + $0xf38] sm:$0xff] }
 0x3c4   :  { %7554 = vmatprep.subr.bf16.mxu1 %v10762_v33  ;;  %v10801_v33 = vcombine.low %v612_v39, %v616_v13  ;;  %v10842_v39 = vcombine.high %v652_v2, %v656_v4 }
 0x3c5   :  { %7307 = vmatpush1.bf16.msra.mxu0 %v11007_v54  ;;  %v879_v54 = vld [vmem:[#allocation5 + $0x1630] sm:$0xff] }
 0x3c6   :  { %7308 = vmatprep.subr.bf16.mxu0 %v11016_v34  ;;  %v11055_v34 = vcombine.low %v867_v16, %v871_v17  ;;  %v11064_v36 = vcombine.high %v875_v5, %v879_v54  ;;  %v660_v16 = vld [vmem:[#allocation5 + $0xf58] sm:$0xff] }
 0x3c7   :  { %7555 = vmatpush1.bf16.msra.mxu1 %v10761_v28  ;;  %v883_v28 = vld [vmem:[#allocation5 + $0x1650] sm:$0xff]  ;;  %v664_v17 = vld [vmem:[#allocation5 + $0xf78] sm:$0xff] }
 0x3c8   :  { %7556 = vmatprep.subr.bf16.mxu1 %v10770_v43  ;;  %v10809_v43 = vcombine.low %v620_v30, %v624_v31  ;;  %v668_v30 = vld [vmem:[#allocation5 + $0xf98] sm:$0xff] }
 0x3c9   :  { %7309 = vmatpush1.bf16.msra.mxu0 %v11015_v42  ;;  %v887_v42 = vld [vmem:[#allocation5 + $0x1670] sm:$0xff]  ;;  %v672_v31 = vld [vmem:[#allocation5 + $0xfb8] sm:$0xff] }
 0x3ca   :  { %7310 = vmatprep.subr.bf16.mxu0 %v11024_v47  ;;  %v11063_v47 = vcombine.low %v875_v5, %v879_v54  ;;  %v11072_v49 = vcombine.high %v883_v28, %v887_v42  ;;  %v923_v5 = vld [vmem:[#allocation5 + $0x1790] sm:$0xff] }
 0x3cb   :  { %7557 = vmatpush1.bf16.msra.mxu1 %v10769_v52  ;;  %v891_v52 = vld [vmem:[#allocation5 + $0x1690] sm:$0xff] }
 0x3cc   :  { %7558 = vmatprep.subr.bf16.mxu1 %v10778_v56  ;;  %v10817_v56 = vcombine.low %v628_v37, %v632_v41  ;;  %v927_v54 = vld [vmem:[#allocation5 + $0x17b0] sm:$0xff]  ;;  %v676_v37 = vld [vmem:[#allocation5 + $0xfd8] sm:$0xff] }
 0x3cd   :  { %7311 = vmatpush1.bf16.msra.mxu0 %v11023_v53  ;;  %v895_v53 = vld [vmem:[#allocation5 + $0x16b0] sm:$0xff]  ;;  %v680_v41 = vld [vmem:[#allocation5 + $0xff8] sm:$0xff] }
 0x3ce   :  { %7312 = vmatprep.subr.bf16.mxu0 %v11032_v61  ;;  %v11071_v61 = vcombine.low %v883_v28, %v887_v42  ;;  %v11080_v59 = vcombine.high %v891_v52, %v895_v53  ;;  %v931_v28 = vld [vmem:[#allocation5 + $0x17d0] sm:$0xff] }
 0x3cf   :  { %7559 = vmatpush1.bf16.msra.mxu1 %v10777_v62  ;;  %v899_v62 = vld [vmem:[#allocation5 + $0x16d0] sm:$0xff] }
 0x3d0   :  { %7560 = vmatprep.subr.bf16.mxu1 %v10786_v6  ;;  %v10825_v6 = vcombine.low %v636_v3, %v640_v50  ;;  %v935_v42 = vld [vmem:[#allocation5 + $0x17f0] sm:$0xff]  ;;  %v684_v3 = vld [vmem:[#allocation5 + $0x1018] sm:$0xff] }
 0x3d1   :  { %7313 = vmatpush1.bf16.msra.mxu0 %v11031_v63  ;;  %v12991_v10 = vpop.f32.mrb[4].mxu1  ;;  %v903_v63 = vld [vmem:[#allocation5 + $0x16f0] sm:$0xff]  ;;  %v688_v50 = vld [vmem:[#allocation5 + $0x1038] sm:$0xff] }
 0x3d2   :  { %7314 = vmatprep.subr.bf16.mxu0 %v11040_v0  ;;  %v12993_v14 = vpop.f32.mrb[5].mxu1  ;;  %v11079_v0 = vcombine.low %v891_v52, %v895_v53  ;;  %v11088_v1 = vcombine.high %v899_v62, %v903_v63  ;;  %v939_v52 = vld [vmem:[#allocation5 + $0x1810] sm:$0xff] }
 0x3d3   :  { %v7096_v18 = vpop.f32.mrb[6].mxu1  ;;  %7561 = vmatpush1.bf16.msra.mxu1 %v10785_v7  ;;  %v907_v7 = vld [vmem:[#allocation5 + $0x1710] sm:$0xff] }
 0x3d4   :  { %v7097_v24 = vpop.f32.mrb[7].mxu1  ;;  %7562 = vmatprep.subr.bf16.mxu1 %v10794_v9  ;;  %v10833_v9 = vcombine.low %v644_v60, %v648_v40  ;;  %v915_v18 = vld [vmem:[#allocation5 + $0x1750] sm:$0xff]  ;;  %v692_v60 = vld [vmem:[#allocation5 + $0x1058] sm:$0xff] }
 0x3d5   :  { %7315 = vmatpush1.bf16.msra.mxu0 %v11039_v8  ;;  %v911_v8 = vld [vmem:[#allocation5 + $0x1730] sm:$0xff]  ;;  %v10841_v24 = vcombine.low %v652_v2, %v656_v4  ;;  %v696_v40 = vld [vmem:[#allocation5 + $0x1078] sm:$0xff] }
 0x3d6   :  { %7316 = vmatprep.subr.bf16.mxu0 %v11048_v11  ;;  %v11087_v11 = vcombine.low %v899_v62, %v903_v63  ;;  %v11096_v13 = vcombine.high %v907_v7, %v911_v8  ;;  %v943_v53 = vld [vmem:[#allocation5 + $0x1830] sm:$0xff]  ;;  %v700_v2 = vld [vmem:[#allocation5 + $0x1098] sm:$0xff] }
 0x3d7   :  { %7563 = vmatpush1.bf16.msra.mxu1 %v10793_v22  ;;  %v919_v22 = vld [vmem:[#allocation5 + $0x1770] sm:$0xff]  ;;  %v704_v4 = vld [vmem:[#allocation5 + $0x10b8] sm:$0xff] }
 0x3d8   :  { %7564 = vmatprep.subr.bf16.mxu1 %v10802_v26  ;;  %v10850_v26 = vcombine.high %v660_v16, %v664_v17  ;;  %v947_v62 = vld [vmem:[#allocation5 + $0x1850] sm:$0xff] }
 0x3d9   :  { %7317 = vmatpush1.bf16.msra.mxu0 %v11047_v19  ;;  %v11095_v19 = vcombine.low %v907_v7, %v911_v8  ;;  %v951_v63 = vld [vmem:[#allocation5 + $0x1870] sm:$0xff] }
 0x3da   :  { %7318 = vmatprep.subr.bf16.mxu0 %v11056_v27  ;;  %v11104_v27 = vcombine.high %v915_v18, %v919_v22  ;;  %v955_v7 = vld [vmem:[#allocation5 + $0x1890] sm:$0xff] }
 0x3db   :  { %7565 = vmatpush1.bf16.msra.mxu1 %v10801_v33  ;;  %v10849_v33 = vcombine.low %v660_v16, %v664_v17  ;;  %v959_v8 = vld [vmem:[#allocation5 + $0x18b0] sm:$0xff]  ;;  %v708_v16 = vld [vmem:[#allocation5 + $0x10d8] sm:$0xff] }
 0x3dc   :  { %7566 = vmatprep.subr.bf16.mxu1 %v10810_v35  ;;  %v10858_v35 = vcombine.high %v668_v30, %v672_v31  ;;  %v712_v17 = vld [vmem:[#allocation5 + $0x10f8] sm:$0xff] }
 0x3dd   :  { %7319 = vmatpush1.bf16.msra.mxu0 %v11055_v34  ;;  %v11103_v34 = vcombine.low %v915_v18, %v919_v22  ;;  %v963_v18 = vld [vmem:[#allocation5 + $0x18d0] sm:$0xff] }
 0x3de   :  { %7320 = vmatprep.subr.bf16.mxu0 %v11064_v36  ;;  %v11112_v36 = vcombine.high %v923_v5, %v927_v54  ;;  %v967_v22 = vld [vmem:[#allocation5 + $0x18f0] sm:$0xff] }
 0x3df   :  { %7567 = vmatpush1.bf16.msra.mxu1 %v10809_v43  ;;  %v10857_v43 = vcombine.low %v668_v30, %v672_v31  ;;  %v720_v30 = vld [vmem:[#allocation5 + $0x1138] sm:$0xff]  ;;  %v971_v31 = vld [vmem:[#allocation5 + $0x1910] sm:$0xff] }
 0x3e0   :  { %7568 = vmatprep.subr.bf16.mxu1 %v10818_v48  ;;  %v10866_v48 = vcombine.high %v676_v37, %v680_v41 }
 0x3e1   :  { %7321 = vmatpush1.bf16.msra.mxu0 %v11063_v47  ;;  %v11111_v47 = vcombine.low %v923_v5, %v927_v54  ;;  %v975_v5 = vld [vmem:[#allocation5 + $0x1930] sm:$0xff]  ;;  %v10897_v54 = vcombine.low %v708_v16, %v712_v17 }
 0x3e2   :  { %7322 = vmatprep.subr.bf16.mxu0 %v11072_v49  ;;  %v11120_v49 = vcombine.high %v931_v28, %v935_v42 }
 0x3e3   :  { %7569 = vmatpush1.bf16.msra.mxu1 %v10817_v56  ;;  %v10865_v56 = vcombine.low %v676_v37, %v680_v41  ;;  %v979_v37 = vld [vmem:[#allocation5 + $0x1950] sm:$0xff] }
 0x3e4   :  { %7570 = vmatprep.subr.bf16.mxu1 %v10826_v57  ;;  %v10874_v57 = vcombine.high %v684_v3, %v688_v50  ;;  %v983_v41 = vld [vmem:[#allocation5 + $0x1970] sm:$0xff] }
 0x3e5   :  { %7323 = vmatpush1.bf16.msra.mxu0 %v11071_v61  ;;  %v11119_v61 = vcombine.low %v931_v28, %v935_v42  ;;  %v11159_v42 = vcombine.low %v971_v31, %v975_v5 }
 0x3e6   :  { %7324 = vmatprep.subr.bf16.mxu0 %v11080_v59  ;;  %v11128_v59 = vcombine.high %v939_v52, %v943_v53 }
 0x3e7   :  { %7571 = vmatpush1.bf16.msra.mxu1 %v10825_v6  ;;  %v10873_v6 = vcombine.low %v684_v3, %v688_v50  ;;  %v987_v3 = vld [vmem:[#allocation5 + $0x1990] sm:$0xff] }
 0x3e8   :  { %7572 = vmatprep.subr.bf16.mxu1 %v10834_v45  ;;  %v10882_v45 = vcombine.high %v692_v60, %v696_v40  ;;  %v991_v50 = vld [vmem:[#allocation5 + $0x19b0] sm:$0xff] }
 0x3e9   :  { %7325 = vmatpush1.bf16.msra.mxu0 %v11079_v0  ;;  %v11127_v0 = vcombine.low %v939_v52, %v943_v53  ;;  %v11167_v53 = vcombine.low %v979_v37, %v983_v41 }
 0x3ea   :  { %7326 = vmatprep.subr.bf16.mxu0 %v11088_v1  ;;  %v11136_v1 = vcombine.high %v947_v62, %v951_v63 }
 0x3eb   :  { %7573 = vmatpush1.bf16.msra.mxu1 %v10833_v9  ;;  %v10881_v9 = vcombine.low %v692_v60, %v696_v40  ;;  %v995_v60 = vld [vmem:[#allocation5 + $0x19d0] sm:$0xff] }
 0x3ec   :  { %7574 = vmatprep.subr.bf16.mxu1 %v10842_v39  ;;  %v10890_v39 = vcombine.high %v700_v2, %v704_v4  ;;  %v999_v40 = vld [vmem:[#allocation5 + $0x19f0] sm:$0xff] }
 0x3ed   :  { %7327 = vmatpush1.bf16.msra.mxu0 %v11087_v11  ;;  %v11135_v11 = vcombine.low %v947_v62, %v951_v63  ;;  %v11175_v63 = vcombine.low %v987_v3, %v991_v50 }
 0x3ee   :  { %7328 = vmatprep.subr.bf16.mxu0 %v11096_v13  ;;  %v11144_v13 = vcombine.high %v955_v7, %v959_v8 }
 0x3ef   :  { %7575 = vmatpush1.bf16.msra.mxu1 %v10841_v24  ;;  %v11143_v24 = vcombine.low %v955_v7, %v959_v8  ;;  %v11183_v8 = vcombine.low %v995_v60, %v999_v40 }
 0x3f0   :  { %7576 = vmatprep.subr.bf16.mxu1 %v10850_v26  ;;  %v11152_v26 = vcombine.high %v963_v18, %v967_v22 }
 0x3f1   :  { %7329 = vmatpush1.bf16.msra.mxu0 %v11095_v19  ;;  %v10898_v19 = vcombine.high %v708_v16, %v712_v17  ;;  %v1011_v16 = vld [vmem:[#allocation5 + $0x1a50] sm:$0xff] }
 0x3f2   :  { %7330 = vmatprep.subr.bf16.mxu0 %v11104_v27  ;;  %v716_v27 = vld [vmem:[#allocation5 + $0x1118] sm:$0xff]  ;;  %v1015_v17 = vld [vmem:[#allocation5 + $0x1a70] sm:$0xff] }
 0x3f3   :  { %7577 = vmatpush1.bf16.msra.mxu1 %v10849_v33  ;;  %v11151_v33 = vcombine.low %v963_v18, %v967_v22  ;;  %v10905_v28 = vcombine.low %v716_v27, %v720_v30 }
 0x3f4   :  { %7578 = vmatprep.subr.bf16.mxu1 %v10858_v35  ;;  %v724_v35 = vld [vmem:[#allocation5 + $0x1158] sm:$0xff] }
 0x3f5   :  { %7331 = vmatpush1.bf16.msra.mxu0 %v11103_v34  ;;  %v10906_v34 = vcombine.high %v716_v27, %v720_v30  ;;  %v1019_v27 = vld [vmem:[#allocation5 + $0x1a90] sm:$0xff] }
 0x3f6   :  { %7332 = vmatprep.subr.bf16.mxu0 %v11112_v36  ;;  %v728_v36 = vld [vmem:[#allocation5 + $0x1178] sm:$0xff]  ;;  %v1023_v30 = vld [vmem:[#allocation5 + $0x1ab0] sm:$0xff] }
 0x3f7   :  { %7579 = vmatpush1.bf16.msra.mxu1 %v10857_v43  ;;  %v10914_v43 = vcombine.high %v724_v35, %v728_v36  ;;  %v10913_v52 = vcombine.low %v724_v35, %v728_v36  ;;  %v1027_v35 = vld [vmem:[#allocation5 + $0x1ad0] sm:$0xff] }
 0x3f8   :  { %7580 = vmatprep.subr.bf16.mxu1 %v10866_v48  ;;  %v732_v48 = vld [vmem:[#allocation5 + $0x1198] sm:$0xff]  ;;  %v1031_v36 = vld [vmem:[#allocation5 + $0x1af0] sm:$0xff] }
 0x3f9   :  { %7333 = vmatpush1.bf16.msra.mxu0 %v11111_v47  ;;  %v11168_v47 = vcombine.high %v979_v37, %v983_v41  ;;  %v11207_v41 = vcombine.low %v1019_v27, %v1023_v30 }
 0x3fa   :  { %7334 = vmatprep.subr.bf16.mxu0 %v11120_v49  ;;  %v736_v49 = vld [vmem:[#allocation5 + $0x11b8] sm:$0xff] }
 0x3fb   :  { %7581 = vmatpush1.bf16.msra.mxu1 %v10865_v56  ;;  %v10922_v56 = vcombine.high %v732_v48, %v736_v49  ;;  %v10921_v62 = vcombine.low %v732_v48, %v736_v49  ;;  %v1035_v48 = vld [vmem:[#allocation5 + $0x1b10] sm:$0xff] }
 0x3fc   :  { %7591 = vmatprep.subr.bf16.mxu1 %v10874_v57  ;;  %v740_v57 = vld [vmem:[#allocation5 + $0x11d8] sm:$0xff]  ;;  %v1039_v49 = vld [vmem:[#allocation5 + $0x1b30] sm:$0xff] }
 0x3fd   :  { %7335 = vmatpush1.bf16.msra.mxu0 %v11119_v61  ;;  %v11176_v61 = vcombine.high %v987_v3, %v991_v50  ;;  %v11215_v50 = vcombine.low %v1027_v35, %v1031_v36 }
 0x3fe   :  { %7345 = vmatprep.subr.bf16.mxu0 %v11128_v59  ;;  %7583 = vmatmul.mubr.bf16.vlgmr.msra.gmra.mrb[8].mxu1 %v12885_v51  ;;  %v10889_v51 = vcombine.low %v700_v2, %v704_v4  ;;  %v744_v59 = vld [vmem:[#allocation5 + $0x11f8] sm:$0xff]  ;;  %v1003_v2 = vld [vmem:[#allocation5 + $0x1a10] sm:$0xff] }
 0x3ff   :  { %7592 = vmatpush1.bf16.msra.mxu1 %v10873_v6  ;;  %7623 = vmatprep.mubr.bf16.mxu1 %v12903_v25  ;;  %v11160_v25 = vcombine.high %v971_v31, %v975_v5  ;;  %v10930_v6 = vcombine.high %v740_v57, %v744_v59  ;;  %v1007_v4 = vld [vmem:[#allocation5 + $0x1a30] sm:$0xff]  ;;  %v10929_v7 = vcombine.low %v740_v57, %v744_v59 }
 0x400   :  { %7337 = vmatmul.mubr.bf16.vlgmr.msra.gmra.mrb[4].mxu0 %v12912_v46  ;;  %7593 = vmatprep.subr.bf16.mxu1 %v10882_v45  ;;  %v748_v45 = vld [vmem:[#allocation5 + $0x1218] sm:$0xff]  ;;  %v11191_v22 = vcombine.low %v1003_v2, %v1007_v4  ;;  %v11199_v5 = vcombine.low %v1011_v16, %v1015_v17  ;;  %v1043_v57 = vld [vmem:[#allocation5 + $0x1b50] sm:$0xff] }
 0x401   :  { %7346 = vmatpush1.bf16.msra.mxu0 %v11127_v0  ;;  %7377 = vmatprep.mubr.bf16.mxu0 %v12934_v38  ;;  %v11184_v0 = vcombine.high %v995_v60, %v999_v40  ;;  %v1047_v59 = vld [vmem:[#allocation5 + $0x1b70] sm:$0xff]  ;;  %v11223_v40 = vcombine.low %v1035_v48, %v1039_v49 }
 0x402   :  { %7347 = vmatprep.subr.bf16.mxu0 %v11136_v1  ;;  %v752_v1 = vld [vmem:[#allocation5 + $0x1238] sm:$0xff] }
 0x403   :  { %7594 = vmatpush1.bf16.msra.mxu1 %v10881_v9  ;;  %v10938_v9 = vcombine.high %v748_v45, %v752_v1  ;;  %v10937_v18 = vcombine.low %v748_v45, %v752_v1  ;;  %v1051_v45 = vld [vmem:[#allocation5 + $0x1b90] sm:$0xff] }
 0x404   :  { %7595 = vmatprep.subr.bf16.mxu1 %v10890_v39  ;;  %v756_v39 = vld [vmem:[#allocation5 + $0x1258] sm:$0xff]  ;;  %v1055_v1 = vld [vmem:[#allocation5 + $0x1bb0] sm:$0xff] }
 0x405   :  { %7348 = vmatpush1.bf16.msra.mxu0 %v11135_v11  ;;  %v11192_v11 = vcombine.high %v1003_v2, %v1007_v4  ;;  %v11231_v4 = vcombine.low %v1043_v57, %v1047_v59 }
 0x406   :  { %7349 = vmatprep.subr.bf16.mxu0 %v11144_v13  ;;  %v760_v13 = vld [vmem:[#allocation5 + $0x1278] sm:$0xff] }
 0x407   :  { %7596 = vmatpush1.bf16.msra.mxu1 %v10889_v51  ;;  %v10946_v51 = vcombine.high %v756_v39, %v760_v13  ;;  %v10945_v31 = vcombine.low %v756_v39, %v760_v13  ;;  %v1059_v39 = vld [vmem:[#allocation5 + $0x1bd0] sm:$0xff] }
 0x408   :  { %7597 = vmatprep.subr.bf16.mxu1 %v10898_v19  ;;  %v764_v19 = vld [vmem:[#allocation5 + $0x1298] sm:$0xff]  ;;  %v1063_v13 = vld [vmem:[#allocation5 + $0x1bf0] sm:$0xff] }
 0x409   :  { %7350 = vmatpush1.bf16.msra.mxu0 %v11143_v24  ;;  %v11200_v24 = vcombine.high %v1011_v16, %v1015_v17  ;;  %v11239_v17 = vcombine.low %v1051_v45, %v1055_v1 }
 0x40a   :  { %7351 = vmatprep.subr.bf16.mxu0 %v11152_v26  ;;  %v768_v26 = vld [vmem:[#allocation5 + $0x12b8] sm:$0xff] }
 0x40b   :  { %7598 = vmatpush1.bf16.msra.mxu1 %v10897_v54  ;;  %v10954_v54 = vcombine.high %v764_v19, %v768_v26  ;;  %v10953_v37 = vcombine.low %v764_v19, %v768_v26  ;;  %v1067_v19 = vld [vmem:[#allocation5 + $0x1c10] sm:$0xff] }
 0x40c   :  { %7599 = vmatprep.subr.bf16.mxu1 %v10906_v34  ;;  %v772_v34 = vld [vmem:[#allocation5 + $0x12d8] sm:$0xff]  ;;  %v1071_v26 = vld [vmem:[#allocation5 + $0x1c30] sm:$0xff] }
 0x40d   :  { %7352 = vmatpush1.bf16.msra.mxu0 %v11151_v33  ;;  %v11208_v33 = vcombine.high %v1019_v27, %v1023_v30  ;;  %v11247_v30 = vcombine.low %v1059_v39, %v1063_v13 }
 0x40e   :  { %7353 = vmatprep.subr.bf16.mxu0 %v11160_v25  ;;  %v776_v25 = vld [vmem:[#allocation5 + $0x12f8] sm:$0xff] }
 0x40f   :  { %7600 = vmatpush1.bf16.msra.mxu1 %v10905_v28  ;;  %v10962_v28 = vcombine.high %v772_v34, %v776_v25  ;;  %v10961_v3 = vcombine.low %v772_v34, %v776_v25  ;;  %v1075_v34 = vld [vmem:[#allocation5 + $0x1c50] sm:$0xff] }
 0x410   :  { %7601 = vmatprep.subr.bf16.mxu1 %v10914_v43  ;;  %v780_v43 = vld [vmem:[#allocation5 + $0x1318] sm:$0xff]  ;;  %v1079_v25 = vld [vmem:[#allocation5 + $0x1c70] sm:$0xff] }
 0x411   :  { %7354 = vmatpush1.bf16.msra.mxu0 %v11159_v42  ;;  %v11216_v42 = vcombine.high %v1027_v35, %v1031_v36  ;;  %v11255_v36 = vcombine.low %v1067_v19, %v1071_v26 }
 0x412   :  { %7355 = vmatprep.subr.bf16.mxu0 %v11168_v47  ;;  %v784_v47 = vld [vmem:[#allocation5 + $0x1338] sm:$0xff] }
 0x413   :  { %7602 = vmatpush1.bf16.msra.mxu1 %v10913_v52  ;;  %v10970_v52 = vcombine.high %v780_v43, %v784_v47  ;;  %v10969_v60 = vcombine.low %v780_v43, %v784_v47  ;;  %v1083_v43 = vld [vmem:[#allocation5 + $0x1c90] sm:$0xff] }
 0x414   :  { %7603 = vmatprep.subr.bf16.mxu1 %v10922_v56  ;;  %v788_v56 = vld [vmem:[#allocation5 + $0x1358] sm:$0xff]  ;;  %v1087_v47 = vld [vmem:[#allocation5 + $0x1cb0] sm:$0xff] }
 0x415   :  { %7356 = vmatpush1.bf16.msra.mxu0 %v11167_v53  ;;  %v11224_v53 = vcombine.high %v1035_v48, %v1039_v49  ;;  %v11263_v49 = vcombine.low %v1075_v34, %v1079_v25 }
 0x416   :  { %7357 = vmatprep.subr.bf16.mxu0 %v11176_v61  ;;  %v792_v61 = vld [vmem:[#allocation5 + $0x1378] sm:$0xff] }
 0x417   :  { %7604 = vmatpush1.bf16.msra.mxu1 %v10921_v62  ;;  %v10978_v62 = vcombine.high %v788_v56, %v792_v61  ;;  %v10977_v2 = vcombine.low %v788_v56, %v792_v61  ;;  %v1091_v56 = vld [vmem:[#allocation5 + $0x1cd0] sm:$0xff] }
 0x418   :  { %7605 = vmatprep.subr.bf16.mxu1 %v10930_v6  ;;  %v796_v6 = vld [vmem:[#allocation5 + $0x1398] sm:$0xff]  ;;  %v1095_v61 = vld [vmem:[#allocation5 + $0x1cf0] sm:$0xff] }
 0x419   :  { %7358 = vmatpush1.bf16.msra.mxu0 %v11175_v63  ;;  %v11232_v63 = vcombine.high %v1043_v57, %v1047_v59  ;;  %v11271_v57 = vcombine.low %v1083_v43, %v1087_v47 }
 0x41a   :  { %7359 = vmatprep.subr.bf16.mxu0 %v11184_v0  ;;  %v800_v0 = vld [vmem:[#allocation5 + $0x13b8] sm:$0xff] }
 0x41b   :  { %7606 = vmatpush1.bf16.msra.mxu1 %v10929_v7  ;;  %v10986_v7 = vcombine.high %v796_v6, %v800_v0  ;;  %v10985_v16 = vcombine.low %v796_v6, %v800_v0  ;;  %v1103_v6 = vld [vmem:[#allocation5 + $0x1d30] sm:$0xff] }
 0x41c   :  { %7607 = vmatprep.subr.bf16.mxu1 %v10938_v9  ;;  %v804_v9 = vld [vmem:[#allocation5 + $0x13d8] sm:$0xff] }
 0x41d   :  { %7360 = vmatpush1.bf16.msra.mxu0 %v11183_v8  ;;  %v11240_v8 = vcombine.high %v1051_v45, %v1055_v1  ;;  %v11279_v45 = vcombine.low %v1091_v56, %v1095_v61 }
 0x41e   :  { %7361 = vmatprep.subr.bf16.mxu0 %v11192_v11  ;;  %v808_v11 = vld [vmem:[#allocation5 + $0x13f8] sm:$0xff] }
 0x41f   :  { %7608 = vmatpush1.bf16.msra.mxu1 %v10937_v18  ;;  %v10994_v18 = vcombine.high %v804_v9, %v808_v11  ;;  %v10993_v27 = vcombine.low %v804_v9, %v808_v11 }
 0x420   :  { %7609 = vmatprep.subr.bf16.mxu1 %v10946_v51  ;;  %v812_v51 = vld [vmem:[#allocation5 + $0x1418] sm:$0xff] }
 0x421   :  { %7362 = vmatpush1.bf16.msra.mxu0 %v11191_v22  ;;  %v11248_v22 = vcombine.high %v1059_v39, %v1063_v13 }
 0x422   :  { %7363 = vmatprep.subr.bf16.mxu0 %v11200_v24  ;;  %v816_v24 = vld [vmem:[#allocation5 + $0x1438] sm:$0xff] }
 0x423   :  { %7610 = vmatpush1.bf16.msra.mxu1 %v10945_v31  ;;  %v11002_v31 = vcombine.high %v812_v51, %v816_v24  ;;  %v11001_v35 = vcombine.low %v812_v51, %v816_v24 }
 0x424   :  { %7611 = vmatprep.subr.bf16.mxu1 %v10954_v54  ;;  %v820_v54 = vld [vmem:[#allocation5 + $0x1458] sm:$0xff] }
 0x425   :  { %7364 = vmatpush1.bf16.msra.mxu0 %v11199_v5  ;;  %v11256_v5 = vcombine.high %v1067_v19, %v1071_v26 }
 0x426   :  { %7365 = vmatprep.subr.bf16.mxu0 %v11208_v33  ;;  %v824_v33 = vld [vmem:[#allocation5 + $0x1478] sm:$0xff] }
 0x427   :  { %7612 = vmatpush1.bf16.msra.mxu1 %v10953_v37  ;;  %v11010_v37 = vcombine.high %v820_v54, %v824_v33  ;;  %v11009_v48 = vcombine.low %v820_v54, %v824_v33 }
 0x428   :  { %7613 = vmatprep.subr.bf16.mxu1 %v10962_v28  ;;  %v828_v28 = vld [vmem:[#allocation5 + $0x1498] sm:$0xff] }
 0x429   :  { %7366 = vmatpush1.bf16.msra.mxu0 %v11207_v41  ;;  %v11264_v41 = vcombine.high %v1075_v34, %v1079_v25 }
 0x42a   :  { %7367 = vmatprep.subr.bf16.mxu0 %v11216_v42  ;;  %v832_v42 = vld [vmem:[#allocation5 + $0x14b8] sm:$0xff] }
 0x42b   :  { %7614 = vmatpush1.bf16.msra.mxu1 %v10961_v3  ;;  %v11018_v3 = vcombine.high %v828_v28, %v832_v42 }
 0x42c   :  { %7615 = vmatprep.subr.bf16.mxu1 %v10970_v52  ;;  %v836_v52 = vld [vmem:[#allocation5 + $0x14d8] sm:$0xff] }
 0x42d   :  { %7368 = vmatpush1.bf16.msra.mxu0 %v11215_v50  ;;  %v11272_v50 = vcombine.high %v1083_v43, %v1087_v47 }
 0x42e   :  { %7369 = vmatprep.subr.bf16.mxu0 %v11224_v53  ;;  %v840_v53 = vld [vmem:[#allocation5 + $0x14f8] sm:$0xff] }
 0x42f   :  { %7616 = vmatpush1.bf16.msra.mxu1 %v10969_v60  ;;  %v11026_v59 = vcombine.high %v836_v52, %v840_v53  ;;  %v11280_v60 = vcombine.high %v1091_v56, %v1095_v61  ;;  %v11025_v0 = vcombine.low %v836_v52, %v840_v53 }
 0x430   :  { %7617 = vmatprep.subr.bf16.mxu1 %v10978_v62  ;;  %v848_v62 = vld [vmem:[#allocation5 + $0x1538] sm:$0xff] }
 0x431   :  { %7370 = vmatpush1.bf16.msra.mxu0 %v11223_v40  ;;  %v844_v40 = vld [vmem:[#allocation5 + $0x1518] sm:$0xff] }
 0x432   :  { %7371 = vmatprep.subr.bf16.mxu0 %v11232_v63  ;;  %v1099_v63 = vld [vmem:[#allocation5 + $0x1d10] sm:$0xff]  ;;  %v11034_v1 = vcombine.high %v844_v40, %v848_v62  ;;  %v11033_v9 = vcombine.low %v844_v40, %v848_v62 }
 0x433   :  { %7618 = vmatpush1.bf16.msra.mxu1 %v10977_v2  ;;  %v852_v2 = vld [vmem:[#allocation5 + $0x1558] sm:$0xff]  ;;  %v11287_v11 = vcombine.low %v1099_v63, %v1103_v6 }
 0x434   :  { %7619 = vmatprep.subr.bf16.mxu1 %v10986_v7  ;;  %v1107_v7 = vld [vmem:[#allocation5 + $0x1d50] sm:$0xff] }
 0x435   :  { %7372 = vmatpush1.bf16.msra.mxu0 %v11231_v4  ;;  %v856_v4 = vld [vmem:[#allocation5 + $0x1578] sm:$0xff] }
 0x436   :  { %7373 = vmatprep.subr.bf16.mxu0 %v11240_v8  ;;  %v1111_v8 = vld [vmem:[#allocation5 + $0x1d70] sm:$0xff]  ;;  %v11042_v39 = vcombine.high %v852_v2, %v856_v4  ;;  %v11041_v51 = vcombine.low %v852_v2, %v856_v4 }
 0x437   :  { %7620 = vmatpush1.bf16.msra.mxu1 %v10985_v16  ;;  %v11296_v13 = vcombine.high %v1107_v7, %v1111_v8  ;;  %v860_v16 = vld [vmem:[#allocation5 + $0x1598] sm:$0xff]  ;;  %v11295_v24 = vcombine.low %v1107_v7, %v1111_v8 }
 0x438   :  { %7621 = vmatprep.subr.bf16.mxu1 %v10994_v18  ;;  %v1115_v18 = vld [vmem:[#allocation5 + $0x1d90] sm:$0xff] }
 0x439   :  { %7374 = vmatpush1.bf16.msra.mxu0 %v11239_v17  ;;  %v864_v17 = vld [vmem:[#allocation5 + $0x15b8] sm:$0xff] }
 0x43a   :  { %7375 = vmatprep.subr.bf16.mxu0 %v11248_v22  ;;  %v1119_v22 = vld [vmem:[#allocation5 + $0x1db0] sm:$0xff]  ;;  %v11050_v19 = vcombine.high %v860_v16, %v864_v17  ;;  %v11049_v54 = vcombine.low %v860_v16, %v864_v17 }
 0x43b   :  { %7622 = vmatpush1.bf16.msra.mxu1 %v10993_v27  ;;  %v11304_v26 = vcombine.high %v1115_v18, %v1119_v22  ;;  %v868_v27 = vld [vmem:[#allocation5 + $0x15d8] sm:$0xff]  ;;  %v11303_v33 = vcombine.low %v1115_v18, %v1119_v22 }
 0x43c   :  { %7632 = vmatprep.subr.bf16.mxu1 %v11002_v31  ;;  %v1123_v31 = vld [vmem:[#allocation5 + $0x1dd0] sm:$0xff] }
 0x43d   :  { %7376 = vmatpush1.bf16.msra.mxu0 %v11247_v30  ;;  %v872_v30 = vld [vmem:[#allocation5 + $0x15f8] sm:$0xff] }
 0x43e   :  { %7386 = vmatprep.subr.bf16.mxu0 %v11256_v5  ;;  %7624 = vmatmul.mubr.bf16.vlgmr.msra.gmra.mrb[8].mxu1 %v12899_v15  ;;  %v11017_v15 = vcombine.low %v828_v28, %v832_v42  ;;  %v1127_v5 = vld [vmem:[#allocation5 + $0x1df0] sm:$0xff]  ;;  %v11058_v34 = vcombine.high %v868_v27, %v872_v30  ;;  %v11057_v28 = vcombine.low %v868_v27, %v872_v30 }
 0x43f   :  { %7633 = vmatpush1.bf16.msra.mxu1 %v11001_v35  ;;  %7664 = vmatprep.mubr.bf16.mxu1 %v12916_v21  ;;  %v11288_v21 = vcombine.high %v1099_v63, %v1103_v6  ;;  %v11312_v25 = vcombine.high %v1123_v31, %v1127_v5  ;;  %v876_v35 = vld [vmem:[#allocation5 + $0x1618] sm:$0xff]  ;;  %v11311_v42 = vcombine.low %v1123_v31, %v1127_v5 }
 0x440   :  { %7378 = vmatmul.mubr.bf16.vlgmr.msra.gmra.mrb[4].mxu0 %v12930_v29  ;;  %7634 = vmatprep.subr.bf16.mxu1 %v11010_v37  ;;  %v1131_v37 = vld [vmem:[#allocation5 + $0x1e10] sm:$0xff] }
 0x441   :  { %7387 = vmatpush1.bf16.msra.mxu0 %v11255_v36  ;;  %7418 = vmatprep.mubr.bf16.mxu0 %v12947_v32  ;;  %v880_v36 = vld [vmem:[#allocation5 + $0x1638] sm:$0xff] }
 0x442   :  { %7388 = vmatprep.subr.bf16.mxu0 %v11264_v41  ;;  %v1135_v41 = vld [vmem:[#allocation5 + $0x1e30] sm:$0xff]  ;;  %v11066_v43 = vcombine.high %v876_v35, %v880_v36  ;;  %v11065_v52 = vcombine.low %v876_v35, %v880_v36 }
 0x443   :  { %7635 = vmatpush1.bf16.msra.mxu1 %v11009_v48  ;;  %v11320_v47 = vcombine.high %v1131_v37, %v1135_v41  ;;  %v884_v48 = vld [vmem:[#allocation5 + $0x1658] sm:$0xff]  ;;  %v11319_v53 = vcombine.low %v1131_v37, %v1135_v41 }
 0x444   :  { %7636 = vmatprep.subr.bf16.mxu1 %v11018_v3  ;;  %v1139_v3 = vld [vmem:[#allocation5 + $0x1e50] sm:$0xff] }
 0x445   :  { %7389 = vmatpush1.bf16.msra.mxu0 %v11263_v49  ;;  %v888_v49 = vld [vmem:[#allocation5 + $0x1678] sm:$0xff] }
 0x446   :  { %7390 = vmatprep.subr.bf16.mxu0 %v11272_v50  ;;  %v1143_v50 = vld [vmem:[#allocation5 + $0x1e70] sm:$0xff]  ;;  %v11074_v56 = vcombine.high %v884_v48, %v888_v49  ;;  %v11073_v40 = vcombine.low %v884_v48, %v888_v49 }
 0x447   :  { %7637 = vmatpush1.bf16.msra.mxu1 %v11017_v15  ;;  %v11328_v61 = vcombine.high %v1139_v3, %v1143_v50  ;;  %v892_v15 = vld [vmem:[#allocation5 + $0x1698] sm:$0xff]  ;;  %v11327_v62 = vcombine.low %v1139_v3, %v1143_v50 }
 0x448   :  { %7638 = vmatprep.subr.bf16.mxu1 %v11026_v59  ;;  %v1147_v59 = vld [vmem:[#allocation5 + $0x1e90] sm:$0xff] }
 0x449   :  { %7391 = vmatpush1.bf16.msra.mxu0 %v11271_v57  ;;  %v896_v57 = vld [vmem:[#allocation5 + $0x16b8] sm:$0xff] }
 0x44a   :  { %7392 = vmatprep.subr.bf16.mxu0 %v11280_v60  ;;  %v1151_v60 = vld [vmem:[#allocation5 + $0x1eb0] sm:$0xff]  ;;  %v11082_v63 = vcombine.high %v892_v15, %v896_v57  ;;  %v11081_v2 = vcombine.low %v892_v15, %v896_v57  ;;  %v11917_v57 = vld [vmem:[#allocation8 + $0x4] ss:$16 sps:$4 sm:$0xff]  }
 0x44b   :  { %7639 = vmatpush1.bf16.msra.mxu1 %v11025_v0  ;;  %v11336_v6 = vcombine.high %v1147_v59, %v1151_v60  ;;  %v900_v0 = vld [vmem:[#allocation5 + $0x16d8] sm:$0xff]  ;;  %v11335_v4 = vcombine.low %v1147_v59, %v1151_v60  ;;  %v7756_v59 = vmax.f32 %v12981_v58, 0.0 }
 0x44c   :  { %7640 = vmatprep.subr.bf16.mxu1 %v11034_v1  ;;  %v1155_v1 = vld [vmem:[#allocation5 + $0x1ed0] sm:$0xff]  ;;  %v948_v60 = vld [vmem:[#allocation5 + $0x1858] sm:$0xff] }
 0x44d   :  { %7393 = vmatpush1.bf16.msra.mxu0 %v11279_v45  ;;  %v904_v45 = vld [vmem:[#allocation5 + $0x16f8] sm:$0xff] }
 0x44e   :  { %7394 = vmatprep.subr.bf16.mxu0 %v11288_v21  ;;  %v1159_v21 = vld [vmem:[#allocation5 + $0x1ef0] sm:$0xff]  ;;  %v11090_v7 = vcombine.high %v900_v0, %v904_v45  ;;  %v11089_v16 = vcombine.low %v900_v0, %v904_v45  ;;  %v11920_v0 = vld [vmem:[#allocation8 + $0x24] ss:$16 sps:$4 sm:$0xff]  }
 0x44f   :  { %7641 = vmatpush1.bf16.msra.mxu1 %v11033_v9  ;;  %v11344_v8 = vcombine.high %v1155_v1, %v1159_v21  ;;  %v908_v9 = vld [vmem:[#allocation5 + $0x1718] sm:$0xff]  ;;  %v11343_v17 = vcombine.low %v1155_v1, %v1159_v21  ;;  %v13004_v21 = vpack.c.bf16 %v7756_v59, %v7756_v59 }
 0x450   :  { %7642 = vmatprep.subr.bf16.mxu1 %v11042_v39  ;;  %v1163_v39 = vld [vmem:[#allocation5 + $0x1f10] sm:$0xff]  ;;  %v956_v45 = vld [vmem:[#allocation5 + $0x1898] sm:$0xff] }
 0x451   :  { %7395 = vmatpush1.bf16.msra.mxu0 %v11287_v11  ;;  %v912_v11 = vld [vmem:[#allocation5 + $0x1738] sm:$0xff] }
 0x452   :  { %7396 = vmatprep.subr.bf16.mxu0 %v11296_v13  ;;  %v1167_v13 = vld [vmem:[#allocation5 + $0x1f30] sm:$0xff]  ;;  %v11098_v18 = vcombine.high %v908_v9, %v912_v11  ;;  %v11097_v27 = vcombine.low %v908_v9, %v912_v11  ;;  %v960_v1 = vld [vmem:[#allocation5 + $0x18b8] sm:$0xff] }
 0x453   :  { %7643 = vmatpush1.bf16.msra.mxu1 %v11041_v51  ;;  %v11352_v22 = vcombine.high %v1163_v39, %v1167_v13  ;;  %v916_v51 = vld [vmem:[#allocation5 + $0x1758] sm:$0xff]  ;;  %v11351_v30 = vcombine.low %v1163_v39, %v1167_v13  ;;  %v11145_v11 = vcombine.low %v956_v45, %v960_v1 }
 0x454   :  { %7644 = vmatprep.subr.bf16.mxu1 %v11050_v19  ;;  %v1171_v19 = vld [vmem:[#allocation5 + $0x1f50] sm:$0xff]  ;;  %v968_v9 = vld [vmem:[#allocation5 + $0x18f8] sm:$0xff] }
 0x455   :  { %7397 = vmatpush1.bf16.msra.mxu0 %v11295_v24  ;;  %v920_v24 = vld [vmem:[#allocation5 + $0x1778] sm:$0xff] }
 0x456   :  { %7398 = vmatprep.subr.bf16.mxu0 %v11304_v26  ;;  %v1175_v26 = vld [vmem:[#allocation5 + $0x1f70] sm:$0xff]  ;;  %v11106_v31 = vcombine.high %v916_v51, %v920_v24  ;;  %v11105_v35 = vcombine.low %v916_v51, %v920_v24  ;;  %v11926_v13 = vld [vmem:[#allocation8 + $0x64] ss:$16 sps:$4 sm:$0xff]  }
 0x457   :  { %7645 = vmatpush1.bf16.msra.mxu1 %v11049_v54  ;;  %v11360_v5 = vcombine.high %v1171_v19, %v1175_v26  ;;  %v924_v54 = vld [vmem:[#allocation5 + $0x1798] sm:$0xff]  ;;  %v11359_v36 = vcombine.low %v1171_v19, %v1175_v26 }
 0x458   :  { %7646 = vmatprep.subr.bf16.mxu1 %v11058_v34  ;;  %v1179_v34 = vld [vmem:[#allocation5 + $0x1f90] sm:$0xff]  ;;  %v11929_v24 = vld [vmem:[#allocation8 + $0x84] ss:$16 sps:$4 sm:$0xff]  }
 0x459   :  { %7399 = vmatpush1.bf16.msra.mxu0 %v11303_v33  ;;  %v928_v33 = vld [vmem:[#allocation5 + $0x17b8] sm:$0xff] }
 0x45a   :  { %7400 = vmatprep.subr.bf16.mxu0 %v11312_v25  ;;  %v1183_v25 = vld [vmem:[#allocation5 + $0x1fb0] sm:$0xff]  ;;  %v11114_v37 = vcombine.high %v924_v54, %v928_v33  ;;  %v11113_v48 = vcombine.low %v924_v54, %v928_v33  ;;  %v980_v19 = vld [vmem:[#allocation5 + $0x1958] sm:$0xff] }
 0x45b   :  { %7647 = vmatpush1.bf16.msra.mxu1 %v11057_v28  ;;  %v11368_v41 = vcombine.high %v1179_v34, %v1183_v25  ;;  %v932_v28 = vld [vmem:[#allocation5 + $0x17d8] sm:$0xff]  ;;  %v11367_v49 = vcombine.low %v1179_v34, %v1183_v25 }
 0x45c   :  { %7648 = vmatprep.subr.bf16.mxu1 %v11066_v43  ;;  %v1187_v43 = vld [vmem:[#allocation5 + $0x1fd0] sm:$0xff]  ;;  %v992_v54 = vld [vmem:[#allocation5 + $0x19b8] sm:$0xff] }
 0x45d   :  { %7401 = vmatpush1.bf16.msra.mxu0 %v11311_v42  ;;  %v936_v42 = vld [vmem:[#allocation5 + $0x17f8] sm:$0xff] }
 0x45e   :  { %7402 = vmatprep.subr.bf16.mxu0 %v11320_v47  ;;  %v1191_v47 = vld [vmem:[#allocation5 + $0x1ff0] sm:$0xff]  ;;  %v11122_v3 = vcombine.high %v932_v28, %v936_v42  ;;  %v11930_v34 = vld [vmem:[#allocation8 + $0xa0] ss:$16 sps:$4 sm:$0xff]   ;;  %v11944_v59 = vld [vmem:[#allocation8 + $0x124] ss:$16 sps:$4 sm:$0xff]  }
 0x45f   :  { %7649 = vmatpush1.bf16.msra.mxu1 %v11065_v52  ;;  %v11376_v50 = vcombine.high %v1187_v43, %v1191_v47  ;;  %v940_v52 = vld [vmem:[#allocation5 + $0x1818] sm:$0xff] }
 0x460   :  { %7650 = vmatprep.subr.bf16.mxu1 %v11074_v56  ;;  %v11121_v56 = vcombine.low %v932_v28, %v936_v42  ;;  %v11933_v28 = vld [vmem:[#allocation8 + $0xc0] ss:$16 sps:$4 sm:$0xff]  }
 0x461   :  { %7403 = vmatpush1.bf16.msra.mxu0 %v11319_v53  ;;  %v944_v53 = vld [vmem:[#allocation5 + $0x1838] sm:$0xff] }
 0x462   :  { %7404 = vmatprep.subr.bf16.mxu0 %v11328_v61  ;;  %v11375_v61 = vcombine.low %v1187_v43, %v1191_v47  ;;  %v11130_v15 = vcombine.high %v940_v52, %v944_v53  ;;  %v11938_v43 = vld [vmem:[#allocation8 + $0xe4] ss:$16 sps:$4 sm:$0xff]  }
 0x463   :  { %7651 = vmatpush1.bf16.msra.mxu1 %v11073_v40  ;;  %v952_v40 = vld [vmem:[#allocation5 + $0x1878] sm:$0xff] }
 0x464   :  { %7652 = vmatprep.subr.bf16.mxu1 %v11082_v63  ;;  %v11915_v63 = vld [vmem:[#allocation8] ss:$16 sps:$4 sm:$0xff]   ;;  %v11137_v58 = vcombine.low %v948_v60, %v952_v40 }
 0x465   :  { %7405 = vmatpush1.bf16.msra.mxu0 %v11327_v62  ;;  %v11129_v62 = vcombine.low %v940_v52, %v944_v53  ;;  %v1004_v47 = vld [vmem:[#allocation5 + $0x1a18] sm:$0xff] }
 0x466   :  { %7406 = vmatprep.subr.bf16.mxu0 %v11336_v6  ;;  %v11138_v6 = vcombine.high %v948_v60, %v952_v40  ;;  %v11941_v52 = vld [vmem:[#allocation8 + $0x104] ss:$16 sps:$4 sm:$0xff]  }
 0x467   :  { %7653 = vmatpush1.bf16.msra.mxu1 %v11081_v2  ;;  %v11918_v2 = vld [vmem:[#allocation8 + $0x20] ss:$16 sps:$4 sm:$0xff]  }
 0x468   :  { %7654 = vmatprep.subr.bf16.mxu1 %v11090_v7  ;;  %v11923_v7 = vld [vmem:[#allocation8 + $0x44] ss:$16 sps:$4 sm:$0xff]  }
 0x469   :  { %7407 = vmatpush1.bf16.msra.mxu0 %v11335_v4  ;;  %v11146_v4 = vcombine.high %v956_v45, %v960_v1  ;;  %v1012_v53 = vld [vmem:[#allocation5 + $0x1a58] sm:$0xff] }
 0x46a   :  { %7408 = vmatprep.subr.bf16.mxu0 %v11344_v8  ;;  %v964_v8 = vld [vmem:[#allocation5 + $0x18d8] sm:$0xff] }
 0x46b   :  { %7655 = vmatpush1.bf16.msra.mxu1 %v11089_v16  ;;  %v11154_v39 = vcombine.high %v964_v8, %v968_v9  ;;  %v972_v16 = vld [vmem:[#allocation5 + $0x1918] sm:$0xff] }
 0x46c   :  { %7656 = vmatprep.subr.bf16.mxu1 %v11098_v18  ;;  %v11153_v18 = vcombine.low %v964_v8, %v968_v9  ;;  %v1020_v60 = vld [vmem:[#allocation5 + $0x1a98] sm:$0xff] }
 0x46d   :  { %7409 = vmatpush1.bf16.msra.mxu0 %v11343_v17  ;;  %v976_v17 = vld [vmem:[#allocation5 + $0x1938] sm:$0xff] }
 0x46e   :  { %7410 = vmatprep.subr.bf16.mxu0 %v11352_v22  ;;  %v11924_v22 = vld [vmem:[#allocation8 + $0x60] ss:$16 sps:$4 sm:$0xff]   ;;  %v11162_v51 = vcombine.high %v972_v16, %v976_v17  ;;  %v11161_v26 = vcombine.low %v972_v16, %v976_v17 }
 0x46f   :  { %7657 = vmatpush1.bf16.msra.mxu1 %v11097_v27  ;;  %v11927_v27 = vld [vmem:[#allocation8 + $0x80] ss:$16 sps:$4 sm:$0xff]  }
 0x470   :  { %7658 = vmatprep.subr.bf16.mxu1 %v11106_v31  ;;  %v11932_v31 = vld [vmem:[#allocation8 + $0xa4] ss:$16 sps:$4 sm:$0xff]  }
 0x471   :  { %7411 = vmatpush1.bf16.msra.mxu0 %v11351_v30  ;;  %v1024_v40 = vld [vmem:[#allocation5 + $0x1ab8] sm:$0xff] }
 0x472   :  { %7412 = vmatprep.subr.bf16.mxu0 %v11360_v5  ;;  %v988_v5 = vld [vmem:[#allocation5 + $0x1998] sm:$0xff] }
 0x473   :  { %7659 = vmatpush1.bf16.msra.mxu1 %v11105_v35  ;;  %v11178_v25 = vcombine.high %v988_v5, %v992_v54  ;;  %v11935_v35 = vld [vmem:[#allocation8 + $0xc4] ss:$16 sps:$4 sm:$0xff]  }
 0x474   :  { %7660 = vmatprep.subr.bf16.mxu1 %v11114_v37  ;;  %v1000_v37 = vld [vmem:[#allocation5 + $0x19f8] sm:$0xff] }
 0x475   :  { %7413 = vmatpush1.bf16.msra.mxu0 %v11359_v36  ;;  %v996_v36 = vld [vmem:[#allocation5 + $0x19d8] sm:$0xff] }
 0x476   :  { %7414 = vmatprep.subr.bf16.mxu0 %v11368_v41  ;;  %v11177_v41 = vcombine.low %v988_v5, %v992_v54  ;;  %v11186_v42 = vcombine.high %v996_v36, %v1000_v37  ;;  %v1028_v45 = vld [vmem:[#allocation5 + $0x1ad8] sm:$0xff] }
 0x477   :  { %7661 = vmatpush1.bf16.msra.mxu1 %v11113_v48  ;;  %v1008_v48 = vld [vmem:[#allocation5 + $0x1a38] sm:$0xff] }
 0x478   :  { %7662 = vmatprep.subr.bf16.mxu1 %v11122_v3  ;;  %v11936_v3 = vld [vmem:[#allocation8 + $0xe0] ss:$16 sps:$4 sm:$0xff]   ;;  %v11959_v5 = vld [vmem:[#allocation8 + $0x1c4] ss:$16 sps:$4 sm:$0xff]  }
 0x479   :  { %7415 = vmatpush1.bf16.msra.mxu0 %v11367_v49  ;;  %v11185_v49 = vcombine.low %v996_v36, %v1000_v37  ;;  %v1032_v1 = vld [vmem:[#allocation5 + $0x1af8] sm:$0xff] }
 0x47a   :  { %7416 = vmatprep.subr.bf16.mxu0 %v11376_v50  ;;  %v11194_v50 = vcombine.high %v1004_v47, %v1008_v48  ;;  %v1036_v8 = vld [vmem:[#allocation5 + $0x1b18] sm:$0xff] }
 0x47b   :  { %7663 = vmatpush1.bf16.msra.mxu1 %v11121_v56  ;;  %v1016_v56 = vld [vmem:[#allocation5 + $0x1a78] sm:$0xff] }
 0x47c   :  { %7673 = vmatprep.subr.bf16.mxu1 %v11130_v15  ;;  %v11939_v15 = vld [vmem:[#allocation8 + $0x100] ss:$16 sps:$4 sm:$0xff]  }
 0x47d   :  { %7417 = vmatpush1.bf16.msra.mxu0 %v11375_v61  ;;  %v11193_v61 = vcombine.low %v1004_v47, %v1008_v48  ;;  %v1040_v9 = vld [vmem:[#allocation5 + $0x1b38] sm:$0xff] }
 0x47e   :  { %9329 = vmatprep.subr.bf16.mxu0 %v11917_v57  ;;  %7665 = vmatmul.mubr.bf16.vlgmr.msra.gmra.mrb[8].mxu1 %v12912_v46  ;;  %v11921_v46 = vld [vmem:[#allocation8 + $0x40] ss:$16 sps:$4 sm:$0xff]   ;;  %v11202_v57 = vcombine.high %v1012_v53, %v1016_v56 }
 0x47f   :  { %7674 = vmatpush1.bf16.msra.mxu1 %v11129_v62  ;;  %7705 = vmatprep.mubr.bf16.mxu1 %v12934_v38  ;;  %v984_v38 = vld [vmem:[#allocation5 + $0x1978] sm:$0xff]  ;;  %v11201_v62 = vcombine.low %v1012_v53, %v1016_v56 }
 0x480   :  { %7419 = vmatmul.mubr.bf16.vlgmr.msra.gmra.mrb[4].mxu0 %v12943_v20  ;;  %7675 = vmatprep.subr.bf16.mxu1 %v11138_v6  ;;  %v11170_v30 = vcombine.high %v980_v19, %v984_v38  ;;  %v11169_v33 = vcombine.low %v980_v19, %v984_v38  ;;  %v11210_v6 = vcombine.high %v1020_v60, %v1024_v40  ;;  %v1044_v16 = vld [vmem:[#allocation5 + $0x1b58] sm:$0xff] }
 0x481   :  { %9330 = vmatpush1.bf16.msra.mxu0 %v11915_v63  ;;  %9361 = vmatprep.mubr.bf16.mxu0 %v13004_v21  ;;  %v11942_v63 = vld [vmem:[#allocation8 + $0x120] ss:$16 sps:$4 sm:$0xff]  }
 0x482   :  { %9331 = vmatprep.subr.bf16.mxu0 %v11920_v0  ;;  %v11947_v0 = vld [vmem:[#allocation8 + $0x144] ss:$16 sps:$4 sm:$0xff]   ;;  %v11957_v36 = vld [vmem:[#allocation8 + $0x1c0] ss:$16 sps:$4 sm:$0xff]  }
 0x483   :  { %7676 = vmatpush1.bf16.msra.mxu1 %v11137_v58  ;;  %v11209_v58 = vcombine.low %v1020_v60, %v1024_v40  ;;  %v1048_v17 = vld [vmem:[#allocation5 + $0x1b78] sm:$0xff] }
 0x484   :  { %7677 = vmatprep.subr.bf16.mxu1 %v11146_v4  ;;  %v11218_v4 = vcombine.high %v1028_v45, %v1032_v1  ;;  %v1052_v19 = vld [vmem:[#allocation5 + $0x1b98] sm:$0xff] }
 0x485   :  { %9332 = vmatpush1.bf16.msra.mxu0 %v11918_v2  ;;  %v11945_v2 = vld [vmem:[#allocation8 + $0x140] ss:$16 sps:$4 sm:$0xff]  }
 0x486   :  { %9333 = vmatprep.subr.bf16.mxu0 %v11923_v7  ;;  %v11950_v7 = vld [vmem:[#allocation8 + $0x164] ss:$16 sps:$4 sm:$0xff]   ;;  %v11960_v48 = vld [vmem:[#allocation8 + $0x1e0] ss:$16 sps:$4 sm:$0xff]  }
 0x487   :  { %7678 = vmatpush1.bf16.msra.mxu1 %v11145_v11  ;;  %v11217_v11 = vcombine.low %v1028_v45, %v1032_v1  ;;  %v1056_v38 = vld [vmem:[#allocation5 + $0x1bb8] sm:$0xff] }
 0x488   :  { %7679 = vmatprep.subr.bf16.mxu1 %v11154_v39  ;;  %v11226_v39 = vcombine.high %v1036_v8, %v1040_v9  ;;  %v1060_v54 = vld [vmem:[#allocation5 + $0x1bd8] sm:$0xff] }
 0x489   :  { %9334 = vmatpush1.bf16.msra.mxu0 %v11921_v46  ;;  %v11948_v46 = vld [vmem:[#allocation8 + $0x160] ss:$16 sps:$4 sm:$0xff]  }
 0x48a   :  { %9335 = vmatprep.subr.bf16.mxu0 %v11926_v13  ;;  %v11953_v13 = vld [vmem:[#allocation8 + $0x184] ss:$16 sps:$4 sm:$0xff]  }
 0x48b   :  { %7680 = vmatpush1.bf16.msra.mxu1 %v11153_v18  ;;  %v11225_v18 = vcombine.low %v1036_v8, %v1040_v9  ;;  %v1076_v53 = vld [vmem:[#allocation5 + $0x1c58] sm:$0xff] }
 0x48c   :  { %7681 = vmatprep.subr.bf16.mxu1 %v11162_v51  ;;  %v11234_v51 = vcombine.high %v1044_v16, %v1048_v17  ;;  %v1080_v56 = vld [vmem:[#allocation5 + $0x1c78] sm:$0xff] }
 0x48d   :  { %9336 = vmatpush1.bf16.msra.mxu0 %v11924_v22  ;;  %v11951_v22 = vld [vmem:[#allocation8 + $0x180] ss:$16 sps:$4 sm:$0xff]  }
 0x48e   :  { %9337 = vmatprep.subr.bf16.mxu0 %v11929_v24  ;;  %v11956_v24 = vld [vmem:[#allocation8 + $0x1a4] ss:$16 sps:$4 sm:$0xff]  }
 0x48f   :  { %7682 = vmatpush1.bf16.msra.mxu1 %v11161_v26  ;;  %v1209_v26 = vsub.s32 3, %v12847_v44  ;;  %v1084_v60 = vld [vmem:[#allocation5 + $0x1c98] sm:$0xff] }
 0x490   :  { %7683 = vmatprep.subr.bf16.mxu1 %v11170_v30  ;;  %v11954_v30 = vld [vmem:[#allocation8 + $0x1a0] ss:$16 sps:$4 sm:$0xff]  }
 0x491   :  { %9338 = vmatpush1.bf16.msra.mxu0 %v11927_v27  ;;  %v11233_v27 = vcombine.low %v1044_v16, %v1048_v17  ;;  %v1088_v40 = vld [vmem:[#allocation5 + $0x1cb8] sm:$0xff] }
 0x492   :  { %9339 = vmatprep.subr.bf16.mxu0 %v11932_v31  ;;  %v11242_v31 = vcombine.high %v1052_v19, %v1056_v38  ;;  %v1092_v45 = vld [vmem:[#allocation5 + $0x1cd8] sm:$0xff] }
 0x493   :  { %7684 = vmatpush1.bf16.msra.mxu1 %v11169_v33  ;;  %v1064_v33 = vld [vmem:[#allocation5 + $0x1bf8] sm:$0xff] }
 0x494   :  { %7685 = vmatprep.subr.bf16.mxu1 %v11178_v25  ;;  %v11250_v37 = vcombine.high %v1060_v54, %v1064_v33  ;;  %v11249_v47 = vcombine.low %v1060_v54, %v1064_v33  ;;  %v1096_v1 = vld [vmem:[#allocation5 + $0x1cf8] sm:$0xff] }
 0x495   :  { %9340 = vmatpush1.bf16.msra.mxu0 %v11930_v34  ;;  %v13011_v34 = vld [vmem:[#allocation7] sm:$0xff]  ;;  %v1104_v8 = vld [vmem:[#allocation5 + $0x1d38] sm:$0xff]  ;;  %v11281_v9 = vcombine.low %v1092_v45, %v1096_v1 }
 0x496   :  { %9341 = vmatprep.subr.bf16.mxu0 %v11935_v35  ;;  %v1210_v25 = vrot.slane %v13011_v34, %v1209_v26  ;;  %v11241_v35 = vcombine.low %v1052_v19, %v1056_v38  ;;  %v11975_v17 = vld [vmem:[#allocation8 + $0x280] ss:$16 sps:$4 sm:$0xff]  }
 0x497   :  { %7686 = vmatpush1.bf16.msra.mxu1 %v11177_v41  ;;  %v11962_v41 = vld [vmem:[#allocation8 + $0x1e4] ss:$16 sps:$4 sm:$0xff]   ;;  %v11978_v38 = vld [vmem:[#allocation8 + $0x2a0] ss:$16 sps:$4 sm:$0xff]  }
 0x498   :  { %7687 = vmatprep.subr.bf16.mxu1 %v11186_v42  ;;  %v1072_v42 = vld [vmem:[#allocation5 + $0x1c38] sm:$0xff] }
 0x499   :  { %9342 = vmatpush1.bf16.msra.mxu0 %v11933_v28  ;;  %v1068_v28 = vld [vmem:[#allocation5 + $0x1c18] sm:$0xff] }
 0x49a   :  { %9343 = vmatprep.subr.bf16.mxu0 %v11938_v43  ;;  %v11745_v43 = vadd.f32 %v12993_v14, %v1210_v25  ;;  %v11266_v14 = vcombine.high %v1076_v53, %v1080_v56  ;;  %v11981_v33 = vld [vmem:[#allocation8 + $0x2c0] ss:$16 sps:$4 sm:$0xff]  }
 0x49b   :  { %7688 = vmatpush1.bf16.msra.mxu1 %v11185_v49  ;;  %v11258_v49 = vcombine.high %v1068_v28, %v1072_v42 }
 0x49c   :  { %7689 = vmatprep.subr.bf16.mxu1 %v11194_v50  ;;  %v11965_v50 = vld [vmem:[#allocation8 + $0x204] ss:$16 sps:$4 sm:$0xff]  }
 0x49d   :  { %9344 = vmatpush1.bf16.msra.mxu0 %v11936_v3  ;;  %v7755_v3 = vmax.f32 %v12979_v55, 0.0  ;;  %v11265_v55 = vcombine.low %v1076_v53, %v1080_v56  ;;  %v1148_v53 = vld [vmem:[#allocation5 + $0x1e98] sm:$0xff] }
 0x49e   :  { %9345 = vmatprep.subr.bf16.mxu0 %v11941_v52  ;;  %v7758_v52 = vmax.f32 %v11745_v43, 0.0  ;;  %v11989_v43 = vld [vmem:[#allocation8 + $0x304] ss:$16 sps:$4 sm:$0xff]  }
 0x49f   :  { %7690 = vmatpush1.bf16.msra.mxu1 %v11193_v61  ;;  %v11257_v61 = vcombine.low %v1068_v28, %v1072_v42  ;;  %v11984_v28 = vld [vmem:[#allocation8 + $0x2e0] ss:$16 sps:$4 sm:$0xff]  }
 0x4a0   :  { %7691 = vmatprep.subr.bf16.mxu1 %v11202_v57  ;;  %v13018_v57 = vpack.c.bf16 %v7755_v3, %v7755_v3  ;;  %v11987_v3 = vld [vmem:[#allocation8 + $0x300] ss:$16 sps:$4 sm:$0xff]  }
 0x4a1   :  { %9346 = vmatpush1.bf16.msra.mxu0 %v11939_v15  ;;  %v11963_v15 = vld [vmem:[#allocation8 + $0x200] ss:$16 sps:$4 sm:$0xff]  }
 0x4a2   :  { %9347 = vmatprep.subr.bf16.mxu0 %v11944_v59  ;;  %v11968_v59 = vld [vmem:[#allocation8 + $0x224] ss:$16 sps:$4 sm:$0xff]  }
 0x4a3   :  { %7692 = vmatpush1.bf16.msra.mxu1 %v11201_v62  ;;  %v13020_v62 = vpack.c.bf16 %v7758_v52, %v7758_v52  ;;  %v11992_v52 = vld [vmem:[#allocation8 + $0x324] ss:$16 sps:$4 sm:$0xff]  }
 0x4a4   :  { %7693 = vmatprep.subr.bf16.mxu1 %v11210_v6  ;;  %v11274_v6 = vcombine.high %v1084_v60, %v1088_v40  ;;  %v1152_v56 = vld [vmem:[#allocation5 + $0x1eb8] sm:$0xff] }
 0x4a5   :  { %9348 = vmatpush1.bf16.msra.mxu0 %v11942_v63  ;;  %v11966_v63 = vld [vmem:[#allocation8 + $0x220] ss:$16 sps:$4 sm:$0xff]  }
 0x4a6   :  { %9349 = vmatprep.subr.bf16.mxu0 %v11947_v0  ;;  %v11971_v0 = vld [vmem:[#allocation8 + $0x244] ss:$16 sps:$4 sm:$0xff]  }
 0x4a7   :  { %7694 = vmatpush1.bf16.msra.mxu1 %v11209_v58  ;;  %v11273_v58 = vcombine.low %v1084_v60, %v1088_v40  ;;  %v1156_v60 = vld [vmem:[#allocation5 + $0x1ed8] sm:$0xff] }
 0x4a8   :  { %7695 = vmatprep.subr.bf16.mxu1 %v11218_v4  ;;  %v11974_v4 = vld [vmem:[#allocation8 + $0x264] ss:$16 sps:$4 sm:$0xff]  }
 0x4a9   :  { %9350 = vmatpush1.bf16.msra.mxu0 %v11945_v2  ;;  %v11282_v2 = vcombine.high %v1092_v45, %v1096_v1  ;;  %v1160_v40 = vld [vmem:[#allocation5 + $0x1ef8] sm:$0xff] }
 0x4aa   :  { %9351 = vmatprep.subr.bf16.mxu0 %v11950_v7  ;;  %v1100_v7 = vld [vmem:[#allocation5 + $0x1d18] sm:$0xff] }
 0x4ab   :  { %7696 = vmatpush1.bf16.msra.mxu1 %v11217_v11  ;;  %v11972_v11 = vld [vmem:[#allocation8 + $0x260] ss:$16 sps:$4 sm:$0xff]   ;;  %v11289_v16 = vcombine.low %v1100_v7, %v1104_v8 }
 0x4ac   :  { %7697 = vmatprep.subr.bf16.mxu1 %v11226_v39  ;;  %v11977_v39 = vld [vmem:[#allocation8 + $0x284] ss:$16 sps:$4 sm:$0xff]  }
 0x4ad   :  { %9352 = vmatpush1.bf16.msra.mxu0 %v11948_v46  ;;  %v11290_v46 = vcombine.high %v1100_v7, %v1104_v8  ;;  %v1164_v45 = vld [vmem:[#allocation5 + $0x1f18] sm:$0xff] }
 0x4ae   :  { %9353 = vmatprep.subr.bf16.mxu0 %v11953_v13  ;;  %v1108_v13 = vld [vmem:[#allocation5 + $0x1d58] sm:$0xff] }
 0x4af   :  { %7698 = vmatpush1.bf16.msra.mxu1 %v11225_v18  ;;  %v1168_v1 = vld [vmem:[#allocation5 + $0x1f38] sm:$0xff] }
 0x4b0   :  { %7699 = vmatprep.subr.bf16.mxu1 %v11234_v51  ;;  %v1116_v51 = vld [vmem:[#allocation5 + $0x1d98] sm:$0xff] }
 0x4b1   :  { %9354 = vmatpush1.bf16.msra.mxu0 %v11951_v22  ;;  %v11980_v22 = vld [vmem:[#allocation8 + $0x2a4] ss:$16 sps:$4 sm:$0xff]  }
 0x4b2   :  { %9355 = vmatprep.subr.bf16.mxu0 %v11956_v24  ;;  %v1120_v24 = vld [vmem:[#allocation5 + $0x1db8] sm:$0xff] }
 0x4b3   :  { %7700 = vmatpush1.bf16.msra.mxu1 %v11233_v27  ;;  %v11306_v27 = vcombine.high %v1116_v51, %v1120_v24  ;;  %v11305_v54 = vcombine.low %v1116_v51, %v1120_v24  ;;  %v1172_v7 = vld [vmem:[#allocation5 + $0x1f58] sm:$0xff] }
 0x4b4   :  { %7701 = vmatprep.subr.bf16.mxu1 %v11242_v31  ;;  %v1124_v31 = vld [vmem:[#allocation5 + $0x1dd8] sm:$0xff] }
 0x4b5   :  { %9356 = vmatpush1.bf16.msra.mxu0 %v11954_v30  ;;  %v11983_v30 = vld [vmem:[#allocation8 + $0x2c4] ss:$16 sps:$4 sm:$0xff]  }
 0x4b6   :  { %9357 = vmatprep.subr.bf16.mxu0 %v11959_v5  ;;  %v1128_v5 = vld [vmem:[#allocation5 + $0x1df8] sm:$0xff] }
 0x4b7   :  { %7702 = vmatpush1.bf16.msra.mxu1 %v11241_v35  ;;  %v11314_v25 = vcombine.high %v1124_v31, %v1128_v5  ;;  %v11986_v35 = vld [vmem:[#allocation8 + $0x2e4] ss:$16 sps:$4 sm:$0xff]  }
 0x4b8   :  { %7703 = vmatprep.subr.bf16.mxu1 %v11250_v37  ;;  %v1136_v37 = vld [vmem:[#allocation5 + $0x1e38] sm:$0xff] }
 0x4b9   :  { %9358 = vmatpush1.bf16.msra.mxu0 %v11957_v36  ;;  %v1132_v36 = vld [vmem:[#allocation5 + $0x1e18] sm:$0xff] }
 0x4ba   :  { %9359 = vmatprep.subr.bf16.mxu0 %v11962_v41  ;;  %v11313_v41 = vcombine.low %v1124_v31, %v1128_v5  ;;  %v11322_v42 = vcombine.high %v1132_v36, %v1136_v37  ;;  %v1176_v8 = vld [vmem:[#allocation5 + $0x1f78] sm:$0xff] }
 0x4bb   :  { %7704 = vmatpush1.bf16.msra.mxu1 %v11249_v47  ;;  %v1140_v47 = vld [vmem:[#allocation5 + $0x1e58] sm:$0xff] }
 0x4bc   :  { %7714 = vmatprep.subr.bf16.mxu1 %v11258_v49  ;;  %v11321_v49 = vcombine.low %v1132_v36, %v1136_v37  ;;  %v12007_v24 = vld [vmem:[#allocation8 + $0x3c4] ss:$16 sps:$4 sm:$0xff]  }
 0x4bd   :  { %9360 = vmatpush1.bf16.msra.mxu0 %v11960_v48  ;;  %v1144_v48 = vld [vmem:[#allocation5 + $0x1e78] sm:$0xff] }
 0x4be   :  { %9370 = vmatprep.subr.bf16.mxu0 %v11965_v50  ;;  %7706 = vmatmul.mubr.bf16.vlgmr.msra.gmra.mrb[8].mxu1 %v12930_v29  ;;  %v11969_v29 = vld [vmem:[#allocation8 + $0x240] ss:$16 sps:$4 sm:$0xff]   ;;  %v11330_v50 = vcombine.high %v1140_v47, %v1144_v48  ;;  %v12034_v37 = vld [vmem:[#allocation8 + $0x404] ss:$16 sps:$4 sm:$0xff]  }
 0x4bf   :  { %7715 = vmatpush1.bf16.msra.mxu1 %v11257_v61  ;;  %7746 = vmatprep.mubr.bf16.mxu1 %v12947_v32  ;;  %v1112_v32 = vld [vmem:[#allocation5 + $0x1d78] sm:$0xff]  ;;  %v11329_v61 = vcombine.low %v1140_v47, %v1144_v48  ;;  %v12014_v47 = vld [vmem:[#allocation8 + $0x28] ss:$16 sps:$4 sm:$0xff]   ;;  %v12019_v48 = vld [vmem:[#allocation8 + $0x4c] ss:$16 sps:$4 sm:$0xff]  }
 0x4c0   :  { %9362 = vmatmul.mubr.bf16.vlgmr.msra.gmra.mrb[8].mxu0 %v13018_v57  ;;  %7716 = vmatprep.subr.bf16.mxu1 %v11266_v14  ;;  %v11298_v18 = vcombine.high %v1108_v13, %v1112_v32  ;;  %v11297_v19 = vcombine.low %v1108_v13, %v1112_v32  ;;  %v11338_v14 = vcombine.high %v1148_v53, %v1152_v56  ;;  %v12004_v13 = vld [vmem:[#allocation8 + $0x3a4] ss:$16 sps:$4 sm:$0xff]  }
 0x4c1   :  { %9371 = vmatpush1.bf16.msra.mxu0 %v11963_v15  ;;  %9402 = vmatprep.mubr.bf16.mxu0 %v13020_v62  ;;  %v11990_v15 = vld [vmem:[#allocation8 + $0x320] ss:$16 sps:$4 sm:$0xff]  }
 0x4c2   :  { %9372 = vmatprep.subr.bf16.mxu0 %v11968_v59  ;;  %v11995_v59 = vld [vmem:[#allocation8 + $0x344] ss:$16 sps:$4 sm:$0xff]  }
 0x4c3   :  { %7717 = vmatpush1.bf16.msra.mxu1 %v11265_v55  ;;  %v11337_v55 = vcombine.low %v1148_v53, %v1152_v56  ;;  %v1180_v32 = vld [vmem:[#allocation5 + $0x1f98] sm:$0xff]  ;;  %v12020_v56 = vld [vmem:[#allocation8 + $0x68] ss:$16 sps:$4 sm:$0xff]  }
 0x4c4   :  { %7718 = vmatprep.subr.bf16.mxu1 %v11274_v6  ;;  %v11346_v6 = vcombine.high %v1156_v60, %v1160_v40  ;;  %v12044_v53 = vld [vmem:[#allocation8 + $0x440] ss:$16 sps:$4 sm:$0xff]  }
 0x4c5   :  { %9373 = vmatpush1.bf16.msra.mxu0 %v11966_v63  ;;  %v11993_v63 = vld [vmem:[#allocation8 + $0x340] ss:$16 sps:$4 sm:$0xff]  }
 0x4c6   :  { %9374 = vmatprep.subr.bf16.mxu0 %v11971_v0  ;;  %v11998_v0 = vld [vmem:[#allocation8 + $0x364] ss:$16 sps:$4 sm:$0xff]  }
 0x4c7   :  { %7719 = vmatpush1.bf16.msra.mxu1 %v11273_v58  ;;  %v11345_v58 = vcombine.low %v1156_v60, %v1160_v40  ;;  %v12056_v60 = vld [vmem:[#allocation8 + $0x480] ss:$16 sps:$4 sm:$0xff]   ;;  %v12064_v40 = vld [vmem:[#allocation8 + $0x4a4] ss:$16 sps:$4 sm:$0xff]  }
 0x4c8   :  { %7720 = vmatprep.subr.bf16.mxu1 %v11282_v2  ;;  %v11354_v2 = vcombine.high %v1164_v45, %v1168_v1 }
 0x4c9   :  { %9375 = vmatpush1.bf16.msra.mxu0 %v11969_v29  ;;  %v11996_v29 = vld [vmem:[#allocation8 + $0x360] ss:$16 sps:$4 sm:$0xff]  }
 0x4ca   :  { %9376 = vmatprep.subr.bf16.mxu0 %v11974_v4  ;;  %v12001_v4 = vld [vmem:[#allocation8 + $0x384] ss:$16 sps:$4 sm:$0xff]  }
 0x4cb   :  { %7721 = vmatpush1.bf16.msra.mxu1 %v11281_v9  ;;  %v11353_v9 = vcombine.low %v1164_v45, %v1168_v1  ;;  %v12029_v45 = vld [vmem:[#allocation8 + $0xc8] ss:$16 sps:$4 sm:$0xff]   ;;  %v12037_v1 = vld [vmem:[#allocation8 + $0xec] ss:$16 sps:$4 sm:$0xff]  }
 0x4cc   :  { %7722 = vmatprep.subr.bf16.mxu1 %v11290_v46  ;;  %v11362_v46 = vcombine.high %v1172_v7, %v1176_v8 }
 0x4cd   :  { %9377 = vmatpush1.bf16.msra.mxu0 %v11972_v11  ;;  %v11999_v11 = vld [vmem:[#allocation8 + $0x380] ss:$16 sps:$4 sm:$0xff]  }
 0x4ce   :  { %9378 = vmatprep.subr.bf16.mxu0 %v11977_v39  ;;  %v1205_v39 = vsub.s32 2, %v12847_v44 }
 0x4cf   :  { %7723 = vmatpush1.bf16.msra.mxu1 %v11289_v16  ;;  %v1184_v16 = vld [vmem:[#allocation5 + $0x1fb8] sm:$0xff] }
 0x4d0   :  { %7724 = vmatprep.subr.bf16.mxu1 %v11298_v18  ;;  %v12002_v18 = vld [vmem:[#allocation8 + $0x3a0] ss:$16 sps:$4 sm:$0xff]   ;;  %v1206_v51 = vrot.slane %v13011_v34, %v1205_v39 }
 0x4d1   :  { %9379 = vmatpush1.bf16.msra.mxu0 %v11975_v17  ;;  %v11361_v17 = vcombine.low %v1172_v7, %v1176_v8  ;;  %v12074_v7 = vld [vmem:[#allocation8 + $0x4e0] ss:$16 sps:$4 sm:$0xff]   ;;  %v12082_v8 = vld [vmem:[#allocation8 + $0x504] ss:$16 sps:$4 sm:$0xff]  }
 0x4d2   :  { %9380 = vmatprep.subr.bf16.mxu0 %v11980_v22  ;;  %v11370_v22 = vcombine.high %v1180_v32, %v1184_v16  ;;  %v11744_v5 = vadd.f32 %v12991_v10, %v1206_v51  ;;  %v12040_v10 = vld [vmem:[#allocation8 + $0x424] ss:$16 sps:$4 sm:$0xff]   ;;  %v12061_v51 = vld [vmem:[#allocation8 + $0x16c] ss:$16 sps:$4 sm:$0xff]  }
 0x4d3   :  { %7725 = vmatpush1.bf16.msra.mxu1 %v11297_v19  ;;  %v1188_v19 = vld [vmem:[#allocation5 + $0x1fd8] sm:$0xff] }
 0x4d4   :  { %7726 = vmatprep.subr.bf16.mxu1 %v11306_v27  ;;  %v11369_v27 = vcombine.low %v1180_v32, %v1184_v16  ;;  %v7757_v36 = vmax.f32 %v11744_v5, 0.0  ;;  %v12047_v32 = vld [vmem:[#allocation8 + $0x128] ss:$16 sps:$4 sm:$0xff]   ;;  %v12055_v16 = vld [vmem:[#allocation8 + $0x14c] ss:$16 sps:$4 sm:$0xff]  }
 0x4d5   :  { %9381 = vmatpush1.bf16.msra.mxu0 %v11978_v38  ;;  %v1192_v38 = vld [vmem:[#allocation5 + $0x1ff8] sm:$0xff]  ;;  %v12065_v5 = vld [vmem:[#allocation8 + $0x188] ss:$16 sps:$4 sm:$0xff]  }
 0x4d6   :  { %9382 = vmatprep.subr.bf16.mxu0 %v11983_v30  ;;  %v12005_v30 = vld [vmem:[#allocation8 + $0x3c0] ss:$16 sps:$4 sm:$0xff]   ;;  %v11378_v31 = vcombine.high %v1188_v19, %v1192_v38 }
 0x4d7   :  { %7727 = vmatpush1.bf16.msra.mxu1 %v11305_v54  ;;  %v12010_v54 = vld [vmem:[#allocation8 + $0x3e4] ss:$16 sps:$4 sm:$0xff]  }
 0x4d8   :  { %7728 = vmatprep.subr.bf16.mxu1 %v11314_v25  ;;  %v12008_v25 = vld [vmem:[#allocation8 + $0x3e0] ss:$16 sps:$4 sm:$0xff]  }
 0x4d9   :  { %9383 = vmatpush1.bf16.msra.mxu0 %v11981_v33  ;;  %v11377_v33 = vcombine.low %v1188_v19, %v1192_v38  ;;  %v12100_v19 = vld [vmem:[#allocation8 + $0x564] ss:$16 sps:$4 sm:$0xff]   ;;  %v12059_v38 = vld [vmem:[#allocation8 + $0x168] ss:$16 sps:$4 sm:$0xff]  }
 0x4da   :  { %9384 = vmatprep.subr.bf16.mxu0 %v11986_v35  ;;  %v12013_v35 = vld [vmem:[#allocation8 + $0xc] ss:$16 sps:$4 sm:$0xff]  }
 0x4db   :  { %7729 = vmatpush1.bf16.msra.mxu1 %v11313_v41  ;;  %v12011_v41 = vld [vmem:[#allocation8 + $0x8] ss:$16 sps:$4 sm:$0xff]  }
 0x4dc   :  { %7730 = vmatprep.subr.bf16.mxu1 %v11322_v42  ;;  %v13031_v42 = vpack.c.bf16 %v7757_v36, %v7757_v36  ;;  %v12079_v36 = vld [vmem:[#allocation8 + $0x1cc] ss:$16 sps:$4 sm:$0xff]  }
 0x4dd   :  { %9385 = vmatpush1.bf16.msra.mxu0 %v11984_v28  ;;  %v12016_v28 = vld [vmem:[#allocation8 + $0x2c] ss:$16 sps:$4 sm:$0xff]  }
 0x4de   :  { %9386 = vmatprep.subr.bf16.mxu0 %v11989_v43  ;;  %v12032_v43 = vld [vmem:[#allocation8 + $0x400] ss:$16 sps:$4 sm:$0xff]  }
 0x4df   :  { %7731 = vmatpush1.bf16.msra.mxu1 %v11321_v49  ;;  %v12038_v49 = vld [vmem:[#allocation8 + $0x420] ss:$16 sps:$4 sm:$0xff]  }
 0x4e0   :  { %7732 = vmatprep.subr.bf16.mxu1 %v11330_v50  ;;  %v12017_v50 = vld [vmem:[#allocation8 + $0x48] ss:$16 sps:$4 sm:$0xff]  }
 0x4e1   :  { %9387 = vmatpush1.bf16.msra.mxu0 %v11987_v3  ;;  %v12046_v3 = vld [vmem:[#allocation8 + $0x444] ss:$16 sps:$4 sm:$0xff]  }
 0x4e2   :  { %9388 = vmatprep.subr.bf16.mxu0 %v11992_v52  ;;  %v12022_v52 = vld [vmem:[#allocation8 + $0x6c] ss:$16 sps:$4 sm:$0xff]  }
 0x4e3   :  { %7733 = vmatpush1.bf16.msra.mxu1 %v11329_v61  ;;  %v12025_v61 = vld [vmem:[#allocation8 + $0x8c] ss:$16 sps:$4 sm:$0xff]  }
 0x4e4   :  { %7734 = vmatprep.subr.bf16.mxu1 %v11338_v14  ;;  %v12023_v14 = vld [vmem:[#allocation8 + $0x88] ss:$16 sps:$4 sm:$0xff]  }
 0x4e5   :  { %9389 = vmatpush1.bf16.msra.mxu0 %v11990_v15  ;;  %v12058_v15 = vld [vmem:[#allocation8 + $0x484] ss:$16 sps:$4 sm:$0xff]  }
 0x4e6   :  { %9390 = vmatprep.subr.bf16.mxu0 %v11995_v59  ;;  %v12028_v59 = vld [vmem:[#allocation8 + $0xac] ss:$16 sps:$4 sm:$0xff]  }
 0x4e7   :  { %7735 = vmatpush1.bf16.msra.mxu1 %v11337_v55  ;;  %v12026_v55 = vld [vmem:[#allocation8 + $0xa8] ss:$16 sps:$4 sm:$0xff]  }
 0x4e8   :  { %7736 = vmatprep.subr.bf16.mxu1 %v11346_v6  ;;  %v12062_v6 = vld [vmem:[#allocation8 + $0x4a0] ss:$16 sps:$4 sm:$0xff]  }
 0x4e9   :  { %9391 = vmatpush1.bf16.msra.mxu0 %v11993_v63  ;;  %v12031_v63 = vld [vmem:[#allocation8 + $0xcc] ss:$16 sps:$4 sm:$0xff]  }
 0x4ea   :  { %9392 = vmatprep.subr.bf16.mxu0 %v11998_v0  ;;  %v12070_v0 = vld [vmem:[#allocation8 + $0x4c4] ss:$16 sps:$4 sm:$0xff]  }
 0x4eb   :  { %7737 = vmatpush1.bf16.msra.mxu1 %v11345_v58  ;;  %v12068_v58 = vld [vmem:[#allocation8 + $0x4c0] ss:$16 sps:$4 sm:$0xff]  }
 0x4ec   :  { %7738 = vmatprep.subr.bf16.mxu1 %v11354_v2  ;;  %v12035_v2 = vld [vmem:[#allocation8 + $0xe8] ss:$16 sps:$4 sm:$0xff]  }
 0x4ed   :  { %9393 = vmatpush1.bf16.msra.mxu0 %v11996_v29  ;;  %v12076_v29 = vld [vmem:[#allocation8 + $0x4e4] ss:$16 sps:$4 sm:$0xff]  }
 0x4ee   :  { %9394 = vmatprep.subr.bf16.mxu0 %v12001_v4  ;;  %v12043_v4 = vld [vmem:[#allocation8 + $0x10c] ss:$16 sps:$4 sm:$0xff]  }
 0x4ef   :  { %7739 = vmatpush1.bf16.msra.mxu1 %v11353_v9  ;;  %v12041_v9 = vld [vmem:[#allocation8 + $0x108] ss:$16 sps:$4 sm:$0xff]  }
 0x4f0   :  { %7740 = vmatprep.subr.bf16.mxu1 %v11362_v46  ;;  %v12080_v46 = vld [vmem:[#allocation8 + $0x500] ss:$16 sps:$4 sm:$0xff]  }
 0x4f1   :  { %9395 = vmatpush1.bf16.msra.mxu0 %v11999_v11  ;;  %v12049_v11 = vld [vmem:[#allocation8 + $0x12c] ss:$16 sps:$4 sm:$0xff]  }
 0x4f2   :  { %9396 = vmatprep.subr.bf16.mxu0 %v12004_v13  ;;  %v12088_v13 = vld [vmem:[#allocation8 + $0x524] ss:$16 sps:$4 sm:$0xff]  }
 0x4f3   :  { %7741 = vmatpush1.bf16.msra.mxu1 %v11361_v17  ;;  %v12086_v17 = vld [vmem:[#allocation8 + $0x520] ss:$16 sps:$4 sm:$0xff]  }
 0x4f4   :  { %7742 = vmatprep.subr.bf16.mxu1 %v11370_v22  ;;  %v12053_v22 = vld [vmem:[#allocation8 + $0x148] ss:$16 sps:$4 sm:$0xff]  }
 0x4f5   :  { %9397 = vmatpush1.bf16.msra.mxu0 %v12002_v18  ;;  %v12094_v18 = vld [vmem:[#allocation8 + $0x544] ss:$16 sps:$4 sm:$0xff]  }
 0x4f6   :  { %9398 = vmatprep.subr.bf16.mxu0 %v12007_v24  ;;  %v12092_v24 = vld [vmem:[#allocation8 + $0x540] ss:$16 sps:$4 sm:$0xff]  }
 0x4f7   :  { %7743 = vmatpush1.bf16.msra.mxu1 %v11369_v27  ;;  %v12067_v27 = vld [vmem:[#allocation8 + $0x18c] ss:$16 sps:$4 sm:$0xff]  }
 0x4f8   :  { %7744 = vmatprep.subr.bf16.mxu1 %v11378_v31  ;;  %v12106_v31 = vld [vmem:[#allocation8 + $0x584] ss:$16 sps:$4 sm:$0xff]  }
 0x4f9   :  { %9399 = vmatpush1.bf16.msra.mxu0 %v12005_v30  ;;  %v12098_v30 = vld [vmem:[#allocation8 + $0x560] ss:$16 sps:$4 sm:$0xff]  }
 0x4fa   :  { %9400 = vmatprep.subr.bf16.mxu0 %v12010_v54  ;;  %v12073_v54 = vld [vmem:[#allocation8 + $0x1ac] ss:$16 sps:$4 sm:$0xff]  }
 0x4fb   :  { %7745 = vmatpush1.bf16.msra.mxu1 %v11377_v33  ;;  %v12104_v33 = vld [vmem:[#allocation8 + $0x580] ss:$16 sps:$4 sm:$0xff]  }
 0x4fc   :  { %9493 = vmatprep.subr.bf16.mxu1 %v12013_v35  ;;  %v12071_v35 = vld [vmem:[#allocation8 + $0x1a8] ss:$16 sps:$4 sm:$0xff]  }
 0x4fd   :  { %9401 = vmatpush1.bf16.msra.mxu0 %v12008_v25  ;;  %v12112_v25 = vld [vmem:[#allocation8 + $0x5a4] ss:$16 sps:$4 sm:$0xff]  }
 0x4fe   :  { %9411 = vmatprep.subr.bf16.mxu0 %v12034_v37  ;;  %7747 = vmatmul.mubr.bf16.vlgmr.msra.gmra.mrb[8].mxu1 %v12943_v20  ;;  %v12052_v20 = vld [vmem:[#allocation8 + $0x464] ss:$16 sps:$4 sm:$0xff]   ;;  %v12110_v37 = vld [vmem:[#allocation8 + $0x5a0] ss:$16 sps:$4 sm:$0xff]  }
 0x4ff   :  { %9494 = vmatpush1.bf16.msra.mxu1 %v12011_v41  ;;  %9525 = vmatprep.mubr.bf16.mxu1 %v13004_v21  ;;  %v12050_v21 = vld [vmem:[#allocation8 + $0x460] ss:$16 sps:$4 sm:$0xff]   ;;  %v12118_v41 = vld [vmem:[#allocation8 + $0x5c4] ss:$16 sps:$4 sm:$0xff]  }
 0x500   :  { %9403 = vmatmul.mubr.bf16.vlgmr.msra.gmra.mrb[8].mxu0 %v13031_v42  ;;  %9495 = vmatprep.subr.bf16.mxu1 %v12016_v28  ;;  %v12077_v28 = vld [vmem:[#allocation8 + $0x1c8] ss:$16 sps:$4 sm:$0xff]  }
 0x501   :  { %9412 = vmatpush1.bf16.msra.mxu0 %v12032_v43  ;;  %v12085_v43 = vld [vmem:[#allocation8 + $0x1ec] ss:$16 sps:$4 sm:$0xff]  }
 0x502   :  { %9413 = vmatprep.subr.bf16.mxu0 %v12040_v10  ;;  %v12116_v10 = vld [vmem:[#allocation8 + $0x5c0] ss:$16 sps:$4 sm:$0xff]  }
 0x503   :  { %9496 = vmatpush1.bf16.msra.mxu1 %v12014_v47  ;;  %v12124_v47 = vld [vmem:[#allocation8 + $0x5e4] ss:$16 sps:$4 sm:$0xff]  }
 0x504   :  { %9497 = vmatprep.subr.bf16.mxu1 %v12019_v48  ;;  %v12083_v48 = vld [vmem:[#allocation8 + $0x1e8] ss:$16 sps:$4 sm:$0xff]  }
 0x505   :  { %9414 = vmatpush1.bf16.msra.mxu0 %v12038_v49  ;;  %v12091_v49 = vld [vmem:[#allocation8 + $0x20c] ss:$16 sps:$4 sm:$0xff]  }
 0x506   :  { %9415 = vmatprep.subr.bf16.mxu0 %v12046_v3  ;;  %v12122_v3 = vld [vmem:[#allocation8 + $0x5e0] ss:$16 sps:$4 sm:$0xff]  }
 0x507   :  { %9498 = vmatpush1.bf16.msra.mxu1 %v12017_v50  ;;  %v12178_v50 = vld [vmem:[#allocation8 + $0x604] ss:$16 sps:$4 sm:$0xff]  }
 0x508   :  { %9499 = vmatprep.subr.bf16.mxu1 %v12022_v52  ;;  %v12089_v52 = vld [vmem:[#allocation8 + $0x208] ss:$16 sps:$4 sm:$0xff]  }
 0x509   :  { %9416 = vmatpush1.bf16.msra.mxu0 %v12044_v53  ;;  %v12097_v53 = vld [vmem:[#allocation8 + $0x22c] ss:$16 sps:$4 sm:$0xff]  }
 0x50a   :  { %9417 = vmatprep.subr.bf16.mxu0 %v12052_v20  ;;  %v12095_v20 = vld [vmem:[#allocation8 + $0x228] ss:$16 sps:$4 sm:$0xff]  }
 0x50b   :  { %9500 = vmatpush1.bf16.msra.mxu1 %v12020_v56  ;;  %v12103_v56 = vld [vmem:[#allocation8 + $0x24c] ss:$16 sps:$4 sm:$0xff]  }
 0x50c   :  { %9501 = vmatprep.subr.bf16.mxu1 %v12025_v61  ;;  %v12101_v61 = vld [vmem:[#allocation8 + $0x248] ss:$16 sps:$4 sm:$0xff]  }
 0x50d   :  { %9418 = vmatpush1.bf16.msra.mxu0 %v12050_v21  ;;  %v12109_v21 = vld [vmem:[#allocation8 + $0x26c] ss:$16 sps:$4 sm:$0xff]  }
 0x50e   :  { %9419 = vmatprep.subr.bf16.mxu0 %v12058_v15  ;;  %v12107_v15 = vld [vmem:[#allocation8 + $0x268] ss:$16 sps:$4 sm:$0xff]  }
 0x50f   :  { %9502 = vmatpush1.bf16.msra.mxu1 %v12023_v14  ;;  %v12115_v14 = vld [vmem:[#allocation8 + $0x28c] ss:$16 sps:$4 sm:$0xff]  }
 0x510   :  { %9503 = vmatprep.subr.bf16.mxu1 %v12028_v59  ;;  %v12113_v59 = vld [vmem:[#allocation8 + $0x288] ss:$16 sps:$4 sm:$0xff]  }
 0x511   :  { %9420 = vmatpush1.bf16.msra.mxu0 %v12056_v60  ;;  %v1213_v60 = vsub.s32 4, %v12847_v44 }
 0x512   :  { %9421 = vmatprep.subr.bf16.mxu0 %v12064_v40  ;;  %v12121_v40 = vld [vmem:[#allocation8 + $0x2ac] ss:$16 sps:$4 sm:$0xff]  }
 0x513   :  { %9504 = vmatpush1.bf16.msra.mxu1 %v12026_v55  ;;  %v12119_v55 = vld [vmem:[#allocation8 + $0x2a8] ss:$16 sps:$4 sm:$0xff]  }
 0x514   :  { %9505 = vmatprep.subr.bf16.mxu1 %v12031_v63 }
 0x515   :  { %9422 = vmatpush1.bf16.msra.mxu0 %v12062_v6  ;;  %v12127_v6 = vld [vmem:[#allocation8 + $0x2cc] ss:$16 sps:$4 sm:$0xff]  }
 0x516   :  { %9423 = vmatprep.subr.bf16.mxu0 %v12070_v0 }
 0x517   :  { %9506 = vmatpush1.bf16.msra.mxu1 %v12029_v45 }
 0x518   :  { %9507 = vmatprep.subr.bf16.mxu1 %v12037_v1 }
 0x519   :  { %9424 = vmatpush1.bf16.msra.mxu0 %v12068_v58  ;;  %v12125_v58 = vld [vmem:[#allocation8 + $0x2c8] ss:$16 sps:$4 sm:$0xff]  }
 0x51a   :  { %9425 = vmatprep.subr.bf16.mxu0 %v12076_v29 }
 0x51b   :  { %9508 = vmatpush1.bf16.msra.mxu1 %v12035_v2 }
 0x51c   :  { %9509 = vmatprep.subr.bf16.mxu1 %v12043_v4  ;;  %v12130_v4 = vld [vmem:[#allocation8 + $0x2ec] ss:$16 sps:$4 sm:$0xff]  }
 0x51d   :  { %9426 = vmatpush1.bf16.msra.mxu0 %v12074_v7 }
 0x51e   :  { %9427 = vmatprep.subr.bf16.mxu0 %v12082_v8 }
 0x51f   :  { %9510 = vmatpush1.bf16.msra.mxu1 %v12041_v9 }
 0x520   :  { %9511 = vmatprep.subr.bf16.mxu1 %v12049_v11  ;;  %v12128_v11 = vld [vmem:[#allocation8 + $0x2e8] ss:$16 sps:$4 sm:$0xff]  }
 0x521   :  { %9428 = vmatpush1.bf16.msra.mxu0 %v12080_v46 }
 0x522   :  { %9429 = vmatprep.subr.bf16.mxu0 %v12088_v13  ;;  %v12176_v13 = vld [vmem:[#allocation8 + $0x600] ss:$16 sps:$4 sm:$0xff]  }
 0x523   :  { %9512 = vmatpush1.bf16.msra.mxu1 %v12047_v32 }
 0x524   :  { %9513 = vmatprep.subr.bf16.mxu1 %v12055_v16  ;;  %v12184_v16 = vld [vmem:[#allocation8 + $0x624] ss:$16 sps:$4 sm:$0xff]  }
 0x525   :  { %9430 = vmatpush1.bf16.msra.mxu0 %v12086_v17  ;;  %v12131_v17 = vld [vmem:[#allocation8 + $0x308] ss:$16 sps:$4 sm:$0xff]  }
 0x526   :  { %9431 = vmatprep.subr.bf16.mxu0 %v12094_v18  ;;  %v12136_v18 = vld [vmem:[#allocation8 + $0x32c] ss:$16 sps:$4 sm:$0xff]  }
 0x527   :  { %9514 = vmatpush1.bf16.msra.mxu1 %v12053_v22  ;;  %v12182_v22 = vld [vmem:[#allocation8 + $0x620] ss:$16 sps:$4 sm:$0xff]  }
 0x528   :  { %9515 = vmatprep.subr.bf16.mxu1 %v12061_v51  ;;  %v12190_v51 = vld [vmem:[#allocation8 + $0x644] ss:$16 sps:$4 sm:$0xff]  }
 0x529   :  { %9432 = vmatpush1.bf16.msra.mxu0 %v12092_v24  ;;  %v12134_v24 = vld [vmem:[#allocation8 + $0x328] ss:$16 sps:$4 sm:$0xff]  }
 0x52a   :  { %9433 = vmatprep.subr.bf16.mxu0 %v12100_v19  ;;  %v12139_v19 = vld [vmem:[#allocation8 + $0x34c] ss:$16 sps:$4 sm:$0xff]  }
 0x52b   :  { %9516 = vmatpush1.bf16.msra.mxu1 %v12059_v38  ;;  %v12188_v38 = vld [vmem:[#allocation8 + $0x640] ss:$16 sps:$4 sm:$0xff]  }
 0x52c   :  { %9517 = vmatprep.subr.bf16.mxu1 %v12067_v27  ;;  %v12196_v27 = vld [vmem:[#allocation8 + $0x664] ss:$16 sps:$4 sm:$0xff]  }
 0x52d   :  { %9434 = vmatpush1.bf16.msra.mxu0 %v12098_v30  ;;  %v12137_v30 = vld [vmem:[#allocation8 + $0x348] ss:$16 sps:$4 sm:$0xff]  }
 0x52e   :  { %9435 = vmatprep.subr.bf16.mxu0 %v12106_v31  ;;  %v12142_v31 = vld [vmem:[#allocation8 + $0x36c] ss:$16 sps:$4 sm:$0xff]  }
 0x52f   :  { %9518 = vmatpush1.bf16.msra.mxu1 %v12065_v5  ;;  %v12194_v5 = vld [vmem:[#allocation8 + $0x660] ss:$16 sps:$4 sm:$0xff]  }
 0x530   :  { %9519 = vmatprep.subr.bf16.mxu1 %v12073_v54  ;;  %v12202_v54 = vld [vmem:[#allocation8 + $0x684] ss:$16 sps:$4 sm:$0xff]  }
 0x531   :  { %9436 = vmatpush1.bf16.msra.mxu0 %v12104_v33  ;;  %v12140_v33 = vld [vmem:[#allocation8 + $0x368] ss:$16 sps:$4 sm:$0xff]  }
 0x532   :  { %9437 = vmatprep.subr.bf16.mxu0 %v12112_v25  ;;  %v12145_v25 = vld [vmem:[#allocation8 + $0x38c] ss:$16 sps:$4 sm:$0xff]  }
 0x533   :  { %9520 = vmatpush1.bf16.msra.mxu1 %v12071_v35  ;;  %v12200_v35 = vld [vmem:[#allocation8 + $0x680] ss:$16 sps:$4 sm:$0xff]  }
 0x534   :  { %9521 = vmatprep.subr.bf16.mxu1 %v12079_v36  ;;  %v12208_v36 = vld [vmem:[#allocation8 + $0x6a4] ss:$16 sps:$4 sm:$0xff]  }
 0x535   :  { %9438 = vmatpush1.bf16.msra.mxu0 %v12110_v37  ;;  %v12143_v37 = vld [vmem:[#allocation8 + $0x388] ss:$16 sps:$4 sm:$0xff]  }
 0x536   :  { %9439 = vmatprep.subr.bf16.mxu0 %v12118_v41  ;;  %v12148_v41 = vld [vmem:[#allocation8 + $0x3ac] ss:$16 sps:$4 sm:$0xff]  }
 0x537   :  { %9522 = vmatpush1.bf16.msra.mxu1 %v12077_v28  ;;  %v12206_v28 = vld [vmem:[#allocation8 + $0x6a0] ss:$16 sps:$4 sm:$0xff]  }
 0x538   :  { %9523 = vmatprep.subr.bf16.mxu1 %v12085_v43  ;;  %v12214_v43 = vld [vmem:[#allocation8 + $0x6c4] ss:$16 sps:$4 sm:$0xff]  }
 0x539   :  { %9440 = vmatpush1.bf16.msra.mxu0 %v12116_v10  ;;  %v12146_v10 = vld [vmem:[#allocation8 + $0x3a8] ss:$16 sps:$4 sm:$0xff]  }
 0x53a   :  { %9441 = vmatprep.subr.bf16.mxu0 %v12124_v47  ;;  %v12151_v47 = vld [vmem:[#allocation8 + $0x3cc] ss:$16 sps:$4 sm:$0xff]  }
 0x53b   :  { %9524 = vmatpush1.bf16.msra.mxu1 %v12083_v48  ;;  %v12212_v48 = vld [vmem:[#allocation8 + $0x6c0] ss:$16 sps:$4 sm:$0xff]  }
 0x53c   :  { %9534 = vmatprep.subr.bf16.mxu1 %v12091_v49  ;;  %v12220_v49 = vld [vmem:[#allocation8 + $0x6e4] ss:$16 sps:$4 sm:$0xff]  }
 0x53d   :  { %9442 = vmatpush1.bf16.msra.mxu0 %v12122_v3  ;;  %v12149_v3 = vld [vmem:[#allocation8 + $0x3c8] ss:$16 sps:$4 sm:$0xff]  }
 0x53e   :  { %9526 = vmatmul.mubr.bf16.vlgmr.msra.gmra.mrb[12].mxu1 %v13018_v57  ;;  %9452 = vmatprep.subr.bf16.mxu0 %v12178_v50  ;;  %v1217_v57 = vsub.s32 5, %v12847_v44  ;;  %v12154_v50 = vld [vmem:[#allocation8 + $0x3ec] ss:$16 sps:$4 sm:$0xff]  }
 0x53f   :  { %9535 = vmatpush1.bf16.msra.mxu1 %v12089_v52  ;;  %9566 = vmatprep.mubr.bf16.mxu1 %v13020_v62  ;;  %v1214_v62 = vrot.slane %v13011_v34, %v1213_v60  ;;  %v12218_v52 = vld [vmem:[#allocation8 + $0x6e0] ss:$16 sps:$4 sm:$0xff]   ;;  %v12238_v60 = vld [vmem:[#allocation8 + $0x744] ss:$16 sps:$4 sm:$0xff]  }
 0x540   :  { %9536 = vmatprep.subr.bf16.mxu1 %v12097_v53  ;;  %v1218_v63 = vrot.slane %v13011_v34, %v1217_v57  ;;  %v12133_v34 = vld [vmem:[#allocation8 + $0x30c] ss:$16 sps:$4 sm:$0xff]   ;;  %v12226_v53 = vld [vmem:[#allocation8 + $0x704] ss:$16 sps:$4 sm:$0xff]   ;;  %v12158_v57 = vld [vmem:[#allocation8 + $0x428] ss:$16 sps:$4 sm:$0xff]  }
 0x543   :  { %9537 = vmatpush1.bf16.msra.mxu1 %v12095_v20  ;;  %v12152_v20 = vld [vmem:[#allocation8 + $0x3e8] ss:$16 sps:$4 sm:$0xff]  }
 0x544   :  { %9538 = vmatprep.subr.bf16.mxu1 %v12103_v56  ;;  %v12157_v56 = vld [vmem:[#allocation8 + $0x40c] ss:$16 sps:$4 sm:$0xff]  }
 0x547   :  { %9539 = vmatpush1.bf16.msra.mxu1 %v12101_v61  ;;  %v12224_v61 = vld [vmem:[#allocation8 + $0x700] ss:$16 sps:$4 sm:$0xff]  }
 0x548   :  { %9540 = vmatprep.subr.bf16.mxu1 %v12109_v21  ;;  %v12232_v21 = vld [vmem:[#allocation8 + $0x724] ss:$16 sps:$4 sm:$0xff]  }
 0x54b   :  { %9541 = vmatpush1.bf16.msra.mxu1 %v12107_v15  ;;  %v12155_v15 = vld [vmem:[#allocation8 + $0x408] ss:$16 sps:$4 sm:$0xff]  }
 0x54c   :  { %9542 = vmatprep.subr.bf16.mxu1 %v12115_v14  ;;  %v12160_v14 = vld [vmem:[#allocation8 + $0x42c] ss:$16 sps:$4 sm:$0xff]  }
 0x54f   :  { %9543 = vmatpush1.bf16.msra.mxu1 %v12113_v59  ;;  %v12230_v59 = vld [vmem:[#allocation8 + $0x720] ss:$16 sps:$4 sm:$0xff]  }
 0x550   :  { %9544 = vmatprep.subr.bf16.mxu1 %v12121_v40  ;;  %v12163_v40 = vld [vmem:[#allocation8 + $0x44c] ss:$16 sps:$4 sm:$0xff]  }
 0x553   :  { %v7420_v0 = vpop.f32.mrb[4].mxu0  ;;  %9545 = vmatpush1.bf16.msra.mxu1 %v12119_v55  ;;  %v12244_v55 = vld [vmem:[#allocation8 + $0x764] ss:$16 sps:$4 sm:$0xff]  }
 0x554   :  { %v11746_v45 = vadd.f32 %v7420_v0, %v1214_v62  ;;  %v7422_v1 = vpop.f32.mrb[5].mxu0  ;;  %9546 = vmatprep.subr.bf16.mxu1 %v12127_v6  ;;  %v12236_v62 = vld [vmem:[#allocation8 + $0x740] ss:$16 sps:$4 sm:$0xff]   ;;  %v12166_v6 = vld [vmem:[#allocation8 + $0x46c] ss:$16 sps:$4 sm:$0xff]  }
 0x555   :  { %v11747_v29 = vadd.f32 %v7422_v1, %v1218_v63  ;;  %v7424_v2 = vpop.f32.mrb[6].mxu0  ;;  %v12161_v63 = vld [vmem:[#allocation8 + $0x448] ss:$16 sps:$4 sm:$0xff]   ;;  %v12242_v0 = vld [vmem:[#allocation8 + $0x760] ss:$16 sps:$4 sm:$0xff]  }
 0x556   :  { %v7759_v7 = vmax.f32 %v11746_v45, 0.0  ;;  %v7425_v8 = vpop.f32.mrb[7].mxu0  ;;  %v12250_v45 = vld [vmem:[#allocation8 + $0x784] ss:$16 sps:$4 sm:$0xff]   ;;  %v12169_v1 = vld [vmem:[#allocation8 + $0x48c] ss:$16 sps:$4 sm:$0xff]  }
 0x557   :  { %v7760_v9 = vmax.f32 %v11747_v29, 0.0  ;;  %9547 = vmatpush1.bf16.msra.mxu1 %v12125_v58  ;;  %v12248_v58 = vld [vmem:[#allocation8 + $0x780] ss:$16 sps:$4 sm:$0xff]   ;;  %v12256_v29 = vld [vmem:[#allocation8 + $0x7a4] ss:$16 sps:$4 sm:$0xff]  }
 0x558   :  { %9548 = vmatprep.subr.bf16.mxu1 %v12130_v4  ;;  %v13044_v32 = vpack.c.bf16 %v7759_v7, %v7759_v7  ;;  %v12167_v2 = vld [vmem:[#allocation8 + $0x488] ss:$16 sps:$4 sm:$0xff]   ;;  %v12172_v4 = vld [vmem:[#allocation8 + $0x4ac] ss:$16 sps:$4 sm:$0xff]   ;;  %v12254_v7 = vld [vmem:[#allocation8 + $0x7a0] ss:$16 sps:$4 sm:$0xff]  }
 0x559   :  { %v13042_v46 = vpack.c.bf16 %v7760_v9, %v7760_v9  ;;  %v12262_v8 = vld [vmem:[#allocation8 + $0x7c4] ss:$16 sps:$4 sm:$0xff]   ;;  %v12170_v9 = vld [vmem:[#allocation8 + $0x4a8] ss:$16 sps:$4 sm:$0xff]  }
 0x55b   :  { %9443 = vmatprep.mubr.bf16.mxu0 %v13042_v46  ;;  %9549 = vmatpush1.bf16.msra.mxu1 %v12128_v11  ;;  %v12175_v11 = vld [vmem:[#allocation8 + $0x4cc] ss:$16 sps:$4 sm:$0xff]  }
 0x55c   :  { %9444 = vmatmul.mubr.bf16.vlgmr.msra.gmra.mrb[8].mxu0 %v13044_v32  ;;  %9550 = vmatprep.subr.bf16.mxu1 %v12133_v34  ;;  %v12268_v34 = vld [vmem:[#allocation8 + $0x7e4] ss:$16 sps:$4 sm:$0xff]  }
 0x55d   :  { %9453 = vmatpush1.bf16.msra.mxu0 %v12176_v13  ;;  %v12173_v13 = vld [vmem:[#allocation8 + $0x4c8] ss:$16 sps:$4 sm:$0xff]  }
 0x55e   :  { %9454 = vmatprep.subr.bf16.mxu0 %v12184_v16  ;;  %v12181_v16 = vld [vmem:[#allocation8 + $0x4ec] ss:$16 sps:$4 sm:$0xff]  }
 0x55f   :  { %9551 = vmatpush1.bf16.msra.mxu1 %v12131_v17  ;;  %v12266_v17 = vld [vmem:[#allocation8 + $0x7e0] ss:$16 sps:$4 sm:$0xff]  }
 0x560   :  { %9552 = vmatprep.subr.bf16.mxu1 %v12136_v18  ;;  %v12301_v18 = vld [vmem:[#allocation11 + $0x4] ss:$8 sps:$4 sm:$0xff]  }
 0x561   :  { %9455 = vmatpush1.bf16.msra.mxu0 %v12182_v22  ;;  %v12179_v22 = vld [vmem:[#allocation8 + $0x4e8] ss:$16 sps:$4 sm:$0xff]  }
 0x562   :  { %9456 = vmatprep.subr.bf16.mxu0 %v12190_v51  ;;  %v12187_v51 = vld [vmem:[#allocation8 + $0x50c] ss:$16 sps:$4 sm:$0xff]  }
 0x563   :  { %9553 = vmatpush1.bf16.msra.mxu1 %v12134_v24  ;;  %v12185_v24 = vld [vmem:[#allocation8 + $0x508] ss:$16 sps:$4 sm:$0xff]  }
 0x564   :  { %9554 = vmatprep.subr.bf16.mxu1 %v12139_v19  ;;  %v12193_v19 = vld [vmem:[#allocation8 + $0x52c] ss:$16 sps:$4 sm:$0xff]  }
 0x565   :  { %9457 = vmatpush1.bf16.msra.mxu0 %v12188_v38  ;;  %v12191_v38 = vld [vmem:[#allocation8 + $0x528] ss:$16 sps:$4 sm:$0xff]  }
 0x566   :  { %9458 = vmatprep.subr.bf16.mxu0 %v12196_v27  ;;  %v12199_v27 = vld [vmem:[#allocation8 + $0x54c] ss:$16 sps:$4 sm:$0xff]  }
 0x567   :  { %9555 = vmatpush1.bf16.msra.mxu1 %v12137_v30  ;;  %v12197_v30 = vld [vmem:[#allocation8 + $0x548] ss:$16 sps:$4 sm:$0xff]  }
 0x568   :  { %9556 = vmatprep.subr.bf16.mxu1 %v12142_v31  ;;  %v12205_v31 = vld [vmem:[#allocation8 + $0x56c] ss:$16 sps:$4 sm:$0xff]  }
 0x569   :  { %9459 = vmatpush1.bf16.msra.mxu0 %v12194_v5  ;;  %v12203_v5 = vld [vmem:[#allocation8 + $0x568] ss:$16 sps:$4 sm:$0xff]  }
 0x56a   :  { %9460 = vmatprep.subr.bf16.mxu0 %v12202_v54  ;;  %v12211_v54 = vld [vmem:[#allocation8 + $0x58c] ss:$16 sps:$4 sm:$0xff]  }
 0x56b   :  { %9557 = vmatpush1.bf16.msra.mxu1 %v12140_v33  ;;  %v12209_v33 = vld [vmem:[#allocation8 + $0x588] ss:$16 sps:$4 sm:$0xff]  }
 0x56c   :  { %9558 = vmatprep.subr.bf16.mxu1 %v12145_v25  ;;  %v12217_v25 = vld [vmem:[#allocation8 + $0x5ac] ss:$16 sps:$4 sm:$0xff]  }
 0x56d   :  { %9461 = vmatpush1.bf16.msra.mxu0 %v12200_v35  ;;  %v12215_v35 = vld [vmem:[#allocation8 + $0x5a8] ss:$16 sps:$4 sm:$0xff]  }
 0x56e   :  { %9462 = vmatprep.subr.bf16.mxu0 %v12208_v36  ;;  %v12223_v36 = vld [vmem:[#allocation8 + $0x5cc] ss:$16 sps:$4 sm:$0xff]  }
 0x56f   :  { %9559 = vmatpush1.bf16.msra.mxu1 %v12143_v37  ;;  %v12221_v37 = vld [vmem:[#allocation8 + $0x5c8] ss:$16 sps:$4 sm:$0xff]  }
 0x570   :  { %9560 = vmatprep.subr.bf16.mxu1 %v12148_v41  ;;  %v12229_v41 = vld [vmem:[#allocation8 + $0x5ec] ss:$16 sps:$4 sm:$0xff]  }
 0x571   :  { %9463 = vmatpush1.bf16.msra.mxu0 %v12206_v28  ;;  %v12227_v28 = vld [vmem:[#allocation8 + $0x5e8] ss:$16 sps:$4 sm:$0xff]  }
 0x572   :  { %9464 = vmatprep.subr.bf16.mxu0 %v12214_v43  ;;  %v12235_v43 = vld [vmem:[#allocation8 + $0x60c] ss:$16 sps:$4 sm:$0xff]  }
 0x573   :  { %9561 = vmatpush1.bf16.msra.mxu1 %v12146_v10  ;;  %v12233_v10 = vld [vmem:[#allocation8 + $0x608] ss:$16 sps:$4 sm:$0xff]  }
 0x574   :  { %9562 = vmatprep.subr.bf16.mxu1 %v12151_v47  ;;  %v12241_v47 = vld [vmem:[#allocation8 + $0x62c] ss:$16 sps:$4 sm:$0xff]  }
 0x575   :  { %9465 = vmatpush1.bf16.msra.mxu0 %v12212_v48  ;;  %v12239_v48 = vld [vmem:[#allocation8 + $0x628] ss:$16 sps:$4 sm:$0xff]  }
 0x576   :  { %9466 = vmatprep.subr.bf16.mxu0 %v12220_v49  ;;  %v12247_v49 = vld [vmem:[#allocation8 + $0x64c] ss:$16 sps:$4 sm:$0xff]  }
 0x577   :  { %9563 = vmatpush1.bf16.msra.mxu1 %v12149_v3  ;;  %v12245_v3 = vld [vmem:[#allocation8 + $0x648] ss:$16 sps:$4 sm:$0xff]  }
 0x578   :  { %9564 = vmatprep.subr.bf16.mxu1 %v12154_v50  ;;  %v12253_v50 = vld [vmem:[#allocation8 + $0x66c] ss:$16 sps:$4 sm:$0xff]  }
 0x579   :  { %9467 = vmatpush1.bf16.msra.mxu0 %v12218_v52  ;;  %v12251_v52 = vld [vmem:[#allocation8 + $0x668] ss:$16 sps:$4 sm:$0xff]  }
 0x57a   :  { %9468 = vmatprep.subr.bf16.mxu0 %v12226_v53  ;;  %v12259_v53 = vld [vmem:[#allocation8 + $0x68c] ss:$16 sps:$4 sm:$0xff]  }
 0x57b   :  { %9565 = vmatpush1.bf16.msra.mxu1 %v12152_v20  ;;  %v1221_v20 = vsub.s32 6, %v12847_v44 }
 0x57c   :  { %9575 = vmatprep.subr.bf16.mxu1 %v12157_v56  ;;  %v12257_v56 = vld [vmem:[#allocation8 + $0x688] ss:$16 sps:$4 sm:$0xff]  }
 0x57d   :  { %9469 = vmatpush1.bf16.msra.mxu0 %v12224_v61  ;;  %v1225_v61 = vsub.s32 7, %v12847_v44  ;;  %v12409_v44 = vld [vmem:[#allocation14 + $0x78] sm:$0xff]  }
 0x57e   :  { %9470 = vmatprep.subr.bf16.mxu0 %v12232_v21  ;;  %9567 = vmatmul.mubr.bf16.vlgmr.msra.gmra.mrb[12].mxu1 %v13031_v42  ;;  %v12164_v42 = vld [vmem:[#allocation8 + $0x468] ss:$16 sps:$4 sm:$0xff]  }
 0x57f   :  { %9576 = vmatpush1.bf16.msra.mxu1 %v12155_v15  ;;  %9607 = vmatprep.mubr.bf16.mxu1 %v13042_v46  ;;  %v12260_v46 = vld [vmem:[#allocation8 + $0x7c0] ss:$16 sps:$4 sm:$0xff]   ;;  %v12412_v21 = vld [vmem:[#allocation7] sm:$0xff] }
 0x580   :  { %9577 = vmatprep.subr.bf16.mxu1 %v12160_v14  ;;  %v1222_v15 = vrot.slane %v12412_v21, %v1221_v20  ;;  %v1226_v14 = vrot.slane %v12412_v21, %v1225_v61  ;;  %v12334_v20 = vld [vmem:[#allocation11 + $0xb4] ss:$8 sps:$4 sm:$0xff]   ;;  %v12337_v61 = vld [vmem:[#allocation11 + $0xc4] ss:$8 sps:$4 sm:$0xff]  }
 0x581   :  { %9471 = vmatpush1.bf16.msra.mxu0 %v12230_v59  ;;  %v12263_v59 = vld [vmem:[#allocation8 + $0x6a8] ss:$16 sps:$4 sm:$0xff]  }
 0x582   :  { %9472 = vmatprep.subr.bf16.mxu0 %v12238_v60  ;;  %v12271_v60 = vld [vmem:[#allocation8 + $0x6cc] ss:$16 sps:$4 sm:$0xff]   ;;  %v12340_v21 = vld [vmem:[#allocation11 + $0xd4] ss:$8 sps:$4 sm:$0xff]  }
 0x583   :  { %9578 = vmatpush1.bf16.msra.mxu1 %v12158_v57 }
 0x584   :  { %9579 = vmatprep.subr.bf16.mxu1 %v12163_v40 }
 0x585   :  { %9473 = vmatpush1.bf16.msra.mxu0 %v12236_v62 }
 0x586   :  { %9474 = vmatprep.subr.bf16.mxu0 %v12244_v55 }
 0x587   :  { %9580 = vmatpush1.bf16.msra.mxu1 %v12161_v63 }
 0x588   :  { %9581 = vmatprep.subr.bf16.mxu1 %v12166_v6  ;;  %v12269_v6 = vld [vmem:[#allocation8 + $0x6c8] ss:$16 sps:$4 sm:$0xff]  }
 0x589   :  { %9475 = vmatpush1.bf16.msra.mxu0 %v12242_v0 }
 0x58a   :  { %9476 = vmatprep.subr.bf16.mxu0 %v12250_v45 }
 0x58b   :  { %9582 = vmatpush1.bf16.msra.mxu1 %v12164_v42  ;;  %v12274_v42 = vld [vmem:[#allocation8 + $0x6ec] ss:$16 sps:$4 sm:$0xff]  }
 0x58c   :  { %9583 = vmatprep.subr.bf16.mxu1 %v12169_v1 }
 0x58d   :  { %9477 = vmatpush1.bf16.msra.mxu0 %v12248_v58 }
 0x58e   :  { %9478 = vmatprep.subr.bf16.mxu0 %v12256_v29  ;;  %v12272_v29 = vld [vmem:[#allocation8 + $0x6e8] ss:$16 sps:$4 sm:$0xff]  }
 0x58f   :  { %9584 = vmatpush1.bf16.msra.mxu1 %v12167_v2  ;;  %v12299_v2 = vld [vmem:[#allocation11] ss:$8 sps:$4 sm:$0xff]  }
 0x590   :  { %9585 = vmatprep.subr.bf16.mxu1 %v12172_v4 }
 0x591   :  { %9479 = vmatpush1.bf16.msra.mxu0 %v12254_v7  ;;  %v12277_v7 = vld [vmem:[#allocation8 + $0x70c] ss:$16 sps:$4 sm:$0xff]  }
 0x592   :  { %9480 = vmatprep.subr.bf16.mxu0 %v12262_v8  ;;  %v12304_v8 = vld [vmem:[#allocation11 + $0x14] ss:$8 sps:$4 sm:$0xff]  }
 0x593   :  { %9586 = vmatpush1.bf16.msra.mxu1 %v12170_v9  ;;  %v12275_v9 = vld [vmem:[#allocation8 + $0x708] ss:$16 sps:$4 sm:$0xff]  }
 0x594   :  { %9587 = vmatprep.subr.bf16.mxu1 %v12175_v11  ;;  %v12302_v11 = vld [vmem:[#allocation11 + $0x10] ss:$8 sps:$4 sm:$0xff]  }
 0x595   :  { %9481 = vmatpush1.bf16.msra.mxu0 %v12260_v46  ;;  %v12280_v46 = vld [vmem:[#allocation8 + $0x72c] ss:$16 sps:$4 sm:$0xff]  }
 0x596   :  { %9482 = vmatprep.subr.bf16.mxu0 %v12268_v34  ;;  %v12307_v34 = vld [vmem:[#allocation11 + $0x24] ss:$8 sps:$4 sm:$0xff]  }
 0x597   :  { %9588 = vmatpush1.bf16.msra.mxu1 %v12173_v13  ;;  %v12278_v13 = vld [vmem:[#allocation8 + $0x728] ss:$16 sps:$4 sm:$0xff]  }
 0x598   :  { %9589 = vmatprep.subr.bf16.mxu1 %v12181_v16  ;;  %v12305_v16 = vld [vmem:[#allocation11 + $0x20] ss:$8 sps:$4 sm:$0xff]  }
 0x599   :  { %9483 = vmatpush1.bf16.msra.mxu0 %v12266_v17  ;;  %v12283_v17 = vld [vmem:[#allocation8 + $0x74c] ss:$16 sps:$4 sm:$0xff]  }
 0x59a   :  { %10061 = vmatprep.subr.bf16.mxu0 %v12301_v18  ;;  %v12310_v18 = vld [vmem:[#allocation11 + $0x34] ss:$8 sps:$4 sm:$0xff]  }
 0x59b   :  { %9590 = vmatpush1.bf16.msra.mxu1 %v12179_v22  ;;  %v12281_v22 = vld [vmem:[#allocation8 + $0x748] ss:$16 sps:$4 sm:$0xff]  }
 0x59c   :  { %9591 = vmatprep.subr.bf16.mxu1 %v12187_v51  ;;  %v12308_v51 = vld [vmem:[#allocation11 + $0x30] ss:$8 sps:$4 sm:$0xff]  }
 0x59f   :  { %9592 = vmatpush1.bf16.msra.mxu1 %v12185_v24  ;;  %v12286_v24 = vld [vmem:[#allocation8 + $0x76c] ss:$16 sps:$4 sm:$0xff]  }
 0x5a0   :  { %9593 = vmatprep.subr.bf16.mxu1 %v12193_v19  ;;  %v12313_v19 = vld [vmem:[#allocation11 + $0x44] ss:$8 sps:$4 sm:$0xff]  }
 0x5a3   :  { %9594 = vmatpush1.bf16.msra.mxu1 %v12191_v38  ;;  %v12284_v38 = vld [vmem:[#allocation8 + $0x768] ss:$16 sps:$4 sm:$0xff]  }
 0x5a4   :  { %9595 = vmatprep.subr.bf16.mxu1 %v12199_v27  ;;  %v12311_v27 = vld [vmem:[#allocation11 + $0x40] ss:$8 sps:$4 sm:$0xff]  }
 0x5a7   :  { %9596 = vmatpush1.bf16.msra.mxu1 %v12197_v30  ;;  %v12289_v30 = vld [vmem:[#allocation8 + $0x78c] ss:$16 sps:$4 sm:$0xff]  }
 0x5a8   :  { %9597 = vmatprep.subr.bf16.mxu1 %v12205_v31  ;;  %v12316_v31 = vld [vmem:[#allocation11 + $0x54] ss:$8 sps:$4 sm:$0xff]  }
 0x5ab   :  { %9598 = vmatpush1.bf16.msra.mxu1 %v12203_v5  ;;  %v12287_v5 = vld [vmem:[#allocation8 + $0x788] ss:$16 sps:$4 sm:$0xff]  }
 0x5ac   :  { %9599 = vmatprep.subr.bf16.mxu1 %v12211_v54  ;;  %v12314_v54 = vld [vmem:[#allocation11 + $0x50] ss:$8 sps:$4 sm:$0xff]  }
 0x5af   :  { %9600 = vmatpush1.bf16.msra.mxu1 %v12209_v33  ;;  %v12292_v33 = vld [vmem:[#allocation8 + $0x7ac] ss:$16 sps:$4 sm:$0xff]  }
 0x5b0   :  { %9601 = vmatprep.subr.bf16.mxu1 %v12217_v25  ;;  %v12319_v25 = vld [vmem:[#allocation11 + $0x64] ss:$8 sps:$4 sm:$0xff]  }
 0x5b3   :  { %9602 = vmatpush1.bf16.msra.mxu1 %v12215_v35  ;;  %v12290_v35 = vld [vmem:[#allocation8 + $0x7a8] ss:$16 sps:$4 sm:$0xff]  }
 0x5b4   :  { %9603 = vmatprep.subr.bf16.mxu1 %v12223_v36  ;;  %v12317_v36 = vld [vmem:[#allocation11 + $0x60] ss:$8 sps:$4 sm:$0xff]  }
 0x5b7   :  { %9604 = vmatpush1.bf16.msra.mxu1 %v12221_v37  ;;  %v12295_v37 = vld [vmem:[#allocation8 + $0x7cc] ss:$16 sps:$4 sm:$0xff]  }
 0x5b8   :  { %9605 = vmatprep.subr.bf16.mxu1 %v12229_v41  ;;  %v12322_v41 = vld [vmem:[#allocation11 + $0x74] ss:$8 sps:$4 sm:$0xff]  }
 0x5bb   :  { %9606 = vmatpush1.bf16.msra.mxu1 %v12227_v28  ;;  %v12293_v28 = vld [vmem:[#allocation8 + $0x7c8] ss:$16 sps:$4 sm:$0xff]  }
 0x5bc   :  { %9616 = vmatprep.subr.bf16.mxu1 %v12235_v43  ;;  %v12320_v43 = vld [vmem:[#allocation11 + $0x70] ss:$8 sps:$4 sm:$0xff]  }
 0x5be   :  { %9608 = vmatmul.mubr.bf16.vlgmr.msra.gmra.mrb[12].mxu1 %v13044_v32  ;;  %v12265_v32 = vld [vmem:[#allocation8 + $0x6ac] ss:$16 sps:$4 sm:$0xff]  }
 0x5bf   :  { %9617 = vmatpush1.bf16.msra.mxu1 %v12233_v10  ;;  %v12298_v10 = vld [vmem:[#allocation8 + $0x7ec] ss:$16 sps:$4 sm:$0xff]  }
 0x5c0   :  { %9618 = vmatprep.subr.bf16.mxu1 %v12241_v47  ;;  %v12325_v47 = vld [vmem:[#allocation11 + $0x84] ss:$8 sps:$4 sm:$0xff]  }
 0x5c3   :  { %9619 = vmatpush1.bf16.msra.mxu1 %v12239_v48  ;;  %v12296_v48 = vld [vmem:[#allocation8 + $0x7e8] ss:$16 sps:$4 sm:$0xff]  }
 0x5c4   :  { %9620 = vmatprep.subr.bf16.mxu1 %v12247_v49  ;;  %v12323_v49 = vld [vmem:[#allocation11 + $0x80] ss:$8 sps:$4 sm:$0xff]  }
 0x5c7   :  { %9621 = vmatpush1.bf16.msra.mxu1 %v12245_v3  ;;  %v12328_v3 = vld [vmem:[#allocation11 + $0x94] ss:$8 sps:$4 sm:$0xff]  }
 0x5c8   :  { %9622 = vmatprep.subr.bf16.mxu1 %v12253_v50  ;;  %v12326_v50 = vld [vmem:[#allocation11 + $0x90] ss:$8 sps:$4 sm:$0xff]  }
 0x5cb   :  { %9623 = vmatpush1.bf16.msra.mxu1 %v12251_v52  ;;  %v12331_v52 = vld [vmem:[#allocation11 + $0xa4] ss:$8 sps:$4 sm:$0xff]  }
 0x5cc   :  { %9624 = vmatprep.subr.bf16.mxu1 %v12259_v53  ;;  %v12329_v53 = vld [vmem:[#allocation11 + $0xa0] ss:$8 sps:$4 sm:$0xff]  }
 0x5cf   :  { %9625 = vmatpush1.bf16.msra.mxu1 %v12257_v56  ;;  %v12332_v56 = vld [vmem:[#allocation11 + $0xb0] ss:$8 sps:$4 sm:$0xff]  }
 0x5d0   :  { %9626 = vmatprep.subr.bf16.mxu1 %v12265_v32  ;;  %v12335_v32 = vld [vmem:[#allocation11 + $0xc0] ss:$8 sps:$4 sm:$0xff]  }
 0x5d1   :  { %v7748_v57 = vpop.f32.mrb[8].mxu1 }
 0x5d2   :  { %v11748_v40 = vadd.f32 %v7748_v57, %v1222_v15  ;;  %v7750_v62 = vpop.f32.mrb[9].mxu1  ;;  %v12338_v15 = vld [vmem:[#allocation11 + $0xd0] ss:$8 sps:$4 sm:$0xff]  }
 0x5d3   :  { %v11749_v55 = vadd.f32 %v7750_v62, %v1226_v14  ;;  %v7752_v63 = vpop.f32.mrb[10].mxu1  ;;  %9627 = vmatpush1.bf16.msra.mxu1 %v12263_v59  ;;  %v12343_v14 = vld [vmem:[#allocation11 + $0xe4] ss:$8 sps:$4 sm:$0xff]   ;;  %v12341_v59 = vld [vmem:[#allocation11 + $0xe0] ss:$8 sps:$4 sm:$0xff]  }
 0x5d4   :  { %v7761_v0 = vmax.f32 %v11748_v40, 0.0  ;;  %v7753_v45 = vpop.f32.mrb[11].mxu1  ;;  %9628 = vmatprep.subr.bf16.mxu1 %v12271_v60  ;;  %v12346_v60 = vld [vmem:[#allocation11 + $0xf4] ss:$8 sps:$4 sm:$0xff]   ;;  %v12344_v57 = vld [vmem:[#allocation11 + $0xf0] ss:$8 sps:$4 sm:$0xff]  }
 0x5d5   :  { %v7762_v1 = vmax.f32 %v11749_v55, 0.0  ;;  %v12349_v40 = vld [vmem:[#allocation11 + $0x104] ss:$8 sps:$4 sm:$0xff]   ;;  %v12400_v45 = vld [vmem:[#allocation14 + $0x10] sm:$0xff]  }
 0x5d6   :  { %v13053_v4 = vpack.c.bf16 %v7761_v0, %v7761_v0  ;;  %v12395_v62 = vld [vmem:[#allocation14 + $0x40] sm:$0xff]   ;;  %v12397_v63 = vld [vmem:[#allocation14 + $0x48] sm:$0xff]   ;;  %v12399_v0 = vld [vmem:[#allocation14 + $0x50] sm:$0xff]  }
 0x5d7   :  { %v7770_v58 = vpack.c.bf16 %v7762_v1, %v7762_v1  ;;  %9629 = vmatpush1.bf16.msra.mxu1 %v12269_v6  ;;  %v12396_v55 = vld [vmem:[#allocation14] sm:$0xff]   ;;  %v12398_v6 = vld [vmem:[#allocation14 + $0x8] sm:$0xff]   ;;  %v12402_v1 = vld [vmem:[#allocation14 + $0x18] sm:$0xff]  }
 0x5d8   :  { %9630 = vmatprep.subr.bf16.mxu1 %v12274_v42  ;;  %v12401_v42 = vld [vmem:[#allocation14 + $0x58] sm:$0xff]  }
 0x5d9   :  { %9484 = vmatprep.mubr.bf16.mxu0 %v7770_v58  ;;  %9648 = vmatprep.mubr.bf16.mxu1 %v7770_v58  ;;  %v12403_v58 = vld [vmem:[#allocation14 + $0x60] sm:$0xff]  }
 0x5da   :  { %9485 = vmatmul.mubr.bf16.vlgmr.msra.gmra.mrb[8].mxu0 %v13053_v4 }
 0x5db   :  { %9631 = vmatpush1.bf16.msra.mxu1 %v12272_v29  ;;  %10062 = vmatpush1.bf16.msra.mxu0 %v12299_v2  ;;  %v12404_v29 = vld [vmem:[#allocation14 + $0x20] sm:$0xff]   ;;  %v12405_v2 = vld [vmem:[#allocation14 + $0x68] sm:$0xff]  }
 0x5dc   :  { %9632 = vmatprep.subr.bf16.mxu1 %v12277_v7  ;;  %10063 = vmatprep.subr.bf16.mxu0 %v12304_v8  ;;  %v13057_v7 = vld [vmem:[#allocation10] sm:$0xf] }
 0x5dd   :  { %v8032_v8 = vrot.slane %v13057_v7, %v12970_v12 }
 0x5df   :  { %9633 = vmatpush1.bf16.msra.mxu1 %v12275_v9  ;;  %10064 = vmatpush1.bf16.msra.mxu0 %v12302_v11  ;;  %v8036_v9 = vrot.slane %v13057_v7, %v12973_v23 }
 0x5e0   :  { %9634 = vmatprep.subr.bf16.mxu1 %v12280_v46  ;;  %10065 = vmatprep.subr.bf16.mxu0 %v12307_v34 }
 0x5e3   :  { %9635 = vmatpush1.bf16.msra.mxu1 %v12278_v13  ;;  %10066 = vmatpush1.bf16.msra.mxu0 %v12305_v16 }
 0x5e4   :  { %9636 = vmatprep.subr.bf16.mxu1 %v12283_v17  ;;  %10067 = vmatprep.subr.bf16.mxu0 %v12310_v18 }
 0x5e7   :  { %9637 = vmatpush1.bf16.msra.mxu1 %v12281_v22  ;;  %10068 = vmatpush1.bf16.msra.mxu0 %v12308_v51 }
 0x5e8   :  { %9638 = vmatprep.subr.bf16.mxu1 %v12286_v24  ;;  %10069 = vmatprep.subr.bf16.mxu0 %v12313_v19  ;;  %v12347_v24 = vld [vmem:[#allocation11 + $0x100] ss:$8 sps:$4 sm:$0xff]  }
 0x5eb   :  { %9639 = vmatpush1.bf16.msra.mxu1 %v12284_v38  ;;  %10070 = vmatpush1.bf16.msra.mxu0 %v12311_v27  ;;  %v12352_v38 = vld [vmem:[#allocation11 + $0x114] ss:$8 sps:$4 sm:$0xff]   ;;  %v12350_v27 = vld [vmem:[#allocation11 + $0x110] ss:$8 sps:$4 sm:$0xff]  }
 0x5ec   :  { %9640 = vmatprep.subr.bf16.mxu1 %v12289_v30  ;;  %10071 = vmatprep.subr.bf16.mxu0 %v12316_v31  ;;  %v12355_v30 = vld [vmem:[#allocation11 + $0x124] ss:$8 sps:$4 sm:$0xff]   ;;  %v12353_v31 = vld [vmem:[#allocation11 + $0x120] ss:$8 sps:$4 sm:$0xff]  }
 0x5ef   :  { %9641 = vmatpush1.bf16.msra.mxu1 %v12287_v5  ;;  %10072 = vmatpush1.bf16.msra.mxu0 %v12314_v54  ;;  %v12358_v5 = vld [vmem:[#allocation11 + $0x134] ss:$8 sps:$4 sm:$0xff]   ;;  %v12356_v54 = vld [vmem:[#allocation11 + $0x130] ss:$8 sps:$4 sm:$0xff]  }
 0x5f0   :  { %9642 = vmatprep.subr.bf16.mxu1 %v12292_v33  ;;  %10073 = vmatprep.subr.bf16.mxu0 %v12319_v25  ;;  %v12361_v33 = vld [vmem:[#allocation11 + $0x144] ss:$8 sps:$4 sm:$0xff]   ;;  %v12359_v25 = vld [vmem:[#allocation11 + $0x140] ss:$8 sps:$4 sm:$0xff]  }
 0x5f3   :  { %9643 = vmatpush1.bf16.msra.mxu1 %v12290_v35  ;;  %10074 = vmatpush1.bf16.msra.mxu0 %v12317_v36  ;;  %v12364_v35 = vld [vmem:[#allocation11 + $0x154] ss:$8 sps:$4 sm:$0xff]   ;;  %v12362_v36 = vld [vmem:[#allocation11 + $0x150] ss:$8 sps:$4 sm:$0xff]  }
 0x5f4   :  { %9644 = vmatprep.subr.bf16.mxu1 %v12295_v37  ;;  %10075 = vmatprep.subr.bf16.mxu0 %v12322_v41  ;;  %v12367_v37 = vld [vmem:[#allocation11 + $0x164] ss:$8 sps:$4 sm:$0xff]   ;;  %v12365_v41 = vld [vmem:[#allocation11 + $0x160] ss:$8 sps:$4 sm:$0xff]  }
 0x5f7   :  { %9645 = vmatpush1.bf16.msra.mxu1 %v12293_v28  ;;  %10076 = vmatpush1.bf16.msra.mxu0 %v12320_v43  ;;  %v12370_v28 = vld [vmem:[#allocation11 + $0x174] ss:$8 sps:$4 sm:$0xff]   ;;  %v12368_v43 = vld [vmem:[#allocation11 + $0x170] ss:$8 sps:$4 sm:$0xff]  }
 0x5f8   :  { %9646 = vmatprep.subr.bf16.mxu1 %v12298_v10  ;;  %10077 = vmatprep.subr.bf16.mxu0 %v12325_v47  ;;  %v8044_v10 = vrot.slane %v13057_v7, %v1209_v26  ;;  %v12373_v47 = vld [vmem:[#allocation11 + $0x184] ss:$8 sps:$4 sm:$0xff]   ;;  %v12377_v26 = vld [vmem:[#allocation11 + $0x1a0] ss:$8 sps:$4 sm:$0xff]  }
 0x5fb   :  { %9647 = vmatpush1.bf16.msra.mxu1 %v12296_v48  ;;  %10078 = vmatpush1.bf16.msra.mxu0 %v12323_v49 }
 0x5fc   :  { %10079 = vmatprep.subr.bf16.mxu0 %v12328_v3  ;;  %11718 = vmatprep.subr.bf16.mxu1 %v12395_v62  ;;  %v8040_v62 = vrot.slane %v13057_v7, %v1205_v39  ;;  %v12410_v39 = vld [vmem:[#allocation14 + $0x38] sm:$0xff]  }
 0x5fe   :  { %9649 = vmatmul.mubr.bf16.vlgmr.msra.gmra.mrb[12].mxu1 %v13053_v4  ;;  %v12406_v4 = vld [vmem:[#allocation14 + $0x28] sm:$0xff]  }
 0x5ff   :  { %10080 = vmatpush1.bf16.msra.mxu0 %v12326_v50  ;;  %11719 = vmatpush3.bf16.msra.mxu1 %v12396_v55  ;;  %v12391_v55 = vld [vmem:[#allocation11 + $0x1e4] ss:$8 sps:$4 sm:$0xff]  }
 0x600   :  { %10081 = vmatprep.subr.bf16.mxu0 %v12331_v52  ;;  %11720 = vmatprep.subr.bf16.mxu1 %v12397_v63  ;;  %v12371_v52 = vld [vmem:[#allocation11 + $0x180] ss:$8 sps:$4 sm:$0xff]  }
 0x601   :  { %v12389_v63 = vld [vmem:[#allocation11 + $0x1e0] ss:$8 sps:$4 sm:$0xff]  }
 0x603   :  { %10082 = vmatpush1.bf16.msra.mxu0 %v12329_v53  ;;  %11721 = vmatpush3.bf16.msra.mxu1 %v12398_v6 }
 0x604   :  { %10083 = vmatprep.subr.bf16.mxu0 %v12334_v20  ;;  %11722 = vmatprep.subr.bf16.mxu1 %v12399_v0  ;;  %v12376_v20 = vld [vmem:[#allocation11 + $0x194] ss:$8 sps:$4 sm:$0xff]  }
 0x605   :  { %v12394_v0 = vld [vmem:[#allocation11 + $0x1f4] ss:$8 sps:$4 sm:$0xff]  }
 0x607   :  { %10084 = vmatpush1.bf16.msra.mxu0 %v12332_v56  ;;  %11723 = vmatpush3.bf16.msra.mxu1 %v12400_v45  ;;  %v12392_v45 = vld [vmem:[#allocation11 + $0x1f0] ss:$8 sps:$4 sm:$0xff]  }
 0x608   :  { %10085 = vmatprep.subr.bf16.mxu0 %v12337_v61  ;;  %11724 = vmatprep.subr.bf16.mxu1 %v12401_v42 }
 0x60b   :  { %10086 = vmatpush1.bf16.msra.mxu0 %v12335_v32  ;;  %11725 = vmatpush3.bf16.msra.mxu1 %v12402_v1  ;;  %v12374_v32 = vld [vmem:[#allocation11 + $0x190] ss:$8 sps:$4 sm:$0xff]  }
 0x60c   :  { %10087 = vmatprep.subr.bf16.mxu0 %v12340_v21  ;;  %11726 = vmatprep.subr.bf16.mxu1 %v12403_v58  ;;  %v12379_v21 = vld [vmem:[#allocation11 + $0x1a4] ss:$8 sps:$4 sm:$0xff]   ;;  %v12407_v58 = vld [vmem:[#allocation14 + $0x70] sm:$0xff]  }
 0x60f   :  { %10088 = vmatpush1.bf16.msra.mxu0 %v12338_v15  ;;  %11727 = vmatpush3.bf16.msra.mxu1 %v12404_v29  ;;  %v12382_v15 = vld [vmem:[#allocation11 + $0x1b4] ss:$8 sps:$4 sm:$0xff]  }
 0x610   :  { %10089 = vmatprep.subr.bf16.mxu0 %v12343_v14  ;;  %11728 = vmatprep.subr.bf16.mxu1 %v12405_v2  ;;  %v12380_v14 = vld [vmem:[#allocation11 + $0x1b0] ss:$8 sps:$4 sm:$0xff]   ;;  %v9729_v2 = vld [vmem:[#allocation13] sm:$0x3] }
 0x611   :  { %v12408_v29 = vld [vmem:[#allocation14 + $0x30] sm:$0xff]   ;;  %v9738_v7 = vrot.slane %v9729_v2, %v12973_v23  ;;  %v11716_v23 = vld [vmem:[#allocation17] ss:$0 sm:$0xff] }
 0x613   :  { %10090 = vmatpush1.bf16.msra.mxu0 %v12341_v59  ;;  %11729 = vmatpush3.bf16.msra.mxu1 %v12406_v4  ;;  %v12385_v59 = vld [vmem:[#allocation11 + $0x1c4] ss:$8 sps:$4 sm:$0xff]   ;;  %v9734_v4 = vrot.slane %v9729_v2, %v12970_v12 }
 0x614   :  { %10091 = vmatprep.subr.bf16.mxu0 %v12346_v60  ;;  %v12383_v60 = vld [vmem:[#allocation11 + $0x1c0] ss:$8 sps:$4 sm:$0xff]   ;;  %11730 = vmatprep.subr.bf16.mxu1 %v12407_v58 }
 0x617   :  { %10092 = vmatpush1.bf16.msra.mxu0 %v12344_v57  ;;  %v12388_v57 = vld [vmem:[#allocation11 + $0x1d4] ss:$8 sps:$4 sm:$0xff]   ;;  %11731 = vmatpush3.bf16.msra.mxu1 %v12408_v29 }
 0x618   :  { %10102 = vmatprep.subr.bf16.mxu0 %v12349_v40  ;;  %v12386_v40 = vld [vmem:[#allocation11 + $0x1d0] ss:$8 sps:$4 sm:$0xff]   ;;  %11732 = vmatprep.subr.bf16.mxu1 %v12409_v44 }
 0x61b   :  { %11733 = vmatpush3.bf16.msra.mxu1 %v12410_v39 }
 0x6ad   :  { %v9486_v11 = vpop.f32.mrb[8].mxu0 }
 0x6ae   :  { %v11750_v46 = vadd.f32 %v9486_v11, %v8032_v8  ;;  %v9488_v34 = vpop.f32.mrb[9].mxu0 }
 0x6af   :  { %v11751_v13 = vadd.f32 %v9488_v34, %v8036_v9  ;;  %v9490_v16 = vpop.f32.mrb[10].mxu0 }
 0x6b0   :  { %v9657_v17 = vmax.f32 %v11750_v46, 0.0  ;;  %v9491_v18 = vpop.f32.mrb[11].mxu0 }
 0x6b1   :  { %v9658_v22 = vmax.f32 %v11751_v13, 0.0 }
 0x6b2   :  { %v9661_v19 = vpack.c.bf16 %v9657_v17, %v9657_v17 }
 0x6b3   :  { %v9662_v51 = vpack.c.bf16 %v9658_v22, %v9658_v22 }
 0x6b5   :  { %10093 = vmatprep.mubr.bf16.mxu0 %v9662_v51 }
 0x6b6   :  { %10094 = vmatmul.mubr.bf16.vlgmr.msra.gmra.mrb[12].mxu0 %v9661_v19 }
 0x6b7   :  { %10103 = vmatpush1.bf16.msra.mxu0 %v12347_v24  ;;  %v11699_v24 = vld [vmem:[#allocation16] ss:$0 sm:$0xff] }
 0x6b8   :  { %10104 = vmatprep.subr.bf16.mxu0 %v12352_v38 }
 0x6bb   :  { %10105 = vmatpush1.bf16.msra.mxu0 %v12350_v27 }
 0x6bc   :  { %10106 = vmatprep.subr.bf16.mxu0 %v12355_v30 }
 0x6bf   :  { %10107 = vmatpush1.bf16.msra.mxu0 %v12353_v31 }
 0x6c0   :  { %10108 = vmatprep.subr.bf16.mxu0 %v12358_v5 }
 0x6c3   :  { %10109 = vmatpush1.bf16.msra.mxu0 %v12356_v54 }
 0x6c4   :  { %10110 = vmatprep.subr.bf16.mxu0 %v12361_v33  ;;  %v11717_v33 = vld [vmem:[#allocation2] ss:$0 sm:$0xff] }
 0x6c7   :  { %10111 = vmatpush1.bf16.msra.mxu0 %v12359_v25 }
 0x6c8   :  { %10112 = vmatprep.subr.bf16.mxu0 %v12364_v35 }
 0x6cb   :  { %10113 = vmatpush1.bf16.msra.mxu0 %v12362_v36 }
 0x6cc   :  { %10114 = vmatprep.subr.bf16.mxu0 %v12367_v37 }
 0x6cf   :  { %10115 = vmatpush1.bf16.msra.mxu0 %v12365_v41 }
 0x6d0   :  { %10116 = vmatprep.subr.bf16.mxu0 %v12370_v28 }
 0x6d1   :  { %v9650_v48 = vpop.f32.mrb[12].mxu1 }
 0x6d2   :  { %v9652_v49 = vpop.f32.mrb[13].mxu1  ;;  %v11752_v6 = vadd.f32 %v9650_v48, %v8040_v62 }
 0x6d3   :  { %v11753_v3 = vadd.f32 %v9652_v49, %v8044_v10  ;;  %10117 = vmatpush1.bf16.msra.mxu0 %v12368_v43  ;;  %v9654_v50 = vpop.f32.mrb[14].mxu1 }
 0x6d4   :  { %v9655_v53 = vpop.f32.mrb[15].mxu1  ;;  %10118 = vmatprep.subr.bf16.mxu0 %v12373_v47  ;;  %v9659_v42 = vmax.f32 %v11752_v6, 0.0 }
 0x6d5   :  { %v9660_v56 = vmax.f32 %v11753_v3, 0.0 }
 0x6d6   :  { %v9663_v1 = vpack.c.bf16 %v9659_v42, %v9659_v42 }
 0x6d7   :  { %v9664_v61 = vpack.c.bf16 %v9660_v56, %v9660_v56  ;;  %10119 = vmatpush1.bf16.msra.mxu0 %v12371_v52 }
 0x6d8   :  { %10120 = vmatprep.subr.bf16.mxu0 %v12376_v20 }
 0x6d9   :  { %10134 = vmatprep.mubr.bf16.mxu0 %v9664_v61 }
 0x6db   :  { %10121 = vmatpush1.bf16.msra.mxu0 %v12374_v32 }
 0x6dc   :  { %10122 = vmatprep.subr.bf16.mxu0 %v12379_v21 }
 0x6df   :  { %10123 = vmatpush1.bf16.msra.mxu0 %v12377_v26 }
 0x6e0   :  { %10124 = vmatprep.subr.bf16.mxu0 %v12382_v15 }
 0x6e3   :  { %10125 = vmatpush1.bf16.msra.mxu0 %v12380_v14 }
 0x6e4   :  { %10126 = vmatprep.subr.bf16.mxu0 %v12385_v59 }
 0x6e7   :  { %10127 = vmatpush1.bf16.msra.mxu0 %v12383_v60 }
 0x6e8   :  { %10128 = vmatprep.subr.bf16.mxu0 %v12388_v57 }
 0x6eb   :  { %10129 = vmatpush1.bf16.msra.mxu0 %v12386_v40 }
 0x6ec   :  { %10130 = vmatprep.subr.bf16.mxu0 %v12391_v55 }
 0x6ef   :  { %10131 = vmatpush1.bf16.msra.mxu0 %v12389_v63 }
 0x6f0   :  { %10132 = vmatprep.subr.bf16.mxu0 %v12394_v0 }
 0x6f3   :  { %10133 = vmatpush1.bf16.msra.mxu0 %v12392_v45 }
 0x6f6   :  { %10135 = vmatmul.mubr.bf16.vlgmr.msra.gmra.mrb[12].mxu0 %v9663_v1 }
 0x7c9   :  { %v10136_v8 = vpop.f32.mrb[12].mxu0 }
 0x7ca   :  { %v11754_v9 = vadd.f32 %v10136_v8, %v9734_v4  ;;  %v10138_v11 = vpop.f32.mrb[13].mxu0 }
 0x7cb   :  { %v11755_v46 = vadd.f32 %v10138_v11, %v9738_v7  ;;  %v10140_v34 = vpop.f32.mrb[14].mxu0 }
 0x7cc   :  { %v10143_v13 = vmax.f32 %v11754_v9, 0.0  ;;  %v10141_v16 = vpop.f32.mrb[15].mxu0 }
 0x7cd   :  { %v10144_v17 = vmax.f32 %v11755_v46, 0.0 }
 0x7ce   :  { %v10145_v22 = vpack.c.bf16 %v10143_v13, %v10143_v13 }
 0x7cf   :  { %v10146_v18 = vpack.c.bf16 %v10144_v17, %v10144_v17 }
 0x7d1   :  { %10314 = vmatprep.mubr.bf16.mxu1 %v10146_v18 }
 0x7d2   :  { %10315 = vmatmul.mubr.bf16.vlgmr.msra.gmra.mrb[16].mxu1 %v10145_v22 }
 0x8a5   :  { %v11734_v51 = vpop.f32.mrb[16].mxu1 }
 0x8a6   :  { %v11735_v19 = vpop.f32.mrb[17].mxu1 }
 0x8a7   :  { %v11736_v38 = vadd.f32 %v11735_v19, %v11734_v51  ;;  %v11737_v27 = vpop.f32.mrb[18].mxu1 }
 0x8a8   :  { %v11738_v12 = vpop.f32.mrb[19].mxu1 }
 0x8a9   :  { %v10317_v30 = vadd.f32 %v11736_v38, %v11699_v24 }
 0x8ab   :  { %v10322_v31 = vmax.f32 %v10317_v30, 0.0 }
 0x8ad   :  { %v10330_v5 = vmul.f32 %v11716_v23, %v10322_v31 }
 0x8af   :  { %v10332_v54 = vsel %vm10331_vm0, %v10330_v5, 0.0 }
 0x8b0   :  { %10333 = vadd.xlane.f32.xlu0 %v10332_v54 }
 0x93d   :  { %v10334_v25 = vpop.xlane.xlu0 %10333 }
 0x93e   :  { %v10342_v35 = vadd.f32 %v11717_v33, %v10334_v25 }
 0x940   :  { %10344 = vst.msk [vmem:[%s13085_s11] sm:$0xf] %vm10343_vm1, %v10342_v35 }
 0x941   :  { %10349 = vsyncpa [#allocation4], 1 }
 0x942   :  { %10350 = vsyncpa [#allocation6], 1 }
 0x943   :  { %10351 = vsyncpa [#allocation9], 1 }
 0x944   :  { %10352 = vsyncpa [#allocation12], 1 }
 0x945   :  { %10353 = vsyncpa [#allocation15], 1 }
 0x946   :  { %10354 = vsyncpa [#allocation18], 1 }

</bundles_post_ra>
